<compile_context>
chip_gen: v6e
topology: v6e:2x2x1
jax: 0.10.0
libtpu: 0.0.40
codegen_flags: <defaults>
</compile_context>

<pallas_src>
import functools

import numpy as np
import jax
import jax.numpy as jnp
from jax.experimental import pallas as pl
from jax.experimental.pallas import tpu as pltpu


def _round_up(n, m):
    return (n + m - 1) // m * m


def _lstm_ae_kernel(x_ref,                       # (S, BB, Dp)
                    we_ih0, we_hh0, be0,         # enc L0: (Dp,4Hp),(Hp,4Hp),(1,4Hp)
                    we_ih1, we_hh1, be1,         # enc L1: (Hp,4Hp),(Hp,4Hp),(1,4Hp)
                    wd_hh0, bd0,                 # dec L0: (Hp,4Hp),(1,4Hp)  (input zeros)
                    wd_ih1, wd_hh1, bd1,         # dec L1: (Hp,4Hp),(Hp,4Hp),(1,4Hp)
                    gamma, beta,                 # layernorm: (1,Hp),(1,Hp) zero-padded
                    w_out, b_out,                # output:    (Hp,Dp),(1,Dp)
                    out_ref,                     # (S, BB, Dp)
                    proj_ref,                    # scratch (S*BB, 4Hp)
                    hseq_ref,                    # scratch (S*BB, Hp)
                    *, h_true):
    S, BB, Dp = x_ref.shape
    Hp = we_hh0.shape[0]
    G = 4 * Hp
    f32 = jnp.float32

    # Hoist weight / bias loads out of the time loops.
    wih0 = we_ih0[...]; whh0 = we_hh0[...]; b0 = be0[...]
    wih1 = we_ih1[...]; whh1 = we_hh1[...]; b1 = be1[...]
    dwhh0 = wd_hh0[...]; db0 = bd0[...]
    dwih1 = wd_ih1[...]; dwhh1 = wd_hh1[...]; db1 = bd1[...]
    gam = gamma[...]; bet = beta[...]
    wo = w_out[...]; bo = b_out[...]

    zeros_h = jnp.zeros((BB, Hp), f32)

    def lstm_gates(g, c):
        # PyTorch gate order i, f, g, o; each slice is a full 128-lane block.
        i = jax.nn.sigmoid(g[:, 0 * Hp:1 * Hp])
        f = jax.nn.sigmoid(g[:, 1 * Hp:2 * Hp])
        u = jnp.tanh(g[:, 2 * Hp:3 * Hp])
        o = jax.nn.sigmoid(g[:, 3 * Hp:4 * Hp])
        c_new = f * c + i * u
        return o * jnp.tanh(c_new), c_new

    # ---------------- encoder layer 0 ----------------------------------------
    # One big MXU matmul for all timesteps' input projections (+ bias).
    x2 = x_ref[...].reshape(S * BB, Dp)
    proj_ref[...] = jnp.dot(x2, wih0, preferred_element_type=f32) + b0

    h, c = zeros_h, zeros_h
    for t in range(S):                        # static S -> fully unrolled
        g = proj_ref[t * BB:(t + 1) * BB, :] + jnp.dot(
            h, whh0, preferred_element_type=f32)
        h, c = lstm_gates(g, c)
        hseq_ref[t * BB:(t + 1) * BB, :] = h
    h0e, c0e = h, c

    # ---------------- encoder layer 1 ----------------------------------------
    proj_ref[...] = jnp.dot(hseq_ref[...], wih1, preferred_element_type=f32) + b1

    h, c = zeros_h, zeros_h
    for t in range(S):
        g = proj_ref[t * BB:(t + 1) * BB, :] + jnp.dot(
            h, whh1, preferred_element_type=f32)
        h, c = lstm_gates(g, c)
    h1e, c1e = h, c

    # ---------------- decoder layer 0 (zero inputs) ---------------------------
    # Input projection of an all-zero input is just the bias: hoist broadcast.
    db0_b = jnp.broadcast_to(db0, (BB, G))
    h, c = h0e, c0e
    for t in range(S):
        g = db0_b + jnp.dot(h, dwhh0, preferred_element_type=f32)
        h, c = lstm_gates(g, c)
        hseq_ref[t * BB:(t + 1) * BB, :] = h

    # ---------------- decoder layer 1 ----------------------------------------
    proj_ref[...] = jnp.dot(hseq_ref[...], dwih1, preferred_element_type=f32) + db1

    h, c = h1e, c1e
    for t in range(S):
        g = proj_ref[t * BB:(t + 1) * BB, :] + jnp.dot(
            h, dwhh1, preferred_element_type=f32)
        h, c = lstm_gates(g, c)
        hseq_ref[t * BB:(t + 1) * BB, :] = h

    # ---------------- batched LayerNorm + output Linear -----------------------
    # Padded hidden lanes are exactly zero, so use E[x^2]-mu^2 with 1/H_true.
    hd1 = hseq_ref[...]                                   # (S*BB, Hp)
    inv_h = 1.0 / float(h_true)
    mu = jnp.sum(hd1, axis=-1, keepdims=True) * inv_h
    ex2 = jnp.sum(hd1 * hd1, axis=-1, keepdims=True) * inv_h
    var = ex2 - mu * mu
    ln = (hd1 - mu) * jax.lax.rsqrt(var + 1e-5) * gam + bet   # pads -> 0 (gam=0)
    y = jnp.dot(ln, wo, preferred_element_type=f32) + bo       # (S*BB, Dp)
    out_ref[...] = y.reshape(S, BB, Dp)                        # single bulk store


# --------------------------------------------------------------------------- #
# Parameter preparation (done once, outside the per-call path)
# --------------------------------------------------------------------------- #
def _pad_gates_w(w, in_pad, H, Hp):
    """PyTorch (4H, in_dim) weight -> (in_pad, 4*Hp), gate-blocked, zero-padded."""
    in_dim = w.shape[1]
    wt = w.T.astype(jnp.float32)                          # (in_dim, 4H)
    out = jnp.zeros((in_pad, 4 * Hp), jnp.float32)
    for k in range(4):
        out = out.at[:in_dim, k * Hp:k * Hp + H].set(wt[:, k * H:(k + 1) * H])
    return out


def _pad_gates_b(b_ih, b_hh, H, Hp):
    b = (b_ih + b_hh).astype(jnp.float32)
    out = jnp.zeros((1, 4 * Hp), jnp.float32)
    for k in range(4):
        out = out.at[0, k * Hp:k * Hp + H].set(b[k * H:(k + 1) * H])
    return out


def prepare_params(p, input_dim, hidden_dim):
    """Transpose, fuse biases, and zero-pad parameters to lane-dense layout."""
    H, Din = hidden_dim, input_dim
    Hp = _round_up(H, 128)
    Dp = _round_up(Din, 128)
    kp = {
        "we_ih0": _pad_gates_w(p["enc_w_ih_l0"], Dp, H, Hp),
        "we_hh0": _pad_gates_w(p["enc_w_hh_l0"], Hp, H, Hp),
        "be0": _pad_gates_b(p["enc_b_ih_l0"], p["enc_b_hh_l0"], H, Hp),
        "we_ih1": _pad_gates_w(p["enc_w_ih_l1"], Hp, H, Hp),
        "we_hh1": _pad_gates_w(p["enc_w_hh_l1"], Hp, H, Hp),
        "be1": _pad_gates_b(p["enc_b_ih_l1"], p["enc_b_hh_l1"], H, Hp),
        # decoder input is all zeros -> dec_w_ih_l0 contributes exactly zero
        "wd_hh0": _pad_gates_w(p["dec_w_hh_l0"], Hp, H, Hp),
        "bd0": _pad_gates_b(p["dec_b_ih_l0"], p["dec_b_hh_l0"], H, Hp),
        "wd_ih1": _pad_gates_w(p["dec_w_ih_l1"], Hp, H, Hp),
        "wd_hh1": _pad_gates_w(p["dec_w_hh_l1"], Hp, H, Hp),
        "bd1": _pad_gates_b(p["dec_b_ih_l1"], p["dec_b_hh_l1"], H, Hp),
        "gamma": jnp.zeros((1, Hp), jnp.float32).at[0, :H].set(p["ln_gamma"]),
        "beta": jnp.zeros((1, Hp), jnp.float32).at[0, :H].set(p["ln_beta"]),
        "w_out": jnp.zeros((Hp, Dp), jnp.float32).at[:H, :Din].set(p["out_w"].T),
        "b_out": jnp.zeros((1, Dp), jnp.float32).at[0, :Din].set(p["out_b"]),
    }
    return kp


def pallas_forward(x, kp, *, hidden_dim, block_b=8):
    """x: (B, S, D_in) float32 -> (B, S, D_in) float32."""
    B, S, Din = x.shape
    Hp = kp["we_hh0"].shape[0]
    Dp = kp["w_out"].shape[1]
    Bp = _round_up(B, block_b)

    # time-major, batch/feature padded: (S, Bp, Dp)
    xp = jnp.zeros((S, Bp, Dp), jnp.float32)
    xp = xp.at[:, :B, :Din].set(jnp.transpose(x, (1, 0, 2)))

    weights = (kp["we_ih0"], kp["we_hh0"], kp["be0"],
               kp["we_ih1"], kp["we_hh1"], kp["be1"],
               kp["wd_hh0"], kp["bd0"],
               kp["wd_ih1"], kp["wd_hh1"], kp["bd1"],
               kp["gamma"], kp["beta"], kp["w_out"], kp["b_out"])
    w_specs = [pl.BlockSpec(w.shape, lambda i: (0, 0)) for w in weights]

    kernel = functools.partial(_lstm_ae_kernel, h_true=hidden_dim)
    grid = (Bp // block_b,)

    out_p = pl.pallas_call(
        kernel,
        out_shape=jax.ShapeDtypeStruct((S, Bp, Dp), jnp.float32),
        grid_spec=pltpu.PrefetchScalarGridSpec(
            num_scalar_prefetch=0,
            grid=grid,
            in_specs=[pl.BlockSpec((S, block_b, Dp), lambda i: (0, i, 0))] + w_specs,
            out_specs=pl.BlockSpec((S, block_b, Dp), lambda i: (0, i, 0)),
            scratch_shapes=[pltpu.VMEM((S * block_b, 4 * Hp), jnp.float32),
                            pltpu.VMEM((S * block_b, Hp), jnp.float32)]),
        compiler_params=pltpu.CompilerParams(
            dimension_semantics=("parallel",)),   # batch blocks -> 2 TCs on v7x
    )(xp, *weights)

    return jnp.transpose(out_p[:, :B, :Din], (1, 0, 2))


# --------------------------------------------------------------------------- #
# Init + pure-JAX reference (PyTorch eval-mode semantics)
# --------------------------------------------------------------------------- #
def init_params(key, input_dim, hidden_dim):
    bound = 1.0 / np.sqrt(hidden_dim)
    ks = jax.random.split(key, 20)

    def u(k, shape):
        return jax.random.uniform(k, shape, jnp.float32, -bound, bound)

    H4 = 4 * hidden_dim
    return {
        "enc_w_ih_l0": u(ks[0], (H4, input_dim)),
        "enc_w_hh_l0": u(ks[1], (H4, hidden_dim)),
        "enc_b_ih_l0": u(ks[2], (H4,)),
        "enc_b_hh_l0": u(ks[3], (H4,)),
        "enc_w_ih_l1": u(ks[4], (H4, hidden_dim)),
        "enc_w_hh_l1": u(ks[5], (H4, hidden_dim)),
        "enc_b_ih_l1": u(ks[6], (H4,)),
        "enc_b_hh_l1": u(ks[7], (H4,)),
        "dec_w_ih_l0": u(ks[8], (H4, hidden_dim)),
        "dec_w_hh_l0": u(ks[9], (H4, hidden_dim)),
        "dec_b_ih_l0": u(ks[10], (H4,)),
        "dec_b_hh_l0": u(ks[11], (H4,)),
        "dec_w_ih_l1": u(ks[12], (H4, hidden_dim)),
        "dec_w_hh_l1": u(ks[13], (H4, hidden_dim)),
        "dec_b_ih_l1": u(ks[14], (H4,)),
        "dec_b_hh_l1": u(ks[15], (H4,)),
        "ln_gamma": jnp.ones((hidden_dim,), jnp.float32),
        "ln_beta": jnp.zeros((hidden_dim,), jnp.float32),
        "out_w": u(ks[16], (input_dim, hidden_dim)),
        "out_b": u(ks[17], (input_dim,)),
    }


def reference_forward(x, p):
    B, S, Din = x.shape
    H = p["enc_w_hh_l0"].shape[1]

    def run_layer(inp, w_ih, w_hh, b_ih, b_hh, h0, c0):
        def cell(carry, xt):
            h, c = carry
            gates = xt @ w_ih.T + h @ w_hh.T + b_ih + b_hh
            i = jax.nn.sigmoid(gates[:, :H])
            f = jax.nn.sigmoid(gates[:, H:2 * H])
            g = jnp.tanh(gates[:, 2 * H:3 * H])
            o = jax.nn.sigmoid(gates[:, 3 * H:])
            c = f * c + i * g
            h = o * jnp.tanh(c)
            return (h, c), h
        (hT, cT), ys = jax.lax.scan(cell, (h0, c0), jnp.swapaxes(inp, 0, 1))
        return jnp.swapaxes(ys, 0, 1), hT, cT

    z = jnp.zeros((B, H), jnp.float32)
    enc0_out, h0e, c0e = run_layer(x, p["enc_w_ih_l0"], p["enc_w_hh_l0"],
                                   p["enc_b_ih_l0"], p["enc_b_hh_l0"], z, z)
    _, h1e, c1e = run_layer(enc0_out, p["enc_w_ih_l1"], p["enc_w_hh_l1"],
                            p["enc_b_ih_l1"], p["enc_b_hh_l1"], z, z)
    dec_in = jnp.zeros((B, S, H), jnp.float32)
    dec0_out, _, _ = run_layer(dec_in, p["dec_w_ih_l0"], p["dec_w_hh_l0"],
                               p["dec_b_ih_l0"], p["dec_b_hh_l0"], h0e, c0e)
    dec1_out, _, _ = run_layer(dec0_out, p["dec_w_ih_l1"], p["dec_w_hh_l1"],
                               p["dec_b_ih_l1"], p["dec_b_hh_l1"], h1e, c1e)
    mu = dec1_out.mean(-1, keepdims=True)
    var = ((dec1_out - mu) ** 2).mean(-1, keepdims=True)
    ln = (dec1_out - mu) / jnp.sqrt(var + 1e-5) * p["ln_gamma"] + p["ln_beta"]
    return ln @ p["out_w"].T + p["out_b"]


if __name__ == "__main__":
    # small shapes consistent with the module (original: S=30, D=60, H=64)
    batch, seq_len, input_dim, hidden_dim = 2, 8, 16, 32

    key = jax.random.PRNGKey(0)
    kx, kparam = jax.random.split(key)
    x = jax.random.normal(kx, (batch, seq_len, input_dim), jnp.float32)
    params = init_params(kparam, input_dim, hidden_dim)

    kernel_params = prepare_params(params, input_dim, hidden_dim)  # one-time prep
    fwd = jax.jit(functools.partial(pallas_forward, hidden_dim=hidden_dim))

    out = jax.block_until_ready(fwd(x, kernel_params))
    assert out.shape == (batch, seq_len, input_dim)

    ref = jax.block_until_ready(reference_forward(x, params))
    np.testing.assert_allclose(np.asarray(out), np.asarray(ref),
                               atol=2e-3, rtol=2e-3)

    print("KERNEL_OK")
</pallas_src>

<mosaic_0001>
module attributes {stable_mosaic.version = 11 : i64} {
  func.func @_lstm_ae_kernel(%arg0: i32, %arg1: memref<8x8x128xf32, #tpu.memory_space<vmem>>, %arg2: memref<128x512xf32, #tpu.memory_space<vmem>>, %arg3: memref<128x512xf32, #tpu.memory_space<vmem>>, %arg4: memref<1x512xf32, #tpu.memory_space<vmem>>, %arg5: memref<128x512xf32, #tpu.memory_space<vmem>>, %arg6: memref<128x512xf32, #tpu.memory_space<vmem>>, %arg7: memref<1x512xf32, #tpu.memory_space<vmem>>, %arg8: memref<128x512xf32, #tpu.memory_space<vmem>>, %arg9: memref<1x512xf32, #tpu.memory_space<vmem>>, %arg10: memref<128x512xf32, #tpu.memory_space<vmem>>, %arg11: memref<128x512xf32, #tpu.memory_space<vmem>>, %arg12: memref<1x512xf32, #tpu.memory_space<vmem>>, %arg13: memref<1x128xf32, #tpu.memory_space<vmem>>, %arg14: memref<1x128xf32, #tpu.memory_space<vmem>>, %arg15: memref<128x128xf32, #tpu.memory_space<vmem>>, %arg16: memref<1x128xf32, #tpu.memory_space<vmem>>, %arg17: memref<8x8x128xf32, #tpu.memory_space<vmem>>, %arg18: memref<64x512xf32, #tpu.memory_space<vmem>>, %arg19: memref<64x128xf32, #tpu.memory_space<vmem>>) attributes {dimension_semantics = [#tpu.dimension_semantics<parallel>], iteration_bounds = array<i64: 1>, scalar_prefetch = 0 : i64, scratch_operands = 2 : i64, tpu.core_type = #tpu.core_type<tc>, window_params = [{transform_indices = @transform_0, window_bounds = array<i64: 8, 8, 128>}, {pipeline_mode = #tpu.pipeline_mode<synchronous>, transform_indices = @transform_1, window_bounds = array<i64: 128, 512>}, {pipeline_mode = #tpu.pipeline_mode<synchronous>, transform_indices = @transform_2, window_bounds = array<i64: 128, 512>}, {pipeline_mode = #tpu.pipeline_mode<synchronous>, transform_indices = @transform_3, window_bounds = array<i64: 1, 512>}, {pipeline_mode = #tpu.pipeline_mode<synchronous>, transform_indices = @transform_4, window_bounds = array<i64: 128, 512>}, {pipeline_mode = #tpu.pipeline_mode<synchronous>, transform_indices = @transform_5, window_bounds = array<i64: 128, 512>}, {pipeline_mode = #tpu.pipeline_mode<synchronous>, transform_indices = @transform_6, window_bounds = array<i64: 1, 512>}, {pipeline_mode = #tpu.pipeline_mode<synchronous>, transform_indices = @transform_7, window_bounds = array<i64: 128, 512>}, {pipeline_mode = #tpu.pipeline_mode<synchronous>, transform_indices = @transform_8, window_bounds = array<i64: 1, 512>}, {pipeline_mode = #tpu.pipeline_mode<synchronous>, transform_indices = @transform_9, window_bounds = array<i64: 128, 512>}, {pipeline_mode = #tpu.pipeline_mode<synchronous>, transform_indices = @transform_10, window_bounds = array<i64: 128, 512>}, {pipeline_mode = #tpu.pipeline_mode<synchronous>, transform_indices = @transform_11, window_bounds = array<i64: 1, 512>}, {pipeline_mode = #tpu.pipeline_mode<synchronous>, transform_indices = @transform_12, window_bounds = array<i64: 1, 128>}, {pipeline_mode = #tpu.pipeline_mode<synchronous>, transform_indices = @transform_13, window_bounds = array<i64: 1, 128>}, {pipeline_mode = #tpu.pipeline_mode<synchronous>, transform_indices = @transform_14, window_bounds = array<i64: 128, 128>}, {pipeline_mode = #tpu.pipeline_mode<synchronous>, transform_indices = @transform_15, window_bounds = array<i64: 1, 128>}, {transform_indices = @transform_16, window_bounds = array<i64: 8, 8, 128>}]} {
    %c0 = arith.constant 0 : index
    %c0_0 = arith.constant 0 : index
    %0 = vector.load %arg2[%c0, %c0_0] : memref<128x512xf32, #tpu.memory_space<vmem>>, vector<128x512xf32>
    %c0_1 = arith.constant 0 : index
    %c0_2 = arith.constant 0 : index
    %1 = vector.load %arg3[%c0_1, %c0_2] : memref<128x512xf32, #tpu.memory_space<vmem>>, vector<128x512xf32>
    %c0_3 = arith.constant 0 : index
    %c0_4 = arith.constant 0 : index
    %2 = vector.load %arg4[%c0_3, %c0_4] : memref<1x512xf32, #tpu.memory_space<vmem>>, vector<1x512xf32>
    %c0_5 = arith.constant 0 : index
    %c0_6 = arith.constant 0 : index
    %3 = vector.load %arg5[%c0_5, %c0_6] : memref<128x512xf32, #tpu.memory_space<vmem>>, vector<128x512xf32>
    %c0_7 = arith.constant 0 : index
    %c0_8 = arith.constant 0 : index
    %4 = vector.load %arg6[%c0_7, %c0_8] : memref<128x512xf32, #tpu.memory_space<vmem>>, vector<128x512xf32>
    %c0_9 = arith.constant 0 : index
    %c0_10 = arith.constant 0 : index
    %5 = vector.load %arg7[%c0_9, %c0_10] : memref<1x512xf32, #tpu.memory_space<vmem>>, vector<1x512xf32>
    %c0_11 = arith.constant 0 : index
    %c0_12 = arith.constant 0 : index
    %6 = vector.load %arg8[%c0_11, %c0_12] : memref<128x512xf32, #tpu.memory_space<vmem>>, vector<128x512xf32>
    %c0_13 = arith.constant 0 : index
    %c0_14 = arith.constant 0 : index
    %7 = vector.load %arg9[%c0_13, %c0_14] : memref<1x512xf32, #tpu.memory_space<vmem>>, vector<1x512xf32>
    %c0_15 = arith.constant 0 : index
    %c0_16 = arith.constant 0 : index
    %8 = vector.load %arg10[%c0_15, %c0_16] : memref<128x512xf32, #tpu.memory_space<vmem>>, vector<128x512xf32>
    %c0_17 = arith.constant 0 : index
    %c0_18 = arith.constant 0 : index
    %9 = vector.load %arg11[%c0_17, %c0_18] : memref<128x512xf32, #tpu.memory_space<vmem>>, vector<128x512xf32>
    %c0_19 = arith.constant 0 : index
    %c0_20 = arith.constant 0 : index
    %10 = vector.load %arg12[%c0_19, %c0_20] : memref<1x512xf32, #tpu.memory_space<vmem>>, vector<1x512xf32>
    %c0_21 = arith.constant 0 : index
    %c0_22 = arith.constant 0 : index
    %11 = vector.load %arg13[%c0_21, %c0_22] : memref<1x128xf32, #tpu.memory_space<vmem>>, vector<1x128xf32>
    %c0_23 = arith.constant 0 : index
    %c0_24 = arith.constant 0 : index
    %12 = vector.load %arg14[%c0_23, %c0_24] : memref<1x128xf32, #tpu.memory_space<vmem>>, vector<1x128xf32>
    %c0_25 = arith.constant 0 : index
    %c0_26 = arith.constant 0 : index
    %13 = vector.load %arg15[%c0_25, %c0_26] : memref<128x128xf32, #tpu.memory_space<vmem>>, vector<128x128xf32>
    %c0_27 = arith.constant 0 : index
    %c0_28 = arith.constant 0 : index
    %14 = vector.load %arg16[%c0_27, %c0_28] : memref<1x128xf32, #tpu.memory_space<vmem>>, vector<1x128xf32>
    %cst = arith.constant 0.000000e+00 : f32
    %15 = vector.broadcast %cst : f32 to vector<8x128xf32>
    %c0_29 = arith.constant 0 : index
    %c0_30 = arith.constant 0 : index
    %c0_31 = arith.constant 0 : index
    %16 = vector.load %arg1[%c0_29, %c0_30, %c0_31] : memref<8x8x128xf32, #tpu.memory_space<vmem>>, vector<8x8x128xf32>
    %17 = vector.shape_cast %16 : vector<8x8x128xf32> to vector<64x128xf32>
    %cst_32 = arith.constant dense<0.000000e+00> : vector<64x512xf32>
    %18 = tpu.matmul %17, %0, %cst_32 {dimension_numbers = #tpu.dot_dimension_numbers<[1], [0], [0], [1], [0, 0, 1, 1], [], []>} : vector<64x128xf32>, vector<128x512xf32>, vector<64x512xf32> -> vector<64x512xf32>
    %19 = vector.broadcast %2 : vector<1x512xf32> to vector<64x512xf32>
    %20 = arith.addf %18, %19 : vector<64x512xf32>
    %c0_33 = arith.constant 0 : index
    %c0_34 = arith.constant 0 : index
    %21 = vector.load %arg18[%c0_33, %c0_34] : memref<64x512xf32, #tpu.memory_space<vmem>>, vector<64x512xf32>
    tpu.vector_store %arg18[%c0_33, %c0_34], %20 {strides = array<i32>} : memref<64x512xf32, #tpu.memory_space<vmem>>, vector<64x512xf32>,
    %c0_35 = arith.constant 0 : index
    %c0_36 = arith.constant 0 : index
    %22 = vector.load %arg18[%c0_35, %c0_36] : memref<64x512xf32, #tpu.memory_space<vmem>>, vector<8x512xf32>
    %cst_37 = arith.constant dense<0.000000e+00> : vector<8x512xf32>
    %23 = tpu.matmul %15, %1, %cst_37 {dimension_numbers = #tpu.dot_dimension_numbers<[1], [0], [0], [1], [0, 0, 1, 1], [], []>} : vector<8x128xf32>, vector<128x512xf32>, vector<8x512xf32> -> vector<8x512xf32>
    %24 = arith.addf %22, %23 : vector<8x512xf32>
    %25 = vector.extract_strided_slice %24 {offsets = [0, 0], sizes = [8, 128], strides = [1, 1]} : vector<8x512xf32> to vector<8x128xf32>
    %26 = arith.negf %25 : vector<8x128xf32>
    %27 = math.exp %26 : vector<8x128xf32>
    %cst_38 = arith.constant 1.000000e+00 : f32
    %28 = vector.broadcast %cst_38 : f32 to vector<8x128xf32>
    %29 = arith.addf %28, %27 : vector<8x128xf32>
    %30 = arith.divf %28, %29 : vector<8x128xf32>
    %31 = vector.extract_strided_slice %24 {offsets = [0, 128], sizes = [8, 128], strides = [1, 1]} : vector<8x512xf32> to vector<8x128xf32>
    %32 = arith.negf %31 : vector<8x128xf32>
    %33 = math.exp %32 : vector<8x128xf32>
    %cst_39 = arith.constant 1.000000e+00 : f32
    %34 = vector.broadcast %cst_39 : f32 to vector<8x128xf32>
    %35 = arith.addf %34, %33 : vector<8x128xf32>
    %36 = arith.divf %34, %35 : vector<8x128xf32>
    %37 = vector.extract_strided_slice %24 {offsets = [0, 256], sizes = [8, 128], strides = [1, 1]} : vector<8x512xf32> to vector<8x128xf32>
    %38 = math.tanh %37 : vector<8x128xf32>
    %39 = vector.extract_strided_slice %24 {offsets = [0, 384], sizes = [8, 128], strides = [1, 1]} : vector<8x512xf32> to vector<8x128xf32>
    %40 = arith.negf %39 : vector<8x128xf32>
    %41 = math.exp %40 : vector<8x128xf32>
    %cst_40 = arith.constant 1.000000e+00 : f32
    %42 = vector.broadcast %cst_40 : f32 to vector<8x128xf32>
    %43 = arith.addf %42, %41 : vector<8x128xf32>
    %44 = arith.divf %42, %43 : vector<8x128xf32>
    %45 = arith.mulf %36, %15 : vector<8x128xf32>
    %46 = arith.mulf %30, %38 : vector<8x128xf32>
    %47 = arith.addf %45, %46 : vector<8x128xf32>
    %48 = math.tanh %47 : vector<8x128xf32>
    %49 = arith.mulf %44, %48 : vector<8x128xf32>
    %c0_41 = arith.constant 0 : index
    %c0_42 = arith.constant 0 : index
    %50 = vector.load %arg19[%c0_41, %c0_42] : memref<64x128xf32, #tpu.memory_space<vmem>>, vector<8x128xf32>
    tpu.vector_store %arg19[%c0_41, %c0_42], %49 {strides = array<i32>} : memref<64x128xf32, #tpu.memory_space<vmem>>, vector<8x128xf32>,
    %c8 = arith.constant 8 : index
    %c0_43 = arith.constant 0 : index
    %51 = vector.load %arg18[%c8, %c0_43] : memref<64x512xf32, #tpu.memory_space<vmem>>, vector<8x512xf32>
    %cst_44 = arith.constant dense<0.000000e+00> : vector<8x512xf32>
    %52 = tpu.matmul %49, %1, %cst_44 {dimension_numbers = #tpu.dot_dimension_numbers<[1], [0], [0], [1], [0, 0, 1, 1], [], []>} : vector<8x128xf32>, vector<128x512xf32>, vector<8x512xf32> -> vector<8x512xf32>
    %53 = arith.addf %51, %52 : vector<8x512xf32>
    %54 = vector.extract_strided_slice %53 {offsets = [0, 0], sizes = [8, 128], strides = [1, 1]} : vector<8x512xf32> to vector<8x128xf32>
    %55 = arith.negf %54 : vector<8x128xf32>
    %56 = math.exp %55 : vector<8x128xf32>
    %cst_45 = arith.constant 1.000000e+00 : f32
    %57 = vector.broadcast %cst_45 : f32 to vector<8x128xf32>
    %58 = arith.addf %57, %56 : vector<8x128xf32>
    %59 = arith.divf %57, %58 : vector<8x128xf32>
    %60 = vector.extract_strided_slice %53 {offsets = [0, 128], sizes = [8, 128], strides = [1, 1]} : vector<8x512xf32> to vector<8x128xf32>
    %61 = arith.negf %60 : vector<8x128xf32>
    %62 = math.exp %61 : vector<8x128xf32>
    %cst_46 = arith.constant 1.000000e+00 : f32
    %63 = vector.broadcast %cst_46 : f32 to vector<8x128xf32>
    %64 = arith.addf %63, %62 : vector<8x128xf32>
    %65 = arith.divf %63, %64 : vector<8x128xf32>
    %66 = vector.extract_strided_slice %53 {offsets = [0, 256], sizes = [8, 128], strides = [1, 1]} : vector<8x512xf32> to vector<8x128xf32>
    %67 = math.tanh %66 : vector<8x128xf32>
    %68 = vector.extract_strided_slice %53 {offsets = [0, 384], sizes = [8, 128], strides = [1, 1]} : vector<8x512xf32> to vector<8x128xf32>
    %69 = arith.negf %68 : vector<8x128xf32>
    %70 = math.exp %69 : vector<8x128xf32>
    %cst_47 = arith.constant 1.000000e+00 : f32
    %71 = vector.broadcast %cst_47 : f32 to vector<8x128xf32>
    %72 = arith.addf %71, %70 : vector<8x128xf32>
    %73 = arith.divf %71, %72 : vector<8x128xf32>
    %74 = arith.mulf %65, %47 : vector<8x128xf32>
    %75 = arith.mulf %59, %67 : vector<8x128xf32>
    %76 = arith.addf %74, %75 : vector<8x128xf32>
    %77 = math.tanh %76 : vector<8x128xf32>
    %78 = arith.mulf %73, %77 : vector<8x128xf32>
    %c8_48 = arith.constant 8 : index
    %c0_49 = arith.constant 0 : index
    %79 = vector.load %arg19[%c8_48, %c0_49] : memref<64x128xf32, #tpu.memory_space<vmem>>, vector<8x128xf32>
    tpu.vector_store %arg19[%c8_48, %c0_49], %78 {strides = array<i32>} : memref<64x128xf32, #tpu.memory_space<vmem>>, vector<8x128xf32>,
    %c16 = arith.constant 16 : index
    %c0_50 = arith.constant 0 : index
    %80 = vector.load %arg18[%c16, %c0_50] : memref<64x512xf32, #tpu.memory_space<vmem>>, vector<8x512xf32>
    %cst_51 = arith.constant dense<0.000000e+00> : vector<8x512xf32>
    %81 = tpu.matmul %78, %1, %cst_51 {dimension_numbers = #tpu.dot_dimension_numbers<[1], [0], [0], [1], [0, 0, 1, 1], [], []>} : vector<8x128xf32>, vector<128x512xf32>, vector<8x512xf32> -> vector<8x512xf32>
    %82 = arith.addf %80, %81 : vector<8x512xf32>
    %83 = vector.extract_strided_slice %82 {offsets = [0, 0], sizes = [8, 128], strides = [1, 1]} : vector<8x512xf32> to vector<8x128xf32>
    %84 = arith.negf %83 : vector<8x128xf32>
    %85 = math.exp %84 : vector<8x128xf32>
    %cst_52 = arith.constant 1.000000e+00 : f32
    %86 = vector.broadcast %cst_52 : f32 to vector<8x128xf32>
    %87 = arith.addf %86, %85 : vector<8x128xf32>
    %88 = arith.divf %86, %87 : vector<8x128xf32>
    %89 = vector.extract_strided_slice %82 {offsets = [0, 128], sizes = [8, 128], strides = [1, 1]} : vector<8x512xf32> to vector<8x128xf32>
    %90 = arith.negf %89 : vector<8x128xf32>
    %91 = math.exp %90 : vector<8x128xf32>
    %cst_53 = arith.constant 1.000000e+00 : f32
    %92 = vector.broadcast %cst_53 : f32 to vector<8x128xf32>
    %93 = arith.addf %92, %91 : vector<8x128xf32>
    %94 = arith.divf %92, %93 : vector<8x128xf32>
    %95 = vector.extract_strided_slice %82 {offsets = [0, 256], sizes = [8, 128], strides = [1, 1]} : vector<8x512xf32> to vector<8x128xf32>
    %96 = math.tanh %95 : vector<8x128xf32>
    %97 = vector.extract_strided_slice %82 {offsets = [0, 384], sizes = [8, 128], strides = [1, 1]} : vector<8x512xf32> to vector<8x128xf32>
    %98 = arith.negf %97 : vector<8x128xf32>
    %99 = math.exp %98 : vector<8x128xf32>
    %cst_54 = arith.constant 1.000000e+00 : f32
    %100 = vector.broadcast %cst_54 : f32 to vector<8x128xf32>
    %101 = arith.addf %100, %99 : vector<8x128xf32>
    %102 = arith.divf %100, %101 : vector<8x128xf32>
    %103 = arith.mulf %94, %76 : vector<8x128xf32>
    %104 = arith.mulf %88, %96 : vector<8x128xf32>
    %105 = arith.addf %103, %104 : vector<8x128xf32>
    %106 = math.tanh %105 : vector<8x128xf32>
    %107 = arith.mulf %102, %106 : vector<8x128xf32>
    %c16_55 = arith.constant 16 : index
    %c0_56 = arith.constant 0 : index
    %108 = vector.load %arg19[%c16_55, %c0_56] : memref<64x128xf32, #tpu.memory_space<vmem>>, vector<8x128xf32>
    tpu.vector_store %arg19[%c16_55, %c0_56], %107 {strides = array<i32>} : memref<64x128xf32, #tpu.memory_space<vmem>>, vector<8x128xf32>,
    %c24 = arith.constant 24 : index
    %c0_57 = arith.constant 0 : index
    %109 = vector.load %arg18[%c24, %c0_57] : memref<64x512xf32, #tpu.memory_space<vmem>>, vector<8x512xf32>
    %cst_58 = arith.constant dense<0.000000e+00> : vector<8x512xf32>
    %110 = tpu.matmul %107, %1, %cst_58 {dimension_numbers = #tpu.dot_dimension_numbers<[1], [0], [0], [1], [0, 0, 1, 1], [], []>} : vector<8x128xf32>, vector<128x512xf32>, vector<8x512xf32> -> vector<8x512xf32>
    %111 = arith.addf %109, %110 : vector<8x512xf32>
    %112 = vector.extract_strided_slice %111 {offsets = [0, 0], sizes = [8, 128], strides = [1, 1]} : vector<8x512xf32> to vector<8x128xf32>
    %113 = arith.negf %112 : vector<8x128xf32>
    %114 = math.exp %113 : vector<8x128xf32>
    %cst_59 = arith.constant 1.000000e+00 : f32
    %115 = vector.broadcast %cst_59 : f32 to vector<8x128xf32>
    %116 = arith.addf %115, %114 : vector<8x128xf32>
    %117 = arith.divf %115, %116 : vector<8x128xf32>
    %118 = vector.extract_strided_slice %111 {offsets = [0, 128], sizes = [8, 128], strides = [1, 1]} : vector<8x512xf32> to vector<8x128xf32>
    %119 = arith.negf %118 : vector<8x128xf32>
    %120 = math.exp %119 : vector<8x128xf32>
    %cst_60 = arith.constant 1.000000e+00 : f32
    %121 = vector.broadcast %cst_60 : f32 to vector<8x128xf32>
    %122 = arith.addf %121, %120 : vector<8x128xf32>
    %123 = arith.divf %121, %122 : vector<8x128xf32>
    %124 = vector.extract_strided_slice %111 {offsets = [0, 256], sizes = [8, 128], strides = [1, 1]} : vector<8x512xf32> to vector<8x128xf32>
    %125 = math.tanh %124 : vector<8x128xf32>
    %126 = vector.extract_strided_slice %111 {offsets = [0, 384], sizes = [8, 128], strides = [1, 1]} : vector<8x512xf32> to vector<8x128xf32>
    %127 = arith.negf %126 : vector<8x128xf32>
    %128 = math.exp %127 : vector<8x128xf32>
    %cst_61 = arith.constant 1.000000e+00 : f32
    %129 = vector.broadcast %cst_61 : f32 to vector<8x128xf32>
    %130 = arith.addf %129, %128 : vector<8x128xf32>
    %131 = arith.divf %129, %130 : vector<8x128xf32>
    %132 = arith.mulf %123, %105 : vector<8x128xf32>
    %133 = arith.mulf %117, %125 : vector<8x128xf32>
    %134 = arith.addf %132, %133 : vector<8x128xf32>
    %135 = math.tanh %134 : vector<8x128xf32>
    %136 = arith.mulf %131, %135 : vector<8x128xf32>
    %c24_62 = arith.constant 24 : index
    %c0_63 = arith.constant 0 : index
    %137 = vector.load %arg19[%c24_62, %c0_63] : memref<64x128xf32, #tpu.memory_space<vmem>>, vector<8x128xf32>
    tpu.vector_store %arg19[%c24_62, %c0_63], %136 {strides = array<i32>} : memref<64x128xf32, #tpu.memory_space<vmem>>, vector<8x128xf32>,
    %c32 = arith.constant 32 : index
    %c0_64 = arith.constant 0 : index
    %138 = vector.load %arg18[%c32, %c0_64] : memref<64x512xf32, #tpu.memory_space<vmem>>, vector<8x512xf32>
    %cst_65 = arith.constant dense<0.000000e+00> : vector<8x512xf32>
    %139 = tpu.matmul %136, %1, %cst_65 {dimension_numbers = #tpu.dot_dimension_numbers<[1], [0], [0], [1], [0, 0, 1, 1], [], []>} : vector<8x128xf32>, vector<128x512xf32>, vector<8x512xf32> -> vector<8x512xf32>
    %140 = arith.addf %138, %139 : vector<8x512xf32>
    %141 = vector.extract_strided_slice %140 {offsets = [0, 0], sizes = [8, 128], strides = [1, 1]} : vector<8x512xf32> to vector<8x128xf32>
    %142 = arith.negf %141 : vector<8x128xf32>
    %143 = math.exp %142 : vector<8x128xf32>
    %cst_66 = arith.constant 1.000000e+00 : f32
    %144 = vector.broadcast %cst_66 : f32 to vector<8x128xf32>
    %145 = arith.addf %144, %143 : vector<8x128xf32>
    %146 = arith.divf %144, %145 : vector<8x128xf32>
    %147 = vector.extract_strided_slice %140 {offsets = [0, 128], sizes = [8, 128], strides = [1, 1]} : vector<8x512xf32> to vector<8x128xf32>
    %148 = arith.negf %147 : vector<8x128xf32>
    %149 = math.exp %148 : vector<8x128xf32>
    %cst_67 = arith.constant 1.000000e+00 : f32
    %150 = vector.broadcast %cst_67 : f32 to vector<8x128xf32>
    %151 = arith.addf %150, %149 : vector<8x128xf32>
    %152 = arith.divf %150, %151 : vector<8x128xf32>
    %153 = vector.extract_strided_slice %140 {offsets = [0, 256], sizes = [8, 128], strides = [1, 1]} : vector<8x512xf32> to vector<8x128xf32>
    %154 = math.tanh %153 : vector<8x128xf32>
    %155 = vector.extract_strided_slice %140 {offsets = [0, 384], sizes = [8, 128], strides = [1, 1]} : vector<8x512xf32> to vector<8x128xf32>
    %156 = arith.negf %155 : vector<8x128xf32>
    %157 = math.exp %156 : vector<8x128xf32>
    %cst_68 = arith.constant 1.000000e+00 : f32
    %158 = vector.broadcast %cst_68 : f32 to vector<8x128xf32>
    %159 = arith.addf %158, %157 : vector<8x128xf32>
    %160 = arith.divf %158, %159 : vector<8x128xf32>
    %161 = arith.mulf %152, %134 : vector<8x128xf32>
    %162 = arith.mulf %146, %154 : vector<8x128xf32>
    %163 = arith.addf %161, %162 : vector<8x128xf32>
    %164 = math.tanh %163 : vector<8x128xf32>
    %165 = arith.mulf %160, %164 : vector<8x128xf32>
    %c32_69 = arith.constant 32 : index
    %c0_70 = arith.constant 0 : index
    %166 = vector.load %arg19[%c32_69, %c0_70] : memref<64x128xf32, #tpu.memory_space<vmem>>, vector<8x128xf32>
    tpu.vector_store %arg19[%c32_69, %c0_70], %165 {strides = array<i32>} : memref<64x128xf32, #tpu.memory_space<vmem>>, vector<8x128xf32>,
    %c40 = arith.constant 40 : index
    %c0_71 = arith.constant 0 : index
    %167 = vector.load %arg18[%c40, %c0_71] : memref<64x512xf32, #tpu.memory_space<vmem>>, vector<8x512xf32>
    %cst_72 = arith.constant dense<0.000000e+00> : vector<8x512xf32>
    %168 = tpu.matmul %165, %1, %cst_72 {dimension_numbers = #tpu.dot_dimension_numbers<[1], [0], [0], [1], [0, 0, 1, 1], [], []>} : vector<8x128xf32>, vector<128x512xf32>, vector<8x512xf32> -> vector<8x512xf32>
    %169 = arith.addf %167, %168 : vector<8x512xf32>
    %170 = vector.extract_strided_slice %169 {offsets = [0, 0], sizes = [8, 128], strides = [1, 1]} : vector<8x512xf32> to vector<8x128xf32>
    %171 = arith.negf %170 : vector<8x128xf32>
    %172 = math.exp %171 : vector<8x128xf32>
    %cst_73 = arith.constant 1.000000e+00 : f32
    %173 = vector.broadcast %cst_73 : f32 to vector<8x128xf32>
    %174 = arith.addf %173, %172 : vector<8x128xf32>
    %175 = arith.divf %173, %174 : vector<8x128xf32>
    %176 = vector.extract_strided_slice %169 {offsets = [0, 128], sizes = [8, 128], strides = [1, 1]} : vector<8x512xf32> to vector<8x128xf32>
    %177 = arith.negf %176 : vector<8x128xf32>
    %178 = math.exp %177 : vector<8x128xf32>
    %cst_74 = arith.constant 1.000000e+00 : f32
    %179 = vector.broadcast %cst_74 : f32 to vector<8x128xf32>
    %180 = arith.addf %179, %178 : vector<8x128xf32>
    %181 = arith.divf %179, %180 : vector<8x128xf32>
    %182 = vector.extract_strided_slice %169 {offsets = [0, 256], sizes = [8, 128], strides = [1, 1]} : vector<8x512xf32> to vector<8x128xf32>
    %183 = math.tanh %182 : vector<8x128xf32>
    %184 = vector.extract_strided_slice %169 {offsets = [0, 384], sizes = [8, 128], strides = [1, 1]} : vector<8x512xf32> to vector<8x128xf32>
    %185 = arith.negf %184 : vector<8x128xf32>
    %186 = math.exp %185 : vector<8x128xf32>
    %cst_75 = arith.constant 1.000000e+00 : f32
    %187 = vector.broadcast %cst_75 : f32 to vector<8x128xf32>
    %188 = arith.addf %187, %186 : vector<8x128xf32>
    %189 = arith.divf %187, %188 : vector<8x128xf32>
    %190 = arith.mulf %181, %163 : vector<8x128xf32>
    %191 = arith.mulf %175, %183 : vector<8x128xf32>
    %192 = arith.addf %190, %191 : vector<8x128xf32>
    %193 = math.tanh %192 : vector<8x128xf32>
    %194 = arith.mulf %189, %193 : vector<8x128xf32>
    %c40_76 = arith.constant 40 : index
    %c0_77 = arith.constant 0 : index
    %195 = vector.load %arg19[%c40_76, %c0_77] : memref<64x128xf32, #tpu.memory_space<vmem>>, vector<8x128xf32>
    tpu.vector_store %arg19[%c40_76, %c0_77], %194 {strides = array<i32>} : memref<64x128xf32, #tpu.memory_space<vmem>>, vector<8x128xf32>,
    %c48 = arith.constant 48 : index
    %c0_78 = arith.constant 0 : index
    %196 = vector.load %arg18[%c48, %c0_78] : memref<64x512xf32, #tpu.memory_space<vmem>>, vector<8x512xf32>
    %cst_79 = arith.constant dense<0.000000e+00> : vector<8x512xf32>
    %197 = tpu.matmul %194, %1, %cst_79 {dimension_numbers = #tpu.dot_dimension_numbers<[1], [0], [0], [1], [0, 0, 1, 1], [], []>} : vector<8x128xf32>, vector<128x512xf32>, vector<8x512xf32> -> vector<8x512xf32>
    %198 = arith.addf %196, %197 : vector<8x512xf32>
    %199 = vector.extract_strided_slice %198 {offsets = [0, 0], sizes = [8, 128], strides = [1, 1]} : vector<8x512xf32> to vector<8x128xf32>
    %200 = arith.negf %199 : vector<8x128xf32>
    %201 = math.exp %200 : vector<8x128xf32>
    %cst_80 = arith.constant 1.000000e+00 : f32
    %202 = vector.broadcast %cst_80 : f32 to vector<8x128xf32>
    %203 = arith.addf %202, %201 : vector<8x128xf32>
    %204 = arith.divf %202, %203 : vector<8x128xf32>
    %205 = vector.extract_strided_slice %198 {offsets = [0, 128], sizes = [8, 128], strides = [1, 1]} : vector<8x512xf32> to vector<8x128xf32>
    %206 = arith.negf %205 : vector<8x128xf32>
    %207 = math.exp %206 : vector<8x128xf32>
    %cst_81 = arith.constant 1.000000e+00 : f32
    %208 = vector.broadcast %cst_81 : f32 to vector<8x128xf32>
    %209 = arith.addf %208, %207 : vector<8x128xf32>
    %210 = arith.divf %208, %209 : vector<8x128xf32>
    %211 = vector.extract_strided_slice %198 {offsets = [0, 256], sizes = [8, 128], strides = [1, 1]} : vector<8x512xf32> to vector<8x128xf32>
    %212 = math.tanh %211 : vector<8x128xf32>
    %213 = vector.extract_strided_slice %198 {offsets = [0, 384], sizes = [8, 128], strides = [1, 1]} : vector<8x512xf32> to vector<8x128xf32>
    %214 = arith.negf %213 : vector<8x128xf32>
    %215 = math.exp %214 : vector<8x128xf32>
    %cst_82 = arith.constant 1.000000e+00 : f32
    %216 = vector.broadcast %cst_82 : f32 to vector<8x128xf32>
    %217 = arith.addf %216, %215 : vector<8x128xf32>
    %218 = arith.divf %216, %217 : vector<8x128xf32>
    %219 = arith.mulf %210, %192 : vector<8x128xf32>
    %220 = arith.mulf %204, %212 : vector<8x128xf32>
    %221 = arith.addf %219, %220 : vector<8x128xf32>
    %222 = math.tanh %221 : vector<8x128xf32>
    %223 = arith.mulf %218, %222 : vector<8x128xf32>
    %c48_83 = arith.constant 48 : index
    %c0_84 = arith.constant 0 : index
    %224 = vector.load %arg19[%c48_83, %c0_84] : memref<64x128xf32, #tpu.memory_space<vmem>>, vector<8x128xf32>
    tpu.vector_store %arg19[%c48_83, %c0_84], %223 {strides = array<i32>} : memref<64x128xf32, #tpu.memory_space<vmem>>, vector<8x128xf32>,
    %c56 = arith.constant 56 : index
    %c0_85 = arith.constant 0 : index
    %225 = vector.load %arg18[%c56, %c0_85] : memref<64x512xf32, #tpu.memory_space<vmem>>, vector<8x512xf32>
    %cst_86 = arith.constant dense<0.000000e+00> : vector<8x512xf32>
    %226 = tpu.matmul %223, %1, %cst_86 {dimension_numbers = #tpu.dot_dimension_numbers<[1], [0], [0], [1], [0, 0, 1, 1], [], []>} : vector<8x128xf32>, vector<128x512xf32>, vector<8x512xf32> -> vector<8x512xf32>
    %227 = arith.addf %225, %226 : vector<8x512xf32>
    %228 = vector.extract_strided_slice %227 {offsets = [0, 0], sizes = [8, 128], strides = [1, 1]} : vector<8x512xf32> to vector<8x128xf32>
    %229 = arith.negf %228 : vector<8x128xf32>
    %230 = math.exp %229 : vector<8x128xf32>
    %cst_87 = arith.constant 1.000000e+00 : f32
    %231 = vector.broadcast %cst_87 : f32 to vector<8x128xf32>
    %232 = arith.addf %231, %230 : vector<8x128xf32>
    %233 = arith.divf %231, %232 : vector<8x128xf32>
    %234 = vector.extract_strided_slice %227 {offsets = [0, 128], sizes = [8, 128], strides = [1, 1]} : vector<8x512xf32> to vector<8x128xf32>
    %235 = arith.negf %234 : vector<8x128xf32>
    %236 = math.exp %235 : vector<8x128xf32>
    %cst_88 = arith.constant 1.000000e+00 : f32
    %237 = vector.broadcast %cst_88 : f32 to vector<8x128xf32>
    %238 = arith.addf %237, %236 : vector<8x128xf32>
    %239 = arith.divf %237, %238 : vector<8x128xf32>
    %240 = vector.extract_strided_slice %227 {offsets = [0, 256], sizes = [8, 128], strides = [1, 1]} : vector<8x512xf32> to vector<8x128xf32>
    %241 = math.tanh %240 : vector<8x128xf32>
    %242 = vector.extract_strided_slice %227 {offsets = [0, 384], sizes = [8, 128], strides = [1, 1]} : vector<8x512xf32> to vector<8x128xf32>
    %243 = arith.negf %242 : vector<8x128xf32>
    %244 = math.exp %243 : vector<8x128xf32>
    %cst_89 = arith.constant 1.000000e+00 : f32
    %245 = vector.broadcast %cst_89 : f32 to vector<8x128xf32>
    %246 = arith.addf %245, %244 : vector<8x128xf32>
    %247 = arith.divf %245, %246 : vector<8x128xf32>
    %248 = arith.mulf %239, %221 : vector<8x128xf32>
    %249 = arith.mulf %233, %241 : vector<8x128xf32>
    %250 = arith.addf %248, %249 : vector<8x128xf32>
    %251 = math.tanh %250 : vector<8x128xf32>
    %252 = arith.mulf %247, %251 : vector<8x128xf32>
    %c56_90 = arith.constant 56 : index
    %c0_91 = arith.constant 0 : index
    %253 = vector.load %arg19[%c56_90, %c0_91] : memref<64x128xf32, #tpu.memory_space<vmem>>, vector<8x128xf32>
    tpu.vector_store %arg19[%c56_90, %c0_91], %252 {strides = array<i32>} : memref<64x128xf32, #tpu.memory_space<vmem>>, vector<8x128xf32>,
    %c0_92 = arith.constant 0 : index
    %c0_93 = arith.constant 0 : index
    %254 = vector.load %arg19[%c0_92, %c0_93] : memref<64x128xf32, #tpu.memory_space<vmem>>, vector<64x128xf32>
    %cst_94 = arith.constant dense<0.000000e+00> : vector<64x512xf32>
    %255 = tpu.matmul %254, %3, %cst_94 {dimension_numbers = #tpu.dot_dimension_numbers<[1], [0], [0], [1], [0, 0, 1, 1], [], []>} : vector<64x128xf32>, vector<128x512xf32>, vector<64x512xf32> -> vector<64x512xf32>
    %256 = vector.broadcast %5 : vector<1x512xf32> to vector<64x512xf32>
    %257 = arith.addf %255, %256 : vector<64x512xf32>
    %c0_95 = arith.constant 0 : index
    %c0_96 = arith.constant 0 : index
    %258 = vector.load %arg18[%c0_95, %c0_96] : memref<64x512xf32, #tpu.memory_space<vmem>>, vector<64x512xf32>
    tpu.vector_store %arg18[%c0_95, %c0_96], %257 {strides = array<i32>} : memref<64x512xf32, #tpu.memory_space<vmem>>, vector<64x512xf32>,
    %c0_97 = arith.constant 0 : index
    %c0_98 = arith.constant 0 : index
    %259 = vector.load %arg18[%c0_97, %c0_98] : memref<64x512xf32, #tpu.memory_space<vmem>>, vector<8x512xf32>
    %cst_99 = arith.constant dense<0.000000e+00> : vector<8x512xf32>
    %260 = tpu.matmul %15, %4, %cst_99 {dimension_numbers = #tpu.dot_dimension_numbers<[1], [0], [0], [1], [0, 0, 1, 1], [], []>} : vector<8x128xf32>, vector<128x512xf32>, vector<8x512xf32> -> vector<8x512xf32>
    %261 = arith.addf %259, %260 : vector<8x512xf32>
    %262 = vector.extract_strided_slice %261 {offsets = [0, 0], sizes = [8, 128], strides = [1, 1]} : vector<8x512xf32> to vector<8x128xf32>
    %263 = arith.negf %262 : vector<8x128xf32>
    %264 = math.exp %263 : vector<8x128xf32>
    %cst_100 = arith.constant 1.000000e+00 : f32
    %265 = vector.broadcast %cst_100 : f32 to vector<8x128xf32>
    %266 = arith.addf %265, %264 : vector<8x128xf32>
    %267 = arith.divf %265, %266 : vector<8x128xf32>
    %268 = vector.extract_strided_slice %261 {offsets = [0, 128], sizes = [8, 128], strides = [1, 1]} : vector<8x512xf32> to vector<8x128xf32>
    %269 = arith.negf %268 : vector<8x128xf32>
    %270 = math.exp %269 : vector<8x128xf32>
    %cst_101 = arith.constant 1.000000e+00 : f32
    %271 = vector.broadcast %cst_101 : f32 to vector<8x128xf32>
    %272 = arith.addf %271, %270 : vector<8x128xf32>
    %273 = arith.divf %271, %272 : vector<8x128xf32>
    %274 = vector.extract_strided_slice %261 {offsets = [0, 256], sizes = [8, 128], strides = [1, 1]} : vector<8x512xf32> to vector<8x128xf32>
    %275 = math.tanh %274 : vector<8x128xf32>
    %276 = vector.extract_strided_slice %261 {offsets = [0, 384], sizes = [8, 128], strides = [1, 1]} : vector<8x512xf32> to vector<8x128xf32>
    %277 = arith.negf %276 : vector<8x128xf32>
    %278 = math.exp %277 : vector<8x128xf32>
    %cst_102 = arith.constant 1.000000e+00 : f32
    %279 = vector.broadcast %cst_102 : f32 to vector<8x128xf32>
    %280 = arith.addf %279, %278 : vector<8x128xf32>
    %281 = arith.divf %279, %280 : vector<8x128xf32>
    %282 = arith.mulf %273, %15 : vector<8x128xf32>
    %283 = arith.mulf %267, %275 : vector<8x128xf32>
    %284 = arith.addf %282, %283 : vector<8x128xf32>
    %285 = math.tanh %284 : vector<8x128xf32>
    %286 = arith.mulf %281, %285 : vector<8x128xf32>
    %c8_103 = arith.constant 8 : index
    %c0_104 = arith.constant 0 : index
    %287 = vector.load %arg18[%c8_103, %c0_104] : memref<64x512xf32, #tpu.memory_space<vmem>>, vector<8x512xf32>
    %cst_105 = arith.constant dense<0.000000e+00> : vector<8x512xf32>
    %288 = tpu.matmul %286, %4, %cst_105 {dimension_numbers = #tpu.dot_dimension_numbers<[1], [0], [0], [1], [0, 0, 1, 1], [], []>} : vector<8x128xf32>, vector<128x512xf32>, vector<8x512xf32> -> vector<8x512xf32>
    %289 = arith.addf %287, %288 : vector<8x512xf32>
    %290 = vector.extract_strided_slice %289 {offsets = [0, 0], sizes = [8, 128], strides = [1, 1]} : vector<8x512xf32> to vector<8x128xf32>
    %291 = arith.negf %290 : vector<8x128xf32>
    %292 = math.exp %291 : vector<8x128xf32>
    %cst_106 = arith.constant 1.000000e+00 : f32
    %293 = vector.broadcast %cst_106 : f32 to vector<8x128xf32>
    %294 = arith.addf %293, %292 : vector<8x128xf32>
    %295 = arith.divf %293, %294 : vector<8x128xf32>
    %296 = vector.extract_strided_slice %289 {offsets = [0, 128], sizes = [8, 128], strides = [1, 1]} : vector<8x512xf32> to vector<8x128xf32>
    %297 = arith.negf %296 : vector<8x128xf32>
    %298 = math.exp %297 : vector<8x128xf32>
    %cst_107 = arith.constant 1.000000e+00 : f32
    %299 = vector.broadcast %cst_107 : f32 to vector<8x128xf32>
    %300 = arith.addf %299, %298 : vector<8x128xf32>
    %301 = arith.divf %299, %300 : vector<8x128xf32>
    %302 = vector.extract_strided_slice %289 {offsets = [0, 256], sizes = [8, 128], strides = [1, 1]} : vector<8x512xf32> to vector<8x128xf32>
    %303 = math.tanh %302 : vector<8x128xf32>
    %304 = vector.extract_strided_slice %289 {offsets = [0, 384], sizes = [8, 128], strides = [1, 1]} : vector<8x512xf32> to vector<8x128xf32>
    %305 = arith.negf %304 : vector<8x128xf32>
    %306 = math.exp %305 : vector<8x128xf32>
    %cst_108 = arith.constant 1.000000e+00 : f32
    %307 = vector.broadcast %cst_108 : f32 to vector<8x128xf32>
    %308 = arith.addf %307, %306 : vector<8x128xf32>
    %309 = arith.divf %307, %308 : vector<8x128xf32>
    %310 = arith.mulf %301, %284 : vector<8x128xf32>
    %311 = arith.mulf %295, %303 : vector<8x128xf32>
    %312 = arith.addf %310, %311 : vector<8x128xf32>
    %313 = math.tanh %312 : vector<8x128xf32>
    %314 = arith.mulf %309, %313 : vector<8x128xf32>
    %c16_109 = arith.constant 16 : index
    %c0_110 = arith.constant 0 : index
    %315 = vector.load %arg18[%c16_109, %c0_110] : memref<64x512xf32, #tpu.memory_space<vmem>>, vector<8x512xf32>
    %cst_111 = arith.constant dense<0.000000e+00> : vector<8x512xf32>
    %316 = tpu.matmul %314, %4, %cst_111 {dimension_numbers = #tpu.dot_dimension_numbers<[1], [0], [0], [1], [0, 0, 1, 1], [], []>} : vector<8x128xf32>, vector<128x512xf32>, vector<8x512xf32> -> vector<8x512xf32>
    %317 = arith.addf %315, %316 : vector<8x512xf32>
    %318 = vector.extract_strided_slice %317 {offsets = [0, 0], sizes = [8, 128], strides = [1, 1]} : vector<8x512xf32> to vector<8x128xf32>
    %319 = arith.negf %318 : vector<8x128xf32>
    %320 = math.exp %319 : vector<8x128xf32>
    %cst_112 = arith.constant 1.000000e+00 : f32
    %321 = vector.broadcast %cst_112 : f32 to vector<8x128xf32>
    %322 = arith.addf %321, %320 : vector<8x128xf32>
    %323 = arith.divf %321, %322 : vector<8x128xf32>
    %324 = vector.extract_strided_slice %317 {offsets = [0, 128], sizes = [8, 128], strides = [1, 1]} : vector<8x512xf32> to vector<8x128xf32>
    %325 = arith.negf %324 : vector<8x128xf32>
    %326 = math.exp %325 : vector<8x128xf32>
    %cst_113 = arith.constant 1.000000e+00 : f32
    %327 = vector.broadcast %cst_113 : f32 to vector<8x128xf32>
    %328 = arith.addf %327, %326 : vector<8x128xf32>
    %329 = arith.divf %327, %328 : vector<8x128xf32>
    %330 = vector.extract_strided_slice %317 {offsets = [0, 256], sizes = [8, 128], strides = [1, 1]} : vector<8x512xf32> to vector<8x128xf32>
    %331 = math.tanh %330 : vector<8x128xf32>
    %332 = vector.extract_strided_slice %317 {offsets = [0, 384], sizes = [8, 128], strides = [1, 1]} : vector<8x512xf32> to vector<8x128xf32>
    %333 = arith.negf %332 : vector<8x128xf32>
    %334 = math.exp %333 : vector<8x128xf32>
    %cst_114 = arith.constant 1.000000e+00 : f32
    %335 = vector.broadcast %cst_114 : f32 to vector<8x128xf32>
    %336 = arith.addf %335, %334 : vector<8x128xf32>
    %337 = arith.divf %335, %336 : vector<8x128xf32>
    %338 = arith.mulf %329, %312 : vector<8x128xf32>
    %339 = arith.mulf %323, %331 : vector<8x128xf32>
    %340 = arith.addf %338, %339 : vector<8x128xf32>
    %341 = math.tanh %340 : vector<8x128xf32>
    %342 = arith.mulf %337, %341 : vector<8x128xf32>
    %c24_115 = arith.constant 24 : index
    %c0_116 = arith.constant 0 : index
    %343 = vector.load %arg18[%c24_115, %c0_116] : memref<64x512xf32, #tpu.memory_space<vmem>>, vector<8x512xf32>
    %cst_117 = arith.constant dense<0.000000e+00> : vector<8x512xf32>
    %344 = tpu.matmul %342, %4, %cst_117 {dimension_numbers = #tpu.dot_dimension_numbers<[1], [0], [0], [1], [0, 0, 1, 1], [], []>} : vector<8x128xf32>, vector<128x512xf32>, vector<8x512xf32> -> vector<8x512xf32>
    %345 = arith.addf %343, %344 : vector<8x512xf32>
    %346 = vector.extract_strided_slice %345 {offsets = [0, 0], sizes = [8, 128], strides = [1, 1]} : vector<8x512xf32> to vector<8x128xf32>
    %347 = arith.negf %346 : vector<8x128xf32>
    %348 = math.exp %347 : vector<8x128xf32>
    %cst_118 = arith.constant 1.000000e+00 : f32
    %349 = vector.broadcast %cst_118 : f32 to vector<8x128xf32>
    %350 = arith.addf %349, %348 : vector<8x128xf32>
    %351 = arith.divf %349, %350 : vector<8x128xf32>
    %352 = vector.extract_strided_slice %345 {offsets = [0, 128], sizes = [8, 128], strides = [1, 1]} : vector<8x512xf32> to vector<8x128xf32>
    %353 = arith.negf %352 : vector<8x128xf32>
    %354 = math.exp %353 : vector<8x128xf32>
    %cst_119 = arith.constant 1.000000e+00 : f32
    %355 = vector.broadcast %cst_119 : f32 to vector<8x128xf32>
    %356 = arith.addf %355, %354 : vector<8x128xf32>
    %357 = arith.divf %355, %356 : vector<8x128xf32>
    %358 = vector.extract_strided_slice %345 {offsets = [0, 256], sizes = [8, 128], strides = [1, 1]} : vector<8x512xf32> to vector<8x128xf32>
    %359 = math.tanh %358 : vector<8x128xf32>
    %360 = vector.extract_strided_slice %345 {offsets = [0, 384], sizes = [8, 128], strides = [1, 1]} : vector<8x512xf32> to vector<8x128xf32>
    %361 = arith.negf %360 : vector<8x128xf32>
    %362 = math.exp %361 : vector<8x128xf32>
    %cst_120 = arith.constant 1.000000e+00 : f32
    %363 = vector.broadcast %cst_120 : f32 to vector<8x128xf32>
    %364 = arith.addf %363, %362 : vector<8x128xf32>
    %365 = arith.divf %363, %364 : vector<8x128xf32>
    %366 = arith.mulf %357, %340 : vector<8x128xf32>
    %367 = arith.mulf %351, %359 : vector<8x128xf32>
    %368 = arith.addf %366, %367 : vector<8x128xf32>
    %369 = math.tanh %368 : vector<8x128xf32>
    %370 = arith.mulf %365, %369 : vector<8x128xf32>
    %c32_121 = arith.constant 32 : index
    %c0_122 = arith.constant 0 : index
    %371 = vector.load %arg18[%c32_121, %c0_122] : memref<64x512xf32, #tpu.memory_space<vmem>>, vector<8x512xf32>
    %cst_123 = arith.constant dense<0.000000e+00> : vector<8x512xf32>
    %372 = tpu.matmul %370, %4, %cst_123 {dimension_numbers = #tpu.dot_dimension_numbers<[1], [0], [0], [1], [0, 0, 1, 1], [], []>} : vector<8x128xf32>, vector<128x512xf32>, vector<8x512xf32> -> vector<8x512xf32>
    %373 = arith.addf %371, %372 : vector<8x512xf32>
    %374 = vector.extract_strided_slice %373 {offsets = [0, 0], sizes = [8, 128], strides = [1, 1]} : vector<8x512xf32> to vector<8x128xf32>
    %375 = arith.negf %374 : vector<8x128xf32>
    %376 = math.exp %375 : vector<8x128xf32>
    %cst_124 = arith.constant 1.000000e+00 : f32
    %377 = vector.broadcast %cst_124 : f32 to vector<8x128xf32>
    %378 = arith.addf %377, %376 : vector<8x128xf32>
    %379 = arith.divf %377, %378 : vector<8x128xf32>
    %380 = vector.extract_strided_slice %373 {offsets = [0, 128], sizes = [8, 128], strides = [1, 1]} : vector<8x512xf32> to vector<8x128xf32>
    %381 = arith.negf %380 : vector<8x128xf32>
    %382 = math.exp %381 : vector<8x128xf32>
    %cst_125 = arith.constant 1.000000e+00 : f32
    %383 = vector.broadcast %cst_125 : f32 to vector<8x128xf32>
    %384 = arith.addf %383, %382 : vector<8x128xf32>
    %385 = arith.divf %383, %384 : vector<8x128xf32>
    %386 = vector.extract_strided_slice %373 {offsets = [0, 256], sizes = [8, 128], strides = [1, 1]} : vector<8x512xf32> to vector<8x128xf32>
    %387 = math.tanh %386 : vector<8x128xf32>
    %388 = vector.extract_strided_slice %373 {offsets = [0, 384], sizes = [8, 128], strides = [1, 1]} : vector<8x512xf32> to vector<8x128xf32>
    %389 = arith.negf %388 : vector<8x128xf32>
    %390 = math.exp %389 : vector<8x128xf32>
    %cst_126 = arith.constant 1.000000e+00 : f32
    %391 = vector.broadcast %cst_126 : f32 to vector<8x128xf32>
    %392 = arith.addf %391, %390 : vector<8x128xf32>
    %393 = arith.divf %391, %392 : vector<8x128xf32>
    %394 = arith.mulf %385, %368 : vector<8x128xf32>
    %395 = arith.mulf %379, %387 : vector<8x128xf32>
    %396 = arith.addf %394, %395 : vector<8x128xf32>
    %397 = math.tanh %396 : vector<8x128xf32>
    %398 = arith.mulf %393, %397 : vector<8x128xf32>
    %c40_127 = arith.constant 40 : index
    %c0_128 = arith.constant 0 : index
    %399 = vector.load %arg18[%c40_127, %c0_128] : memref<64x512xf32, #tpu.memory_space<vmem>>, vector<8x512xf32>
    %cst_129 = arith.constant dense<0.000000e+00> : vector<8x512xf32>
    %400 = tpu.matmul %398, %4, %cst_129 {dimension_numbers = #tpu.dot_dimension_numbers<[1], [0], [0], [1], [0, 0, 1, 1], [], []>} : vector<8x128xf32>, vector<128x512xf32>, vector<8x512xf32> -> vector<8x512xf32>
    %401 = arith.addf %399, %400 : vector<8x512xf32>
    %402 = vector.extract_strided_slice %401 {offsets = [0, 0], sizes = [8, 128], strides = [1, 1]} : vector<8x512xf32> to vector<8x128xf32>
    %403 = arith.negf %402 : vector<8x128xf32>
    %404 = math.exp %403 : vector<8x128xf32>
    %cst_130 = arith.constant 1.000000e+00 : f32
    %405 = vector.broadcast %cst_130 : f32 to vector<8x128xf32>
    %406 = arith.addf %405, %404 : vector<8x128xf32>
    %407 = arith.divf %405, %406 : vector<8x128xf32>
    %408 = vector.extract_strided_slice %401 {offsets = [0, 128], sizes = [8, 128], strides = [1, 1]} : vector<8x512xf32> to vector<8x128xf32>
    %409 = arith.negf %408 : vector<8x128xf32>
    %410 = math.exp %409 : vector<8x128xf32>
    %cst_131 = arith.constant 1.000000e+00 : f32
    %411 = vector.broadcast %cst_131 : f32 to vector<8x128xf32>
    %412 = arith.addf %411, %410 : vector<8x128xf32>
    %413 = arith.divf %411, %412 : vector<8x128xf32>
    %414 = vector.extract_strided_slice %401 {offsets = [0, 256], sizes = [8, 128], strides = [1, 1]} : vector<8x512xf32> to vector<8x128xf32>
    %415 = math.tanh %414 : vector<8x128xf32>
    %416 = vector.extract_strided_slice %401 {offsets = [0, 384], sizes = [8, 128], strides = [1, 1]} : vector<8x512xf32> to vector<8x128xf32>
    %417 = arith.negf %416 : vector<8x128xf32>
    %418 = math.exp %417 : vector<8x128xf32>
    %cst_132 = arith.constant 1.000000e+00 : f32
    %419 = vector.broadcast %cst_132 : f32 to vector<8x128xf32>
    %420 = arith.addf %419, %418 : vector<8x128xf32>
    %421 = arith.divf %419, %420 : vector<8x128xf32>
    %422 = arith.mulf %413, %396 : vector<8x128xf32>
    %423 = arith.mulf %407, %415 : vector<8x128xf32>
    %424 = arith.addf %422, %423 : vector<8x128xf32>
    %425 = math.tanh %424 : vector<8x128xf32>
    %426 = arith.mulf %421, %425 : vector<8x128xf32>
    %c48_133 = arith.constant 48 : index
    %c0_134 = arith.constant 0 : index
    %427 = vector.load %arg18[%c48_133, %c0_134] : memref<64x512xf32, #tpu.memory_space<vmem>>, vector<8x512xf32>
    %cst_135 = arith.constant dense<0.000000e+00> : vector<8x512xf32>
    %428 = tpu.matmul %426, %4, %cst_135 {dimension_numbers = #tpu.dot_dimension_numbers<[1], [0], [0], [1], [0, 0, 1, 1], [], []>} : vector<8x128xf32>, vector<128x512xf32>, vector<8x512xf32> -> vector<8x512xf32>
    %429 = arith.addf %427, %428 : vector<8x512xf32>
    %430 = vector.extract_strided_slice %429 {offsets = [0, 0], sizes = [8, 128], strides = [1, 1]} : vector<8x512xf32> to vector<8x128xf32>
    %431 = arith.negf %430 : vector<8x128xf32>
    %432 = math.exp %431 : vector<8x128xf32>
    %cst_136 = arith.constant 1.000000e+00 : f32
    %433 = vector.broadcast %cst_136 : f32 to vector<8x128xf32>
    %434 = arith.addf %433, %432 : vector<8x128xf32>
    %435 = arith.divf %433, %434 : vector<8x128xf32>
    %436 = vector.extract_strided_slice %429 {offsets = [0, 128], sizes = [8, 128], strides = [1, 1]} : vector<8x512xf32> to vector<8x128xf32>
    %437 = arith.negf %436 : vector<8x128xf32>
    %438 = math.exp %437 : vector<8x128xf32>
    %cst_137 = arith.constant 1.000000e+00 : f32
    %439 = vector.broadcast %cst_137 : f32 to vector<8x128xf32>
    %440 = arith.addf %439, %438 : vector<8x128xf32>
    %441 = arith.divf %439, %440 : vector<8x128xf32>
    %442 = vector.extract_strided_slice %429 {offsets = [0, 256], sizes = [8, 128], strides = [1, 1]} : vector<8x512xf32> to vector<8x128xf32>
    %443 = math.tanh %442 : vector<8x128xf32>
    %444 = vector.extract_strided_slice %429 {offsets = [0, 384], sizes = [8, 128], strides = [1, 1]} : vector<8x512xf32> to vector<8x128xf32>
    %445 = arith.negf %444 : vector<8x128xf32>
    %446 = math.exp %445 : vector<8x128xf32>
    %cst_138 = arith.constant 1.000000e+00 : f32
    %447 = vector.broadcast %cst_138 : f32 to vector<8x128xf32>
    %448 = arith.addf %447, %446 : vector<8x128xf32>
    %449 = arith.divf %447, %448 : vector<8x128xf32>
    %450 = arith.mulf %441, %424 : vector<8x128xf32>
    %451 = arith.mulf %435, %443 : vector<8x128xf32>
    %452 = arith.addf %450, %451 : vector<8x128xf32>
    %453 = math.tanh %452 : vector<8x128xf32>
    %454 = arith.mulf %449, %453 : vector<8x128xf32>
    %c56_139 = arith.constant 56 : index
    %c0_140 = arith.constant 0 : index
    %455 = vector.load %arg18[%c56_139, %c0_140] : memref<64x512xf32, #tpu.memory_space<vmem>>, vector<8x512xf32>
    %cst_141 = arith.constant dense<0.000000e+00> : vector<8x512xf32>
    %456 = tpu.matmul %454, %4, %cst_141 {dimension_numbers = #tpu.dot_dimension_numbers<[1], [0], [0], [1], [0, 0, 1, 1], [], []>} : vector<8x128xf32>, vector<128x512xf32>, vector<8x512xf32> -> vector<8x512xf32>
    %457 = arith.addf %455, %456 : vector<8x512xf32>
    %458 = vector.extract_strided_slice %457 {offsets = [0, 0], sizes = [8, 128], strides = [1, 1]} : vector<8x512xf32> to vector<8x128xf32>
    %459 = arith.negf %458 : vector<8x128xf32>
    %460 = math.exp %459 : vector<8x128xf32>
    %cst_142 = arith.constant 1.000000e+00 : f32
    %461 = vector.broadcast %cst_142 : f32 to vector<8x128xf32>
    %462 = arith.addf %461, %460 : vector<8x128xf32>
    %463 = arith.divf %461, %462 : vector<8x128xf32>
    %464 = vector.extract_strided_slice %457 {offsets = [0, 128], sizes = [8, 128], strides = [1, 1]} : vector<8x512xf32> to vector<8x128xf32>
    %465 = arith.negf %464 : vector<8x128xf32>
    %466 = math.exp %465 : vector<8x128xf32>
    %cst_143 = arith.constant 1.000000e+00 : f32
    %467 = vector.broadcast %cst_143 : f32 to vector<8x128xf32>
    %468 = arith.addf %467, %466 : vector<8x128xf32>
    %469 = arith.divf %467, %468 : vector<8x128xf32>
    %470 = vector.extract_strided_slice %457 {offsets = [0, 256], sizes = [8, 128], strides = [1, 1]} : vector<8x512xf32> to vector<8x128xf32>
    %471 = math.tanh %470 : vector<8x128xf32>
    %472 = vector.extract_strided_slice %457 {offsets = [0, 384], sizes = [8, 128], strides = [1, 1]} : vector<8x512xf32> to vector<8x128xf32>
    %473 = arith.negf %472 : vector<8x128xf32>
    %474 = math.exp %473 : vector<8x128xf32>
    %cst_144 = arith.constant 1.000000e+00 : f32
    %475 = vector.broadcast %cst_144 : f32 to vector<8x128xf32>
    %476 = arith.addf %475, %474 : vector<8x128xf32>
    %477 = arith.divf %475, %476 : vector<8x128xf32>
    %478 = arith.mulf %469, %452 : vector<8x128xf32>
    %479 = arith.mulf %463, %471 : vector<8x128xf32>
    %480 = arith.addf %478, %479 : vector<8x128xf32>
    %481 = math.tanh %480 : vector<8x128xf32>
    %482 = arith.mulf %477, %481 : vector<8x128xf32>
    %483 = vector.shape_cast %7 : vector<1x512xf32> to vector<1x512xf32>
    %484 = vector.broadcast %483 : vector<1x512xf32> to vector<8x512xf32>
    %cst_145 = arith.constant dense<0.000000e+00> : vector<8x512xf32>
    %485 = tpu.matmul %252, %6, %cst_145 {dimension_numbers = #tpu.dot_dimension_numbers<[1], [0], [0], [1], [0, 0, 1, 1], [], []>} : vector<8x128xf32>, vector<128x512xf32>, vector<8x512xf32> -> vector<8x512xf32>
    %486 = arith.addf %484, %485 : vector<8x512xf32>
    %487 = vector.extract_strided_slice %486 {offsets = [0, 0], sizes = [8, 128], strides = [1, 1]} : vector<8x512xf32> to vector<8x128xf32>
    %488 = arith.negf %487 : vector<8x128xf32>
    %489 = math.exp %488 : vector<8x128xf32>
    %cst_146 = arith.constant 1.000000e+00 : f32
    %490 = vector.broadcast %cst_146 : f32 to vector<8x128xf32>
    %491 = arith.addf %490, %489 : vector<8x128xf32>
    %492 = arith.divf %490, %491 : vector<8x128xf32>
    %493 = vector.extract_strided_slice %486 {offsets = [0, 128], sizes = [8, 128], strides = [1, 1]} : vector<8x512xf32> to vector<8x128xf32>
    %494 = arith.negf %493 : vector<8x128xf32>
    %495 = math.exp %494 : vector<8x128xf32>
    %cst_147 = arith.constant 1.000000e+00 : f32
    %496 = vector.broadcast %cst_147 : f32 to vector<8x128xf32>
    %497 = arith.addf %496, %495 : vector<8x128xf32>
    %498 = arith.divf %496, %497 : vector<8x128xf32>
    %499 = vector.extract_strided_slice %486 {offsets = [0, 256], sizes = [8, 128], strides = [1, 1]} : vector<8x512xf32> to vector<8x128xf32>
    %500 = math.tanh %499 : vector<8x128xf32>
    %501 = vector.extract_strided_slice %486 {offsets = [0, 384], sizes = [8, 128], strides = [1, 1]} : vector<8x512xf32> to vector<8x128xf32>
    %502 = arith.negf %501 : vector<8x128xf32>
    %503 = math.exp %502 : vector<8x128xf32>
    %cst_148 = arith.constant 1.000000e+00 : f32
    %504 = vector.broadcast %cst_148 : f32 to vector<8x128xf32>
    %505 = arith.addf %504, %503 : vector<8x128xf32>
    %506 = arith.divf %504, %505 : vector<8x128xf32>
    %507 = arith.mulf %498, %250 : vector<8x128xf32>
    %508 = arith.mulf %492, %500 : vector<8x128xf32>
    %509 = arith.addf %507, %508 : vector<8x128xf32>
    %510 = math.tanh %509 : vector<8x128xf32>
    %511 = arith.mulf %506, %510 : vector<8x128xf32>
    %c0_149 = arith.constant 0 : index
    %c0_150 = arith.constant 0 : index
    %512 = vector.load %arg19[%c0_149, %c0_150] : memref<64x128xf32, #tpu.memory_space<vmem>>, vector<8x128xf32>
    tpu.vector_store %arg19[%c0_149, %c0_150], %511 {strides = array<i32>} : memref<64x128xf32, #tpu.memory_space<vmem>>, vector<8x128xf32>,
    %cst_151 = arith.constant dense<0.000000e+00> : vector<8x512xf32>
    %513 = tpu.matmul %511, %6, %cst_151 {dimension_numbers = #tpu.dot_dimension_numbers<[1], [0], [0], [1], [0, 0, 1, 1], [], []>} : vector<8x128xf32>, vector<128x512xf32>, vector<8x512xf32> -> vector<8x512xf32>
    %514 = arith.addf %484, %513 : vector<8x512xf32>
    %515 = vector.extract_strided_slice %514 {offsets = [0, 0], sizes = [8, 128], strides = [1, 1]} : vector<8x512xf32> to vector<8x128xf32>
    %516 = arith.negf %515 : vector<8x128xf32>
    %517 = math.exp %516 : vector<8x128xf32>
    %cst_152 = arith.constant 1.000000e+00 : f32
    %518 = vector.broadcast %cst_152 : f32 to vector<8x128xf32>
    %519 = arith.addf %518, %517 : vector<8x128xf32>
    %520 = arith.divf %518, %519 : vector<8x128xf32>
    %521 = vector.extract_strided_slice %514 {offsets = [0, 128], sizes = [8, 128], strides = [1, 1]} : vector<8x512xf32> to vector<8x128xf32>
    %522 = arith.negf %521 : vector<8x128xf32>
    %523 = math.exp %522 : vector<8x128xf32>
    %cst_153 = arith.constant 1.000000e+00 : f32
    %524 = vector.broadcast %cst_153 : f32 to vector<8x128xf32>
    %525 = arith.addf %524, %523 : vector<8x128xf32>
    %526 = arith.divf %524, %525 : vector<8x128xf32>
    %527 = vector.extract_strided_slice %514 {offsets = [0, 256], sizes = [8, 128], strides = [1, 1]} : vector<8x512xf32> to vector<8x128xf32>
    %528 = math.tanh %527 : vector<8x128xf32>
    %529 = vector.extract_strided_slice %514 {offsets = [0, 384], sizes = [8, 128], strides = [1, 1]} : vector<8x512xf32> to vector<8x128xf32>
    %530 = arith.negf %529 : vector<8x128xf32>
    %531 = math.exp %530 : vector<8x128xf32>
    %cst_154 = arith.constant 1.000000e+00 : f32
    %532 = vector.broadcast %cst_154 : f32 to vector<8x128xf32>
    %533 = arith.addf %532, %531 : vector<8x128xf32>
    %534 = arith.divf %532, %533 : vector<8x128xf32>
    %535 = arith.mulf %526, %509 : vector<8x128xf32>
    %536 = arith.mulf %520, %528 : vector<8x128xf32>
    %537 = arith.addf %535, %536 : vector<8x128xf32>
    %538 = math.tanh %537 : vector<8x128xf32>
    %539 = arith.mulf %534, %538 : vector<8x128xf32>
    %c8_155 = arith.constant 8 : index
    %c0_156 = arith.constant 0 : index
    %540 = vector.load %arg19[%c8_155, %c0_156] : memref<64x128xf32, #tpu.memory_space<vmem>>, vector<8x128xf32>
    tpu.vector_store %arg19[%c8_155, %c0_156], %539 {strides = array<i32>} : memref<64x128xf32, #tpu.memory_space<vmem>>, vector<8x128xf32>,
    %cst_157 = arith.constant dense<0.000000e+00> : vector<8x512xf32>
    %541 = tpu.matmul %539, %6, %cst_157 {dimension_numbers = #tpu.dot_dimension_numbers<[1], [0], [0], [1], [0, 0, 1, 1], [], []>} : vector<8x128xf32>, vector<128x512xf32>, vector<8x512xf32> -> vector<8x512xf32>
    %542 = arith.addf %484, %541 : vector<8x512xf32>
    %543 = vector.extract_strided_slice %542 {offsets = [0, 0], sizes = [8, 128], strides = [1, 1]} : vector<8x512xf32> to vector<8x128xf32>
    %544 = arith.negf %543 : vector<8x128xf32>
    %545 = math.exp %544 : vector<8x128xf32>
    %cst_158 = arith.constant 1.000000e+00 : f32
    %546 = vector.broadcast %cst_158 : f32 to vector<8x128xf32>
    %547 = arith.addf %546, %545 : vector<8x128xf32>
    %548 = arith.divf %546, %547 : vector<8x128xf32>
    %549 = vector.extract_strided_slice %542 {offsets = [0, 128], sizes = [8, 128], strides = [1, 1]} : vector<8x512xf32> to vector<8x128xf32>
    %550 = arith.negf %549 : vector<8x128xf32>
    %551 = math.exp %550 : vector<8x128xf32>
    %cst_159 = arith.constant 1.000000e+00 : f32
    %552 = vector.broadcast %cst_159 : f32 to vector<8x128xf32>
    %553 = arith.addf %552, %551 : vector<8x128xf32>
    %554 = arith.divf %552, %553 : vector<8x128xf32>
    %555 = vector.extract_strided_slice %542 {offsets = [0, 256], sizes = [8, 128], strides = [1, 1]} : vector<8x512xf32> to vector<8x128xf32>
    %556 = math.tanh %555 : vector<8x128xf32>
    %557 = vector.extract_strided_slice %542 {offsets = [0, 384], sizes = [8, 128], strides = [1, 1]} : vector<8x512xf32> to vector<8x128xf32>
    %558 = arith.negf %557 : vector<8x128xf32>
    %559 = math.exp %558 : vector<8x128xf32>
    %cst_160 = arith.constant 1.000000e+00 : f32
    %560 = vector.broadcast %cst_160 : f32 to vector<8x128xf32>
    %561 = arith.addf %560, %559 : vector<8x128xf32>
    %562 = arith.divf %560, %561 : vector<8x128xf32>
    %563 = arith.mulf %554, %537 : vector<8x128xf32>
    %564 = arith.mulf %548, %556 : vector<8x128xf32>
    %565 = arith.addf %563, %564 : vector<8x128xf32>
    %566 = math.tanh %565 : vector<8x128xf32>
    %567 = arith.mulf %562, %566 : vector<8x128xf32>
    %c16_161 = arith.constant 16 : index
    %c0_162 = arith.constant 0 : index
    %568 = vector.load %arg19[%c16_161, %c0_162] : memref<64x128xf32, #tpu.memory_space<vmem>>, vector<8x128xf32>
    tpu.vector_store %arg19[%c16_161, %c0_162], %567 {strides = array<i32>} : memref<64x128xf32, #tpu.memory_space<vmem>>, vector<8x128xf32>,
    %cst_163 = arith.constant dense<0.000000e+00> : vector<8x512xf32>
    %569 = tpu.matmul %567, %6, %cst_163 {dimension_numbers = #tpu.dot_dimension_numbers<[1], [0], [0], [1], [0, 0, 1, 1], [], []>} : vector<8x128xf32>, vector<128x512xf32>, vector<8x512xf32> -> vector<8x512xf32>
    %570 = arith.addf %484, %569 : vector<8x512xf32>
    %571 = vector.extract_strided_slice %570 {offsets = [0, 0], sizes = [8, 128], strides = [1, 1]} : vector<8x512xf32> to vector<8x128xf32>
    %572 = arith.negf %571 : vector<8x128xf32>
    %573 = math.exp %572 : vector<8x128xf32>
    %cst_164 = arith.constant 1.000000e+00 : f32
    %574 = vector.broadcast %cst_164 : f32 to vector<8x128xf32>
    %575 = arith.addf %574, %573 : vector<8x128xf32>
    %576 = arith.divf %574, %575 : vector<8x128xf32>
    %577 = vector.extract_strided_slice %570 {offsets = [0, 128], sizes = [8, 128], strides = [1, 1]} : vector<8x512xf32> to vector<8x128xf32>
    %578 = arith.negf %577 : vector<8x128xf32>
    %579 = math.exp %578 : vector<8x128xf32>
    %cst_165 = arith.constant 1.000000e+00 : f32
    %580 = vector.broadcast %cst_165 : f32 to vector<8x128xf32>
    %581 = arith.addf %580, %579 : vector<8x128xf32>
    %582 = arith.divf %580, %581 : vector<8x128xf32>
    %583 = vector.extract_strided_slice %570 {offsets = [0, 256], sizes = [8, 128], strides = [1, 1]} : vector<8x512xf32> to vector<8x128xf32>
    %584 = math.tanh %583 : vector<8x128xf32>
    %585 = vector.extract_strided_slice %570 {offsets = [0, 384], sizes = [8, 128], strides = [1, 1]} : vector<8x512xf32> to vector<8x128xf32>
    %586 = arith.negf %585 : vector<8x128xf32>
    %587 = math.exp %586 : vector<8x128xf32>
    %cst_166 = arith.constant 1.000000e+00 : f32
    %588 = vector.broadcast %cst_166 : f32 to vector<8x128xf32>
    %589 = arith.addf %588, %587 : vector<8x128xf32>
    %590 = arith.divf %588, %589 : vector<8x128xf32>
    %591 = arith.mulf %582, %565 : vector<8x128xf32>
    %592 = arith.mulf %576, %584 : vector<8x128xf32>
    %593 = arith.addf %591, %592 : vector<8x128xf32>
    %594 = math.tanh %593 : vector<8x128xf32>
    %595 = arith.mulf %590, %594 : vector<8x128xf32>
    %c24_167 = arith.constant 24 : index
    %c0_168 = arith.constant 0 : index
    %596 = vector.load %arg19[%c24_167, %c0_168] : memref<64x128xf32, #tpu.memory_space<vmem>>, vector<8x128xf32>
    tpu.vector_store %arg19[%c24_167, %c0_168], %595 {strides = array<i32>} : memref<64x128xf32, #tpu.memory_space<vmem>>, vector<8x128xf32>,
    %cst_169 = arith.constant dense<0.000000e+00> : vector<8x512xf32>
    %597 = tpu.matmul %595, %6, %cst_169 {dimension_numbers = #tpu.dot_dimension_numbers<[1], [0], [0], [1], [0, 0, 1, 1], [], []>} : vector<8x128xf32>, vector<128x512xf32>, vector<8x512xf32> -> vector<8x512xf32>
    %598 = arith.addf %484, %597 : vector<8x512xf32>
    %599 = vector.extract_strided_slice %598 {offsets = [0, 0], sizes = [8, 128], strides = [1, 1]} : vector<8x512xf32> to vector<8x128xf32>
    %600 = arith.negf %599 : vector<8x128xf32>
    %601 = math.exp %600 : vector<8x128xf32>
    %cst_170 = arith.constant 1.000000e+00 : f32
    %602 = vector.broadcast %cst_170 : f32 to vector<8x128xf32>
    %603 = arith.addf %602, %601 : vector<8x128xf32>
    %604 = arith.divf %602, %603 : vector<8x128xf32>
    %605 = vector.extract_strided_slice %598 {offsets = [0, 128], sizes = [8, 128], strides = [1, 1]} : vector<8x512xf32> to vector<8x128xf32>
    %606 = arith.negf %605 : vector<8x128xf32>
    %607 = math.exp %606 : vector<8x128xf32>
    %cst_171 = arith.constant 1.000000e+00 : f32
    %608 = vector.broadcast %cst_171 : f32 to vector<8x128xf32>
    %609 = arith.addf %608, %607 : vector<8x128xf32>
    %610 = arith.divf %608, %609 : vector<8x128xf32>
    %611 = vector.extract_strided_slice %598 {offsets = [0, 256], sizes = [8, 128], strides = [1, 1]} : vector<8x512xf32> to vector<8x128xf32>
    %612 = math.tanh %611 : vector<8x128xf32>
    %613 = vector.extract_strided_slice %598 {offsets = [0, 384], sizes = [8, 128], strides = [1, 1]} : vector<8x512xf32> to vector<8x128xf32>
    %614 = arith.negf %613 : vector<8x128xf32>
    %615 = math.exp %614 : vector<8x128xf32>
    %cst_172 = arith.constant 1.000000e+00 : f32
    %616 = vector.broadcast %cst_172 : f32 to vector<8x128xf32>
    %617 = arith.addf %616, %615 : vector<8x128xf32>
    %618 = arith.divf %616, %617 : vector<8x128xf32>
    %619 = arith.mulf %610, %593 : vector<8x128xf32>
    %620 = arith.mulf %604, %612 : vector<8x128xf32>
    %621 = arith.addf %619, %620 : vector<8x128xf32>
    %622 = math.tanh %621 : vector<8x128xf32>
    %623 = arith.mulf %618, %622 : vector<8x128xf32>
    %c32_173 = arith.constant 32 : index
    %c0_174 = arith.constant 0 : index
    %624 = vector.load %arg19[%c32_173, %c0_174] : memref<64x128xf32, #tpu.memory_space<vmem>>, vector<8x128xf32>
    tpu.vector_store %arg19[%c32_173, %c0_174], %623 {strides = array<i32>} : memref<64x128xf32, #tpu.memory_space<vmem>>, vector<8x128xf32>,
    %cst_175 = arith.constant dense<0.000000e+00> : vector<8x512xf32>
    %625 = tpu.matmul %623, %6, %cst_175 {dimension_numbers = #tpu.dot_dimension_numbers<[1], [0], [0], [1], [0, 0, 1, 1], [], []>} : vector<8x128xf32>, vector<128x512xf32>, vector<8x512xf32> -> vector<8x512xf32>
    %626 = arith.addf %484, %625 : vector<8x512xf32>
    %627 = vector.extract_strided_slice %626 {offsets = [0, 0], sizes = [8, 128], strides = [1, 1]} : vector<8x512xf32> to vector<8x128xf32>
    %628 = arith.negf %627 : vector<8x128xf32>
    %629 = math.exp %628 : vector<8x128xf32>
    %cst_176 = arith.constant 1.000000e+00 : f32
    %630 = vector.broadcast %cst_176 : f32 to vector<8x128xf32>
    %631 = arith.addf %630, %629 : vector<8x128xf32>
    %632 = arith.divf %630, %631 : vector<8x128xf32>
    %633 = vector.extract_strided_slice %626 {offsets = [0, 128], sizes = [8, 128], strides = [1, 1]} : vector<8x512xf32> to vector<8x128xf32>
    %634 = arith.negf %633 : vector<8x128xf32>
    %635 = math.exp %634 : vector<8x128xf32>
    %cst_177 = arith.constant 1.000000e+00 : f32
    %636 = vector.broadcast %cst_177 : f32 to vector<8x128xf32>
    %637 = arith.addf %636, %635 : vector<8x128xf32>
    %638 = arith.divf %636, %637 : vector<8x128xf32>
    %639 = vector.extract_strided_slice %626 {offsets = [0, 256], sizes = [8, 128], strides = [1, 1]} : vector<8x512xf32> to vector<8x128xf32>
    %640 = math.tanh %639 : vector<8x128xf32>
    %641 = vector.extract_strided_slice %626 {offsets = [0, 384], sizes = [8, 128], strides = [1, 1]} : vector<8x512xf32> to vector<8x128xf32>
    %642 = arith.negf %641 : vector<8x128xf32>
    %643 = math.exp %642 : vector<8x128xf32>
    %cst_178 = arith.constant 1.000000e+00 : f32
    %644 = vector.broadcast %cst_178 : f32 to vector<8x128xf32>
    %645 = arith.addf %644, %643 : vector<8x128xf32>
    %646 = arith.divf %644, %645 : vector<8x128xf32>
    %647 = arith.mulf %638, %621 : vector<8x128xf32>
    %648 = arith.mulf %632, %640 : vector<8x128xf32>
    %649 = arith.addf %647, %648 : vector<8x128xf32>
    %650 = math.tanh %649 : vector<8x128xf32>
    %651 = arith.mulf %646, %650 : vector<8x128xf32>
    %c40_179 = arith.constant 40 : index
    %c0_180 = arith.constant 0 : index
    %652 = vector.load %arg19[%c40_179, %c0_180] : memref<64x128xf32, #tpu.memory_space<vmem>>, vector<8x128xf32>
    tpu.vector_store %arg19[%c40_179, %c0_180], %651 {strides = array<i32>} : memref<64x128xf32, #tpu.memory_space<vmem>>, vector<8x128xf32>,
    %cst_181 = arith.constant dense<0.000000e+00> : vector<8x512xf32>
    %653 = tpu.matmul %651, %6, %cst_181 {dimension_numbers = #tpu.dot_dimension_numbers<[1], [0], [0], [1], [0, 0, 1, 1], [], []>} : vector<8x128xf32>, vector<128x512xf32>, vector<8x512xf32> -> vector<8x512xf32>
    %654 = arith.addf %484, %653 : vector<8x512xf32>
    %655 = vector.extract_strided_slice %654 {offsets = [0, 0], sizes = [8, 128], strides = [1, 1]} : vector<8x512xf32> to vector<8x128xf32>
    %656 = arith.negf %655 : vector<8x128xf32>
    %657 = math.exp %656 : vector<8x128xf32>
    %cst_182 = arith.constant 1.000000e+00 : f32
    %658 = vector.broadcast %cst_182 : f32 to vector<8x128xf32>
    %659 = arith.addf %658, %657 : vector<8x128xf32>
    %660 = arith.divf %658, %659 : vector<8x128xf32>
    %661 = vector.extract_strided_slice %654 {offsets = [0, 128], sizes = [8, 128], strides = [1, 1]} : vector<8x512xf32> to vector<8x128xf32>
    %662 = arith.negf %661 : vector<8x128xf32>
    %663 = math.exp %662 : vector<8x128xf32>
    %cst_183 = arith.constant 1.000000e+00 : f32
    %664 = vector.broadcast %cst_183 : f32 to vector<8x128xf32>
    %665 = arith.addf %664, %663 : vector<8x128xf32>
    %666 = arith.divf %664, %665 : vector<8x128xf32>
    %667 = vector.extract_strided_slice %654 {offsets = [0, 256], sizes = [8, 128], strides = [1, 1]} : vector<8x512xf32> to vector<8x128xf32>
    %668 = math.tanh %667 : vector<8x128xf32>
    %669 = vector.extract_strided_slice %654 {offsets = [0, 384], sizes = [8, 128], strides = [1, 1]} : vector<8x512xf32> to vector<8x128xf32>
    %670 = arith.negf %669 : vector<8x128xf32>
    %671 = math.exp %670 : vector<8x128xf32>
    %cst_184 = arith.constant 1.000000e+00 : f32
    %672 = vector.broadcast %cst_184 : f32 to vector<8x128xf32>
    %673 = arith.addf %672, %671 : vector<8x128xf32>
    %674 = arith.divf %672, %673 : vector<8x128xf32>
    %675 = arith.mulf %666, %649 : vector<8x128xf32>
    %676 = arith.mulf %660, %668 : vector<8x128xf32>
    %677 = arith.addf %675, %676 : vector<8x128xf32>
    %678 = math.tanh %677 : vector<8x128xf32>
    %679 = arith.mulf %674, %678 : vector<8x128xf32>
    %c48_185 = arith.constant 48 : index
    %c0_186 = arith.constant 0 : index
    %680 = vector.load %arg19[%c48_185, %c0_186] : memref<64x128xf32, #tpu.memory_space<vmem>>, vector<8x128xf32>
    tpu.vector_store %arg19[%c48_185, %c0_186], %679 {strides = array<i32>} : memref<64x128xf32, #tpu.memory_space<vmem>>, vector<8x128xf32>,
    %cst_187 = arith.constant dense<0.000000e+00> : vector<8x512xf32>
    %681 = tpu.matmul %679, %6, %cst_187 {dimension_numbers = #tpu.dot_dimension_numbers<[1], [0], [0], [1], [0, 0, 1, 1], [], []>} : vector<8x128xf32>, vector<128x512xf32>, vector<8x512xf32> -> vector<8x512xf32>
    %682 = arith.addf %484, %681 : vector<8x512xf32>
    %683 = vector.extract_strided_slice %682 {offsets = [0, 0], sizes = [8, 128], strides = [1, 1]} : vector<8x512xf32> to vector<8x128xf32>
    %684 = arith.negf %683 : vector<8x128xf32>
    %685 = math.exp %684 : vector<8x128xf32>
    %cst_188 = arith.constant 1.000000e+00 : f32
    %686 = vector.broadcast %cst_188 : f32 to vector<8x128xf32>
    %687 = arith.addf %686, %685 : vector<8x128xf32>
    %688 = arith.divf %686, %687 : vector<8x128xf32>
    %689 = vector.extract_strided_slice %682 {offsets = [0, 128], sizes = [8, 128], strides = [1, 1]} : vector<8x512xf32> to vector<8x128xf32>
    %690 = arith.negf %689 : vector<8x128xf32>
    %691 = math.exp %690 : vector<8x128xf32>
    %cst_189 = arith.constant 1.000000e+00 : f32
    %692 = vector.broadcast %cst_189 : f32 to vector<8x128xf32>
    %693 = arith.addf %692, %691 : vector<8x128xf32>
    %694 = arith.divf %692, %693 : vector<8x128xf32>
    %695 = vector.extract_strided_slice %682 {offsets = [0, 256], sizes = [8, 128], strides = [1, 1]} : vector<8x512xf32> to vector<8x128xf32>
    %696 = math.tanh %695 : vector<8x128xf32>
    %697 = vector.extract_strided_slice %682 {offsets = [0, 384], sizes = [8, 128], strides = [1, 1]} : vector<8x512xf32> to vector<8x128xf32>
    %698 = arith.negf %697 : vector<8x128xf32>
    %699 = math.exp %698 : vector<8x128xf32>
    %cst_190 = arith.constant 1.000000e+00 : f32
    %700 = vector.broadcast %cst_190 : f32 to vector<8x128xf32>
    %701 = arith.addf %700, %699 : vector<8x128xf32>
    %702 = arith.divf %700, %701 : vector<8x128xf32>
    %703 = arith.mulf %694, %677 : vector<8x128xf32>
    %704 = arith.mulf %688, %696 : vector<8x128xf32>
    %705 = arith.addf %703, %704 : vector<8x128xf32>
    %706 = math.tanh %705 : vector<8x128xf32>
    %707 = arith.mulf %702, %706 : vector<8x128xf32>
    %c56_191 = arith.constant 56 : index
    %c0_192 = arith.constant 0 : index
    %708 = vector.load %arg19[%c56_191, %c0_192] : memref<64x128xf32, #tpu.memory_space<vmem>>, vector<8x128xf32>
    tpu.vector_store %arg19[%c56_191, %c0_192], %707 {strides = array<i32>} : memref<64x128xf32, #tpu.memory_space<vmem>>, vector<8x128xf32>,
    %c0_193 = arith.constant 0 : index
    %c0_194 = arith.constant 0 : index
    %709 = vector.load %arg19[%c0_193, %c0_194] : memref<64x128xf32, #tpu.memory_space<vmem>>, vector<64x128xf32>
    %cst_195 = arith.constant dense<0.000000e+00> : vector<64x512xf32>
    %710 = tpu.matmul %709, %8, %cst_195 {dimension_numbers = #tpu.dot_dimension_numbers<[1], [0], [0], [1], [0, 0, 1, 1], [], []>} : vector<64x128xf32>, vector<128x512xf32>, vector<64x512xf32> -> vector<64x512xf32>
    %711 = vector.broadcast %10 : vector<1x512xf32> to vector<64x512xf32>
    %712 = arith.addf %710, %711 : vector<64x512xf32>
    %c0_196 = arith.constant 0 : index
    %c0_197 = arith.constant 0 : index
    %713 = vector.load %arg18[%c0_196, %c0_197] : memref<64x512xf32, #tpu.memory_space<vmem>>, vector<64x512xf32>
    tpu.vector_store %arg18[%c0_196, %c0_197], %712 {strides = array<i32>} : memref<64x512xf32, #tpu.memory_space<vmem>>, vector<64x512xf32>,
    %c0_198 = arith.constant 0 : index
    %c0_199 = arith.constant 0 : index
    %714 = vector.load %arg18[%c0_198, %c0_199] : memref<64x512xf32, #tpu.memory_space<vmem>>, vector<8x512xf32>
    %cst_200 = arith.constant dense<0.000000e+00> : vector<8x512xf32>
    %715 = tpu.matmul %482, %9, %cst_200 {dimension_numbers = #tpu.dot_dimension_numbers<[1], [0], [0], [1], [0, 0, 1, 1], [], []>} : vector<8x128xf32>, vector<128x512xf32>, vector<8x512xf32> -> vector<8x512xf32>
    %716 = arith.addf %714, %715 : vector<8x512xf32>
    %717 = vector.extract_strided_slice %716 {offsets = [0, 0], sizes = [8, 128], strides = [1, 1]} : vector<8x512xf32> to vector<8x128xf32>
    %718 = arith.negf %717 : vector<8x128xf32>
    %719 = math.exp %718 : vector<8x128xf32>
    %cst_201 = arith.constant 1.000000e+00 : f32
    %720 = vector.broadcast %cst_201 : f32 to vector<8x128xf32>
    %721 = arith.addf %720, %719 : vector<8x128xf32>
    %722 = arith.divf %720, %721 : vector<8x128xf32>
    %723 = vector.extract_strided_slice %716 {offsets = [0, 128], sizes = [8, 128], strides = [1, 1]} : vector<8x512xf32> to vector<8x128xf32>
    %724 = arith.negf %723 : vector<8x128xf32>
    %725 = math.exp %724 : vector<8x128xf32>
    %cst_202 = arith.constant 1.000000e+00 : f32
    %726 = vector.broadcast %cst_202 : f32 to vector<8x128xf32>
    %727 = arith.addf %726, %725 : vector<8x128xf32>
    %728 = arith.divf %726, %727 : vector<8x128xf32>
    %729 = vector.extract_strided_slice %716 {offsets = [0, 256], sizes = [8, 128], strides = [1, 1]} : vector<8x512xf32> to vector<8x128xf32>
    %730 = math.tanh %729 : vector<8x128xf32>
    %731 = vector.extract_strided_slice %716 {offsets = [0, 384], sizes = [8, 128], strides = [1, 1]} : vector<8x512xf32> to vector<8x128xf32>
    %732 = arith.negf %731 : vector<8x128xf32>
    %733 = math.exp %732 : vector<8x128xf32>
    %cst_203 = arith.constant 1.000000e+00 : f32
    %734 = vector.broadcast %cst_203 : f32 to vector<8x128xf32>
    %735 = arith.addf %734, %733 : vector<8x128xf32>
    %736 = arith.divf %734, %735 : vector<8x128xf32>
    %737 = arith.mulf %728, %480 : vector<8x128xf32>
    %738 = arith.mulf %722, %730 : vector<8x128xf32>
    %739 = arith.addf %737, %738 : vector<8x128xf32>
    %740 = math.tanh %739 : vector<8x128xf32>
    %741 = arith.mulf %736, %740 : vector<8x128xf32>
    %c0_204 = arith.constant 0 : index
    %c0_205 = arith.constant 0 : index
    %742 = vector.load %arg19[%c0_204, %c0_205] : memref<64x128xf32, #tpu.memory_space<vmem>>, vector<8x128xf32>
    tpu.vector_store %arg19[%c0_204, %c0_205], %741 {strides = array<i32>} : memref<64x128xf32, #tpu.memory_space<vmem>>, vector<8x128xf32>,
    %c8_206 = arith.constant 8 : index
    %c0_207 = arith.constant 0 : index
    %743 = vector.load %arg18[%c8_206, %c0_207] : memref<64x512xf32, #tpu.memory_space<vmem>>, vector<8x512xf32>
    %cst_208 = arith.constant dense<0.000000e+00> : vector<8x512xf32>
    %744 = tpu.matmul %741, %9, %cst_208 {dimension_numbers = #tpu.dot_dimension_numbers<[1], [0], [0], [1], [0, 0, 1, 1], [], []>} : vector<8x128xf32>, vector<128x512xf32>, vector<8x512xf32> -> vector<8x512xf32>
    %745 = arith.addf %743, %744 : vector<8x512xf32>
    %746 = vector.extract_strided_slice %745 {offsets = [0, 0], sizes = [8, 128], strides = [1, 1]} : vector<8x512xf32> to vector<8x128xf32>
    %747 = arith.negf %746 : vector<8x128xf32>
    %748 = math.exp %747 : vector<8x128xf32>
    %cst_209 = arith.constant 1.000000e+00 : f32
    %749 = vector.broadcast %cst_209 : f32 to vector<8x128xf32>
    %750 = arith.addf %749, %748 : vector<8x128xf32>
    %751 = arith.divf %749, %750 : vector<8x128xf32>
    %752 = vector.extract_strided_slice %745 {offsets = [0, 128], sizes = [8, 128], strides = [1, 1]} : vector<8x512xf32> to vector<8x128xf32>
    %753 = arith.negf %752 : vector<8x128xf32>
    %754 = math.exp %753 : vector<8x128xf32>
    %cst_210 = arith.constant 1.000000e+00 : f32
    %755 = vector.broadcast %cst_210 : f32 to vector<8x128xf32>
    %756 = arith.addf %755, %754 : vector<8x128xf32>
    %757 = arith.divf %755, %756 : vector<8x128xf32>
    %758 = vector.extract_strided_slice %745 {offsets = [0, 256], sizes = [8, 128], strides = [1, 1]} : vector<8x512xf32> to vector<8x128xf32>
    %759 = math.tanh %758 : vector<8x128xf32>
    %760 = vector.extract_strided_slice %745 {offsets = [0, 384], sizes = [8, 128], strides = [1, 1]} : vector<8x512xf32> to vector<8x128xf32>
    %761 = arith.negf %760 : vector<8x128xf32>
    %762 = math.exp %761 : vector<8x128xf32>
    %cst_211 = arith.constant 1.000000e+00 : f32
    %763 = vector.broadcast %cst_211 : f32 to vector<8x128xf32>
    %764 = arith.addf %763, %762 : vector<8x128xf32>
    %765 = arith.divf %763, %764 : vector<8x128xf32>
    %766 = arith.mulf %757, %739 : vector<8x128xf32>
    %767 = arith.mulf %751, %759 : vector<8x128xf32>
    %768 = arith.addf %766, %767 : vector<8x128xf32>
    %769 = math.tanh %768 : vector<8x128xf32>
    %770 = arith.mulf %765, %769 : vector<8x128xf32>
    %c8_212 = arith.constant 8 : index
    %c0_213 = arith.constant 0 : index
    %771 = vector.load %arg19[%c8_212, %c0_213] : memref<64x128xf32, #tpu.memory_space<vmem>>, vector<8x128xf32>
    tpu.vector_store %arg19[%c8_212, %c0_213], %770 {strides = array<i32>} : memref<64x128xf32, #tpu.memory_space<vmem>>, vector<8x128xf32>,
    %c16_214 = arith.constant 16 : index
    %c0_215 = arith.constant 0 : index
    %772 = vector.load %arg18[%c16_214, %c0_215] : memref<64x512xf32, #tpu.memory_space<vmem>>, vector<8x512xf32>
    %cst_216 = arith.constant dense<0.000000e+00> : vector<8x512xf32>
    %773 = tpu.matmul %770, %9, %cst_216 {dimension_numbers = #tpu.dot_dimension_numbers<[1], [0], [0], [1], [0, 0, 1, 1], [], []>} : vector<8x128xf32>, vector<128x512xf32>, vector<8x512xf32> -> vector<8x512xf32>
    %774 = arith.addf %772, %773 : vector<8x512xf32>
    %775 = vector.extract_strided_slice %774 {offsets = [0, 0], sizes = [8, 128], strides = [1, 1]} : vector<8x512xf32> to vector<8x128xf32>
    %776 = arith.negf %775 : vector<8x128xf32>
    %777 = math.exp %776 : vector<8x128xf32>
    %cst_217 = arith.constant 1.000000e+00 : f32
    %778 = vector.broadcast %cst_217 : f32 to vector<8x128xf32>
    %779 = arith.addf %778, %777 : vector<8x128xf32>
    %780 = arith.divf %778, %779 : vector<8x128xf32>
    %781 = vector.extract_strided_slice %774 {offsets = [0, 128], sizes = [8, 128], strides = [1, 1]} : vector<8x512xf32> to vector<8x128xf32>
    %782 = arith.negf %781 : vector<8x128xf32>
    %783 = math.exp %782 : vector<8x128xf32>
    %cst_218 = arith.constant 1.000000e+00 : f32
    %784 = vector.broadcast %cst_218 : f32 to vector<8x128xf32>
    %785 = arith.addf %784, %783 : vector<8x128xf32>
    %786 = arith.divf %784, %785 : vector<8x128xf32>
    %787 = vector.extract_strided_slice %774 {offsets = [0, 256], sizes = [8, 128], strides = [1, 1]} : vector<8x512xf32> to vector<8x128xf32>
    %788 = math.tanh %787 : vector<8x128xf32>
    %789 = vector.extract_strided_slice %774 {offsets = [0, 384], sizes = [8, 128], strides = [1, 1]} : vector<8x512xf32> to vector<8x128xf32>
    %790 = arith.negf %789 : vector<8x128xf32>
    %791 = math.exp %790 : vector<8x128xf32>
    %cst_219 = arith.constant 1.000000e+00 : f32
    %792 = vector.broadcast %cst_219 : f32 to vector<8x128xf32>
    %793 = arith.addf %792, %791 : vector<8x128xf32>
    %794 = arith.divf %792, %793 : vector<8x128xf32>
    %795 = arith.mulf %786, %768 : vector<8x128xf32>
    %796 = arith.mulf %780, %788 : vector<8x128xf32>
    %797 = arith.addf %795, %796 : vector<8x128xf32>
    %798 = math.tanh %797 : vector<8x128xf32>
    %799 = arith.mulf %794, %798 : vector<8x128xf32>
    %c16_220 = arith.constant 16 : index
    %c0_221 = arith.constant 0 : index
    %800 = vector.load %arg19[%c16_220, %c0_221] : memref<64x128xf32, #tpu.memory_space<vmem>>, vector<8x128xf32>
    tpu.vector_store %arg19[%c16_220, %c0_221], %799 {strides = array<i32>} : memref<64x128xf32, #tpu.memory_space<vmem>>, vector<8x128xf32>,
    %c24_222 = arith.constant 24 : index
    %c0_223 = arith.constant 0 : index
    %801 = vector.load %arg18[%c24_222, %c0_223] : memref<64x512xf32, #tpu.memory_space<vmem>>, vector<8x512xf32>
    %cst_224 = arith.constant dense<0.000000e+00> : vector<8x512xf32>
    %802 = tpu.matmul %799, %9, %cst_224 {dimension_numbers = #tpu.dot_dimension_numbers<[1], [0], [0], [1], [0, 0, 1, 1], [], []>} : vector<8x128xf32>, vector<128x512xf32>, vector<8x512xf32> -> vector<8x512xf32>
    %803 = arith.addf %801, %802 : vector<8x512xf32>
    %804 = vector.extract_strided_slice %803 {offsets = [0, 0], sizes = [8, 128], strides = [1, 1]} : vector<8x512xf32> to vector<8x128xf32>
    %805 = arith.negf %804 : vector<8x128xf32>
    %806 = math.exp %805 : vector<8x128xf32>
    %cst_225 = arith.constant 1.000000e+00 : f32
    %807 = vector.broadcast %cst_225 : f32 to vector<8x128xf32>
    %808 = arith.addf %807, %806 : vector<8x128xf32>
    %809 = arith.divf %807, %808 : vector<8x128xf32>
    %810 = vector.extract_strided_slice %803 {offsets = [0, 128], sizes = [8, 128], strides = [1, 1]} : vector<8x512xf32> to vector<8x128xf32>
    %811 = arith.negf %810 : vector<8x128xf32>
    %812 = math.exp %811 : vector<8x128xf32>
    %cst_226 = arith.constant 1.000000e+00 : f32
    %813 = vector.broadcast %cst_226 : f32 to vector<8x128xf32>
    %814 = arith.addf %813, %812 : vector<8x128xf32>
    %815 = arith.divf %813, %814 : vector<8x128xf32>
    %816 = vector.extract_strided_slice %803 {offsets = [0, 256], sizes = [8, 128], strides = [1, 1]} : vector<8x512xf32> to vector<8x128xf32>
    %817 = math.tanh %816 : vector<8x128xf32>
    %818 = vector.extract_strided_slice %803 {offsets = [0, 384], sizes = [8, 128], strides = [1, 1]} : vector<8x512xf32> to vector<8x128xf32>
    %819 = arith.negf %818 : vector<8x128xf32>
    %820 = math.exp %819 : vector<8x128xf32>
    %cst_227 = arith.constant 1.000000e+00 : f32
    %821 = vector.broadcast %cst_227 : f32 to vector<8x128xf32>
    %822 = arith.addf %821, %820 : vector<8x128xf32>
    %823 = arith.divf %821, %822 : vector<8x128xf32>
    %824 = arith.mulf %815, %797 : vector<8x128xf32>
    %825 = arith.mulf %809, %817 : vector<8x128xf32>
    %826 = arith.addf %824, %825 : vector<8x128xf32>
    %827 = math.tanh %826 : vector<8x128xf32>
    %828 = arith.mulf %823, %827 : vector<8x128xf32>
    %c24_228 = arith.constant 24 : index
    %c0_229 = arith.constant 0 : index
    %829 = vector.load %arg19[%c24_228, %c0_229] : memref<64x128xf32, #tpu.memory_space<vmem>>, vector<8x128xf32>
    tpu.vector_store %arg19[%c24_228, %c0_229], %828 {strides = array<i32>} : memref<64x128xf32, #tpu.memory_space<vmem>>, vector<8x128xf32>,
    %c32_230 = arith.constant 32 : index
    %c0_231 = arith.constant 0 : index
    %830 = vector.load %arg18[%c32_230, %c0_231] : memref<64x512xf32, #tpu.memory_space<vmem>>, vector<8x512xf32>
    %cst_232 = arith.constant dense<0.000000e+00> : vector<8x512xf32>
    %831 = tpu.matmul %828, %9, %cst_232 {dimension_numbers = #tpu.dot_dimension_numbers<[1], [0], [0], [1], [0, 0, 1, 1], [], []>} : vector<8x128xf32>, vector<128x512xf32>, vector<8x512xf32> -> vector<8x512xf32>
    %832 = arith.addf %830, %831 : vector<8x512xf32>
    %833 = vector.extract_strided_slice %832 {offsets = [0, 0], sizes = [8, 128], strides = [1, 1]} : vector<8x512xf32> to vector<8x128xf32>
    %834 = arith.negf %833 : vector<8x128xf32>
    %835 = math.exp %834 : vector<8x128xf32>
    %cst_233 = arith.constant 1.000000e+00 : f32
    %836 = vector.broadcast %cst_233 : f32 to vector<8x128xf32>
    %837 = arith.addf %836, %835 : vector<8x128xf32>
    %838 = arith.divf %836, %837 : vector<8x128xf32>
    %839 = vector.extract_strided_slice %832 {offsets = [0, 128], sizes = [8, 128], strides = [1, 1]} : vector<8x512xf32> to vector<8x128xf32>
    %840 = arith.negf %839 : vector<8x128xf32>
    %841 = math.exp %840 : vector<8x128xf32>
    %cst_234 = arith.constant 1.000000e+00 : f32
    %842 = vector.broadcast %cst_234 : f32 to vector<8x128xf32>
    %843 = arith.addf %842, %841 : vector<8x128xf32>
    %844 = arith.divf %842, %843 : vector<8x128xf32>
    %845 = vector.extract_strided_slice %832 {offsets = [0, 256], sizes = [8, 128], strides = [1, 1]} : vector<8x512xf32> to vector<8x128xf32>
    %846 = math.tanh %845 : vector<8x128xf32>
    %847 = vector.extract_strided_slice %832 {offsets = [0, 384], sizes = [8, 128], strides = [1, 1]} : vector<8x512xf32> to vector<8x128xf32>
    %848 = arith.negf %847 : vector<8x128xf32>
    %849 = math.exp %848 : vector<8x128xf32>
    %cst_235 = arith.constant 1.000000e+00 : f32
    %850 = vector.broadcast %cst_235 : f32 to vector<8x128xf32>
    %851 = arith.addf %850, %849 : vector<8x128xf32>
    %852 = arith.divf %850, %851 : vector<8x128xf32>
    %853 = arith.mulf %844, %826 : vector<8x128xf32>
    %854 = arith.mulf %838, %846 : vector<8x128xf32>
    %855 = arith.addf %853, %854 : vector<8x128xf32>
    %856 = math.tanh %855 : vector<8x128xf32>
    %857 = arith.mulf %852, %856 : vector<8x128xf32>
    %c32_236 = arith.constant 32 : index
    %c0_237 = arith.constant 0 : index
    %858 = vector.load %arg19[%c32_236, %c0_237] : memref<64x128xf32, #tpu.memory_space<vmem>>, vector<8x128xf32>
    tpu.vector_store %arg19[%c32_236, %c0_237], %857 {strides = array<i32>} : memref<64x128xf32, #tpu.memory_space<vmem>>, vector<8x128xf32>,
    %c40_238 = arith.constant 40 : index
    %c0_239 = arith.constant 0 : index
    %859 = vector.load %arg18[%c40_238, %c0_239] : memref<64x512xf32, #tpu.memory_space<vmem>>, vector<8x512xf32>
    %cst_240 = arith.constant dense<0.000000e+00> : vector<8x512xf32>
    %860 = tpu.matmul %857, %9, %cst_240 {dimension_numbers = #tpu.dot_dimension_numbers<[1], [0], [0], [1], [0, 0, 1, 1], [], []>} : vector<8x128xf32>, vector<128x512xf32>, vector<8x512xf32> -> vector<8x512xf32>
    %861 = arith.addf %859, %860 : vector<8x512xf32>
    %862 = vector.extract_strided_slice %861 {offsets = [0, 0], sizes = [8, 128], strides = [1, 1]} : vector<8x512xf32> to vector<8x128xf32>
    %863 = arith.negf %862 : vector<8x128xf32>
    %864 = math.exp %863 : vector<8x128xf32>
    %cst_241 = arith.constant 1.000000e+00 : f32
    %865 = vector.broadcast %cst_241 : f32 to vector<8x128xf32>
    %866 = arith.addf %865, %864 : vector<8x128xf32>
    %867 = arith.divf %865, %866 : vector<8x128xf32>
    %868 = vector.extract_strided_slice %861 {offsets = [0, 128], sizes = [8, 128], strides = [1, 1]} : vector<8x512xf32> to vector<8x128xf32>
    %869 = arith.negf %868 : vector<8x128xf32>
    %870 = math.exp %869 : vector<8x128xf32>
    %cst_242 = arith.constant 1.000000e+00 : f32
    %871 = vector.broadcast %cst_242 : f32 to vector<8x128xf32>
    %872 = arith.addf %871, %870 : vector<8x128xf32>
    %873 = arith.divf %871, %872 : vector<8x128xf32>
    %874 = vector.extract_strided_slice %861 {offsets = [0, 256], sizes = [8, 128], strides = [1, 1]} : vector<8x512xf32> to vector<8x128xf32>
    %875 = math.tanh %874 : vector<8x128xf32>
    %876 = vector.extract_strided_slice %861 {offsets = [0, 384], sizes = [8, 128], strides = [1, 1]} : vector<8x512xf32> to vector<8x128xf32>
    %877 = arith.negf %876 : vector<8x128xf32>
    %878 = math.exp %877 : vector<8x128xf32>
    %cst_243 = arith.constant 1.000000e+00 : f32
    %879 = vector.broadcast %cst_243 : f32 to vector<8x128xf32>
    %880 = arith.addf %879, %878 : vector<8x128xf32>
    %881 = arith.divf %879, %880 : vector<8x128xf32>
    %882 = arith.mulf %873, %855 : vector<8x128xf32>
    %883 = arith.mulf %867, %875 : vector<8x128xf32>
    %884 = arith.addf %882, %883 : vector<8x128xf32>
    %885 = math.tanh %884 : vector<8x128xf32>
    %886 = arith.mulf %881, %885 : vector<8x128xf32>
    %c40_244 = arith.constant 40 : index
    %c0_245 = arith.constant 0 : index
    %887 = vector.load %arg19[%c40_244, %c0_245] : memref<64x128xf32, #tpu.memory_space<vmem>>, vector<8x128xf32>
    tpu.vector_store %arg19[%c40_244, %c0_245], %886 {strides = array<i32>} : memref<64x128xf32, #tpu.memory_space<vmem>>, vector<8x128xf32>,
    %c48_246 = arith.constant 48 : index
    %c0_247 = arith.constant 0 : index
    %888 = vector.load %arg18[%c48_246, %c0_247] : memref<64x512xf32, #tpu.memory_space<vmem>>, vector<8x512xf32>
    %cst_248 = arith.constant dense<0.000000e+00> : vector<8x512xf32>
    %889 = tpu.matmul %886, %9, %cst_248 {dimension_numbers = #tpu.dot_dimension_numbers<[1], [0], [0], [1], [0, 0, 1, 1], [], []>} : vector<8x128xf32>, vector<128x512xf32>, vector<8x512xf32> -> vector<8x512xf32>
    %890 = arith.addf %888, %889 : vector<8x512xf32>
    %891 = vector.extract_strided_slice %890 {offsets = [0, 0], sizes = [8, 128], strides = [1, 1]} : vector<8x512xf32> to vector<8x128xf32>
    %892 = arith.negf %891 : vector<8x128xf32>
    %893 = math.exp %892 : vector<8x128xf32>
    %cst_249 = arith.constant 1.000000e+00 : f32
    %894 = vector.broadcast %cst_249 : f32 to vector<8x128xf32>
    %895 = arith.addf %894, %893 : vector<8x128xf32>
    %896 = arith.divf %894, %895 : vector<8x128xf32>
    %897 = vector.extract_strided_slice %890 {offsets = [0, 128], sizes = [8, 128], strides = [1, 1]} : vector<8x512xf32> to vector<8x128xf32>
    %898 = arith.negf %897 : vector<8x128xf32>
    %899 = math.exp %898 : vector<8x128xf32>
    %cst_250 = arith.constant 1.000000e+00 : f32
    %900 = vector.broadcast %cst_250 : f32 to vector<8x128xf32>
    %901 = arith.addf %900, %899 : vector<8x128xf32>
    %902 = arith.divf %900, %901 : vector<8x128xf32>
    %903 = vector.extract_strided_slice %890 {offsets = [0, 256], sizes = [8, 128], strides = [1, 1]} : vector<8x512xf32> to vector<8x128xf32>
    %904 = math.tanh %903 : vector<8x128xf32>
    %905 = vector.extract_strided_slice %890 {offsets = [0, 384], sizes = [8, 128], strides = [1, 1]} : vector<8x512xf32> to vector<8x128xf32>
    %906 = arith.negf %905 : vector<8x128xf32>
    %907 = math.exp %906 : vector<8x128xf32>
    %cst_251 = arith.constant 1.000000e+00 : f32
    %908 = vector.broadcast %cst_251 : f32 to vector<8x128xf32>
    %909 = arith.addf %908, %907 : vector<8x128xf32>
    %910 = arith.divf %908, %909 : vector<8x128xf32>
    %911 = arith.mulf %902, %884 : vector<8x128xf32>
    %912 = arith.mulf %896, %904 : vector<8x128xf32>
    %913 = arith.addf %911, %912 : vector<8x128xf32>
    %914 = math.tanh %913 : vector<8x128xf32>
    %915 = arith.mulf %910, %914 : vector<8x128xf32>
    %c48_252 = arith.constant 48 : index
    %c0_253 = arith.constant 0 : index
    %916 = vector.load %arg19[%c48_252, %c0_253] : memref<64x128xf32, #tpu.memory_space<vmem>>, vector<8x128xf32>
    tpu.vector_store %arg19[%c48_252, %c0_253], %915 {strides = array<i32>} : memref<64x128xf32, #tpu.memory_space<vmem>>, vector<8x128xf32>,
    %c56_254 = arith.constant 56 : index
    %c0_255 = arith.constant 0 : index
    %917 = vector.load %arg18[%c56_254, %c0_255] : memref<64x512xf32, #tpu.memory_space<vmem>>, vector<8x512xf32>
    %cst_256 = arith.constant dense<0.000000e+00> : vector<8x512xf32>
    %918 = tpu.matmul %915, %9, %cst_256 {dimension_numbers = #tpu.dot_dimension_numbers<[1], [0], [0], [1], [0, 0, 1, 1], [], []>} : vector<8x128xf32>, vector<128x512xf32>, vector<8x512xf32> -> vector<8x512xf32>
    %919 = arith.addf %917, %918 : vector<8x512xf32>
    %920 = vector.extract_strided_slice %919 {offsets = [0, 0], sizes = [8, 128], strides = [1, 1]} : vector<8x512xf32> to vector<8x128xf32>
    %921 = arith.negf %920 : vector<8x128xf32>
    %922 = math.exp %921 : vector<8x128xf32>
    %cst_257 = arith.constant 1.000000e+00 : f32
    %923 = vector.broadcast %cst_257 : f32 to vector<8x128xf32>
    %924 = arith.addf %923, %922 : vector<8x128xf32>
    %925 = arith.divf %923, %924 : vector<8x128xf32>
    %926 = vector.extract_strided_slice %919 {offsets = [0, 128], sizes = [8, 128], strides = [1, 1]} : vector<8x512xf32> to vector<8x128xf32>
    %927 = arith.negf %926 : vector<8x128xf32>
    %928 = math.exp %927 : vector<8x128xf32>
    %cst_258 = arith.constant 1.000000e+00 : f32
    %929 = vector.broadcast %cst_258 : f32 to vector<8x128xf32>
    %930 = arith.addf %929, %928 : vector<8x128xf32>
    %931 = arith.divf %929, %930 : vector<8x128xf32>
    %932 = vector.extract_strided_slice %919 {offsets = [0, 256], sizes = [8, 128], strides = [1, 1]} : vector<8x512xf32> to vector<8x128xf32>
    %933 = math.tanh %932 : vector<8x128xf32>
    %934 = vector.extract_strided_slice %919 {offsets = [0, 384], sizes = [8, 128], strides = [1, 1]} : vector<8x512xf32> to vector<8x128xf32>
    %935 = arith.negf %934 : vector<8x128xf32>
    %936 = math.exp %935 : vector<8x128xf32>
    %cst_259 = arith.constant 1.000000e+00 : f32
    %937 = vector.broadcast %cst_259 : f32 to vector<8x128xf32>
    %938 = arith.addf %937, %936 : vector<8x128xf32>
    %939 = arith.divf %937, %938 : vector<8x128xf32>
    %940 = arith.mulf %931, %913 : vector<8x128xf32>
    %941 = arith.mulf %925, %933 : vector<8x128xf32>
    %942 = arith.addf %940, %941 : vector<8x128xf32>
    %943 = math.tanh %942 : vector<8x128xf32>
    %944 = arith.mulf %939, %943 : vector<8x128xf32>
    %c56_260 = arith.constant 56 : index
    %c0_261 = arith.constant 0 : index
    %945 = vector.load %arg19[%c56_260, %c0_261] : memref<64x128xf32, #tpu.memory_space<vmem>>, vector<8x128xf32>
    tpu.vector_store %arg19[%c56_260, %c0_261], %944 {strides = array<i32>} : memref<64x128xf32, #tpu.memory_space<vmem>>, vector<8x128xf32>,
    %c0_262 = arith.constant 0 : index
    %c0_263 = arith.constant 0 : index
    %946 = vector.load %arg19[%c0_262, %c0_263] : memref<64x128xf32, #tpu.memory_space<vmem>>, vector<64x128xf32>
    %cst_264 = arith.constant dense<0.000000e+00> : vector<64xf32>
    %947 = vector.multi_reduction <add>, %946, %cst_264 [1] : vector<64x128xf32> to vector<64xf32>
    %948 = vector.shape_cast %947 : vector<64xf32> to vector<64x1xf32>
    %cst_265 = arith.constant 3.125000e-02 : f32
    %949 = vector.broadcast %cst_265 : f32 to vector<64x1xf32>
    %950 = arith.mulf %948, %949 : vector<64x1xf32>
    %951 = arith.mulf %946, %946 : vector<64x128xf32>
    %cst_266 = arith.constant dense<0.000000e+00> : vector<64xf32>
    %952 = vector.multi_reduction <add>, %951, %cst_266 [1] : vector<64x128xf32> to vector<64xf32>
    %953 = vector.shape_cast %952 : vector<64xf32> to vector<64x1xf32>
    %cst_267 = arith.constant 3.125000e-02 : f32
    %954 = vector.broadcast %cst_267 : f32 to vector<64x1xf32>
    %955 = arith.mulf %953, %954 : vector<64x1xf32>
    %956 = arith.mulf %950, %950 : vector<64x1xf32>
    %957 = arith.subf %955, %956 : vector<64x1xf32>
    %958 = vector.broadcast %950 : vector<64x1xf32> to vector<64x128xf32>
    %959 = arith.subf %946, %958 : vector<64x128xf32>
    %cst_268 = arith.constant 9.99999974E-6 : f32
    %960 = vector.broadcast %cst_268 : f32 to vector<64x1xf32>
    %961 = arith.addf %957, %960 : vector<64x1xf32>
    %962 = math.rsqrt %961 : vector<64x1xf32>
    %963 = vector.broadcast %962 : vector<64x1xf32> to vector<64x128xf32>
    %964 = arith.mulf %959, %963 : vector<64x128xf32>
    %965 = vector.broadcast %11 : vector<1x128xf32> to vector<64x128xf32>
    %966 = arith.mulf %964, %965 : vector<64x128xf32>
    %967 = vector.broadcast %12 : vector<1x128xf32> to vector<64x128xf32>
    %968 = arith.addf %966, %967 : vector<64x128xf32>
    %cst_269 = arith.constant dense<0.000000e+00> : vector<64x128xf32>
    %969 = tpu.matmul %968, %13, %cst_269 {dimension_numbers = #tpu.dot_dimension_numbers<[1], [0], [0], [1], [0, 0, 1, 1], [], []>} : vector<64x128xf32>, vector<128x128xf32>, vector<64x128xf32> -> vector<64x128xf32>
    %970 = vector.broadcast %14 : vector<1x128xf32> to vector<64x128xf32>
    %971 = arith.addf %969, %970 : vector<64x128xf32>
    %972 = vector.shape_cast %971 : vector<64x128xf32> to vector<8x8x128xf32>
    %c0_270 = arith.constant 0 : index
    %c0_271 = arith.constant 0 : index
    %c0_272 = arith.constant 0 : index
    %973 = vector.load %arg17[%c0_270, %c0_271, %c0_272] : memref<8x8x128xf32, #tpu.memory_space<vmem>>, vector<8x8x128xf32>
    tpu.vector_store %arg17[%c0_270, %c0_271, %c0_272], %972 {strides = array<i32>} : memref<8x8x128xf32, #tpu.memory_space<vmem>>, vector<8x8x128xf32>,
    return
  }
  func.func @transform_0(%arg0: i32) -> (i32, i32, i32) {
    %c0_i32 = arith.constant 0 : i32
    %c0_i32_0 = arith.constant 0 : i32
    %c0_i32_1 = arith.constant 0 : i32
    return %c0_i32, %arg0, %c0_i32_0 : i32, i32, i32
  }
  func.func @transform_1(%arg0: i32) -> (i32, i32) {
    %c0_i32 = arith.constant 0 : i32
    %c0_i32_0 = arith.constant 0 : i32
    %c0_i32_1 = arith.constant 0 : i32
    return %c0_i32, %c0_i32_0 : i32, i32
  }
  func.func @transform_2(%arg0: i32) -> (i32, i32) {
    %c0_i32 = arith.constant 0 : i32
    %c0_i32_0 = arith.constant 0 : i32
    %c0_i32_1 = arith.constant 0 : i32
    return %c0_i32, %c0_i32_0 : i32, i32
  }
  func.func @transform_3(%arg0: i32) -> (i32, i32) {
    %c0_i32 = arith.constant 0 : i32
    %c0_i32_0 = arith.constant 0 : i32
    %c0_i32_1 = arith.constant 0 : i32
    return %c0_i32, %c0_i32_0 : i32, i32
  }
  func.func @transform_4(%arg0: i32) -> (i32, i32) {
    %c0_i32 = arith.constant 0 : i32
    %c0_i32_0 = arith.constant 0 : i32
    %c0_i32_1 = arith.constant 0 : i32
    return %c0_i32, %c0_i32_0 : i32, i32
  }
  func.func @transform_5(%arg0: i32) -> (i32, i32) {
    %c0_i32 = arith.constant 0 : i32
    %c0_i32_0 = arith.constant 0 : i32
    %c0_i32_1 = arith.constant 0 : i32
    return %c0_i32, %c0_i32_0 : i32, i32
  }
  func.func @transform_6(%arg0: i32) -> (i32, i32) {
    %c0_i32 = arith.constant 0 : i32
    %c0_i32_0 = arith.constant 0 : i32
    %c0_i32_1 = arith.constant 0 : i32
    return %c0_i32, %c0_i32_0 : i32, i32
  }
  func.func @transform_7(%arg0: i32) -> (i32, i32) {
    %c0_i32 = arith.constant 0 : i32
    %c0_i32_0 = arith.constant 0 : i32
    %c0_i32_1 = arith.constant 0 : i32
    return %c0_i32, %c0_i32_0 : i32, i32
  }
  func.func @transform_8(%arg0: i32) -> (i32, i32) {
    %c0_i32 = arith.constant 0 : i32
    %c0_i32_0 = arith.constant 0 : i32
    %c0_i32_1 = arith.constant 0 : i32
    return %c0_i32, %c0_i32_0 : i32, i32
  }
  func.func @transform_9(%arg0: i32) -> (i32, i32) {
    %c0_i32 = arith.constant 0 : i32
    %c0_i32_0 = arith.constant 0 : i32
    %c0_i32_1 = arith.constant 0 : i32
    return %c0_i32, %c0_i32_0 : i32, i32
  }
  func.func @transform_10(%arg0: i32) -> (i32, i32) {
    %c0_i32 = arith.constant 0 : i32
    %c0_i32_0 = arith.constant 0 : i32
    %c0_i32_1 = arith.constant 0 : i32
    return %c0_i32, %c0_i32_0 : i32, i32
  }
  func.func @transform_11(%arg0: i32) -> (i32, i32) {
    %c0_i32 = arith.constant 0 : i32
    %c0_i32_0 = arith.constant 0 : i32
    %c0_i32_1 = arith.constant 0 : i32
    return %c0_i32, %c0_i32_0 : i32, i32
  }
  func.func @transform_12(%arg0: i32) -> (i32, i32) {
    %c0_i32 = arith.constant 0 : i32
    %c0_i32_0 = arith.constant 0 : i32
    %c0_i32_1 = arith.constant 0 : i32
    return %c0_i32, %c0_i32_0 : i32, i32
  }
  func.func @transform_13(%arg0: i32) -> (i32, i32) {
    %c0_i32 = arith.constant 0 : i32
    %c0_i32_0 = arith.constant 0 : i32
    %c0_i32_1 = arith.constant 0 : i32
    return %c0_i32, %c0_i32_0 : i32, i32
  }
  func.func @transform_14(%arg0: i32) -> (i32, i32) {
    %c0_i32 = arith.constant 0 : i32
    %c0_i32_0 = arith.constant 0 : i32
    %c0_i32_1 = arith.constant 0 : i32
    return %c0_i32, %c0_i32_0 : i32, i32
  }
  func.func @transform_15(%arg0: i32) -> (i32, i32) {
    %c0_i32 = arith.constant 0 : i32
    %c0_i32_0 = arith.constant 0 : i32
    %c0_i32_1 = arith.constant 0 : i32
    return %c0_i32, %c0_i32_0 : i32, i32
  }
  func.func @transform_16(%arg0: i32) -> (i32, i32, i32) {
    %c0_i32 = arith.constant 0 : i32
    %c0_i32_0 = arith.constant 0 : i32
    %c0_i32_1 = arith.constant 0 : i32
    return %c0_i32, %arg0, %c0_i32_0 : i32, i32, i32
  }
}

</mosaic_0001>

<bundles_post_ra>
// kernel: pallas_forward.1
= control target key start
LH: loop header
LB: loop body
LE: loop exit
PB: predicated region body
PF: predicated region fallthrough
CT: control target
= control target key end

     0   :  { %s12633_s0 = inlined_call_operand.vmem [shape: f32[8,8,128], index: 0, kind: input, shape index: {}]   ;;  %s12634_s1 = inlined_call_operand.hbm [shape: f32[128,512], index: 1, kind: input, shape index: {}]   ;;  %s12635_s2 = inlined_call_operand.hbm [shape: f32[128,512], index: 2, kind: input, shape index: {}]   ;;  %s12636_s3 = inlined_call_operand.vmem [shape: f32[1,512], index: 3, kind: input, shape index: {}]   ;;  %s12637_s4 = inlined_call_operand.hbm [shape: f32[128,512], index: 4, kind: input, shape index: {}]   ;;  %s12638_s5 = inlined_call_operand.hbm [shape: f32[128,512], index: 5, kind: input, shape index: {}]   ;;  %s12639_s6 = inlined_call_operand.vmem [shape: f32[1,512], index: 6, kind: input, shape index: {}]   ;;  %s12640_s7 = inlined_call_operand.hbm [shape: f32[128,512], index: 7, kind: input, shape index: {}]   ;;  %s12641_s8 = inlined_call_operand.vmem [shape: f32[1,512], index: 8, kind: input, shape index: {}]   ;;  %s12642_s9 = inlined_call_operand.hbm [shape: f32[128,512], index: 9, kind: input, shape index: {}]   ;;  %s12643_s10 = inlined_call_operand.hbm [shape: f32[128,512], index: 10, kind: input, shape index: {}]   ;;  %s12644_s11 = inlined_call_operand.vmem [shape: f32[1,512], index: 11, kind: input, shape index: {}]   ;;  %s12645_s12 = inlined_call_operand.vmem [shape: f32[1,128], index: 12, kind: input, shape index: {}]   ;;  %s12646_s13 = inlined_call_operand.vmem [shape: f32[1,128], index: 13, kind: input, shape index: {}]   ;;  %s12647_s14 = inlined_call_operand.hbm [shape: f32[128,128], index: 14, kind: input, shape index: {}]   ;;  %s12648_s15 = inlined_call_operand.vmem [shape: f32[1,128], index: 15, kind: input, shape index: {}]   ;;  %s12649_s16 = inlined_call_operand.vmem [shape: f32[8,8,128], index: 16, kind: output, shape index: {}]  }
   0x1   :  { %13092 = sst [smem:[#allocation83_spill]] %s12633_s0 }
   0x2   :  { %21 = vsyncpa [#allocation5], 0 }
   0x3   :  { %22 = vsyncpa [#allocation7], 0 }
   0x4   :  { %23 = vsyncpa [#allocation10], 0 }
   0x5   :  { %24 = vsyncpa [#allocation13], 0 }
   0x6   :  { %25 = vsyncpa [#allocation16], 0  ;;  %s8477_s21 = smov [#allocation6]   ;;  %s8478_s23 = smov [#allocation9]  }
   0x7   :  { %s45_s22 = sshll.u32 %s8477_s21, 4  ;;  %s71_s24 = sshll.u32 %s8478_s23, 4  ;;  %s46_s22 = int_to_ptr.vmem [resolvable:$true] %s45_s22  ;;  %s72_s24 = int_to_ptr.vmem [resolvable:$true] %s71_s24 }
   0x8   :  { %s8315_s25 = scalar_lea.vmem %s46_s22, 8192  ;;  %p8320_p1 = scmp.lt.s32.totalorder %s46_s22, %s46_s22 }
   0x9   :  { %p8316_p0 = scmp.ne.s32.totalorder %s46_s22, %s8315_s25  ;;  %p8321_p2 = scmp.lt.s32.totalorder %s8315_s25, %s8315_s25 }
   0xb   :  { %p8322_p3 = por %p8321_p2, %p8320_p1 }
   0xd   :  { %p8323_p4 = pnand %p8322_p3, %p8316_p0 }
   0xf   :  { %8326 = shalt.err (!%p8323_p4)
}
  0x10   :  { %s8479_s26 = smov 512   ;;  %s8480_s27 = smov 32  }
  0x11   :  { %51 = dma.hbm_to_vmem [thread:$0]  %s12635_s2, 8192, %s46_s22, [#allocation7], %s8479_s26, %s8479_s26, %s8480_s27  }
  0x12   :  { %s8335_s30 = scalar_lea.vmem %s72_s24, 8192  ;;  %p8340_p6 = scmp.lt.s32.totalorder %s72_s24, %s72_s24 }
  0x13   :  { %p8336_p5 = scmp.ne.s32.totalorder %s72_s24, %s8335_s30  ;;  %p8341_p7 = scmp.lt.s32.totalorder %s8335_s30, %s8335_s30 }
  0x15   :  { %p8342_p8 = por %p8341_p7, %p8340_p6 }
  0x17   :  { %p8343_p9 = pnand %p8342_p8, %p8336_p5 }
  0x19   :  { %8346 = shalt.err (!%p8343_p9)
}
  0x1a   :  { %77 = dma.hbm_to_vmem [thread:$0]  %s12638_s5, 8192, %s72_s24, [#allocation10], %s8479_s26, %s8479_s26, %s8480_s27  }
  0x1b   :  { %s8481_s18 = smov [#allocation12]   ;;  %s8482_s20 = smov [#allocation4]  }
  0x1c   :  { %s99_s19 = sshll.u32 %s8481_s18, 4  ;;  %s33_s21 = sshll.u32 %s8482_s20, 4  ;;  %s100_s19 = int_to_ptr.vmem [resolvable:$true] %s99_s19  ;;  %s34_s21 = int_to_ptr.vmem [resolvable:$true] %s33_s21 }
  0x1d   :  { %s8355_s2 = scalar_lea.vmem %s100_s19, 8192  ;;  %p8360_p11 = scmp.lt.s32.totalorder %s100_s19, %s100_s19 }
  0x1e   :  { %p8356_p10 = scmp.ne.s32.totalorder %s100_s19, %s8355_s2  ;;  %p8361_p12 = scmp.lt.s32.totalorder %s8355_s2, %s8355_s2 }
  0x20   :  { %p8362_p13 = por %p8361_p12, %p8360_p11 }
  0x22   :  { %p8363_p0 = pnand %p8362_p13, %p8356_p10 }
  0x24   :  { %8366 = shalt.err (!%p8363_p0)
}
  0x25   :  { %105 = dma.hbm_to_vmem [thread:$0]  %s12642_s9, 8192, %s100_s19, [#allocation13], %s8479_s26, %s8479_s26, %s8480_s27  }
  0x26   :  { %s8375_s5 = scalar_lea.vmem %s34_s21, 8192  ;;  %p8380_p2 = scmp.lt.s32.totalorder %s34_s21, %s34_s21 }
  0x27   :  { %p8376_p1 = scmp.ne.s32.totalorder %s34_s21, %s8375_s5  ;;  %p8381_p3 = scmp.lt.s32.totalorder %s8375_s5, %s8375_s5 }
  0x29   :  { %p8382_p4 = por %p8381_p3, %p8380_p2 }
  0x2b   :  { %p8383_p5 = pnand %p8382_p4, %p8376_p1 }
  0x2d   :  { %8386 = shalt.err (!%p8383_p5)
}
  0x2e   :  { %39 = dma.hbm_to_vmem [thread:$0]  %s12634_s1, 8192, %s34_s21, [#allocation5], %s8479_s26, %s8479_s26, %s8480_s27  }
  0x2f   :  { %s8483_s28 = smov [#allocation8]   ;;  %s8484_s30 = smov [#allocation11]  }
  0x30   :  { %s59_s29 = sshll.u32 %s8483_s28, 4  ;;  %s85_s0 = sshll.u32 %s8484_s30, 4  ;;  %s60_s29 = int_to_ptr.vmem [resolvable:$true] %s59_s29  ;;  %s86_s0 = int_to_ptr.vmem [resolvable:$true] %s85_s0 }
  0x31   :  { %s8395_s9 = scalar_lea.vmem %s60_s29, 8192  ;;  %p8400_p7 = scmp.lt.s32.totalorder %s60_s29, %s60_s29 }
  0x32   :  { %p8396_p6 = scmp.ne.s32.totalorder %s60_s29, %s8395_s9  ;;  %p8401_p8 = scmp.lt.s32.totalorder %s8395_s9, %s8395_s9 }
  0x34   :  { %p8402_p9 = por %p8401_p8, %p8400_p7 }
  0x36   :  { %p8403_p10 = pnand %p8402_p9, %p8396_p6 }
  0x38   :  { %8406 = shalt.err (!%p8403_p10)
}
  0x39   :  { %65 = dma.hbm_to_vmem [thread:$0]  %s12637_s4, 8192, %s60_s29, [#allocation7], %s8479_s26, %s8479_s26, %s8480_s27  }
  0x3a   :  { %s8415_s1 = scalar_lea.vmem %s86_s0, 8192  ;;  %p8420_p12 = scmp.lt.s32.totalorder %s86_s0, %s86_s0 }
  0x3b   :  { %p8416_p11 = scmp.ne.s32.totalorder %s86_s0, %s8415_s1  ;;  %p8421_p13 = scmp.lt.s32.totalorder %s8415_s1, %s8415_s1 }
  0x3d   :  { %p8422_p0 = por %p8421_p13, %p8420_p12 }
  0x3f   :  { %p8423_p1 = pnand %p8422_p0, %p8416_p11 }
  0x41   :  { %8426 = shalt.err (!%p8423_p1)
}
  0x42   :  { %91 = dma.hbm_to_vmem [thread:$0]  %s12640_s7, 8192, %s86_s0, [#allocation10], %s8479_s26, %s8479_s26, %s8480_s27  }
  0x43   :  { %s8485_s21 = smov [#allocation14]   ;;  %s8486_s22 = smov [#allocation15]  }
  0x44   :  { %s111_s2 = sshll.u32 %s8485_s21, 4  ;;  %s129_s23 = sshll.u32 %s8486_s22, 4  ;;  %s112_s2 = int_to_ptr.vmem [resolvable:$true] %s111_s2  ;;  %s130_s23 = int_to_ptr.vmem [resolvable:$true] %s129_s23 }
  0x45   :  { %s8435_s4 = scalar_lea.vmem %s112_s2, 8192  ;;  %p8440_p3 = scmp.lt.s32.totalorder %s112_s2, %s112_s2 }
  0x46   :  { %p8436_p2 = scmp.ne.s32.totalorder %s112_s2, %s8435_s4  ;;  %p8441_p4 = scmp.lt.s32.totalorder %s8435_s4, %s8435_s4 }
  0x48   :  { %p8442_p5 = por %p8441_p4, %p8440_p3 }
  0x4a   :  { %p8443_p6 = pnand %p8442_p5, %p8436_p2 }
  0x4c   :  { %8446 = shalt.err (!%p8443_p6)
}
  0x4d   :  { %117 = dma.hbm_to_vmem [thread:$0]  %s12643_s10, 8192, %s112_s2, [#allocation13], %s8479_s26, %s8479_s26, %s8480_s27  }
  0x4e   :  { %s8455_s7 = scalar_lea.vmem %s130_s23, 2048  ;;  %p8460_p8 = scmp.lt.s32.totalorder %s130_s23, %s130_s23 }
  0x4f   :  { %p8456_p7 = scmp.ne.s32.totalorder %s130_s23, %s8455_s7  ;;  %p8461_p9 = scmp.lt.s32.totalorder %s8455_s7, %s8455_s7 }
  0x51   :  { %p8462_p10 = por %p8461_p9, %p8460_p8 }
  0x53   :  { %p8463_p11 = pnand %p8462_p10, %p8456_p7 }
  0x55   :  { %8466 = shalt.err (!%p8463_p11)
}
  0x56   :  { %s8487_s25 = smov 128   ;;  %s8488_s28 = smov 8  }
  0x57   :  { %135 = dma.hbm_to_vmem [thread:$0]  %s12647_s14, 2048, %s130_s23, [#allocation16], %s8487_s25, %s8487_s25, %s8488_s28  }
  0x58   :  { %8467 = dma.done.wait [#allocation5], 8192  }
  0x59   :  { %8468 = vsyncadd [#allocation5], 4294959104 }
  0x5a   :  { %8469 = dma.done.wait [#allocation7], 16384  }
  0x5b   :  { %8470 = vsyncadd [#allocation7], 4294950912 }
  0x5c   :  { %8471 = dma.done.wait [#allocation10], 16384  }
  0x5d   :  { %8472 = vsyncadd [#allocation10], 4294950912 }
  0x5e   :  { %8473 = dma.done.wait [#allocation13], 16384  }
  0x5f   :  { %8474 = vsyncadd [#allocation13], 4294950912 }
  0x60   :  { %8475 = dma.done.wait [#allocation16], 2048  }
  0x61   :  { %8476 = vsyncadd [#allocation16], 4294965248  ;;  %v12653_v0 = vmov 0.0   ;;  %v223_v1 = vld [vmem:[#allocation4 + $0x1e8] sm:$0xff]  ;;  %v222_v2 = vld [vmem:[#allocation4 + $0x1e0] sm:$0xff]  ;;  %s13103_s26 = sld [smem:[#allocation83_spill]] }
  0x62   :  { %726 = vmatprep.mubr.f32.mxu1 %v12653_v0  ;;  %988 = vmatprep.mubr.f32.mxu0 %v12653_v0  ;;  %v219_v3 = vld [vmem:[#allocation4 + $0x1c8] sm:$0xff]  ;;  %v218_v5 = vld [vmem:[#allocation4 + $0x1c0] sm:$0xff] }
  0x63   :  { %662 = vmatprep.subr.mxu1 %v223_v1  ;;  %v8622_v4 = vld [vmem:[#allocation6 + $0x1e8] sm:$0xff]  ;;  %v8624_v6 = vld [vmem:[#allocation6 + $0x1e0] sm:$0xff] }
  0x64   :  { %663 = vmatpush1.msra.mxu1 %v222_v2  ;;  %924 = vmatprep.subr.mxu0 %v8622_v4  ;;  %v215_v7 = vld [vmem:[#allocation4 + $0x1a8] sm:$0xff]  ;;  %v214_v9 = vld [vmem:[#allocation4 + $0x1a0] sm:$0xff]  ;;  %v225_v2 = vld [vmem:[#allocation4 + $0x1f8] sm:$0xff] }
  0x65   :  { %v8627_v8 = vld [vmem:[#allocation6 + $0x1c8] sm:$0xff]  ;;  %664 = vmatprep.subr.mxu1 %v219_v3  ;;  %925 = vmatpush1.msra.mxu0 %v8624_v6  ;;  %v8630_v10 = vld [vmem:[#allocation6 + $0x1c0] sm:$0xff]  ;;  %v224_v3 = vld [vmem:[#allocation4 + $0x1f0] sm:$0xff] }
  0x66   :  { %v8632_v11 = vld [vmem:[#allocation6 + $0x1a8] sm:$0xff]  ;;  %665 = vmatpush1.msra.mxu1 %v218_v5  ;;  %926 = vmatprep.subr.mxu0 %v8627_v8  ;;  %v8635_v13 = vld [vmem:[#allocation6 + $0x1a0] sm:$0xff] }
  0x67   :  { %v211_v12 = vld [vmem:[#allocation4 + $0x188] sm:$0xff]  ;;  %666 = vmatprep.subr.mxu1 %v215_v7  ;;  %927 = vmatpush1.msra.mxu0 %v8630_v10  ;;  %v210_v14 = vld [vmem:[#allocation4 + $0x180] sm:$0xff]  ;;  %v221_v7 = vld [vmem:[#allocation4 + $0x1d8] sm:$0xff] }
  0x68   :  { %v8638_v15 = vld [vmem:[#allocation6 + $0x188] sm:$0xff]  ;;  %667 = vmatpush1.msra.mxu1 %v214_v9  ;;  %928 = vmatprep.subr.mxu0 %v8632_v11  ;;  %v8641_v17 = vld [vmem:[#allocation6 + $0x180] sm:$0xff]  ;;  %v220_v9 = vld [vmem:[#allocation4 + $0x1d0] sm:$0xff] }
  0x69   :  { %v207_v16 = vld [vmem:[#allocation4 + $0x168] sm:$0xff]  ;;  %668 = vmatprep.subr.mxu1 %v211_v12  ;;  %929 = vmatpush1.msra.mxu0 %v8635_v13  ;;  %v206_v18 = vld [vmem:[#allocation4 + $0x160] sm:$0xff] }
  0x6a   :  { %v8644_v19 = vld [vmem:[#allocation6 + $0x168] sm:$0xff]  ;;  %669 = vmatpush1.msra.mxu1 %v210_v14  ;;  %930 = vmatprep.subr.mxu0 %v8638_v15  ;;  %v8647_v21 = vld [vmem:[#allocation6 + $0x160] sm:$0xff]  ;;  %v217_v14 = vld [vmem:[#allocation4 + $0x1b8] sm:$0xff] }
  0x6b   :  { %v203_v20 = vld [vmem:[#allocation4 + $0x148] sm:$0xff]  ;;  %670 = vmatprep.subr.mxu1 %v207_v16  ;;  %931 = vmatpush1.msra.mxu0 %v8641_v17  ;;  %v202_v22 = vld [vmem:[#allocation4 + $0x140] sm:$0xff]  ;;  %v216_v16 = vld [vmem:[#allocation4 + $0x1b0] sm:$0xff] }
  0x6c   :  { %v8650_v23 = vld [vmem:[#allocation6 + $0x148] sm:$0xff]  ;;  %671 = vmatpush1.msra.mxu1 %v206_v18  ;;  %932 = vmatprep.subr.mxu0 %v8644_v19  ;;  %v8653_v25 = vld [vmem:[#allocation6 + $0x140] sm:$0xff]  ;;  %v213_v18 = vld [vmem:[#allocation4 + $0x198] sm:$0xff] }
  0x6d   :  { %v199_v24 = vld [vmem:[#allocation4 + $0x128] sm:$0xff]  ;;  %672 = vmatprep.subr.mxu1 %v203_v20  ;;  %933 = vmatpush1.msra.mxu0 %v8647_v21  ;;  %v198_v26 = vld [vmem:[#allocation4 + $0x120] sm:$0xff]  ;;  %v212_v20 = vld [vmem:[#allocation4 + $0x190] sm:$0xff] }
  0x6e   :  { %v8656_v27 = vld [vmem:[#allocation6 + $0x128] sm:$0xff]  ;;  %673 = vmatpush1.msra.mxu1 %v202_v22  ;;  %934 = vmatprep.subr.mxu0 %v8650_v23  ;;  %v8659_v29 = vld [vmem:[#allocation6 + $0x120] sm:$0xff]  ;;  %v8736_v22 = vld [vmem:[%s13103_s26 + $0x10] sm:$0xff] }
  0x6f   :  { %v195_v28 = vld [vmem:[#allocation4 + $0x108] sm:$0xff]  ;;  %674 = vmatprep.subr.mxu1 %v199_v24  ;;  %935 = vmatpush1.msra.mxu0 %v8653_v25  ;;  %v194_v30 = vld [vmem:[#allocation4 + $0x100] sm:$0xff]  ;;  %v209_v24 = vld [vmem:[#allocation4 + $0x178] sm:$0xff] }
  0x70   :  { %v8662_v31 = vld [vmem:[#allocation6 + $0x108] sm:$0xff]  ;;  %675 = vmatpush1.msra.mxu1 %v198_v26  ;;  %936 = vmatprep.subr.mxu0 %v8656_v27  ;;  %v8665_v33 = vld [vmem:[#allocation6 + $0x100] sm:$0xff]  ;;  %v208_v26 = vld [vmem:[#allocation4 + $0x170] sm:$0xff] }
  0x71   :  { %v191_v32 = vld [vmem:[#allocation4 + $0xe8] sm:$0xff]  ;;  %676 = vmatprep.subr.mxu1 %v195_v28  ;;  %937 = vmatpush1.msra.mxu0 %v8659_v29  ;;  %v190_v34 = vld [vmem:[#allocation4 + $0xe0] sm:$0xff]  ;;  %v205_v28 = vld [vmem:[#allocation4 + $0x158] sm:$0xff] }
  0x72   :  { %v8668_v35 = vld [vmem:[#allocation6 + $0xe8] sm:$0xff]  ;;  %677 = vmatpush1.msra.mxu1 %v194_v30  ;;  %938 = vmatprep.subr.mxu0 %v8662_v31  ;;  %v8671_v37 = vld [vmem:[#allocation6 + $0xe0] sm:$0xff]  ;;  %v204_v30 = vld [vmem:[#allocation4 + $0x150] sm:$0xff] }
  0x73   :  { %v187_v36 = vld [vmem:[#allocation4 + $0xc8] sm:$0xff]  ;;  %678 = vmatprep.subr.mxu1 %v191_v32  ;;  %939 = vmatpush1.msra.mxu0 %v8665_v33  ;;  %v186_v38 = vld [vmem:[#allocation4 + $0xc0] sm:$0xff]  ;;  %v8745_v32 = vld [vmem:[%s13103_s26 + $0x18] sm:$0xff] }
  0x74   :  { %v8674_v39 = vld [vmem:[#allocation6 + $0xc8] sm:$0xff]  ;;  %679 = vmatpush1.msra.mxu1 %v190_v34  ;;  %940 = vmatprep.subr.mxu0 %v8668_v35  ;;  %v8677_v41 = vld [vmem:[#allocation6 + $0xc0] sm:$0xff]  ;;  %v201_v34 = vld [vmem:[#allocation4 + $0x138] sm:$0xff] }
  0x75   :  { %v183_v40 = vld [vmem:[#allocation4 + $0xa8] sm:$0xff]  ;;  %680 = vmatprep.subr.mxu1 %v187_v36  ;;  %941 = vmatpush1.msra.mxu0 %v8671_v37  ;;  %v182_v42 = vld [vmem:[#allocation4 + $0xa0] sm:$0xff]  ;;  %v200_v36 = vld [vmem:[#allocation4 + $0x130] sm:$0xff] }
  0x76   :  { %v8680_v43 = vld [vmem:[#allocation6 + $0xa8] sm:$0xff]  ;;  %681 = vmatpush1.msra.mxu1 %v186_v38  ;;  %942 = vmatprep.subr.mxu0 %v8674_v39  ;;  %v8683_v45 = vld [vmem:[#allocation6 + $0xa0] sm:$0xff]  ;;  %v197_v38 = vld [vmem:[#allocation4 + $0x118] sm:$0xff] }
  0x77   :  { %v179_v44 = vld [vmem:[#allocation4 + $0x88] sm:$0xff]  ;;  %13093 = vst [vmem:[#allocation22_spill] sm:$0xff] %v8683_v45  ;;  %682 = vmatprep.subr.mxu1 %v183_v40  ;;  %943 = vmatpush1.msra.mxu0 %v8677_v41  ;;  %v178_v46 = vld [vmem:[#allocation4 + $0x80] sm:$0xff]  ;;  %v196_v40 = vld [vmem:[#allocation4 + $0x110] sm:$0xff] }
  0x78   :  { %v8686_v47 = vld [vmem:[#allocation6 + $0x88] sm:$0xff]  ;;  %683 = vmatpush1.msra.mxu1 %v182_v42  ;;  %944 = vmatprep.subr.mxu0 %v8680_v43  ;;  %v8689_v49 = vld [vmem:[#allocation6 + $0x80] sm:$0xff] }
  0x79   :  { %13094 = vst [vmem:[#allocation23_spill] sm:$0xff] %v8686_v47  ;;  %v175_v48 = vld [vmem:[#allocation4 + $0x68] sm:$0xff]  ;;  %13095 = vst [vmem:[#allocation24_spill] sm:$0xff] %v8689_v49  ;;  %684 = vmatprep.subr.mxu1 %v179_v44  ;;  %945 = vmatpush1.msra.mxu0 %v8683_v45  ;;  %v174_v50 = vld [vmem:[#allocation4 + $0x60] sm:$0xff] }
  0x7a   :  { %v8692_v51 = vld [vmem:[#allocation6 + $0x68] sm:$0xff]  ;;  %685 = vmatpush1.msra.mxu1 %v178_v46  ;;  %946 = vmatprep.subr.mxu0 %v8686_v47  ;;  %v8695_v53 = vld [vmem:[#allocation6 + $0x60] sm:$0xff]  ;;  %v193_v44 = vld [vmem:[#allocation4 + $0xf8] sm:$0xff] }
  0x7b   :  { %13096 = vst [vmem:[#allocation25_spill] sm:$0xff] %v8692_v51  ;;  %v171_v52 = vld [vmem:[#allocation4 + $0x48] sm:$0xff]  ;;  %13097 = vst [vmem:[#allocation26_spill] sm:$0xff] %v8695_v53  ;;  %686 = vmatprep.subr.mxu1 %v175_v48  ;;  %947 = vmatpush1.msra.mxu0 %v8689_v49  ;;  %v170_v54 = vld [vmem:[#allocation4 + $0x40] sm:$0xff] }
  0x7c   :  { %v8698_v55 = vld [vmem:[#allocation6 + $0x48] sm:$0xff]  ;;  %687 = vmatpush1.msra.mxu1 %v174_v50  ;;  %948 = vmatprep.subr.mxu0 %v8692_v51  ;;  %v8701_v57 = vld [vmem:[#allocation6 + $0x40] sm:$0xff]  ;;  %v192_v46 = vld [vmem:[#allocation4 + $0xf0] sm:$0xff] }
  0x7d   :  { %13098 = vst [vmem:[#allocation27_spill] sm:$0xff] %v8698_v55  ;;  %v167_v56 = vld [vmem:[#allocation4 + $0x28] sm:$0xff]  ;;  %13099 = vst [vmem:[#allocation28_spill] sm:$0xff] %v8701_v57  ;;  %688 = vmatprep.subr.mxu1 %v171_v52  ;;  %949 = vmatpush1.msra.mxu0 %v8695_v53  ;;  %v166_v58 = vld [vmem:[#allocation4 + $0x20] sm:$0xff] }
  0x7e   :  { %v8704_v59 = vld [vmem:[#allocation6 + $0x28] sm:$0xff]  ;;  %689 = vmatpush1.msra.mxu1 %v170_v54  ;;  %950 = vmatprep.subr.mxu0 %v8698_v55  ;;  %v8707_v61 = vld [vmem:[#allocation6 + $0x20] sm:$0xff]  ;;  %v189_v48 = vld [vmem:[#allocation4 + $0xd8] sm:$0xff] }
  0x7f   :  { %13100 = vst [vmem:[#allocation29_spill] sm:$0xff] %v8704_v59  ;;  %v163_v60 = vld [vmem:[#allocation4 + $0x8] sm:$0xff]  ;;  %13101 = vst [vmem:[#allocation30_spill] sm:$0xff] %v8707_v61  ;;  %690 = vmatprep.subr.mxu1 %v167_v56  ;;  %951 = vmatpush1.msra.mxu0 %v8701_v57  ;;  %v162_v62 = vld [vmem:[#allocation4] sm:$0xff] }
  0x80   :  { %v8710_v63 = vld [vmem:[#allocation6 + $0x8] sm:$0xff]  ;;  %691 = vmatpush1.msra.mxu1 %v166_v58  ;;  %952 = vmatprep.subr.mxu0 %v8704_v59  ;;  %v8716_v1 = vld [vmem:[%s13103_s26] sm:$0xff]  ;;  %v188_v50 = vld [vmem:[#allocation4 + $0xd0] sm:$0xff] }
  0x81   :  { %13102 = vst [vmem:[#allocation31_spill] sm:$0xff] %v8710_v63  ;;  %692 = vmatprep.subr.mxu1 %v163_v60  ;;  %953 = vmatpush1.msra.mxu0 %v8707_v61  ;;  %v8719_v5 = vld [vmem:[#allocation6] sm:$0xff]  ;;  %v8727_v12 = vld [vmem:[%s13103_s26 + $0x8] sm:$0xff]  ;;  %v185_v54 = vld [vmem:[#allocation4 + $0xb8] sm:$0xff] }
  0x82   :  { %13104 = vst [vmem:[#allocation32_spill] sm:$0xff] %v8719_v5  ;;  %693 = vmatpush1.msra.mxu1 %v162_v62  ;;  %954 = vmatprep.subr.mxu0 %v8710_v63  ;;  %v8754_v42 = vld [vmem:[%s13103_s26 + $0x20] sm:$0xff]  ;;  %v8763_v52 = vld [vmem:[%s13103_s26 + $0x28] sm:$0xff]  ;;  %v184_v56 = vld [vmem:[#allocation4 + $0xb0] sm:$0xff] }
  0x83   :  { %727 = vmatmul.mubr.f32.vlgmr.msra.gmra.mxu1 %v8716_v1  ;;  %775 = vmatprep.subr.mxu1 %v225_v2  ;;  %v181_v58 = vld [vmem:[#allocation4 + $0x98] sm:$0xff]  ;;  %v180_v60 = vld [vmem:[#allocation4 + $0x90] sm:$0xff] }
  0x84   :  { %776 = vmatpush1.msra.mxu1 %v224_v3  ;;  %955 = vmatpush1.msra.mxu0 %v8719_v5  ;;  %v8772_v62 = vld [vmem:[%s13103_s26 + $0x30] sm:$0xff]  ;;  %v177_v2 = vld [vmem:[#allocation4 + $0x78] sm:$0xff] }
  0x85   :  { %777 = vmatprep.subr.mxu1 %v221_v7  ;;  %989 = vmatmul.mubr.f32.vlgmr.msra.gmra.mxu0 %v12653_v0  ;;  %v176_v3 = vld [vmem:[#allocation4 + $0x70] sm:$0xff]  ;;  %v173_v7 = vld [vmem:[#allocation4 + $0x58] sm:$0xff] }
  0x86   :  { %732 = vmatprep.mubr.f32.mxu1 %v12653_v0  ;;  %778 = vmatpush1.msra.mxu1 %v220_v9  ;;  %v172_v9 = vld [vmem:[#allocation4 + $0x50] sm:$0xff] }
  0x87   :  { %733 = vmatmul.mubr.f32.gmra.mxu1 %v8727_v12  ;;  %779 = vmatprep.subr.mxu1 %v217_v14  ;;  %v8781_v14 = vld [vmem:[%s13103_s26 + $0x38] sm:$0xff] }
  0x88   :  { %780 = vmatpush1.msra.mxu1 %v216_v16  ;;  %738 = vmatprep.mubr.f32.mxu1 %v12653_v0  ;;  %v169_v16 = vld [vmem:[#allocation4 + $0x38] sm:$0xff] }
  0x89   :  { %781 = vmatprep.subr.mxu1 %v213_v18  ;;  %1099 = vmatprep.subr.mxu0 %v8622_v4  ;;  %v168_v18 = vld [vmem:[#allocation4 + $0x30] sm:$0xff] }
  0x8a   :  { %782 = vmatpush1.msra.mxu1 %v212_v20  ;;  %1100 = vmatpush1.msra.mxu0 %v8624_v6  ;;  %v165_v20 = vld [vmem:[#allocation4 + $0x18] sm:$0xff] }
  0x8b   :  { %739 = vmatmul.mubr.f32.gmra.mxu1 %v8736_v22  ;;  %783 = vmatprep.subr.mxu1 %v209_v24  ;;  %v164_v24 = vld [vmem:[#allocation4 + $0x10] sm:$0xff] }
  0x8c   :  { %784 = vmatpush1.msra.mxu1 %v208_v26  ;;  %744 = vmatprep.mubr.f32.mxu1 %v12653_v0  ;;  %v8787_v26 = vld [vmem:[#allocation6 + $0x1f8] sm:$0xff] }
  0x8d   :  { %785 = vmatprep.subr.mxu1 %v205_v28  ;;  %1101 = vmatprep.subr.mxu0 %v8627_v8  ;;  %13105 = vst [vmem:[#allocation33_spill] sm:$0xff] %v8787_v26  ;;  %v8789_v28 = vld [vmem:[#allocation6 + $0x1f0] sm:$0xff] }
  0x8e   :  { %786 = vmatpush1.msra.mxu1 %v204_v30  ;;  %1102 = vmatpush1.msra.mxu0 %v8630_v10  ;;  %v8792_v30 = vld [vmem:[#allocation6 + $0x1d8] sm:$0xff] }
  0x8f   :  { %745 = vmatmul.mubr.f32.gmra.mxu1 %v8745_v32  ;;  %787 = vmatprep.subr.mxu1 %v201_v34  ;;  %v8797_v34 = vld [vmem:[#allocation6 + $0x1d0] sm:$0xff] }
  0x90   :  { %788 = vmatpush1.msra.mxu1 %v200_v36  ;;  %750 = vmatprep.mubr.f32.mxu1 %v12653_v0  ;;  %v8801_v36 = vld [vmem:[#allocation6 + $0x1b8] sm:$0xff] }
  0x91   :  { %789 = vmatprep.subr.mxu1 %v197_v38  ;;  %1103 = vmatprep.subr.mxu0 %v8632_v11  ;;  %v8804_v38 = vld [vmem:[#allocation6 + $0x1b0] sm:$0xff] }
  0x92   :  { %790 = vmatpush1.msra.mxu1 %v196_v40  ;;  %1104 = vmatpush1.msra.mxu0 %v8635_v13  ;;  %v8808_v40 = vld [vmem:[#allocation6 + $0x198] sm:$0xff] }
  0x93   :  { %751 = vmatmul.mubr.f32.gmra.mxu1 %v8754_v42  ;;  %791 = vmatprep.subr.mxu1 %v193_v44  ;;  %v8817_v44 = vld [vmem:[#allocation6 + $0x178] sm:$0xff] }
  0x94   :  { %792 = vmatpush1.msra.mxu1 %v192_v46  ;;  %756 = vmatprep.mubr.f32.mxu1 %v12653_v0  ;;  %v8820_v46 = vld [vmem:[#allocation6 + $0x170] sm:$0xff] }
  0x95   :  { %793 = vmatprep.subr.mxu1 %v189_v48  ;;  %1105 = vmatprep.subr.mxu0 %v8638_v15  ;;  %v8824_v48 = vld [vmem:[#allocation6 + $0x158] sm:$0xff] }
  0x96   :  { %794 = vmatpush1.msra.mxu1 %v188_v50  ;;  %1106 = vmatpush1.msra.mxu0 %v8641_v17  ;;  %v8833_v50 = vld [vmem:[#allocation6 + $0x138] sm:$0xff] }
  0x97   :  { %757 = vmatmul.mubr.f32.gmra.mxu1 %v8763_v52  ;;  %795 = vmatprep.subr.mxu1 %v185_v54  ;;  %v8836_v54 = vld [vmem:[#allocation6 + $0x130] sm:$0xff] }
  0x98   :  { %796 = vmatpush1.msra.mxu1 %v184_v56  ;;  %762 = vmatprep.mubr.f32.mxu1 %v12653_v0  ;;  %v8840_v56 = vld [vmem:[#allocation6 + $0x118] sm:$0xff] }
  0x99   :  { %797 = vmatprep.subr.mxu1 %v181_v58  ;;  %1107 = vmatprep.subr.mxu0 %v8644_v19  ;;  %v8849_v58 = vld [vmem:[#allocation6 + $0xf8] sm:$0xff] }
  0x9a   :  { %798 = vmatpush1.msra.mxu1 %v180_v60  ;;  %1108 = vmatpush1.msra.mxu0 %v8647_v21  ;;  %v8852_v60 = vld [vmem:[#allocation6 + $0xf0] sm:$0xff] }
  0x9b   :  { %763 = vmatmul.mubr.f32.gmra.mxu1 %v8772_v62  ;;  %799 = vmatprep.subr.mxu1 %v177_v2  ;;  %v8856_v2 = vld [vmem:[#allocation6 + $0xd8] sm:$0xff] }
  0x9c   :  { %800 = vmatpush1.msra.mxu1 %v176_v3  ;;  %768 = vmatprep.mubr.f32.mxu1 %v12653_v0  ;;  %v8865_v3 = vld [vmem:[#allocation6 + $0xb8] sm:$0xff] }
  0x9d   :  { %801 = vmatprep.subr.mxu1 %v173_v7  ;;  %1109 = vmatprep.subr.mxu0 %v8650_v23  ;;  %v8868_v7 = vld [vmem:[#allocation6 + $0xb0] sm:$0xff] }
  0x9e   :  { %802 = vmatpush1.msra.mxu1 %v172_v9  ;;  %1110 = vmatpush1.msra.mxu0 %v8653_v25  ;;  %13106 = vst [vmem:[#allocation34_spill] sm:$0xff] %v8868_v7  ;;  %v8872_v9 = vld [vmem:[#allocation6 + $0x98] sm:$0xff] }
  0x9f   :  { %769 = vmatmul.mubr.f32.gmra.mxu1 %v8781_v14  ;;  %803 = vmatprep.subr.mxu1 %v169_v16  ;;  %13107 = vst [vmem:[#allocation35_spill] sm:$0xff] %v8872_v9  ;;  %v8881_v16 = vld [vmem:[#allocation6 + $0x78] sm:$0xff] }
  0xa0   :  { %804 = vmatpush1.msra.mxu1 %v168_v18  ;;  %839 = vmatprep.mubr.f32.mxu1 %v12653_v0  ;;  %13109 = vst [vmem:[#allocation37_spill] sm:$0xff] %v8881_v16  ;;  %v8884_v18 = vld [vmem:[#allocation6 + $0x70] sm:$0xff] }
  0xa1   :  { %805 = vmatprep.subr.mxu1 %v165_v20  ;;  %1111 = vmatprep.subr.mxu0 %v8656_v27  ;;  %13110 = vst [vmem:[#allocation38_spill] sm:$0xff] %v8884_v18  ;;  %v8888_v20 = vld [vmem:[#allocation6 + $0x58] sm:$0xff] }
  0xa2   :  { %806 = vmatpush1.msra.mxu1 %v164_v24  ;;  %1112 = vmatpush1.msra.mxu0 %v8659_v29  ;;  %13111 = vst [vmem:[#allocation39_spill] sm:$0xff] %v8888_v20  ;;  %v8897_v24 = vld [vmem:[#allocation6 + $0x38] sm:$0xff] }
  0xa3   :  { %840 = vmatmul.mubr.f32.vlgmr.msra.gmra.mxu1 %v8716_v1  ;;  %995 = vmatprep.subr.mxu1 %v8787_v26  ;;  %v8813_v1 = vld [vmem:[#allocation6 + $0x190] sm:$0xff]  ;;  %13113 = vst [vmem:[#allocation41_spill] sm:$0xff] %v8897_v24 }
  0xa4   :  { %996 = vmatpush1.msra.mxu1 %v8789_v28  ;;  %845 = vmatprep.mubr.f32.mxu1 %v12653_v0 }
  0xa5   :  { %997 = vmatprep.subr.mxu1 %v8792_v30  ;;  %1113 = vmatprep.subr.mxu0 %v8662_v31 }
  0xa6   :  { %998 = vmatpush1.msra.mxu1 %v8797_v34  ;;  %1114 = vmatpush1.msra.mxu0 %v8665_v33 }
  0xa7   :  { %846 = vmatmul.mubr.f32.gmra.mxu1 %v8727_v12  ;;  %999 = vmatprep.subr.mxu1 %v8801_v36  ;;  %v8829_v12 = vld [vmem:[#allocation6 + $0x150] sm:$0xff] }
  0xa8   :  { %1000 = vmatpush1.msra.mxu1 %v8804_v38  ;;  %851 = vmatprep.mubr.f32.mxu1 %v12653_v0 }
  0xa9   :  { %1001 = vmatprep.subr.mxu1 %v8808_v40  ;;  %1115 = vmatprep.subr.mxu0 %v8668_v35 }
  0xaa   :  { %1002 = vmatpush1.msra.mxu1 %v8813_v1  ;;  %1116 = vmatpush1.msra.mxu0 %v8671_v37 }
  0xab   :  { %852 = vmatmul.mubr.f32.gmra.mxu1 %v8736_v22  ;;  %1003 = vmatprep.subr.mxu1 %v8817_v44  ;;  %v8845_v22 = vld [vmem:[#allocation6 + $0x110] sm:$0xff] }
  0xac   :  { %1004 = vmatpush1.msra.mxu1 %v8820_v46  ;;  %857 = vmatprep.mubr.f32.mxu1 %v12653_v0 }
  0xad   :  { %1005 = vmatprep.subr.mxu1 %v8824_v48  ;;  %1117 = vmatprep.subr.mxu0 %v8674_v39 }
  0xae   :  { %1006 = vmatpush1.msra.mxu1 %v8829_v12  ;;  %1118 = vmatpush1.msra.mxu0 %v8677_v41 }
  0xaf   :  { %858 = vmatmul.mubr.f32.gmra.mxu1 %v8745_v32  ;;  %1007 = vmatprep.subr.mxu1 %v8833_v50  ;;  %v8861_v32 = vld [vmem:[#allocation6 + $0xd0] sm:$0xff] }
  0xb0   :  { %1008 = vmatpush1.msra.mxu1 %v8836_v54  ;;  %863 = vmatprep.mubr.f32.mxu1 %v12653_v0 }
  0xb1   :  { %1009 = vmatprep.subr.mxu1 %v8840_v56  ;;  %1119 = vmatprep.subr.mxu0 %v8680_v43 }
  0xb2   :  { %1010 = vmatpush1.msra.mxu1 %v8845_v22  ;;  %1120 = vmatpush1.msra.mxu0 %v8683_v45 }
  0xb3   :  { %864 = vmatmul.mubr.f32.gmra.mxu1 %v8754_v42  ;;  %1011 = vmatprep.subr.mxu1 %v8849_v58  ;;  %v8877_v42 = vld [vmem:[#allocation6 + $0x90] sm:$0xff] }
  0xb4   :  { %1012 = vmatpush1.msra.mxu1 %v8852_v60  ;;  %869 = vmatprep.mubr.f32.mxu1 %v12653_v0  ;;  %13108 = vst [vmem:[#allocation36_spill] sm:$0xff] %v8877_v42 }
  0xb5   :  { %1013 = vmatprep.subr.mxu1 %v8856_v2  ;;  %1121 = vmatprep.subr.mxu0 %v8686_v47 }
  0xb6   :  { %1014 = vmatpush1.msra.mxu1 %v8861_v32  ;;  %1122 = vmatpush1.msra.mxu0 %v8689_v49 }
  0xb7   :  { %870 = vmatmul.mubr.f32.gmra.mxu1 %v8763_v52  ;;  %1015 = vmatprep.subr.mxu1 %v8865_v3  ;;  %v8893_v52 = vld [vmem:[#allocation6 + $0x50] sm:$0xff] }
  0xb8   :  { %1016 = vmatpush1.msra.mxu1 %v8868_v7  ;;  %875 = vmatprep.mubr.f32.mxu1 %v12653_v0  ;;  %13112 = vst [vmem:[#allocation40_spill] sm:$0xff] %v8893_v52 }
  0xb9   :  { %1017 = vmatprep.subr.mxu1 %v8872_v9  ;;  %1123 = vmatprep.subr.mxu0 %v8692_v51  ;;  %v8900_v51 = vld [vmem:[#allocation6 + $0x30] sm:$0xff] }
  0xba   :  { %1018 = vmatpush1.msra.mxu1 %v8877_v42  ;;  %1124 = vmatpush1.msra.mxu0 %v8695_v53  ;;  %13114 = vst [vmem:[#allocation42_spill] sm:$0xff] %v8900_v51  ;;  %v8904_v53 = vld [vmem:[#allocation6 + $0x18] sm:$0xff] }
  0xbb   :  { %876 = vmatmul.mubr.f32.gmra.mxu1 %v8772_v62  ;;  %1019 = vmatprep.subr.mxu1 %v8881_v16  ;;  %13115 = vst [vmem:[#allocation43_spill] sm:$0xff] %v8904_v53  ;;  %v8909_v62 = vld [vmem:[#allocation6 + $0x10] sm:$0xff] }
  0xbc   :  { %1020 = vmatpush1.msra.mxu1 %v8884_v18  ;;  %881 = vmatprep.mubr.f32.mxu1 %v12653_v0  ;;  %13116 = vst [vmem:[#allocation44_spill] sm:$0xff] %v8909_v62 }
  0xbd   :  { %1021 = vmatprep.subr.mxu1 %v8888_v20  ;;  %1125 = vmatprep.subr.mxu0 %v8698_v55 }
  0xbe   :  { %1022 = vmatpush1.msra.mxu1 %v8893_v52  ;;  %1126 = vmatpush1.msra.mxu0 %v8701_v57 }
  0xbf   :  { %882 = vmatmul.mubr.f32.gmra.mxu1 %v8781_v14  ;;  %1023 = vmatprep.subr.mxu1 %v8897_v24 }
  0xc0   :  { %1024 = vmatpush1.msra.mxu1 %v8900_v51  ;;  %1059 = vmatprep.mubr.f32.mxu1 %v12653_v0 }
  0xc1   :  { %1025 = vmatprep.subr.mxu1 %v8904_v53  ;;  %1127 = vmatprep.subr.mxu0 %v8704_v59 }
  0xc2   :  { %1026 = vmatpush1.msra.mxu1 %v8909_v62  ;;  %1128 = vmatpush1.msra.mxu0 %v8707_v61 }
  0xc3   :  { %1060 = vmatmul.mubr.f32.vlgmr.msra.gmra.mxu1 %v12653_v0  ;;  %1170 = vmatprep.subr.mxu1 %v8787_v26 }
  0xc4   :  { %1171 = vmatpush1.msra.mxu1 %v8789_v28  ;;  %1129 = vmatprep.subr.mxu0 %v8710_v63 }
  0xc5   :  { %1172 = vmatprep.subr.mxu1 %v8792_v30  ;;  %1130 = vmatpush1.msra.mxu0 %v8719_v5  ;;  %v290_v5 = vld [vmem:[%s12636_s3] sm:$0xf] }
  0xc6   :  { %1173 = vmatpush1.msra.mxu1 %v8797_v34  ;;  %1163 = vmatprep.mubr.f32.mxu0 %v12653_v0 }
  0xc7   :  { %1174 = vmatprep.subr.mxu1 %v8801_v36  ;;  %1234 = vmatprep.mubr.f32.mxu1 %v12653_v0 }
  0xc8   :  { %1175 = vmatpush1.msra.mxu1 %v8804_v38  ;;  %1274 = vmatprep.subr.mxu0 %v8622_v4  ;;  %v642_v4 = vlaneseq }
  0xc9   :  { %1176 = vmatprep.subr.mxu1 %v8808_v40 }
  0xca   :  { %1177 = vmatpush1.msra.mxu1 %v8813_v1  ;;  %v643_v14 = vshrl.u32 %v642_v4, 7 }
  0xcb   :  { %1178 = vmatprep.subr.mxu1 %v8817_v44 }
  0xcc   :  { %1179 = vmatpush1.msra.mxu1 %v8820_v46  ;;  %v8956_v0 = vsub.s32 0, %v643_v14 }
  0xcd   :  { %1180 = vmatprep.subr.mxu1 %v8824_v48 }
  0xce   :  { %1181 = vmatpush1.msra.mxu1 %v8829_v12  ;;  %13117 = vst [vmem:[#allocation45_spill] sm:$0xff] %v8956_v0 }
  0xcf   :  { %1182 = vmatprep.subr.mxu1 %v8833_v50 }
  0xd0   :  { %1183 = vmatpush1.msra.mxu1 %v8836_v54 }
  0xd1   :  { %1184 = vmatprep.subr.mxu1 %v8840_v56 }
  0xd2   :  { %1185 = vmatpush1.msra.mxu1 %v8845_v22 }
  0xd3   :  { %1186 = vmatprep.subr.mxu1 %v8849_v58 }
  0xd4   :  { %1187 = vmatpush1.msra.mxu1 %v8852_v60 }
  0xd5   :  { %1188 = vmatprep.subr.mxu1 %v8856_v2 }
  0xd6   :  { %1189 = vmatpush1.msra.mxu1 %v8861_v32 }
  0xd7   :  { %1190 = vmatprep.subr.mxu1 %v8865_v3 }
  0xd8   :  { %1191 = vmatpush1.msra.mxu1 %v8868_v7 }
  0xd9   :  { %1192 = vmatprep.subr.mxu1 %v8872_v9 }
  0xda   :  { %1193 = vmatpush1.msra.mxu1 %v8877_v42 }
  0xdb   :  { %1194 = vmatprep.subr.mxu1 %v8881_v16 }
  0xdc   :  { %1195 = vmatpush1.msra.mxu1 %v8884_v18 }
  0xdd   :  { %1196 = vmatprep.subr.mxu1 %v8888_v20 }
  0xde   :  { %1197 = vmatpush1.msra.mxu1 %v8893_v52 }
  0xdf   :  { %1198 = vmatprep.subr.mxu1 %v8897_v24  ;;  %v645_v24 = vrot.slane %v290_v5, %v8956_v0 }
  0xe0   :  { %1199 = vmatpush1.msra.mxu1 %v8900_v51 }
  0xe1   :  { %1200 = vmatprep.subr.mxu1 %v8904_v53 }
  0xe2   :  { %1201 = vmatpush1.msra.mxu1 %v8909_v62 }
  0xe3   :  { %1345 = vmatprep.subr.mxu1 %v8787_v26 }
 0x143   :  { %v728_v63 = vpop.f32.mrf.mxu1 }
 0x145   :  { %v730_v61 = vpop.f32.mrf.mxu1 }
 0x147   :  { %v734_v59 = vpop.f32.mrf.mxu1 }
 0x148   :  { %v8962_v51 = vadd.f32 %v734_v59, %v645_v24 }
 0x149   :  { %v8964_v53 = vpop.f32.mrf.mxu1 }
 0x14a   :  { %13118 = vst [vmem:[#allocation46_spill] sm:$0xff] %v8962_v51  ;;  %13119 = vst [vmem:[#allocation47_spill] sm:$0xff] %v8964_v53 }
 0x14b   :  { %v740_v62 = vpop.f32.mrf.mxu1 }
 0x14c   :  { %v8966_v52 = vadd.f32 %v740_v62, %v645_v24  ;;  %v8982_v62 = vsub.s32 1, %v643_v14 }
 0x14d   :  { %v8968_v26 = vpop.f32.mrf.mxu1 }
 0x14e   :  { %13120 = vst [vmem:[#allocation48_spill] sm:$0xff] %v8966_v52  ;;  %13121 = vst [vmem:[#allocation49_spill] sm:$0xff] %v8968_v26 }
 0x14f   :  { %v746_v4 = vpop.f32.mrf.mxu1  ;;  %13128 = vst [vmem:[#allocation56_spill] sm:$0xff] %v8982_v62 }
 0x150   :  { %v8970_v57 = vadd.f32 %v746_v4, %v645_v24 }
 0x151   :  { %v8972_v20 = vpop.f32.mrf.mxu1 }
 0x152   :  { %13122 = vst [vmem:[#allocation50_spill] sm:$0xff] %v8970_v57  ;;  %13123 = vst [vmem:[#allocation51_spill] sm:$0xff] %v8972_v20  ;;  %v8989_v57 = vrot.slane %v290_v5, %v8982_v62  ;;  %v8998_v20 = vsub.s32 3, %v643_v14 }
 0x153   :  { %v752_v55 = vpop.f32.mrf.mxu1 }
 0x154   :  { %v8974_v18 = vadd.f32 %v752_v55, %v645_v24  ;;  %13131 = vst [vmem:[#allocation59_spill] sm:$0xff] %v8989_v57  ;;  %13135 = vst [vmem:[#allocation63_spill] sm:$0xff] %v8998_v20 }
 0x155   :  { %v8976_v16 = vpop.f32.mrf.mxu1 }
 0x156   :  { %13124 = vst [vmem:[#allocation52_spill] sm:$0xff] %v8974_v18  ;;  %13125 = vst [vmem:[#allocation53_spill] sm:$0xff] %v8976_v16  ;;  %v990_v18 = vpop.f32.mrf.mxu0 }
 0x157   :  { %v758_v0 = vpop.f32.mrf.mxu1 }
 0x158   :  { %v8978_v59 = vadd.f32 %v758_v0, %v645_v24  ;;  %v8995_v0 = vsub.s32 2, %v643_v14 }
 0x159   :  { %v8980_v51 = vpop.f32.mrf.mxu1 }
 0x15a   :  { %13126 = vst [vmem:[#allocation54_spill] sm:$0xff] %v8978_v59  ;;  %13127 = vst [vmem:[#allocation55_spill] sm:$0xff] %v8980_v51  ;;  %v731_v51 = vadd.f32 %v730_v61, %v8989_v57 }
 0x15b   :  { %v764_v53 = vpop.f32.mrf.mxu1  ;;  %13134 = vst [vmem:[#allocation62_spill] sm:$0xff] %v8995_v0 }
 0x15c   :  { %v8984_v52 = vadd.f32 %v764_v53, %v645_v24  ;;  %v729_v53 = vadd.f32 %v728_v63, %v645_v24 }
 0x15d   :  { %v8986_v26 = vpop.f32.mrf.mxu1 }
 0x15e   :  { %13129 = vst [vmem:[#allocation57_spill] sm:$0xff] %v8984_v52  ;;  %13130 = vst [vmem:[#allocation58_spill] sm:$0xff] %v8986_v26  ;;  %v992_v52 = vpop.f32.mrf.mxu0  ;;  %v653_v26 = vrot.slane %v290_v5, %v8995_v0  ;;  %v1066_v9 = vadd.f32 %v990_v18, %v729_v53 }
 0x15f   :  { %v770_v4 = vpop.f32.mrf.mxu1  ;;  %v1067_v62 = vadd.f32 %v992_v52, %v731_v51 }
 0x160   :  { %v8991_v55 = vadd.f32 %v770_v4, %v645_v24  ;;  %v657_v4 = vrot.slane %v290_v5, %v8998_v20  ;;  %v7343_v14 = vmul.f32 -1.442695, %v1066_v9 }
 0x161   :  { %v8993_v16 = vpop.f32.mrf.mxu1  ;;  %v7344_v45 = vmul.f32 -1.442695, %v1067_v62 }
 0x162   :  { %13132 = vst [vmem:[#allocation60_spill] sm:$0xff] %v8991_v55  ;;  %13133 = vst [vmem:[#allocation61_spill] sm:$0xff] %v8993_v16 }
 0x163   :  { %v841_v59 = vpop.f32.mrf.mxu1  ;;  %7523 = vpow2.f32 %v7344_v45 }
 0x164   :  { %7525 = vpow2.f32 %v7343_v14 }
 0x165   :  { %v843_v42 = vpop.f32.mrf.mxu1 }
 0x167   :  { %v847_v49 = vpop.f32.mrf.mxu1 }
 0x168   :  { %v9002_v55 = vadd.f32 %v847_v49, %v653_v26 }
 0x169   :  { %v849_v16 = vpop.f32.mrf.mxu1 }
 0x16a   :  { %v9004_v47 = vadd.f32 %v849_v16, %v657_v4 }
 0x16b   :  { %v853_v7 = vpop.f32.mrf.mxu1 }
 0x16c   :  { %v9006_v61 = vadd.f32 %v853_v7, %v653_v26 }
 0x16d   :  { %v855_v63 = vpop.f32.mrf.mxu1 }
 0x16e   :  { %13136 = vst [vmem:[#allocation64_spill] sm:$0xff] %v9006_v61  ;;  %v9008_v24 = vadd.f32 %v855_v63, %v657_v4 }
 0x16f   :  { %v859_v57 = vpop.f32.mrf.mxu1 }
 0x170   :  { %v9010_v0 = vadd.f32 %v859_v57, %v653_v26  ;;  %v7524_v57 = vpop.eup %7523 }
 0x171   :  { %v861_v51 = vpop.f32.mrf.mxu1  ;;  %v7526_v20 = vpop.eup %7525 }
 0x172   :  { %13137 = vst [vmem:[#allocation65_spill] sm:$0xff] %v9010_v0  ;;  %v9012_v49 = vadd.f32 %v861_v51, %v657_v4 }
 0x173   :  { %v865_v5 = vpop.f32.mrf.mxu1 }
 0x174   :  { %13138 = vst [vmem:[#allocation66_spill] sm:$0xff] %v9012_v49  ;;  %v9014_v18 = vadd.f32 %v865_v5, %v653_v26  ;;  %v1079_v5 = vadd.f32 1.0, %v7524_v57  ;;  %v842_v49 = vadd.f32 %v841_v59, %v653_v26 }
 0x175   :  { %v867_v16 = vpop.f32.mrf.mxu1 }
 0x176   :  { %13139 = vst [vmem:[#allocation67_spill] sm:$0xff] %v9014_v18  ;;  %v9016_v52 = vadd.f32 %v867_v16, %v657_v4  ;;  %v1073_v16 = vadd.f32 1.0, %v7526_v20  ;;  %7527 = vrcp.f32 %v1079_v5  ;;  %v13174_v5 = vld [vmem:[#allocation47_spill] sm:$0xff] }
 0x177   :  { %v871_v7 = vpop.f32.mrf.mxu1 }
 0x178   :  { %13140 = vst [vmem:[#allocation68_spill] sm:$0xff] %v9016_v52  ;;  %v9018_v62 = vadd.f32 %v871_v7, %v653_v26  ;;  %7529 = vrcp.f32 %v1073_v16 }
 0x179   :  { %v873_v9 = vpop.f32.mrf.mxu1 }
 0x17a   :  { %13141 = vst [vmem:[#allocation69_spill] sm:$0xff] %v9018_v62  ;;  %v9020_v53 = vadd.f32 %v873_v9, %v657_v4  ;;  %v844_v9 = vadd.f32 %v843_v42, %v657_v4 }
 0x17b   :  { %v877_v63 = vpop.f32.mrf.mxu1 }
 0x17c   :  { %13142 = vst [vmem:[#allocation70_spill] sm:$0xff] %v9020_v53  ;;  %v9022_v45 = vadd.f32 %v877_v63, %v653_v26 }
 0x17d   :  { %v879_v14 = vpop.f32.mrf.mxu1 }
 0x17e   :  { %13143 = vst [vmem:[#allocation71_spill] sm:$0xff] %v9022_v45  ;;  %v9024_v51 = vadd.f32 %v879_v14, %v657_v4 }
 0x17f   :  { %v883_v0 = vpop.f32.mrf.mxu1 }
 0x180   :  { %13144 = vst [vmem:[#allocation72_spill] sm:$0xff] %v9024_v51  ;;  %v9026_v18 = vadd.f32 %v883_v0, %v653_v26 }
 0x181   :  { %v885_v52 = vpop.f32.mrf.mxu1 }
 0x182   :  { %13145 = vst [vmem:[#allocation73_spill] sm:$0xff] %v9026_v18  ;;  %v9028_v7 = vadd.f32 %v885_v52, %v657_v4  ;;  %v13170_v52 = vld [vmem:[#allocation44_spill] sm:$0xff] }
 0x183   :  { %v1061_v62 = vpop.f32.mrf.mxu1  ;;  %v7528_v14 = vpop.eup %7527 }
 0x184   :  { %13146 = vst [vmem:[#allocation74_spill] sm:$0xff] %v9028_v7  ;;  %v1068_v53 = vadd.f32 %v1061_v62, %v842_v49  ;;  %v1089_v0 = vmul.f32 0.0, %v7528_v14  ;;  %v9101_v62 = vld [vmem:[#allocation6 + $0x1e8] sm:$0xff] }
 0x185   :  { %v1063_v63 = vpop.f32.mrf.mxu1  ;;  %v7530_v51 = vpop.eup %7529  ;;  %v9210_v7 = vld [vmem:[#allocation6 + $0x68] sm:$0xff] }
 0x186   :  { %7531 = vtanh.f32 %v1068_v53  ;;  %v1069_v45 = vadd.f32 %v1063_v63, %v844_v9  ;;  %v13172_v53 = vld [vmem:[#allocation33_spill] sm:$0xff]  ;;  %v13175_v9 = vld [vmem:[#allocation46_spill] sm:$0xff] }
 0x188   :  { %v7345_v61 = vmul.f32 -1.442695, %v1069_v45 }
 0x18a   :  { %7533 = vpow2.f32 %v7345_v61  ;;  %v13168_v61 = vld [vmem:[#allocation32_spill] sm:$0xff] }
 0x193   :  { %v7532_v57 = vpop.eup %7531 }
 0x194   :  { %v1090_v18 = vmul.f32 %v7532_v57, %v7530_v51  ;;  %v13173_v51 = vld [vmem:[#allocation59_spill] sm:$0xff] }
 0x195   :  { %v737_v16 = vadd.f32 %v13174_v5, %v13173_v51 }
 0x196   :  { %v9030_v20 = vadd.f32 %v1090_v18, %v1089_v0  ;;  %v13169_v18 = vmov 0.0  }
 0x197   :  { %v7534_v26 = vpop.eup %7533 }
 0x198   :  { %v1086_v59 = vadd.f32 1.0, %v7534_v26  ;;  %7535 = vtanh.f32 %v9030_v20 }
 0x19a   :  { %7537 = vrcp.f32 %v1086_v59 }
 0x1a5   :  { %v7536_v42 = vpop.eup %7535 }
 0x1a7   :  { %v7538_v4 = vpop.eup %7537 }
 0x1a8   :  { %v9033_v49 = vmul.f32 %v7538_v4, %v7536_v42 }
 0x1aa   :  { %13147 = vst [vmem:[#allocation75_spill] sm:$0xff] %v9033_v49  ;;  %1164 = vmatmul.mubr.f32.vlgmr.msra.gmra.mxu0 %v9033_v49  ;;  %1235 = vmatmul.mubr.f32.vlgmr.msra.gmra.mxu1 %v9033_v49  ;;  %v9218_v49 = vld [vmem:[#allocation6 + $0x48] sm:$0xff] }
 0x1ab   :  { %1275 = vmatpush1.msra.mxu0 %v8624_v6  ;;  %1346 = vmatpush1.msra.mxu1 %v8789_v28  ;;  %v13148_v6 = vld [vmem:[#allocation22_spill] sm:$0xff] }
 0x1ac   :  { %1276 = vmatprep.subr.mxu0 %v8627_v8  ;;  %1347 = vmatprep.subr.mxu1 %v8792_v30  ;;  %v13149_v8 = vld [vmem:[#allocation34_spill] sm:$0xff]  ;;  %13171 = vst [vmem:[#allocation22_spill] sm:$0xff] %v9101_v62 }
 0x1ad   :  { %1277 = vmatpush1.msra.mxu0 %v8630_v10  ;;  %1348 = vmatpush1.msra.mxu1 %v8797_v34  ;;  %v13150_v10 = vld [vmem:[#allocation23_spill] sm:$0xff] }
 0x1ae   :  { %1278 = vmatprep.subr.mxu0 %v8632_v11  ;;  %1349 = vmatprep.subr.mxu1 %v8801_v36  ;;  %v13151_v11 = vld [vmem:[#allocation35_spill] sm:$0xff] }
 0x1af   :  { %1279 = vmatpush1.msra.mxu0 %v8635_v13  ;;  %1350 = vmatpush1.msra.mxu1 %v8804_v38  ;;  %v13152_v13 = vld [vmem:[#allocation24_spill] sm:$0xff] }
 0x1b0   :  { %1280 = vmatprep.subr.mxu0 %v8638_v15  ;;  %1351 = vmatprep.subr.mxu1 %v8808_v40  ;;  %v13153_v15 = vld [vmem:[#allocation36_spill] sm:$0xff]  ;;  %13178 = vst [vmem:[#allocation24_spill] sm:$0xff] %v9210_v7 }
 0x1b1   :  { %1281 = vmatpush1.msra.mxu0 %v8641_v17  ;;  %1352 = vmatpush1.msra.mxu1 %v8813_v1  ;;  %v13154_v17 = vld [vmem:[#allocation25_spill] sm:$0xff] }
 0x1b2   :  { %1282 = vmatprep.subr.mxu0 %v8644_v19  ;;  %1353 = vmatprep.subr.mxu1 %v8817_v44  ;;  %v13155_v19 = vld [vmem:[#allocation37_spill] sm:$0xff] }
 0x1b3   :  { %1283 = vmatpush1.msra.mxu0 %v8647_v21  ;;  %1354 = vmatpush1.msra.mxu1 %v8820_v46  ;;  %v13156_v21 = vld [vmem:[#allocation26_spill] sm:$0xff] }
 0x1b4   :  { %1284 = vmatprep.subr.mxu0 %v8650_v23  ;;  %1355 = vmatprep.subr.mxu1 %v8824_v48  ;;  %v13157_v23 = vld [vmem:[#allocation38_spill] sm:$0xff]  ;;  %13180 = vst [vmem:[#allocation26_spill] sm:$0xff] %v9218_v49 }
 0x1b5   :  { %1285 = vmatpush1.msra.mxu0 %v8653_v25  ;;  %1356 = vmatpush1.msra.mxu1 %v8829_v12  ;;  %v13158_v25 = vld [vmem:[#allocation27_spill] sm:$0xff] }
 0x1b6   :  { %1286 = vmatprep.subr.mxu0 %v8656_v27  ;;  %1357 = vmatprep.subr.mxu1 %v8833_v50  ;;  %v13159_v27 = vld [vmem:[#allocation39_spill] sm:$0xff] }
 0x1b7   :  { %1287 = vmatpush1.msra.mxu0 %v8659_v29  ;;  %1358 = vmatpush1.msra.mxu1 %v8836_v54  ;;  %v13160_v29 = vld [vmem:[#allocation28_spill] sm:$0xff] }
 0x1b8   :  { %1288 = vmatprep.subr.mxu0 %v8662_v31  ;;  %1359 = vmatprep.subr.mxu1 %v8840_v56  ;;  %v13161_v31 = vld [vmem:[#allocation40_spill] sm:$0xff] }
 0x1b9   :  { %1289 = vmatpush1.msra.mxu0 %v8665_v33  ;;  %1360 = vmatpush1.msra.mxu1 %v8845_v22  ;;  %v13162_v33 = vld [vmem:[#allocation29_spill] sm:$0xff] }
 0x1ba   :  { %1290 = vmatprep.subr.mxu0 %v8668_v35  ;;  %1361 = vmatprep.subr.mxu1 %v8849_v58  ;;  %v13163_v35 = vld [vmem:[#allocation41_spill] sm:$0xff] }
 0x1bb   :  { %1291 = vmatpush1.msra.mxu0 %v8671_v37  ;;  %1362 = vmatpush1.msra.mxu1 %v8852_v60  ;;  %v13164_v37 = vld [vmem:[#allocation30_spill] sm:$0xff] }
 0x1bc   :  { %1292 = vmatprep.subr.mxu0 %v8674_v39  ;;  %1363 = vmatprep.subr.mxu1 %v8856_v2  ;;  %v13165_v39 = vld [vmem:[#allocation42_spill] sm:$0xff] }
 0x1bd   :  { %1293 = vmatpush1.msra.mxu0 %v8677_v41  ;;  %1364 = vmatpush1.msra.mxu1 %v8861_v32  ;;  %v13166_v41 = vld [vmem:[#allocation31_spill] sm:$0xff] }
 0x1be   :  { %1294 = vmatprep.subr.mxu0 %v8680_v43  ;;  %1365 = vmatprep.subr.mxu1 %v8865_v3  ;;  %v13167_v43 = vld [vmem:[#allocation43_spill] sm:$0xff] }
 0x1bf   :  { %1295 = vmatpush1.msra.mxu0 %v13148_v6  ;;  %1366 = vmatpush1.msra.mxu1 %v13149_v8 }
 0x1c0   :  { %1296 = vmatprep.subr.mxu0 %v13150_v10  ;;  %1367 = vmatprep.subr.mxu1 %v13151_v11 }
 0x1c1   :  { %1297 = vmatpush1.msra.mxu0 %v13152_v13  ;;  %1368 = vmatpush1.msra.mxu1 %v13153_v15 }
 0x1c2   :  { %1298 = vmatprep.subr.mxu0 %v13154_v17  ;;  %1369 = vmatprep.subr.mxu1 %v13155_v19 }
 0x1c3   :  { %1299 = vmatpush1.msra.mxu0 %v13156_v21  ;;  %1370 = vmatpush1.msra.mxu1 %v13157_v23 }
 0x1c4   :  { %1300 = vmatprep.subr.mxu0 %v13158_v25  ;;  %1371 = vmatprep.subr.mxu1 %v13159_v27 }
 0x1c5   :  { %1301 = vmatpush1.msra.mxu0 %v13160_v29  ;;  %1372 = vmatpush1.msra.mxu1 %v13161_v31 }
 0x1c6   :  { %1302 = vmatprep.subr.mxu0 %v13162_v33  ;;  %1373 = vmatprep.subr.mxu1 %v13163_v35 }
 0x1c7   :  { %1303 = vmatpush1.msra.mxu0 %v13164_v37  ;;  %1374 = vmatpush1.msra.mxu1 %v13165_v39 }
 0x1c8   :  { %1304 = vmatprep.subr.mxu0 %v13166_v41  ;;  %1375 = vmatprep.subr.mxu1 %v13167_v43 }
 0x1c9   :  { %1305 = vmatpush1.msra.mxu0 %v13168_v61  ;;  %1338 = vmatprep.mubr.f32.mxu0 %v13169_v18 }
 0x1ca   :  { %1376 = vmatpush1.msra.mxu1 %v13170_v52  ;;  %1409 = vmatprep.mubr.f32.mxu1 %v13169_v18 }
 0x1cb   :  { %1449 = vmatprep.subr.mxu0 %v9101_v62  ;;  %1520 = vmatprep.subr.mxu1 %v13172_v53 }
 0x26a   :  { %v1165_v45 = vpop.f32.mrf.mxu0  ;;  %v1236_v26 = vpop.f32.mrf.mxu1 }
 0x26b   :  { %v1241_v63 = vadd.f32 %v1165_v45, %v13175_v9  ;;  %v1243_v6 = vadd.f32 %v1236_v26, %v9002_v55  ;;  %v9134_v26 = vld [vmem:[#allocation6 + $0x1a0] sm:$0xff] }
 0x26c   :  { %v1167_v14 = vpop.f32.mrf.mxu0  ;;  %v1238_v42 = vpop.f32.mrf.mxu1 }
 0x26d   :  { %v7346_v57 = vmul.f32 -1.442695, %v1241_v63  ;;  %v1242_v0 = vadd.f32 %v1167_v14, %v737_v16  ;;  %v1244_v4 = vadd.f32 %v1238_v42, %v9004_v47  ;;  %v9118_v14 = vld [vmem:[#allocation6 + $0x1e0] sm:$0xff] }
 0x26e   :  { %v9142_v42 = vld [vmem:[#allocation6 + $0x180] sm:$0xff] }
 0x26f   :  { %7539 = vpow2.f32 %v7346_v57  ;;  %v7347_v59 = vmul.f32 -1.442695, %v1242_v0  ;;  %v7348_v10 = vmul.f32 -1.442695, %v1244_v4  ;;  %v9126_v57 = vld [vmem:[#allocation6 + $0x1c0] sm:$0xff]  ;;  %v9130_v0 = vld [vmem:[#allocation6 + $0x1a8] sm:$0xff] }
 0x270   :  { %v9146_v4 = vld [vmem:[#allocation6 + $0x168] sm:$0xff] }
 0x271   :  { %7541 = vpow2.f32 %v7347_v59  ;;  %v9138_v59 = vld [vmem:[#allocation6 + $0x188] sm:$0xff] }
 0x272   :  { %7543 = vtanh.f32 %v1243_v6  ;;  %v9150_v6 = vld [vmem:[#allocation6 + $0x160] sm:$0xff] }
 0x273   :  { %7545 = vpow2.f32 %v7348_v10  ;;  %v9154_v10 = vld [vmem:[#allocation6 + $0x148] sm:$0xff] }
 0x27c   :  { %v7540_v13 = vpop.eup %7539 }
 0x27d   :  { %v1248_v17 = vadd.f32 1.0, %v7540_v13  ;;  %v9158_v13 = vld [vmem:[#allocation6 + $0x140] sm:$0xff] }
 0x27e   :  { %v7542_v21 = vpop.eup %7541 }
 0x27f   :  { %7547 = vrcp.f32 %v1248_v17  ;;  %v1254_v25 = vadd.f32 1.0, %v7542_v21  ;;  %v7544_v29 = vpop.eup %7543  ;;  %v9162_v17 = vld [vmem:[#allocation6 + $0x128] sm:$0xff]  ;;  %v9166_v21 = vld [vmem:[#allocation6 + $0x120] sm:$0xff] }
 0x280   :  { %v7546_v33 = vpop.eup %7545 }
 0x281   :  { %7549 = vrcp.f32 %v1254_v25  ;;  %v1261_v5 = vadd.f32 1.0, %v7546_v33  ;;  %v9170_v25 = vld [vmem:[#allocation6 + $0x108] sm:$0xff] }
 0x282   :  { %v9178_v33 = vld [vmem:[#allocation6 + $0xe8] sm:$0xff] }
 0x283   :  { %7551 = vrcp.f32 %v1261_v5  ;;  %v9194_v5 = vld [vmem:[#allocation6 + $0xa8] sm:$0xff] }
 0x28c   :  { %v7548_v37 = vpop.eup %7547 }
 0x28d   :  { %v1265_v41 = vmul.f32 %v7548_v37, %v7544_v29  ;;  %v9174_v29 = vld [vmem:[#allocation6 + $0x100] sm:$0xff] }
 0x28e   :  { %v7550_v45 = vpop.eup %7549  ;;  %v9182_v37 = vld [vmem:[#allocation6 + $0xe0] sm:$0xff] }
 0x28f   :  { %v1264_v16 = vmul.f32 %v7550_v45, %v9030_v20  ;;  %v9122_v20 = vld [vmem:[#allocation6 + $0x1c8] sm:$0xff]  ;;  %v9190_v45 = vld [vmem:[#allocation6 + $0xc0] sm:$0xff] }
 0x290   :  { %v7552_v55 = vpop.eup %7551 }
 0x291   :  { %v9111_v47 = vadd.f32 %v1265_v41, %v1264_v16  ;;  %v9186_v41 = vld [vmem:[#allocation6 + $0xc8] sm:$0xff]  ;;  %v9198_v16 = vld [vmem:[#allocation6 + $0xa0] sm:$0xff] }
 0x293   :  { %7553 = vtanh.f32 %v9111_v47 }
 0x2a0   :  { %v7554_v9 = vpop.eup %7553 }
 0x2a1   :  { %v9114_v63 = vmul.f32 %v7554_v9, %v7552_v55  ;;  %v9202_v55 = vld [vmem:[#allocation6 + $0x88] sm:$0xff]  ;;  %v9206_v9 = vld [vmem:[#allocation6 + $0x80] sm:$0xff] }
 0x2a2   :  { %13177 = vst [vmem:[#allocation23_spill] sm:$0xff] %v9206_v9 }
 0x2a3   :  { %13176 = vst [vmem:[#allocation34_spill] sm:$0xff] %v9114_v63  ;;  %1339 = vmatmul.mubr.f32.vlgmr.msra.gmra.mxu0 %v9114_v63  ;;  %1410 = vmatmul.mubr.f32.vlgmr.msra.gmra.mxu1 %v9114_v63  ;;  %v9214_v63 = vld [vmem:[#allocation6 + $0x60] sm:$0xff] }
 0x2a4   :  { %1450 = vmatpush1.msra.mxu0 %v9118_v14  ;;  %1521 = vmatpush1.msra.mxu1 %v8789_v28  ;;  %13179 = vst [vmem:[#allocation25_spill] sm:$0xff] %v9214_v63 }
 0x2a5   :  { %1451 = vmatprep.subr.mxu0 %v9122_v20  ;;  %1522 = vmatprep.subr.mxu1 %v8792_v30 }
 0x2a6   :  { %1452 = vmatpush1.msra.mxu0 %v9126_v57  ;;  %1523 = vmatpush1.msra.mxu1 %v8797_v34 }
 0x2a7   :  { %1453 = vmatprep.subr.mxu0 %v9130_v0  ;;  %1524 = vmatprep.subr.mxu1 %v8801_v36 }
 0x2a8   :  { %1454 = vmatpush1.msra.mxu0 %v9134_v26  ;;  %1525 = vmatpush1.msra.mxu1 %v8804_v38 }
 0x2a9   :  { %1455 = vmatprep.subr.mxu0 %v9138_v59  ;;  %1526 = vmatprep.subr.mxu1 %v8808_v40 }
 0x2aa   :  { %1456 = vmatpush1.msra.mxu0 %v9142_v42  ;;  %1527 = vmatpush1.msra.mxu1 %v8813_v1 }
 0x2ab   :  { %1457 = vmatprep.subr.mxu0 %v9146_v4  ;;  %1528 = vmatprep.subr.mxu1 %v8817_v44 }
 0x2ac   :  { %1458 = vmatpush1.msra.mxu0 %v9150_v6  ;;  %1529 = vmatpush1.msra.mxu1 %v8820_v46 }
 0x2ad   :  { %1459 = vmatprep.subr.mxu0 %v9154_v10  ;;  %1530 = vmatprep.subr.mxu1 %v8824_v48 }
 0x2ae   :  { %1460 = vmatpush1.msra.mxu0 %v9158_v13  ;;  %1531 = vmatpush1.msra.mxu1 %v8829_v12 }
 0x2af   :  { %1461 = vmatprep.subr.mxu0 %v9162_v17  ;;  %1532 = vmatprep.subr.mxu1 %v8833_v50 }
 0x2b0   :  { %1462 = vmatpush1.msra.mxu0 %v9166_v21  ;;  %1533 = vmatpush1.msra.mxu1 %v8836_v54 }
 0x2b1   :  { %1463 = vmatprep.subr.mxu0 %v9170_v25  ;;  %1534 = vmatprep.subr.mxu1 %v8840_v56 }
 0x2b2   :  { %1464 = vmatpush1.msra.mxu0 %v9174_v29  ;;  %1535 = vmatpush1.msra.mxu1 %v8845_v22 }
 0x2b3   :  { %1465 = vmatprep.subr.mxu0 %v9178_v33  ;;  %1536 = vmatprep.subr.mxu1 %v8849_v58 }
 0x2b4   :  { %1466 = vmatpush1.msra.mxu0 %v9182_v37  ;;  %1537 = vmatpush1.msra.mxu1 %v8852_v60 }
 0x2b5   :  { %1467 = vmatprep.subr.mxu0 %v9186_v41  ;;  %1538 = vmatprep.subr.mxu1 %v8856_v2 }
 0x2b6   :  { %1468 = vmatpush1.msra.mxu0 %v9190_v45  ;;  %1539 = vmatpush1.msra.mxu1 %v8861_v32 }
 0x2b7   :  { %1469 = vmatprep.subr.mxu0 %v9194_v5  ;;  %1540 = vmatprep.subr.mxu1 %v8865_v3 }
 0x2b8   :  { %1470 = vmatpush1.msra.mxu0 %v9198_v16  ;;  %1541 = vmatpush1.msra.mxu1 %v13149_v8 }
 0x2b9   :  { %1471 = vmatprep.subr.mxu0 %v9202_v55  ;;  %1542 = vmatprep.subr.mxu1 %v13151_v11 }
 0x2ba   :  { %1472 = vmatpush1.msra.mxu0 %v9206_v9  ;;  %1543 = vmatpush1.msra.mxu1 %v13153_v15  ;;  %v9222_v9 = vld [vmem:[#allocation6 + $0x40] sm:$0xff] }
 0x2bb   :  { %1473 = vmatprep.subr.mxu0 %v9210_v7  ;;  %1544 = vmatprep.subr.mxu1 %v13155_v19  ;;  %13181 = vst [vmem:[#allocation27_spill] sm:$0xff] %v9222_v9  ;;  %v9226_v7 = vld [vmem:[#allocation6 + $0x28] sm:$0xff] }
 0x2bc   :  { %1474 = vmatpush1.msra.mxu0 %v9214_v63  ;;  %1545 = vmatpush1.msra.mxu1 %v13157_v23  ;;  %13182 = vst [vmem:[#allocation28_spill] sm:$0xff] %v9226_v7  ;;  %v9230_v63 = vld [vmem:[#allocation6 + $0x20] sm:$0xff]  ;;  %v13187_v23 = vld [vmem:[#allocation64_spill] sm:$0xff] }
 0x2bd   :  { %1475 = vmatprep.subr.mxu0 %v9218_v49  ;;  %1546 = vmatprep.subr.mxu1 %v13159_v27  ;;  %13183 = vst [vmem:[#allocation29_spill] sm:$0xff] %v9230_v63  ;;  %v9234_v49 = vld [vmem:[#allocation6 + $0x8] sm:$0xff] }
 0x2be   :  { %1476 = vmatpush1.msra.mxu0 %v9222_v9  ;;  %1547 = vmatpush1.msra.mxu1 %v13161_v31  ;;  %13184 = vst [vmem:[#allocation30_spill] sm:$0xff] %v9234_v49 }
 0x2bf   :  { %1477 = vmatprep.subr.mxu0 %v9226_v7  ;;  %1548 = vmatprep.subr.mxu1 %v13163_v35  ;;  %v13186_v7 = vld [vmem:[#allocation48_spill] sm:$0xff] }
 0x2c0   :  { %1478 = vmatpush1.msra.mxu0 %v9230_v63  ;;  %1549 = vmatpush1.msra.mxu1 %v13165_v39  ;;  %v13185_v39 = vld [vmem:[#allocation49_spill] sm:$0xff] }
 0x2c1   :  { %1479 = vmatprep.subr.mxu0 %v9234_v49  ;;  %1550 = vmatprep.subr.mxu1 %v13167_v43  ;;  %v743_v35 = vadd.f32 %v13185_v39, %v13173_v51 }
 0x2c2   :  { %1480 = vmatpush1.msra.mxu0 %v13168_v61  ;;  %1513 = vmatprep.mubr.f32.mxu0 %v13169_v18 }
 0x2c3   :  { %1551 = vmatpush1.msra.mxu1 %v13170_v52  ;;  %1584 = vmatprep.mubr.f32.mxu1 %v13169_v18 }
 0x2c4   :  { %1624 = vmatprep.subr.mxu0 %v9101_v62  ;;  %1695 = vmatprep.subr.mxu1 %v13172_v53 }
 0x363   :  { %v1340_v63 = vpop.f32.mrf.mxu0  ;;  %v1411_v61 = vpop.f32.mrf.mxu1 }
 0x364   :  { %v1416_v49 = vadd.f32 %v1340_v63, %v13186_v7  ;;  %v1418_v62 = vadd.f32 %v1411_v61, %v13187_v23 }
 0x365   :  { %v1342_v31 = vpop.f32.mrf.mxu0  ;;  %v1413_v52 = vpop.f32.mrf.mxu1 }
 0x366   :  { %v7349_v43 = vmul.f32 -1.442695, %v1416_v49  ;;  %v1417_v9 = vadd.f32 %v1342_v31, %v743_v35  ;;  %v1419_v18 = vadd.f32 %v1413_v52, %v9008_v24 }
 0x368   :  { %7555 = vpow2.f32 %v7349_v43  ;;  %v7350_v27 = vmul.f32 -1.442695, %v1417_v9  ;;  %v7351_v19 = vmul.f32 -1.442695, %v1419_v18 }
 0x36a   :  { %7557 = vpow2.f32 %v7350_v27 }
 0x36b   :  { %7559 = vtanh.f32 %v1418_v62 }
 0x36c   :  { %7561 = vpow2.f32 %v7351_v19  ;;  %v13211_v19 = vld [vmem:[#allocation51_spill] sm:$0xff] }
 0x36d   :  { %v749_v62 = vadd.f32 %v13211_v19, %v13173_v51 }
 0x375   :  { %v7556_v53 = vpop.eup %7555 }
 0x376   :  { %v1423_v15 = vadd.f32 1.0, %v7556_v53 }
 0x377   :  { %v7558_v11 = vpop.eup %7557 }
 0x378   :  { %7563 = vrcp.f32 %v1423_v15  ;;  %v1429_v7 = vadd.f32 1.0, %v7558_v11  ;;  %v7560_v49 = vpop.eup %7559  ;;  %v9324_v11 = vld [vmem:[#allocation6 + $0x1f8] sm:$0xff] }
 0x379   :  { %v7562_v31 = vpop.eup %7561  ;;  %13210 = vst [vmem:[#allocation33_spill] sm:$0xff] %v9324_v11 }
 0x37a   :  { %7565 = vrcp.f32 %v1429_v7  ;;  %v1436_v27 = vadd.f32 1.0, %v7562_v31 }
 0x37c   :  { %7567 = vrcp.f32 %v1436_v27  ;;  %v13214_v27 = vld [vmem:[#allocation65_spill] sm:$0xff] }
 0x385   :  { %v7564_v35 = vpop.eup %7563 }
 0x386   :  { %v1440_v39 = vmul.f32 %v7564_v35, %v7560_v49 }
 0x387   :  { %v7566_v43 = vpop.eup %7565 }
 0x388   :  { %v1439_v63 = vmul.f32 %v7566_v43, %v9111_v47  ;;  %v13212_v47 = vld [vmem:[#allocation50_spill] sm:$0xff] }
 0x389   :  { %v7568_v23 = vpop.eup %7567 }
 0x38a   :  { %v9250_v24 = vadd.f32 %v1440_v39, %v1439_v63  ;;  %v13213_v39 = vld [vmem:[#allocation66_spill] sm:$0xff] }
 0x38c   :  { %7569 = vtanh.f32 %v9250_v24 }
 0x399   :  { %v7570_v18 = vpop.eup %7569 }
 0x39a   :  { %v9253_v52 = vmul.f32 %v7570_v18, %v7568_v23 }
 0x39c   :  { %13188 = vst [vmem:[#allocation31_spill] sm:$0xff] %v9253_v52  ;;  %1514 = vmatmul.mubr.f32.vlgmr.msra.gmra.mxu0 %v9253_v52  ;;  %1585 = vmatmul.mubr.f32.vlgmr.msra.gmra.mxu1 %v9253_v52  ;;  %v9449_v52 = vld [vmem:[#allocation6 + $0x38] sm:$0xff] }
 0x39d   :  { %1625 = vmatpush1.msra.mxu0 %v9118_v14  ;;  %1696 = vmatpush1.msra.mxu1 %v8789_v28  ;;  %v13189_v28 = vld [vmem:[#allocation35_spill] sm:$0xff] }
 0x39e   :  { %1626 = vmatprep.subr.mxu0 %v9122_v20  ;;  %1697 = vmatprep.subr.mxu1 %v8792_v30  ;;  %v13190_v30 = vld [vmem:[#allocation23_spill] sm:$0xff] }
 0x39f   :  { %1627 = vmatpush1.msra.mxu0 %v9126_v57  ;;  %1698 = vmatpush1.msra.mxu1 %v8797_v34  ;;  %v13191_v34 = vld [vmem:[#allocation36_spill] sm:$0xff] }
 0x3a0   :  { %1628 = vmatprep.subr.mxu0 %v9130_v0  ;;  %1699 = vmatprep.subr.mxu1 %v8801_v36  ;;  %v13192_v36 = vld [vmem:[#allocation24_spill] sm:$0xff]  ;;  %13222 = vst [vmem:[#allocation36_spill] sm:$0xff] %v9449_v52 }
 0x3a1   :  { %1629 = vmatpush1.msra.mxu0 %v9134_v26  ;;  %1700 = vmatpush1.msra.mxu1 %v8804_v38  ;;  %v13193_v38 = vld [vmem:[#allocation37_spill] sm:$0xff] }
 0x3a2   :  { %1630 = vmatprep.subr.mxu0 %v9138_v59  ;;  %1701 = vmatprep.subr.mxu1 %v8808_v40  ;;  %v13194_v40 = vld [vmem:[#allocation25_spill] sm:$0xff] }
 0x3a3   :  { %1631 = vmatpush1.msra.mxu0 %v9142_v42  ;;  %1702 = vmatpush1.msra.mxu1 %v8813_v1  ;;  %v13195_v1 = vld [vmem:[#allocation38_spill] sm:$0xff] }
 0x3a4   :  { %1632 = vmatprep.subr.mxu0 %v9146_v4  ;;  %1703 = vmatprep.subr.mxu1 %v8817_v44  ;;  %v13196_v44 = vld [vmem:[#allocation26_spill] sm:$0xff] }
 0x3a5   :  { %1633 = vmatpush1.msra.mxu0 %v9150_v6  ;;  %1704 = vmatpush1.msra.mxu1 %v8820_v46  ;;  %v13197_v46 = vld [vmem:[#allocation39_spill] sm:$0xff] }
 0x3a6   :  { %1634 = vmatprep.subr.mxu0 %v9154_v10  ;;  %1705 = vmatprep.subr.mxu1 %v8824_v48  ;;  %v13198_v48 = vld [vmem:[#allocation27_spill] sm:$0xff] }
 0x3a7   :  { %1635 = vmatpush1.msra.mxu0 %v9158_v13  ;;  %1706 = vmatpush1.msra.mxu1 %v8829_v12  ;;  %v13199_v12 = vld [vmem:[#allocation40_spill] sm:$0xff] }
 0x3a8   :  { %1636 = vmatprep.subr.mxu0 %v9162_v17  ;;  %1707 = vmatprep.subr.mxu1 %v8833_v50  ;;  %v13200_v50 = vld [vmem:[#allocation28_spill] sm:$0xff] }
 0x3a9   :  { %1637 = vmatpush1.msra.mxu0 %v9166_v21  ;;  %1708 = vmatpush1.msra.mxu1 %v8836_v54  ;;  %v13201_v54 = vld [vmem:[#allocation41_spill] sm:$0xff] }
 0x3aa   :  { %1638 = vmatprep.subr.mxu0 %v9170_v25  ;;  %1709 = vmatprep.subr.mxu1 %v8840_v56  ;;  %v13202_v56 = vld [vmem:[#allocation29_spill] sm:$0xff] }
 0x3ab   :  { %1639 = vmatpush1.msra.mxu0 %v9174_v29  ;;  %1710 = vmatpush1.msra.mxu1 %v8845_v22  ;;  %v13203_v22 = vld [vmem:[#allocation42_spill] sm:$0xff] }
 0x3ac   :  { %1640 = vmatprep.subr.mxu0 %v9178_v33  ;;  %1711 = vmatprep.subr.mxu1 %v8849_v58  ;;  %v13204_v58 = vld [vmem:[#allocation30_spill] sm:$0xff] }
 0x3ad   :  { %1641 = vmatpush1.msra.mxu0 %v9182_v37  ;;  %1712 = vmatpush1.msra.mxu1 %v8852_v60  ;;  %v13205_v60 = vld [vmem:[#allocation43_spill] sm:$0xff] }
 0x3ae   :  { %1642 = vmatprep.subr.mxu0 %v9186_v41  ;;  %1713 = vmatprep.subr.mxu1 %v8856_v2  ;;  %v9317_v2 = vld [vmem:[#allocation6] sm:$0xff] }
 0x3af   :  { %1643 = vmatpush1.msra.mxu0 %v9190_v45  ;;  %1714 = vmatpush1.msra.mxu1 %v8861_v32  ;;  %13206 = vst [vmem:[#allocation32_spill] sm:$0xff] %v9317_v2  ;;  %v13207_v32 = vmov 0.0  }
 0x3b0   :  { %1644 = vmatprep.subr.mxu0 %v9194_v5  ;;  %1715 = vmatprep.subr.mxu1 %v8865_v3  ;;  %v13208_v3 = vld [vmem:[#allocation44_spill] sm:$0xff] }
 0x3b1   :  { %1645 = vmatpush1.msra.mxu0 %v9198_v16  ;;  %1716 = vmatpush1.msra.mxu1 %v13149_v8  ;;  %v13209_v8 = vld [vmem:[#allocation22_spill] sm:$0xff] }
 0x3b2   :  { %1646 = vmatprep.subr.mxu0 %v9202_v55  ;;  %1717 = vmatprep.subr.mxu1 %v13189_v28 }
 0x3b3   :  { %1647 = vmatpush1.msra.mxu0 %v13190_v30  ;;  %1718 = vmatpush1.msra.mxu1 %v13191_v34 }
 0x3b4   :  { %1648 = vmatprep.subr.mxu0 %v13192_v36  ;;  %1719 = vmatprep.subr.mxu1 %v13193_v38 }
 0x3b5   :  { %1649 = vmatpush1.msra.mxu0 %v13194_v40  ;;  %1720 = vmatpush1.msra.mxu1 %v13195_v1 }
 0x3b6   :  { %1650 = vmatprep.subr.mxu0 %v13196_v44  ;;  %1721 = vmatprep.subr.mxu1 %v13197_v46 }
 0x3b7   :  { %1651 = vmatpush1.msra.mxu0 %v13198_v48  ;;  %1722 = vmatpush1.msra.mxu1 %v13199_v12 }
 0x3b8   :  { %1652 = vmatprep.subr.mxu0 %v13200_v50  ;;  %1723 = vmatprep.subr.mxu1 %v13201_v54 }
 0x3b9   :  { %1653 = vmatpush1.msra.mxu0 %v13202_v56  ;;  %1724 = vmatpush1.msra.mxu1 %v13203_v22 }
 0x3ba   :  { %1654 = vmatprep.subr.mxu0 %v13204_v58  ;;  %1725 = vmatprep.subr.mxu1 %v13205_v60 }
 0x3bb   :  { %1655 = vmatpush1.msra.mxu0 %v9317_v2  ;;  %1688 = vmatprep.mubr.f32.mxu0 %v13207_v32 }
 0x3bc   :  { %1726 = vmatpush1.msra.mxu1 %v13208_v3  ;;  %1759 = vmatprep.mubr.f32.mxu1 %v13207_v32 }
 0x3bd   :  { %1799 = vmatprep.subr.mxu0 %v13209_v8  ;;  %1870 = vmatprep.subr.mxu1 %v9324_v11 }
 0x45c   :  { %v1515_v15 = vpop.f32.mrf.mxu0  ;;  %v1586_v49 = vpop.f32.mrf.mxu1 }
 0x45d   :  { %v1591_v9 = vadd.f32 %v1515_v15, %v13212_v47  ;;  %v1593_v63 = vadd.f32 %v1586_v49, %v13214_v27  ;;  %v9361_v49 = vld [vmem:[#allocation6 + $0x198] sm:$0xff]  ;;  %v9381_v27 = vld [vmem:[#allocation6 + $0x150] sm:$0xff] }
 0x45e   :  { %v1517_v61 = vpop.f32.mrf.mxu0  ;;  %v1588_v35 = vpop.f32.mrf.mxu1 }
 0x45f   :  { %v7352_v53 = vmul.f32 -1.442695, %v1591_v9  ;;  %v1592_v7 = vadd.f32 %v1517_v61, %v749_v62  ;;  %v1594_v43 = vadd.f32 %v1588_v35, %v13213_v39  ;;  %v9341_v9 = vld [vmem:[#allocation6 + $0x1f0] sm:$0xff]  ;;  %v9369_v35 = vld [vmem:[#allocation6 + $0x178] sm:$0xff] }
 0x460   :  { %v9349_v61 = vld [vmem:[#allocation6 + $0x1d0] sm:$0xff] }
 0x461   :  { %7571 = vpow2.f32 %v7352_v53  ;;  %v7353_v31 = vmul.f32 -1.442695, %v1592_v7  ;;  %v7354_v23 = vmul.f32 -1.442695, %v1594_v43  ;;  %v9353_v53 = vld [vmem:[#allocation6 + $0x1b8] sm:$0xff]  ;;  %v9357_v7 = vld [vmem:[#allocation6 + $0x1b0] sm:$0xff] }
 0x462   :  { %v9373_v39 = vld [vmem:[#allocation6 + $0x170] sm:$0xff]  ;;  %v9377_v43 = vld [vmem:[#allocation6 + $0x158] sm:$0xff] }
 0x463   :  { %7573 = vpow2.f32 %v7353_v31  ;;  %v9365_v31 = vld [vmem:[#allocation6 + $0x190] sm:$0xff] }
 0x464   :  { %7575 = vtanh.f32 %v1593_v63  ;;  %v9385_v63 = vld [vmem:[#allocation6 + $0x138] sm:$0xff] }
 0x465   :  { %7577 = vpow2.f32 %v7354_v23  ;;  %v9389_v23 = vld [vmem:[#allocation6 + $0x130] sm:$0xff] }
 0x46e   :  { %v7572_v18 = vpop.eup %7571 }
 0x46f   :  { %v1598_v28 = vadd.f32 1.0, %v7572_v18  ;;  %v9393_v18 = vld [vmem:[#allocation6 + $0x118] sm:$0xff] }
 0x470   :  { %v7574_v34 = vpop.eup %7573 }
 0x471   :  { %7579 = vrcp.f32 %v1598_v28  ;;  %v1604_v38 = vadd.f32 1.0, %v7574_v34  ;;  %v7576_v1 = vpop.eup %7575  ;;  %v9397_v28 = vld [vmem:[#allocation6 + $0x110] sm:$0xff]  ;;  %v9401_v34 = vld [vmem:[#allocation6 + $0xf8] sm:$0xff] }
 0x472   :  { %v7578_v46 = vpop.eup %7577 }
 0x473   :  { %7581 = vrcp.f32 %v1604_v38  ;;  %v1611_v60 = vadd.f32 1.0, %v7578_v46  ;;  %v9405_v38 = vld [vmem:[#allocation6 + $0xf0] sm:$0xff] }
 0x474   :  { %v9413_v46 = vld [vmem:[#allocation6 + $0xd0] sm:$0xff] }
 0x475   :  { %7583 = vrcp.f32 %v1611_v60  ;;  %v9429_v60 = vld [vmem:[#allocation6 + $0x90] sm:$0xff] }
 0x476   :  { %13217 = vst [vmem:[#allocation46_spill] sm:$0xff] %v9429_v60 }
 0x47e   :  { %v7580_v12 = vpop.eup %7579 }
 0x47f   :  { %v1615_v54 = vmul.f32 %v7580_v12, %v7576_v1  ;;  %v9409_v1 = vld [vmem:[#allocation6 + $0xd8] sm:$0xff] }
 0x480   :  { %v7582_v22 = vpop.eup %7581  ;;  %v9417_v12 = vld [vmem:[#allocation6 + $0xb8] sm:$0xff] }
 0x481   :  { %v1614_v3 = vmul.f32 %v7582_v22, %v9250_v24  ;;  %v9345_v24 = vld [vmem:[#allocation6 + $0x1d8] sm:$0xff] }
 0x482   :  { %v7584_v19 = vpop.eup %7583  ;;  %v9425_v22 = vld [vmem:[#allocation6 + $0x98] sm:$0xff] }
 0x483   :  { %v9333_v15 = vadd.f32 %v1615_v54, %v1614_v3  ;;  %v9421_v54 = vld [vmem:[#allocation6 + $0xb0] sm:$0xff]  ;;  %13216 = vst [vmem:[#allocation47_spill] sm:$0xff] %v9425_v22  ;;  %v9433_v3 = vld [vmem:[#allocation6 + $0x78] sm:$0xff] }
 0x484   :  { %13218 = vst [vmem:[#allocation49_spill] sm:$0xff] %v9433_v3 }
 0x485   :  { %7585 = vtanh.f32 %v9333_v15 }
 0x492   :  { %v7586_v62 = vpop.eup %7585 }
 0x493   :  { %v9336_v47 = vmul.f32 %v7586_v62, %v7584_v19  ;;  %v9437_v19 = vld [vmem:[#allocation6 + $0x70] sm:$0xff]  ;;  %v9441_v62 = vld [vmem:[#allocation6 + $0x58] sm:$0xff] }
 0x494   :  { %13219 = vst [vmem:[#allocation48_spill] sm:$0xff] %v9437_v19  ;;  %13220 = vst [vmem:[#allocation64_spill] sm:$0xff] %v9441_v62 }
 0x495   :  { %13215 = vst [vmem:[#allocation59_spill] sm:$0xff] %v9336_v47  ;;  %1689 = vmatmul.mubr.f32.vlgmr.msra.gmra.mxu0 %v9336_v47  ;;  %1760 = vmatmul.mubr.f32.vlgmr.msra.gmra.mxu1 %v9336_v47  ;;  %v9445_v47 = vld [vmem:[#allocation6 + $0x50] sm:$0xff] }
 0x496   :  { %1800 = vmatpush1.msra.mxu0 %v9118_v14  ;;  %1871 = vmatpush1.msra.mxu1 %v9341_v9  ;;  %13221 = vst [vmem:[#allocation35_spill] sm:$0xff] %v9445_v47 }
 0x497   :  { %1801 = vmatprep.subr.mxu0 %v9122_v20  ;;  %1872 = vmatprep.subr.mxu1 %v9345_v24 }
 0x498   :  { %1802 = vmatpush1.msra.mxu0 %v9126_v57  ;;  %1873 = vmatpush1.msra.mxu1 %v9349_v61 }
 0x499   :  { %1803 = vmatprep.subr.mxu0 %v9130_v0  ;;  %1874 = vmatprep.subr.mxu1 %v9353_v53 }
 0x49a   :  { %1804 = vmatpush1.msra.mxu0 %v9134_v26  ;;  %1875 = vmatpush1.msra.mxu1 %v9357_v7 }
 0x49b   :  { %1805 = vmatprep.subr.mxu0 %v9138_v59  ;;  %1876 = vmatprep.subr.mxu1 %v9361_v49 }
 0x49c   :  { %1806 = vmatpush1.msra.mxu0 %v9142_v42  ;;  %1877 = vmatpush1.msra.mxu1 %v9365_v31 }
 0x49d   :  { %1807 = vmatprep.subr.mxu0 %v9146_v4  ;;  %1878 = vmatprep.subr.mxu1 %v9369_v35 }
 0x49e   :  { %1808 = vmatpush1.msra.mxu0 %v9150_v6  ;;  %1879 = vmatpush1.msra.mxu1 %v9373_v39 }
 0x49f   :  { %1809 = vmatprep.subr.mxu0 %v9154_v10  ;;  %1880 = vmatprep.subr.mxu1 %v9377_v43 }
 0x4a0   :  { %1810 = vmatpush1.msra.mxu0 %v9158_v13  ;;  %1881 = vmatpush1.msra.mxu1 %v9381_v27 }
 0x4a1   :  { %1811 = vmatprep.subr.mxu0 %v9162_v17  ;;  %1882 = vmatprep.subr.mxu1 %v9385_v63 }
 0x4a2   :  { %1812 = vmatpush1.msra.mxu0 %v9166_v21  ;;  %1883 = vmatpush1.msra.mxu1 %v9389_v23 }
 0x4a3   :  { %1813 = vmatprep.subr.mxu0 %v9170_v25  ;;  %1884 = vmatprep.subr.mxu1 %v9393_v18 }
 0x4a4   :  { %1814 = vmatpush1.msra.mxu0 %v9174_v29  ;;  %1885 = vmatpush1.msra.mxu1 %v9397_v28 }
 0x4a5   :  { %1815 = vmatprep.subr.mxu0 %v9178_v33  ;;  %1886 = vmatprep.subr.mxu1 %v9401_v34 }
 0x4a6   :  { %1816 = vmatpush1.msra.mxu0 %v9182_v37  ;;  %1887 = vmatpush1.msra.mxu1 %v9405_v38 }
 0x4a7   :  { %1817 = vmatprep.subr.mxu0 %v9186_v41  ;;  %1888 = vmatprep.subr.mxu1 %v9409_v1 }
 0x4a8   :  { %1818 = vmatpush1.msra.mxu0 %v9190_v45  ;;  %1889 = vmatpush1.msra.mxu1 %v9413_v46 }
 0x4a9   :  { %1819 = vmatprep.subr.mxu0 %v9194_v5  ;;  %1890 = vmatprep.subr.mxu1 %v9417_v12 }
 0x4aa   :  { %1820 = vmatpush1.msra.mxu0 %v9198_v16  ;;  %1891 = vmatpush1.msra.mxu1 %v9421_v54 }
 0x4ab   :  { %1821 = vmatprep.subr.mxu0 %v9202_v55  ;;  %1892 = vmatprep.subr.mxu1 %v9425_v22 }
 0x4ac   :  { %1822 = vmatpush1.msra.mxu0 %v13190_v30  ;;  %1893 = vmatpush1.msra.mxu1 %v9429_v60 }
 0x4ad   :  { %1823 = vmatprep.subr.mxu0 %v13192_v36  ;;  %1894 = vmatprep.subr.mxu1 %v9433_v3  ;;  %v13228_v3 = vld [vmem:[#allocation68_spill] sm:$0xff]  ;;  %v13229_v36 = vld [vmem:[#allocation67_spill] sm:$0xff] }
 0x4ae   :  { %1824 = vmatpush1.msra.mxu0 %v13194_v40  ;;  %1895 = vmatpush1.msra.mxu1 %v9437_v19  ;;  %v9453_v19 = vld [vmem:[#allocation6 + $0x30] sm:$0xff] }
 0x4af   :  { %1825 = vmatprep.subr.mxu0 %v13196_v44  ;;  %1896 = vmatprep.subr.mxu1 %v9441_v62  ;;  %13223 = vst [vmem:[#allocation37_spill] sm:$0xff] %v9453_v19  ;;  %v9457_v62 = vld [vmem:[#allocation6 + $0x18] sm:$0xff] }
 0x4b0   :  { %1826 = vmatpush1.msra.mxu0 %v13198_v48  ;;  %1897 = vmatpush1.msra.mxu1 %v9445_v47  ;;  %13224 = vst [vmem:[#allocation38_spill] sm:$0xff] %v9457_v62 }
 0x4b1   :  { %1827 = vmatprep.subr.mxu0 %v13200_v50  ;;  %1898 = vmatprep.subr.mxu1 %v9449_v52  ;;  %v9462_v50 = vld [vmem:[#allocation6 + $0x10] sm:$0xff] }
 0x4b2   :  { %1828 = vmatpush1.msra.mxu0 %v13202_v56  ;;  %1899 = vmatpush1.msra.mxu1 %v9453_v19  ;;  %13225 = vst [vmem:[#allocation39_spill] sm:$0xff] %v9462_v50  ;;  %v13227_v52 = vld [vmem:[#allocation52_spill] sm:$0xff] }
 0x4b3   :  { %1829 = vmatprep.subr.mxu0 %v13204_v58  ;;  %1900 = vmatprep.subr.mxu1 %v9457_v62  ;;  %v13226_v58 = vld [vmem:[#allocation53_spill] sm:$0xff] }
 0x4b4   :  { %1830 = vmatpush1.msra.mxu0 %v9317_v2  ;;  %1863 = vmatprep.mubr.f32.mxu0 %v13207_v32  ;;  %v755_v56 = vadd.f32 %v13226_v58, %v13173_v51 }
 0x4b5   :  { %1901 = vmatpush1.msra.mxu1 %v9462_v50  ;;  %1934 = vmatprep.mubr.f32.mxu1 %v13207_v32 }
 0x4b6   :  { %1974 = vmatprep.subr.mxu0 %v13209_v8  ;;  %2045 = vmatprep.subr.mxu1 %v9324_v11 }
 0x555   :  { %v1690_v19 = vpop.f32.mrf.mxu0  ;;  %v1761_v44 = vpop.f32.mrf.mxu1 }
 0x556   :  { %v1766_v62 = vadd.f32 %v1690_v19, %v13227_v52  ;;  %v1768_v8 = vadd.f32 %v1761_v44, %v13229_v36 }
 0x557   :  { %v1692_v47 = vpop.f32.mrf.mxu0  ;;  %v1763_v50 = vpop.f32.mrf.mxu1 }
 0x558   :  { %v7355_v2 = vmul.f32 -1.442695, %v1766_v62  ;;  %v1767_v48 = vadd.f32 %v1692_v47, %v755_v56  ;;  %v1769_v32 = vadd.f32 %v1763_v50, %v13228_v3  ;;  %v13237_v3 = vld [vmem:[#allocation48_spill] sm:$0xff]  ;;  %v13238_v62 = vld [vmem:[#allocation26_spill] sm:$0xff] }
 0x55a   :  { %7587 = vpow2.f32 %v7355_v2  ;;  %v7356_v40 = vmul.f32 -1.442695, %v1767_v48  ;;  %v7357_v60 = vmul.f32 -1.442695, %v1769_v32 }
 0x55c   :  { %7589 = vpow2.f32 %v7356_v40 }
 0x55d   :  { %7591 = vtanh.f32 %v1768_v8  ;;  %v13232_v8 = vld [vmem:[#allocation23_spill] sm:$0xff] }
 0x55e   :  { %7593 = vpow2.f32 %v7357_v60  ;;  %v13236_v60 = vld [vmem:[#allocation25_spill] sm:$0xff] }
 0x567   :  { %v7588_v11 = vpop.eup %7587 }
 0x568   :  { %v1773_v30 = vadd.f32 1.0, %v7588_v11  ;;  %v13233_v11 = vld [vmem:[#allocation46_spill] sm:$0xff] }
 0x569   :  { %v7590_v22 = vpop.eup %7589 }
 0x56a   :  { %7595 = vrcp.f32 %v1773_v30  ;;  %v1779_v52 = vadd.f32 1.0, %v7590_v22  ;;  %v7592_v58 = vpop.eup %7591  ;;  %v13231_v30 = vld [vmem:[#allocation47_spill] sm:$0xff]  ;;  %v13235_v22 = vld [vmem:[#allocation49_spill] sm:$0xff] }
 0x56b   :  { %v7594_v56 = vpop.eup %7593 }
 0x56c   :  { %7597 = vrcp.f32 %v1779_v52  ;;  %v1786_v40 = vadd.f32 1.0, %v7594_v56  ;;  %v13239_v52 = vld [vmem:[#allocation64_spill] sm:$0xff]  ;;  %v13241_v56 = vld [vmem:[#allocation35_spill] sm:$0xff] }
 0x56e   :  { %7599 = vrcp.f32 %v1786_v40  ;;  %v13245_v40 = vld [vmem:[#allocation37_spill] sm:$0xff] }
 0x577   :  { %v7596_v2 = vpop.eup %7595 }
 0x578   :  { %v1790_v47 = vmul.f32 %v7596_v2, %v7592_v58  ;;  %v13240_v58 = vld [vmem:[#allocation27_spill] sm:$0xff]  ;;  %v13242_v2 = vld [vmem:[#allocation28_spill] sm:$0xff] }
 0x579   :  { %v7598_v48 = vpop.eup %7597 }
 0x57a   :  { %v1789_v19 = vmul.f32 %v7598_v48, %v9333_v15  ;;  %v13234_v15 = vld [vmem:[#allocation24_spill] sm:$0xff]  ;;  %v13244_v48 = vld [vmem:[#allocation29_spill] sm:$0xff] }
 0x57b   :  { %v7600_v36 = vpop.eup %7599 }
 0x57c   :  { %v9474_v50 = vadd.f32 %v1790_v47, %v1789_v19  ;;  %v13243_v47 = vld [vmem:[#allocation36_spill] sm:$0xff]  ;;  %v13246_v19 = vld [vmem:[#allocation30_spill] sm:$0xff] }
 0x57e   :  { %7601 = vtanh.f32 %v9474_v50 }
 0x58b   :  { %v7602_v44 = vpop.eup %7601 }
 0x58c   :  { %v9477_v32 = vmul.f32 %v7602_v44, %v7600_v36  ;;  %v13247_v36 = vld [vmem:[#allocation38_spill] sm:$0xff]  ;;  %v13248_v44 = vld [vmem:[#allocation32_spill] sm:$0xff] }
 0x58e   :  { %13230 = vst [vmem:[#allocation40_spill] sm:$0xff] %v9477_v32  ;;  %1864 = vmatmul.mubr.f32.vlgmr.msra.gmra.mxu0 %v9477_v32  ;;  %1935 = vmatmul.mubr.f32.vlgmr.msra.gmra.mxu1 %v9477_v32  ;;  %v13249_v32 = vmov 0.0  }
 0x58f   :  { %1975 = vmatpush1.msra.mxu0 %v9118_v14  ;;  %2046 = vmatpush1.msra.mxu1 %v9341_v9 }
 0x590   :  { %1976 = vmatprep.subr.mxu0 %v9122_v20  ;;  %2047 = vmatprep.subr.mxu1 %v9345_v24 }
 0x591   :  { %1977 = vmatpush1.msra.mxu0 %v9126_v57  ;;  %2048 = vmatpush1.msra.mxu1 %v9349_v61 }
 0x592   :  { %1978 = vmatprep.subr.mxu0 %v9130_v0  ;;  %2049 = vmatprep.subr.mxu1 %v9353_v53 }
 0x593   :  { %1979 = vmatpush1.msra.mxu0 %v9134_v26  ;;  %2050 = vmatpush1.msra.mxu1 %v9357_v7 }
 0x594   :  { %1980 = vmatprep.subr.mxu0 %v9138_v59  ;;  %2051 = vmatprep.subr.mxu1 %v9361_v49 }
 0x595   :  { %1981 = vmatpush1.msra.mxu0 %v9142_v42  ;;  %2052 = vmatpush1.msra.mxu1 %v9365_v31 }
 0x596   :  { %1982 = vmatprep.subr.mxu0 %v9146_v4  ;;  %2053 = vmatprep.subr.mxu1 %v9369_v35 }
 0x597   :  { %1983 = vmatpush1.msra.mxu0 %v9150_v6  ;;  %2054 = vmatpush1.msra.mxu1 %v9373_v39 }
 0x598   :  { %1984 = vmatprep.subr.mxu0 %v9154_v10  ;;  %2055 = vmatprep.subr.mxu1 %v9377_v43 }
 0x599   :  { %1985 = vmatpush1.msra.mxu0 %v9158_v13  ;;  %2056 = vmatpush1.msra.mxu1 %v9381_v27 }
 0x59a   :  { %1986 = vmatprep.subr.mxu0 %v9162_v17  ;;  %2057 = vmatprep.subr.mxu1 %v9385_v63 }
 0x59b   :  { %1987 = vmatpush1.msra.mxu0 %v9166_v21  ;;  %2058 = vmatpush1.msra.mxu1 %v9389_v23 }
 0x59c   :  { %1988 = vmatprep.subr.mxu0 %v9170_v25  ;;  %2059 = vmatprep.subr.mxu1 %v9393_v18 }
 0x59d   :  { %1989 = vmatpush1.msra.mxu0 %v9174_v29  ;;  %2060 = vmatpush1.msra.mxu1 %v9397_v28 }
 0x59e   :  { %1990 = vmatprep.subr.mxu0 %v9178_v33  ;;  %2061 = vmatprep.subr.mxu1 %v9401_v34 }
 0x59f   :  { %1991 = vmatpush1.msra.mxu0 %v9182_v37  ;;  %2062 = vmatpush1.msra.mxu1 %v9405_v38 }
 0x5a0   :  { %1992 = vmatprep.subr.mxu0 %v9186_v41  ;;  %2063 = vmatprep.subr.mxu1 %v9409_v1 }
 0x5a1   :  { %1993 = vmatpush1.msra.mxu0 %v9190_v45  ;;  %2064 = vmatpush1.msra.mxu1 %v9413_v46 }
 0x5a2   :  { %1994 = vmatprep.subr.mxu0 %v9194_v5  ;;  %2065 = vmatprep.subr.mxu1 %v9417_v12 }
 0x5a3   :  { %1995 = vmatpush1.msra.mxu0 %v9198_v16  ;;  %2066 = vmatpush1.msra.mxu1 %v9421_v54 }
 0x5a4   :  { %1996 = vmatprep.subr.mxu0 %v9202_v55  ;;  %2067 = vmatprep.subr.mxu1 %v13231_v30 }
 0x5a5   :  { %1997 = vmatpush1.msra.mxu0 %v13232_v8  ;;  %2068 = vmatpush1.msra.mxu1 %v13233_v11 }
 0x5a6   :  { %1998 = vmatprep.subr.mxu0 %v13234_v15  ;;  %2069 = vmatprep.subr.mxu1 %v13235_v22  ;;  %v13255_v22 = vld [vmem:[#allocation70_spill] sm:$0xff]  ;;  %v13256_v15 = vld [vmem:[#allocation69_spill] sm:$0xff] }
 0x5a7   :  { %1999 = vmatpush1.msra.mxu0 %v13236_v60  ;;  %2070 = vmatpush1.msra.mxu1 %v13237_v3 }
 0x5a8   :  { %2000 = vmatprep.subr.mxu0 %v13238_v62  ;;  %2071 = vmatprep.subr.mxu1 %v13239_v52  ;;  %v13250_v52 = vld [vmem:[#allocation39_spill] sm:$0xff] }
 0x5a9   :  { %2001 = vmatpush1.msra.mxu0 %v13240_v58  ;;  %2072 = vmatpush1.msra.mxu1 %v13241_v56  ;;  %v13251_v56 = vld [vmem:[#allocation22_spill] sm:$0xff] }
 0x5aa   :  { %2002 = vmatprep.subr.mxu0 %v13242_v2  ;;  %2073 = vmatprep.subr.mxu1 %v13243_v47  ;;  %v13252_v2 = vld [vmem:[#allocation33_spill] sm:$0xff]  ;;  %v13254_v58 = vld [vmem:[#allocation54_spill] sm:$0xff] }
 0x5ab   :  { %2003 = vmatpush1.msra.mxu0 %v13244_v48  ;;  %2074 = vmatpush1.msra.mxu1 %v13245_v40  ;;  %v13253_v48 = vld [vmem:[#allocation55_spill] sm:$0xff] }
 0x5ac   :  { %2004 = vmatprep.subr.mxu0 %v13246_v19  ;;  %2075 = vmatprep.subr.mxu1 %v13247_v36  ;;  %v761_v40 = vadd.f32 %v13253_v48, %v13173_v51 }
 0x5ad   :  { %2005 = vmatpush1.msra.mxu0 %v13248_v44  ;;  %2038 = vmatprep.mubr.f32.mxu0 %v13249_v32 }
 0x5ae   :  { %2076 = vmatpush1.msra.mxu1 %v13250_v52  ;;  %2109 = vmatprep.mubr.f32.mxu1 %v13249_v32 }
 0x5af   :  { %2149 = vmatprep.subr.mxu0 %v13251_v56  ;;  %2220 = vmatprep.subr.mxu1 %v13252_v2 }
 0x64e   :  { %v1865_v47 = vpop.f32.mrf.mxu0  ;;  %v1936_v44 = vpop.f32.mrf.mxu1 }
 0x64f   :  { %v1941_v19 = vadd.f32 %v1865_v47, %v13254_v58  ;;  %v1943_v56 = vadd.f32 %v1936_v44, %v13256_v15 }
 0x650   :  { %v1867_v62 = vpop.f32.mrf.mxu0  ;;  %v1938_v52 = vpop.f32.mrf.mxu1 }
 0x651   :  { %v7358_v36 = vmul.f32 -1.442695, %v1941_v19  ;;  %v1942_v3 = vadd.f32 %v1867_v62, %v761_v40  ;;  %v1944_v32 = vadd.f32 %v1938_v52, %v13255_v22 }
 0x653   :  { %7603 = vpow2.f32 %v7358_v36  ;;  %v7359_v60 = vmul.f32 -1.442695, %v1942_v3  ;;  %v7360_v11 = vmul.f32 -1.442695, %v1944_v32 }
 0x655   :  { %7605 = vpow2.f32 %v7359_v60 }
 0x656   :  { %7607 = vtanh.f32 %v1943_v56 }
 0x657   :  { %7609 = vpow2.f32 %v7360_v11 }
 0x660   :  { %v7604_v2 = vpop.eup %7603 }
 0x661   :  { %v1948_v8 = vadd.f32 1.0, %v7604_v2 }
 0x662   :  { %v7606_v30 = vpop.eup %7605 }
 0x663   :  { %7611 = vrcp.f32 %v1948_v8  ;;  %v1954_v58 = vadd.f32 1.0, %v7606_v30  ;;  %v7608_v47 = vpop.eup %7607 }
 0x664   :  { %v7610_v62 = vpop.eup %7609 }
 0x665   :  { %7613 = vrcp.f32 %v1954_v58  ;;  %v1961_v60 = vadd.f32 1.0, %v7610_v62  ;;  %v351_v62 = vld [vmem:[#allocation8 + $0x1e0] sm:$0xff] }
 0x667   :  { %7615 = vrcp.f32 %v1961_v60  ;;  %v347_v60 = vld [vmem:[#allocation8 + $0x1c0] sm:$0xff] }
 0x670   :  { %v7612_v48 = vpop.eup %7611 }
 0x671   :  { %v1965_v40 = vmul.f32 %v7612_v48, %v7608_v47  ;;  %v353_v48 = vld [vmem:[#allocation8 + $0x1f0] sm:$0xff] }
 0x672   :  { %v7614_v3 = vpop.eup %7613 }
 0x673   :  { %v1964_v19 = vmul.f32 %v7614_v3, %v9474_v50  ;;  %v350_v3 = vld [vmem:[#allocation8 + $0x1d8] sm:$0xff] }
 0x674   :  { %v7616_v32 = vpop.eup %7615 }
 0x675   :  { %v9553_v22 = vadd.f32 %v1965_v40, %v1964_v19  ;;  %v348_v40 = vld [vmem:[#allocation8 + $0x1c8] sm:$0xff]  ;;  %v349_v19 = vld [vmem:[#allocation8 + $0x1d0] sm:$0xff] }
 0x677   :  { %7617 = vtanh.f32 %v9553_v22 }
 0x684   :  { %v7618_v15 = vpop.eup %7617 }
 0x685   :  { %v9556_v52 = vmul.f32 %v7618_v15, %v7616_v32  ;;  %v346_v32 = vld [vmem:[#allocation8 + $0x1b8] sm:$0xff]  ;;  %v343_v15 = vld [vmem:[#allocation8 + $0x1a0] sm:$0xff] }
 0x687   :  { %2039 = vmatmul.mubr.f32.vlgmr.msra.gmra.mxu0 %v9556_v52  ;;  %2110 = vmatmul.mubr.f32.vlgmr.msra.gmra.mxu1 %v9556_v52 }
 0x688   :  { %2150 = vmatpush1.msra.mxu0 %v9118_v14  ;;  %2221 = vmatpush1.msra.mxu1 %v9341_v9  ;;  %v13257_v14 = vld [vmem:[#allocation47_spill] sm:$0xff] }
 0x689   :  { %2151 = vmatprep.subr.mxu0 %v9122_v20  ;;  %2222 = vmatprep.subr.mxu1 %v9345_v24  ;;  %v13258_v20 = vld [vmem:[#allocation23_spill] sm:$0xff]  ;;  %v13277_v24 = vld [vmem:[#allocation58_spill] sm:$0xff] }
 0x68a   :  { %2152 = vmatpush1.msra.mxu0 %v9126_v57  ;;  %2223 = vmatpush1.msra.mxu1 %v9349_v61  ;;  %v13259_v57 = vld [vmem:[#allocation46_spill] sm:$0xff]  ;;  %v767_v61 = vadd.f32 %v13277_v24, %v13173_v51  ;;  %v322_v24 = vld [vmem:[#allocation8 + $0xf8] sm:$0xff] }
 0x68b   :  { %2153 = vmatprep.subr.mxu0 %v9130_v0  ;;  %2224 = vmatprep.subr.mxu1 %v9353_v53  ;;  %v13260_v0 = vld [vmem:[#allocation24_spill] sm:$0xff]  ;;  %v13278_v53 = vld [vmem:[#allocation57_spill] sm:$0xff] }
 0x68c   :  { %2154 = vmatpush1.msra.mxu0 %v9134_v26  ;;  %2225 = vmatpush1.msra.mxu1 %v9357_v7  ;;  %v13261_v26 = vld [vmem:[#allocation49_spill] sm:$0xff] }
 0x68d   :  { %2155 = vmatprep.subr.mxu0 %v9138_v59  ;;  %2226 = vmatprep.subr.mxu1 %v9361_v49  ;;  %v13262_v59 = vld [vmem:[#allocation25_spill] sm:$0xff] }
 0x68e   :  { %2156 = vmatpush1.msra.mxu0 %v9142_v42  ;;  %2227 = vmatpush1.msra.mxu1 %v9365_v31  ;;  %v13263_v42 = vld [vmem:[#allocation48_spill] sm:$0xff] }
 0x68f   :  { %2157 = vmatprep.subr.mxu0 %v9146_v4  ;;  %2228 = vmatprep.subr.mxu1 %v9369_v35  ;;  %v13264_v4 = vld [vmem:[#allocation26_spill] sm:$0xff] }
 0x690   :  { %2158 = vmatpush1.msra.mxu0 %v9150_v6  ;;  %2229 = vmatpush1.msra.mxu1 %v9373_v39  ;;  %v13265_v6 = vld [vmem:[#allocation64_spill] sm:$0xff] }
 0x691   :  { %2159 = vmatprep.subr.mxu0 %v9154_v10  ;;  %2230 = vmatprep.subr.mxu1 %v9377_v43  ;;  %v13266_v10 = vld [vmem:[#allocation27_spill] sm:$0xff] }
 0x692   :  { %2160 = vmatpush1.msra.mxu0 %v9158_v13  ;;  %2231 = vmatpush1.msra.mxu1 %v9381_v27  ;;  %v13267_v13 = vld [vmem:[#allocation35_spill] sm:$0xff] }
 0x693   :  { %2161 = vmatprep.subr.mxu0 %v9162_v17  ;;  %2232 = vmatprep.subr.mxu1 %v9385_v63  ;;  %v13268_v17 = vld [vmem:[#allocation28_spill] sm:$0xff] }
 0x694   :  { %2162 = vmatpush1.msra.mxu0 %v9166_v21  ;;  %2233 = vmatpush1.msra.mxu1 %v9389_v23  ;;  %v13269_v21 = vld [vmem:[#allocation36_spill] sm:$0xff] }
 0x695   :  { %2163 = vmatprep.subr.mxu0 %v9170_v25  ;;  %2234 = vmatprep.subr.mxu1 %v9393_v18  ;;  %v13270_v25 = vld [vmem:[#allocation29_spill] sm:$0xff]  ;;  %v13279_v63 = vld [vmem:[#allocation72_spill] sm:$0xff]  ;;  %v13280_v18 = vld [vmem:[#allocation71_spill] sm:$0xff] }
 0x696   :  { %2164 = vmatpush1.msra.mxu0 %v9174_v29  ;;  %2235 = vmatpush1.msra.mxu1 %v9397_v28  ;;  %v13271_v29 = vld [vmem:[#allocation37_spill] sm:$0xff] }
 0x697   :  { %2165 = vmatprep.subr.mxu0 %v9178_v33  ;;  %2236 = vmatprep.subr.mxu1 %v9401_v34  ;;  %v13272_v33 = vld [vmem:[#allocation30_spill] sm:$0xff] }
 0x698   :  { %2166 = vmatpush1.msra.mxu0 %v9182_v37  ;;  %2237 = vmatpush1.msra.mxu1 %v9405_v38  ;;  %v13273_v37 = vld [vmem:[#allocation38_spill] sm:$0xff] }
 0x699   :  { %2167 = vmatprep.subr.mxu0 %v9186_v41  ;;  %2238 = vmatprep.subr.mxu1 %v9409_v1  ;;  %v13274_v41 = vld [vmem:[#allocation32_spill] sm:$0xff] }
 0x69a   :  { %2168 = vmatpush1.msra.mxu0 %v9190_v45  ;;  %2239 = vmatpush1.msra.mxu1 %v9413_v46  ;;  %v13275_v45 = vld [vmem:[#allocation39_spill] sm:$0xff] }
 0x69b   :  { %2169 = vmatprep.subr.mxu0 %v9194_v5  ;;  %2240 = vmatprep.subr.mxu1 %v9417_v12  ;;  %v13276_v5 = vmov 0.0  }
 0x69c   :  { %2170 = vmatpush1.msra.mxu0 %v9198_v16  ;;  %2241 = vmatpush1.msra.mxu1 %v9421_v54  ;;  %v352_v16 = vld [vmem:[#allocation8 + $0x1e8] sm:$0xff] }
 0x69d   :  { %2171 = vmatprep.subr.mxu0 %v9202_v55  ;;  %2242 = vmatprep.subr.mxu1 %v13257_v14  ;;  %v354_v55 = vld [vmem:[#allocation8 + $0x1f8] sm:$0xff]  ;;  %v345_v14 = vld [vmem:[#allocation8 + $0x1b0] sm:$0xff] }
 0x69e   :  { %2172 = vmatpush1.msra.mxu0 %v13258_v20  ;;  %2243 = vmatpush1.msra.mxu1 %v13259_v57  ;;  %v340_v20 = vld [vmem:[#allocation8 + $0x188] sm:$0xff]  ;;  %v342_v57 = vld [vmem:[#allocation8 + $0x198] sm:$0xff] }
 0x69f   :  { %2173 = vmatprep.subr.mxu0 %v13260_v0  ;;  %2244 = vmatprep.subr.mxu1 %v13261_v26  ;;  %v339_v0 = vld [vmem:[#allocation8 + $0x180] sm:$0xff]  ;;  %v341_v26 = vld [vmem:[#allocation8 + $0x190] sm:$0xff] }
 0x6a0   :  { %2174 = vmatpush1.msra.mxu0 %v13262_v59  ;;  %2245 = vmatpush1.msra.mxu1 %v13263_v42  ;;  %v336_v59 = vld [vmem:[#allocation8 + $0x168] sm:$0xff]  ;;  %v338_v42 = vld [vmem:[#allocation8 + $0x178] sm:$0xff] }
 0x6a1   :  { %2175 = vmatprep.subr.mxu0 %v13264_v4  ;;  %2246 = vmatprep.subr.mxu1 %v13265_v6  ;;  %v335_v4 = vld [vmem:[#allocation8 + $0x160] sm:$0xff]  ;;  %v337_v6 = vld [vmem:[#allocation8 + $0x170] sm:$0xff] }
 0x6a2   :  { %2176 = vmatpush1.msra.mxu0 %v13266_v10  ;;  %2247 = vmatpush1.msra.mxu1 %v13267_v13  ;;  %v332_v10 = vld [vmem:[#allocation8 + $0x148] sm:$0xff]  ;;  %v334_v13 = vld [vmem:[#allocation8 + $0x158] sm:$0xff] }
 0x6a3   :  { %2177 = vmatprep.subr.mxu0 %v13268_v17  ;;  %2248 = vmatprep.subr.mxu1 %v13269_v21  ;;  %v331_v17 = vld [vmem:[#allocation8 + $0x140] sm:$0xff]  ;;  %v333_v21 = vld [vmem:[#allocation8 + $0x150] sm:$0xff] }
 0x6a4   :  { %2178 = vmatpush1.msra.mxu0 %v13270_v25  ;;  %2249 = vmatpush1.msra.mxu1 %v13271_v29  ;;  %v328_v25 = vld [vmem:[#allocation8 + $0x128] sm:$0xff]  ;;  %v330_v29 = vld [vmem:[#allocation8 + $0x138] sm:$0xff] }
 0x6a5   :  { %2179 = vmatprep.subr.mxu0 %v13272_v33  ;;  %2250 = vmatprep.subr.mxu1 %v13273_v37  ;;  %v327_v33 = vld [vmem:[#allocation8 + $0x120] sm:$0xff]  ;;  %v329_v37 = vld [vmem:[#allocation8 + $0x130] sm:$0xff] }
 0x6a6   :  { %2180 = vmatpush1.msra.mxu0 %v13274_v41  ;;  %2251 = vmatpush1.msra.mxu1 %v13275_v45  ;;  %v324_v41 = vld [vmem:[#allocation8 + $0x108] sm:$0xff]  ;;  %v326_v45 = vld [vmem:[#allocation8 + $0x118] sm:$0xff] }
 0x6a7   :  { %2213 = vmatprep.mubr.f32.mxu0 %v13276_v5  ;;  %2284 = vmatprep.mubr.f32.mxu1 %v13276_v5 }
 0x6a8   :  { %2349 = vmatprep.subr.mxu0 %v352_v16  ;;  %2462 = vmatprep.subr.mxu1 %v354_v55  ;;  %v323_v16 = vld [vmem:[#allocation8 + $0x100] sm:$0xff]  ;;  %v325_v55 = vld [vmem:[#allocation8 + $0x110] sm:$0xff] }
 0x747   :  { %v2040_v9 = vpop.f32.mrf.mxu0  ;;  %v2111_v39 = vpop.f32.mrf.mxu1 }
 0x748   :  { %v2116_v7 = vadd.f32 %v2040_v9, %v13278_v53  ;;  %v2118_v28 = vadd.f32 %v2111_v39, %v13280_v18  ;;  %v320_v9 = vld [vmem:[#allocation8 + $0xe8] sm:$0xff]  ;;  %v321_v53 = vld [vmem:[#allocation8 + $0xf0] sm:$0xff]  ;;  %v310_v18 = vld [vmem:[#allocation8 + $0x98] sm:$0xff] }
 0x749   :  { %v2042_v49 = vpop.f32.mrf.mxu0  ;;  %v2113_v27 = vpop.f32.mrf.mxu1  ;;  %v312_v39 = vld [vmem:[#allocation8 + $0xa8] sm:$0xff] }
 0x74a   :  { %v7361_v31 = vmul.f32 -1.442695, %v2116_v7  ;;  %v2117_v35 = vadd.f32 %v2042_v49, %v767_v61  ;;  %v2119_v23 = vadd.f32 %v2113_v27, %v13279_v63  ;;  %v319_v61 = vld [vmem:[#allocation8 + $0xe0] sm:$0xff]  ;;  %v316_v7 = vld [vmem:[#allocation8 + $0xc8] sm:$0xff]  ;;  %v318_v49 = vld [vmem:[#allocation8 + $0xd8] sm:$0xff] }
 0x74b   :  { %v311_v27 = vld [vmem:[#allocation8 + $0xa0] sm:$0xff]  ;;  %v313_v63 = vld [vmem:[#allocation8 + $0xb0] sm:$0xff] }
 0x74c   :  { %7619 = vpow2.f32 %v7361_v31  ;;  %v7362_v43 = vmul.f32 -1.442695, %v2117_v35  ;;  %v7363_v34 = vmul.f32 -1.442695, %v2119_v23  ;;  %v315_v31 = vld [vmem:[#allocation8 + $0xc0] sm:$0xff]  ;;  %v317_v35 = vld [vmem:[#allocation8 + $0xd0] sm:$0xff] }
 0x74d   :  { %v308_v23 = vld [vmem:[#allocation8 + $0x88] sm:$0xff] }
 0x74e   :  { %7621 = vpow2.f32 %v7362_v43  ;;  %v314_v43 = vld [vmem:[#allocation8 + $0xb8] sm:$0xff] }
 0x74f   :  { %7623 = vtanh.f32 %v2118_v28  ;;  %v307_v28 = vld [vmem:[#allocation8 + $0x80] sm:$0xff] }
 0x750   :  { %7625 = vpow2.f32 %v7363_v34  ;;  %v309_v34 = vld [vmem:[#allocation8 + $0x90] sm:$0xff] }
 0x759   :  { %v7620_v38 = vpop.eup %7619 }
 0x75a   :  { %v2123_v1 = vadd.f32 1.0, %v7620_v38  ;;  %v304_v38 = vld [vmem:[#allocation8 + $0x68] sm:$0xff] }
 0x75b   :  { %v7622_v46 = vpop.eup %7621 }
 0x75c   :  { %7627 = vrcp.f32 %v2123_v1  ;;  %v2129_v12 = vadd.f32 1.0, %v7622_v46  ;;  %v7624_v54 = vpop.eup %7623  ;;  %v306_v1 = vld [vmem:[#allocation8 + $0x78] sm:$0xff]  ;;  %v303_v46 = vld [vmem:[#allocation8 + $0x60] sm:$0xff] }
 0x75d   :  { %v7626_v50 = vpop.eup %7625 }
 0x75e   :  { %7629 = vrcp.f32 %v2129_v12  ;;  %v2136_v36 = vadd.f32 1.0, %v7626_v50  ;;  %v305_v12 = vld [vmem:[#allocation8 + $0x70] sm:$0xff]  ;;  %v302_v50 = vld [vmem:[#allocation8 + $0x58] sm:$0xff] }
 0x760   :  { %7631 = vrcp.f32 %v2136_v36  ;;  %v298_v36 = vld [vmem:[#allocation8 + $0x38] sm:$0xff] }
 0x769   :  { %v7628_v30 = vpop.eup %7627 }
 0x76a   :  { %v2140_v8 = vmul.f32 %v7628_v30, %v7624_v54  ;;  %v300_v54 = vld [vmem:[#allocation8 + $0x48] sm:$0xff]  ;;  %v299_v30 = vld [vmem:[#allocation8 + $0x40] sm:$0xff] }
 0x76b   :  { %v7630_v11 = vpop.eup %7629 }
 0x76c   :  { %v2139_v44 = vmul.f32 %v7630_v11, %v9553_v22  ;;  %v344_v22 = vld [vmem:[#allocation8 + $0x1a8] sm:$0xff] }
 0x76d   :  { %v7632_v2 = vpop.eup %7631  ;;  %v296_v11 = vld [vmem:[#allocation8 + $0x28] sm:$0xff] }
 0x76e   :  { %v9630_v56 = vadd.f32 %v2140_v8, %v2139_v44  ;;  %v301_v8 = vld [vmem:[#allocation8 + $0x50] sm:$0xff]  ;;  %v295_v44 = vld [vmem:[#allocation8 + $0x20] sm:$0xff] }
 0x770   :  { %7633 = vtanh.f32 %v9630_v56 }
 0x77d   :  { %v7634_v58 = vpop.eup %7633 }
 0x77e   :  { %v9633_v47 = vmul.f32 %v7634_v58, %v7632_v2  ;;  %v297_v2 = vld [vmem:[#allocation8 + $0x30] sm:$0xff]  ;;  %v292_v58 = vld [vmem:[#allocation8 + $0x8] sm:$0xff] }
 0x780   :  { %2214 = vmatmul.mubr.f32.vlgmr.msra.gmra.mxu0 %v9633_v47  ;;  %2285 = vmatmul.mubr.f32.vlgmr.msra.gmra.mxu1 %v9633_v47 }
 0x781   :  { %2350 = vmatpush1.msra.mxu0 %v351_v62  ;;  %2463 = vmatpush1.msra.mxu1 %v353_v48  ;;  %v294_v62 = vld [vmem:[#allocation8 + $0x18] sm:$0xff]  ;;  %v291_v48 = vld [vmem:[#allocation8] sm:$0xff] }
 0x782   :  { %2351 = vmatprep.subr.mxu0 %v348_v40  ;;  %2464 = vmatprep.subr.mxu1 %v350_v3  ;;  %v293_v40 = vld [vmem:[#allocation8 + $0x10] sm:$0xff]  ;;  %v13281_v3 = vld [vmem:[#allocation75_spill] sm:$0xff] }
 0x783   :  { %2352 = vmatpush1.msra.mxu0 %v347_v60  ;;  %2465 = vmatpush1.msra.mxu1 %v349_v19  ;;  %v13282_v60 = vld [vmem:[#allocation34_spill] sm:$0xff]  ;;  %v13283_v19 = vld [vmem:[#allocation31_spill] sm:$0xff] }
 0x784   :  { %2353 = vmatprep.subr.mxu0 %v344_v22  ;;  %2466 = vmatprep.subr.mxu1 %v346_v32  ;;  %v13284_v22 = vld [vmem:[#allocation59_spill] sm:$0xff]  ;;  %v13285_v32 = vld [vmem:[#allocation40_spill] sm:$0xff] }
 0x785   :  { %2354 = vmatpush1.msra.mxu0 %v343_v15  ;;  %2467 = vmatpush1.msra.mxu1 %v345_v14  ;;  %v9667_v15 = vld [vmem:[#allocation9 + $0x1e8] sm:$0xff]  ;;  %v9669_v14 = vld [vmem:[#allocation9 + $0x1f8] sm:$0xff] }
 0x786   :  { %2355 = vmatprep.subr.mxu0 %v340_v20  ;;  %2468 = vmatprep.subr.mxu1 %v342_v57  ;;  %13286 = vst [vmem:[#allocation41_spill] sm:$0xff] %v9667_v15  ;;  %13287 = vst [vmem:[#allocation42_spill] sm:$0xff] %v9669_v14  ;;  %v9675_v20 = vld [vmem:[#allocation9 + $0x1f0] sm:$0xff]  ;;  %v9681_v57 = vld [vmem:[#allocation9 + $0x1d8] sm:$0xff] }
 0x787   :  { %2356 = vmatpush1.msra.mxu0 %v339_v0  ;;  %2469 = vmatpush1.msra.mxu1 %v341_v26  ;;  %v9685_v0 = vld [vmem:[#allocation9 + $0x1c0] sm:$0xff]  ;;  %v9687_v26 = vld [vmem:[#allocation9 + $0x1d0] sm:$0xff] }
 0x788   :  { %2357 = vmatprep.subr.mxu0 %v336_v59  ;;  %2470 = vmatprep.subr.mxu1 %v338_v42  ;;  %v9691_v59 = vld [vmem:[#allocation9 + $0x1a8] sm:$0xff]  ;;  %v9693_v42 = vld [vmem:[#allocation9 + $0x1b8] sm:$0xff] }
 0x789   :  { %2358 = vmatpush1.msra.mxu0 %v335_v4  ;;  %2471 = vmatpush1.msra.mxu1 %v337_v6  ;;  %v9697_v4 = vld [vmem:[#allocation9 + $0x1a0] sm:$0xff]  ;;  %v9699_v6 = vld [vmem:[#allocation9 + $0x1b0] sm:$0xff] }
 0x78a   :  { %2359 = vmatprep.subr.mxu0 %v332_v10  ;;  %2472 = vmatprep.subr.mxu1 %v334_v13  ;;  %v9703_v10 = vld [vmem:[#allocation9 + $0x188] sm:$0xff]  ;;  %v9705_v13 = vld [vmem:[#allocation9 + $0x198] sm:$0xff] }
 0x78b   :  { %2360 = vmatpush1.msra.mxu0 %v331_v17  ;;  %2473 = vmatpush1.msra.mxu1 %v333_v21  ;;  %v9709_v17 = vld [vmem:[#allocation9 + $0x180] sm:$0xff]  ;;  %v9711_v21 = vld [vmem:[#allocation9 + $0x190] sm:$0xff] }
 0x78c   :  { %2361 = vmatprep.subr.mxu0 %v328_v25  ;;  %2474 = vmatprep.subr.mxu1 %v330_v29  ;;  %v9715_v25 = vld [vmem:[#allocation9 + $0x168] sm:$0xff]  ;;  %v9717_v29 = vld [vmem:[#allocation9 + $0x178] sm:$0xff] }
 0x78d   :  { %2362 = vmatpush1.msra.mxu0 %v327_v33  ;;  %2475 = vmatpush1.msra.mxu1 %v329_v37  ;;  %v9721_v33 = vld [vmem:[#allocation9 + $0x160] sm:$0xff]  ;;  %v9723_v37 = vld [vmem:[#allocation9 + $0x170] sm:$0xff] }
 0x78e   :  { %2363 = vmatprep.subr.mxu0 %v324_v41  ;;  %2476 = vmatprep.subr.mxu1 %v326_v45  ;;  %v9727_v41 = vld [vmem:[#allocation9 + $0x148] sm:$0xff]  ;;  %v9729_v45 = vld [vmem:[#allocation9 + $0x158] sm:$0xff] }
 0x78f   :  { %2364 = vmatpush1.msra.mxu0 %v323_v16  ;;  %2477 = vmatpush1.msra.mxu1 %v325_v55  ;;  %v9733_v16 = vld [vmem:[#allocation9 + $0x140] sm:$0xff]  ;;  %v9735_v55 = vld [vmem:[#allocation9 + $0x150] sm:$0xff] }
 0x790   :  { %2365 = vmatprep.subr.mxu0 %v320_v9  ;;  %2478 = vmatprep.subr.mxu1 %v322_v24  ;;  %v9739_v9 = vld [vmem:[#allocation9 + $0x128] sm:$0xff]  ;;  %v9741_v24 = vld [vmem:[#allocation9 + $0x138] sm:$0xff] }
 0x791   :  { %2366 = vmatpush1.msra.mxu0 %v319_v61  ;;  %2479 = vmatpush1.msra.mxu1 %v321_v53  ;;  %v9745_v61 = vld [vmem:[#allocation9 + $0x120] sm:$0xff]  ;;  %v9747_v53 = vld [vmem:[#allocation9 + $0x130] sm:$0xff] }
 0x792   :  { %2367 = vmatprep.subr.mxu0 %v316_v7  ;;  %2480 = vmatprep.subr.mxu1 %v318_v49  ;;  %v9751_v7 = vld [vmem:[#allocation9 + $0x108] sm:$0xff]  ;;  %v9753_v49 = vld [vmem:[#allocation9 + $0x118] sm:$0xff] }
 0x793   :  { %2368 = vmatpush1.msra.mxu0 %v315_v31  ;;  %2481 = vmatpush1.msra.mxu1 %v317_v35  ;;  %v9757_v31 = vld [vmem:[#allocation9 + $0x100] sm:$0xff]  ;;  %v9759_v35 = vld [vmem:[#allocation9 + $0x110] sm:$0xff] }
 0x794   :  { %2369 = vmatprep.subr.mxu0 %v312_v39  ;;  %2482 = vmatprep.subr.mxu1 %v314_v43  ;;  %v9763_v39 = vld [vmem:[#allocation9 + $0xe8] sm:$0xff]  ;;  %v9765_v43 = vld [vmem:[#allocation9 + $0xf8] sm:$0xff] }
 0x795   :  { %2370 = vmatpush1.msra.mxu0 %v311_v27  ;;  %2483 = vmatpush1.msra.mxu1 %v313_v63  ;;  %v9769_v27 = vld [vmem:[#allocation9 + $0xe0] sm:$0xff]  ;;  %v9771_v63 = vld [vmem:[#allocation9 + $0xf0] sm:$0xff] }
 0x796   :  { %2371 = vmatprep.subr.mxu0 %v308_v23  ;;  %2484 = vmatprep.subr.mxu1 %v310_v18  ;;  %v9775_v23 = vld [vmem:[#allocation9 + $0xc8] sm:$0xff]  ;;  %v9777_v18 = vld [vmem:[#allocation9 + $0xd8] sm:$0xff] }
 0x797   :  { %2372 = vmatpush1.msra.mxu0 %v307_v28  ;;  %2485 = vmatpush1.msra.mxu1 %v309_v34  ;;  %v9781_v28 = vld [vmem:[#allocation9 + $0xc0] sm:$0xff]  ;;  %v9783_v34 = vld [vmem:[#allocation9 + $0xd0] sm:$0xff] }
 0x798   :  { %2373 = vmatprep.subr.mxu0 %v304_v38  ;;  %2486 = vmatprep.subr.mxu1 %v306_v1  ;;  %v9787_v38 = vld [vmem:[#allocation9 + $0xa8] sm:$0xff]  ;;  %v9789_v1 = vld [vmem:[#allocation9 + $0xb8] sm:$0xff] }
 0x799   :  { %2374 = vmatpush1.msra.mxu0 %v303_v46  ;;  %2487 = vmatpush1.msra.mxu1 %v305_v12  ;;  %v9793_v46 = vld [vmem:[#allocation9 + $0xa0] sm:$0xff]  ;;  %v9795_v12 = vld [vmem:[#allocation9 + $0xb0] sm:$0xff] }
 0x79a   :  { %2375 = vmatprep.subr.mxu0 %v300_v54  ;;  %2488 = vmatprep.subr.mxu1 %v302_v50  ;;  %13288 = vst [vmem:[#allocation43_spill] sm:$0xff] %v9795_v12  ;;  %v9799_v54 = vld [vmem:[#allocation9 + $0x88] sm:$0xff]  ;;  %v9801_v50 = vld [vmem:[#allocation9 + $0x98] sm:$0xff] }
 0x79b   :  { %2376 = vmatpush1.msra.mxu0 %v299_v30  ;;  %2489 = vmatpush1.msra.mxu1 %v301_v8  ;;  %13289 = vst [vmem:[#allocation44_spill] sm:$0xff] %v9799_v54  ;;  %13290 = vst [vmem:[#allocation51_spill] sm:$0xff] %v9801_v50  ;;  %v9805_v30 = vld [vmem:[#allocation9 + $0x80] sm:$0xff]  ;;  %v9807_v8 = vld [vmem:[#allocation9 + $0x90] sm:$0xff] }
 0x79c   :  { %2377 = vmatprep.subr.mxu0 %v296_v11  ;;  %2490 = vmatprep.subr.mxu1 %v298_v36  ;;  %13291 = vst [vmem:[#allocation50_spill] sm:$0xff] %v9805_v30  ;;  %13292 = vst [vmem:[#allocation66_spill] sm:$0xff] %v9807_v8  ;;  %v9811_v11 = vld [vmem:[#allocation9 + $0x68] sm:$0xff]  ;;  %v9813_v36 = vld [vmem:[#allocation9 + $0x78] sm:$0xff] }
 0x79d   :  { %2378 = vmatpush1.msra.mxu0 %v295_v44  ;;  %2491 = vmatpush1.msra.mxu1 %v297_v2  ;;  %13293 = vst [vmem:[#allocation65_spill] sm:$0xff] %v9811_v11  ;;  %13294 = vst [vmem:[#allocation53_spill] sm:$0xff] %v9813_v36  ;;  %v9817_v44 = vld [vmem:[#allocation9 + $0x60] sm:$0xff]  ;;  %v9819_v2 = vld [vmem:[#allocation9 + $0x70] sm:$0xff] }
 0x79e   :  { %2379 = vmatprep.subr.mxu0 %v292_v58  ;;  %2492 = vmatprep.subr.mxu1 %v294_v62  ;;  %13295 = vst [vmem:[#allocation52_spill] sm:$0xff] %v9817_v44  ;;  %13296 = vst [vmem:[#allocation68_spill] sm:$0xff] %v9819_v2  ;;  %v9823_v58 = vld [vmem:[#allocation9 + $0x48] sm:$0xff]  ;;  %v9825_v62 = vld [vmem:[#allocation9 + $0x58] sm:$0xff] }
 0x79f   :  { %2380 = vmatpush1.msra.mxu0 %v291_v48  ;;  %2413 = vmatprep.mubr.f32.mxu0 %v13276_v5  ;;  %13297 = vst [vmem:[#allocation67_spill] sm:$0xff] %v9823_v58  ;;  %13298 = vst [vmem:[#allocation22_spill] sm:$0xff] %v9825_v62  ;;  %v9829_v48 = vld [vmem:[#allocation9 + $0x40] sm:$0xff] }
 0x7a0   :  { %2493 = vmatpush1.msra.mxu1 %v293_v40  ;;  %2526 = vmatprep.mubr.f32.mxu1 %v13276_v5  ;;  %13299 = vst [vmem:[#allocation33_spill] sm:$0xff] %v9829_v48  ;;  %v9831_v40 = vld [vmem:[#allocation9 + $0x50] sm:$0xff] }
 0x7a1   :  { %2414 = vmatmul.mubr.f32.vlgmr.msra.gmra.mxu0 %v13281_v3  ;;  %2527 = vmatmul.mubr.f32.vlgmr.msra.gmra.mxu1 %v13281_v3  ;;  %13300 = vst [vmem:[#allocation55_spill] sm:$0xff] %v9831_v40  ;;  %v9835_v3 = vld [vmem:[#allocation9 + $0x28] sm:$0xff] }
 0x7a2   :  { %2419 = vmatprep.mubr.f32.mxu0 %v13276_v5  ;;  %2532 = vmatprep.mubr.f32.mxu1 %v13276_v5  ;;  %13301 = vst [vmem:[#allocation54_spill] sm:$0xff] %v9835_v3 }
 0x7a3   :  { %2611 = vmatprep.subr.mxu0 %v9667_v15  ;;  %2682 = vmatprep.subr.mxu1 %v9669_v14 }
 0x7a4   :  { %2683 = vmatpush1.msra.mxu1 %v9675_v20 }
 0x7a5   :  { %2420 = vmatmul.mubr.f32.gmra.mxu0 %v13282_v60  ;;  %2533 = vmatmul.mubr.f32.gmra.mxu1 %v13282_v60  ;;  %v9837_v60 = vld [vmem:[#allocation9 + $0x38] sm:$0xff] }
 0x7a6   :  { %2425 = vmatprep.mubr.f32.mxu0 %v13276_v5  ;;  %2538 = vmatprep.mubr.f32.mxu1 %v13276_v5  ;;  %13302 = vst [vmem:[#allocation70_spill] sm:$0xff] %v9837_v60 }
 0x7a7   :  { %2684 = vmatprep.subr.mxu1 %v9681_v57 }
 0x7a8   :  { %2685 = vmatpush1.msra.mxu1 %v9687_v26 }
 0x7a9   :  { %2426 = vmatmul.mubr.f32.gmra.mxu0 %v13283_v19  ;;  %2539 = vmatmul.mubr.f32.gmra.mxu1 %v13283_v19  ;;  %v9841_v19 = vld [vmem:[#allocation9 + $0x20] sm:$0xff] }
 0x7aa   :  { %2431 = vmatprep.mubr.f32.mxu0 %v13276_v5  ;;  %2544 = vmatprep.mubr.f32.mxu1 %v13276_v5  ;;  %13303 = vst [vmem:[#allocation69_spill] sm:$0xff] %v9841_v19 }
 0x7ab   :  { %2686 = vmatprep.subr.mxu1 %v9693_v42 }
 0x7ac   :  { %2687 = vmatpush1.msra.mxu1 %v9699_v6 }
 0x7ad   :  { %2432 = vmatmul.mubr.f32.gmra.mxu0 %v13284_v22  ;;  %2545 = vmatmul.mubr.f32.gmra.mxu1 %v13284_v22  ;;  %v9843_v22 = vld [vmem:[#allocation9 + $0x30] sm:$0xff] }
 0x7ae   :  { %2437 = vmatprep.mubr.f32.mxu0 %v13276_v5  ;;  %2550 = vmatprep.mubr.f32.mxu1 %v13276_v5  ;;  %13304 = vst [vmem:[#allocation47_spill] sm:$0xff] %v9843_v22 }
 0x7af   :  { %2688 = vmatprep.subr.mxu1 %v9705_v13 }
 0x7b0   :  { %2689 = vmatpush1.msra.mxu1 %v9711_v21 }
 0x7b1   :  { %2438 = vmatmul.mubr.f32.gmra.mxu0 %v13285_v32  ;;  %2551 = vmatmul.mubr.f32.gmra.mxu1 %v13285_v32  ;;  %v9847_v32 = vld [vmem:[#allocation9 + $0x8] sm:$0xff] }
 0x7b2   :  { %2443 = vmatprep.mubr.f32.mxu0 %v13276_v5  ;;  %2556 = vmatprep.mubr.f32.mxu1 %v13276_v5  ;;  %13305 = vst [vmem:[#allocation23_spill] sm:$0xff] %v9847_v32 }
 0x7b3   :  { %2690 = vmatprep.subr.mxu1 %v9717_v29 }
 0x7b4   :  { %2691 = vmatpush1.msra.mxu1 %v9723_v37 }
 0x7b5   :  { %2444 = vmatmul.mubr.f32.gmra.mxu0 %v9556_v52  ;;  %2557 = vmatmul.mubr.f32.gmra.mxu1 %v9556_v52  ;;  %v9673_v52 = vld [vmem:[#allocation9 + $0x1e0] sm:$0xff] }
 0x7b6   :  { %2449 = vmatprep.mubr.f32.mxu0 %v13276_v5  ;;  %2562 = vmatprep.mubr.f32.mxu1 %v13276_v5 }
 0x7b7   :  { %2612 = vmatpush1.msra.mxu0 %v9673_v52  ;;  %2692 = vmatprep.subr.mxu1 %v9729_v45 }
 0x7b8   :  { %2693 = vmatpush1.msra.mxu1 %v9735_v55 }
 0x7b9   :  { %2450 = vmatmul.mubr.f32.gmra.mxu0 %v9633_v47  ;;  %2563 = vmatmul.mubr.f32.gmra.mxu1 %v9633_v47  ;;  %v9679_v47 = vld [vmem:[#allocation9 + $0x1c8] sm:$0xff] }
 0x7ba   :  { %2455 = vmatprep.mubr.f32.mxu0 %v13276_v5  ;;  %2568 = vmatprep.mubr.f32.mxu1 %v13276_v5 }
 0x7bb   :  { %2613 = vmatprep.subr.mxu0 %v9679_v47  ;;  %2694 = vmatprep.subr.mxu1 %v9741_v24 }
 0x7bc   :  { %2614 = vmatpush1.msra.mxu0 %v9685_v0  ;;  %2695 = vmatpush1.msra.mxu1 %v9747_v53 }
 0x7bd   :  { %2615 = vmatprep.subr.mxu0 %v9691_v59  ;;  %2696 = vmatprep.subr.mxu1 %v9753_v49 }
 0x7be   :  { %2616 = vmatpush1.msra.mxu0 %v9697_v4  ;;  %2697 = vmatpush1.msra.mxu1 %v9759_v35 }
 0x7bf   :  { %2617 = vmatprep.subr.mxu0 %v9703_v10  ;;  %2698 = vmatprep.subr.mxu1 %v9765_v43 }
 0x7c0   :  { %2618 = vmatpush1.msra.mxu0 %v9709_v17  ;;  %2699 = vmatpush1.msra.mxu1 %v9771_v63 }
 0x7c1   :  { %2619 = vmatprep.subr.mxu0 %v9715_v25  ;;  %2700 = vmatprep.subr.mxu1 %v9777_v18 }
 0x7c2   :  { %2620 = vmatpush1.msra.mxu0 %v9721_v33  ;;  %2701 = vmatpush1.msra.mxu1 %v9783_v34 }
 0x7c3   :  { %2621 = vmatprep.subr.mxu0 %v9727_v41  ;;  %2702 = vmatprep.subr.mxu1 %v9789_v1 }
 0x7c4   :  { %2622 = vmatpush1.msra.mxu0 %v9733_v16  ;;  %2703 = vmatpush1.msra.mxu1 %v9795_v12 }
 0x7c5   :  { %2623 = vmatprep.subr.mxu0 %v9739_v9  ;;  %2704 = vmatprep.subr.mxu1 %v9801_v50 }
 0x7c6   :  { %2624 = vmatpush1.msra.mxu0 %v9745_v61  ;;  %2705 = vmatpush1.msra.mxu1 %v9807_v8  ;;  %v13312_v8 = vld [vmem:[#allocation73_spill] sm:$0xff] }
 0x7c7   :  { %2625 = vmatprep.subr.mxu0 %v9751_v7  ;;  %2706 = vmatprep.subr.mxu1 %v9813_v36 }
 0x7c8   :  { %2626 = vmatpush1.msra.mxu0 %v9757_v31  ;;  %2707 = vmatpush1.msra.mxu1 %v9819_v2 }
 0x7c9   :  { %2627 = vmatprep.subr.mxu0 %v9763_v39  ;;  %2708 = vmatprep.subr.mxu1 %v9825_v62  ;;  %v13310_v62 = vld [vmem:[#allocation60_spill] sm:$0xff] }
 0x7ca   :  { %2628 = vmatpush1.msra.mxu0 %v9769_v27  ;;  %2709 = vmatpush1.msra.mxu1 %v9831_v40  ;;  %v9851_v40 = vld [vmem:[#allocation9] sm:$0xff] }
 0x7cb   :  { %2629 = vmatprep.subr.mxu0 %v9775_v23  ;;  %2710 = vmatprep.subr.mxu1 %v9837_v60  ;;  %13307 = vst [vmem:[#allocation24_spill] sm:$0xff] %v9851_v40 }
 0x7cc   :  { %2630 = vmatpush1.msra.mxu0 %v9781_v28  ;;  %2711 = vmatpush1.msra.mxu1 %v9843_v22 }
 0x7cd   :  { %2631 = vmatprep.subr.mxu0 %v9787_v38 }
 0x7ce   :  { %2632 = vmatpush1.msra.mxu0 %v9793_v46 }
 0x7cf   :  { %2633 = vmatprep.subr.mxu0 %v9799_v54 }
 0x7d0   :  { %2634 = vmatpush1.msra.mxu0 %v9805_v30 }
 0x7d1   :  { %2635 = vmatprep.subr.mxu0 %v9811_v11  ;;  %v13311_v11 = vld [vmem:[#allocation74_spill] sm:$0xff] }
 0x7d2   :  { %2636 = vmatpush1.msra.mxu0 %v9817_v44 }
 0x7d3   :  { %2637 = vmatprep.subr.mxu0 %v9823_v58 }
 0x7d4   :  { %2638 = vmatpush1.msra.mxu0 %v9829_v48  ;;  %v9849_v48 = vld [vmem:[#allocation9 + $0x18] sm:$0xff] }
 0x7d5   :  { %2639 = vmatprep.subr.mxu0 %v9835_v3  ;;  %13306 = vst [vmem:[#allocation46_spill] sm:$0xff] %v9849_v48  ;;  %2712 = vmatprep.subr.mxu1 %v9849_v48  ;;  %v9855_v3 = vld [vmem:[#allocation9 + $0x10] sm:$0xff] }
 0x7d6   :  { %2640 = vmatpush1.msra.mxu0 %v9841_v19  ;;  %13308 = vst [vmem:[#allocation49_spill] sm:$0xff] %v9855_v3  ;;  %2713 = vmatpush1.msra.mxu1 %v9855_v3  ;;  %v13309_v19 = vld [vmem:[#allocation61_spill] sm:$0xff] }
 0x7d7   :  { %2641 = vmatprep.subr.mxu0 %v9847_v32  ;;  %2856 = vmatprep.subr.mxu1 %v9669_v14  ;;  %v773_v60 = vadd.f32 %v13309_v19, %v13173_v51 }
 0x7d8   :  { %2642 = vmatpush1.msra.mxu0 %v9851_v40 }
 0x7d9   :  { %2785 = vmatprep.subr.mxu0 %v9667_v15 }
 0x840   :  { %v2215_v22 = vpop.f32.mrf.mxu0  ;;  %v2286_v48 = vpop.f32.mrf.mxu1 }
 0x841   :  { %v2291_v58 = vadd.f32 %v2215_v22, %v13310_v62  ;;  %v2293_v15 = vadd.f32 %v2286_v48, %v13312_v8  ;;  %v13319_v48 = vld [vmem:[#allocation65_spill] sm:$0xff]  ;;  %v13322_v22 = vld [vmem:[#allocation68_spill] sm:$0xff] }
 0x842   :  { %v2217_v2 = vpop.f32.mrf.mxu0  ;;  %v2288_v40 = vpop.f32.mrf.mxu1 }
 0x843   :  { %v7364_v32 = vmul.f32 -1.442695, %v2291_v58  ;;  %v2292_v44 = vadd.f32 %v2217_v2, %v773_v60  ;;  %v2294_v3 = vadd.f32 %v2288_v40, %v13311_v11  ;;  %v13320_v40 = vld [vmem:[#allocation53_spill] sm:$0xff] }
 0x845   :  { %7635 = vpow2.f32 %v7364_v32  ;;  %v7365_v36 = vmul.f32 -1.442695, %v2292_v44  ;;  %v7366_v30 = vmul.f32 -1.442695, %v2294_v3  ;;  %v13321_v3 = vld [vmem:[#allocation52_spill] sm:$0xff]  ;;  %v13323_v32 = vld [vmem:[#allocation67_spill] sm:$0xff] }
 0x847   :  { %7637 = vpow2.f32 %v7365_v36 }
 0x848   :  { %7639 = vtanh.f32 %v2293_v15 }
 0x849   :  { %7641 = vpow2.f32 %v7366_v30  ;;  %v13318_v30 = vld [vmem:[#allocation66_spill] sm:$0xff] }
 0x852   :  { %v7636_v14 = vpop.eup %7635 }
 0x853   :  { %v2298_v50 = vadd.f32 1.0, %v7636_v14 }
 0x854   :  { %v7638_v54 = vpop.eup %7637 }
 0x855   :  { %7643 = vrcp.f32 %v2298_v50  ;;  %v2304_v51 = vadd.f32 1.0, %v7638_v54  ;;  %v7640_v58 = vpop.eup %7639  ;;  %v13316_v54 = vld [vmem:[#allocation51_spill] sm:$0xff]  ;;  %v13317_v50 = vld [vmem:[#allocation50_spill] sm:$0xff] }
 0x856   :  { %v7642_v2 = vpop.eup %7641 }
 0x857   :  { %7645 = vrcp.f32 %v2304_v51  ;;  %v2311_v36 = vadd.f32 1.0, %v7642_v2  ;;  %v13324_v51 = vld [vmem:[#allocation22_spill] sm:$0xff]  ;;  %v13326_v2 = vld [vmem:[#allocation55_spill] sm:$0xff] }
 0x859   :  { %7647 = vrcp.f32 %v2311_v36  ;;  %v13330_v36 = vld [vmem:[#allocation47_spill] sm:$0xff] }
 0x862   :  { %v7644_v62 = vpop.eup %7643 }
 0x863   :  { %v2315_v60 = vmul.f32 %v7644_v62, %v7640_v58  ;;  %v13325_v58 = vld [vmem:[#allocation33_spill] sm:$0xff]  ;;  %v13327_v62 = vld [vmem:[#allocation54_spill] sm:$0xff] }
 0x864   :  { %v7646_v44 = vpop.eup %7645 }
 0x865   :  { %v2314_v19 = vmul.f32 %v7646_v44, %v9630_v56  ;;  %v13315_v56 = vld [vmem:[#allocation44_spill] sm:$0xff]  ;;  %v13329_v44 = vld [vmem:[#allocation69_spill] sm:$0xff] }
 0x866   :  { %v7648_v14 = vpop.eup %7647 }
 0x867   :  { %v9867_v11 = vadd.f32 %v2315_v60, %v2314_v19  ;;  %v13328_v60 = vld [vmem:[#allocation70_spill] sm:$0xff]  ;;  %v13331_v19 = vld [vmem:[#allocation23_spill] sm:$0xff] }
 0x869   :  { %13313 = vst [vmem:[#allocation25_spill] sm:$0xff] %v9867_v11  ;;  %7649 = vtanh.f32 %v9867_v11  ;;  %v13334_v11 = vld [vmem:[#allocation49_spill] sm:$0xff] }
 0x876   :  { %v7650_v15 = vpop.eup %7649 }
 0x877   :  { %v9870_v8 = vmul.f32 %v7650_v15, %v7648_v14  ;;  %v13332_v14 = vld [vmem:[#allocation46_spill] sm:$0xff]  ;;  %v13333_v15 = vld [vmem:[#allocation24_spill] sm:$0xff] }
 0x879   :  { %13314 = vst [vmem:[#allocation48_spill] sm:$0xff] %v9870_v8  ;;  %2456 = vmatmul.mubr.f32.gmra.mxu0 %v9870_v8  ;;  %2569 = vmatmul.mubr.f32.gmra.mxu1 %v9870_v8  ;;  %v13335_v8 = vld [vmem:[#allocation41_spill] sm:$0xff] }
 0x87a   :  { %2675 = vmatprep.mubr.f32.mxu0 %v13276_v5  ;;  %2746 = vmatprep.mubr.f32.mxu1 %v13276_v5 }
 0x87d   :  { %2676 = vmatmul.mubr.f32.vlgmr.msra.gmra.mxu0 %v13276_v5  ;;  %2747 = vmatmul.mubr.f32.vlgmr.msra.gmra.mxu1 %v13276_v5 }
 0x87e   :  { %2786 = vmatpush1.msra.mxu0 %v9673_v52  ;;  %2857 = vmatpush1.msra.mxu1 %v9675_v20 }
 0x87f   :  { %2787 = vmatprep.subr.mxu0 %v9679_v47  ;;  %2858 = vmatprep.subr.mxu1 %v9681_v57 }
 0x880   :  { %2788 = vmatpush1.msra.mxu0 %v9685_v0  ;;  %2859 = vmatpush1.msra.mxu1 %v9687_v26 }
 0x881   :  { %2789 = vmatprep.subr.mxu0 %v9691_v59  ;;  %2860 = vmatprep.subr.mxu1 %v9693_v42 }
 0x882   :  { %2790 = vmatpush1.msra.mxu0 %v9697_v4  ;;  %2861 = vmatpush1.msra.mxu1 %v9699_v6 }
 0x883   :  { %2791 = vmatprep.subr.mxu0 %v9703_v10  ;;  %2862 = vmatprep.subr.mxu1 %v9705_v13 }
 0x884   :  { %2792 = vmatpush1.msra.mxu0 %v9709_v17  ;;  %2863 = vmatpush1.msra.mxu1 %v9711_v21 }
 0x885   :  { %2793 = vmatprep.subr.mxu0 %v9715_v25  ;;  %2864 = vmatprep.subr.mxu1 %v9717_v29 }
 0x886   :  { %2794 = vmatpush1.msra.mxu0 %v9721_v33  ;;  %2865 = vmatpush1.msra.mxu1 %v9723_v37 }
 0x887   :  { %2795 = vmatprep.subr.mxu0 %v9727_v41  ;;  %2866 = vmatprep.subr.mxu1 %v9729_v45 }
 0x888   :  { %2796 = vmatpush1.msra.mxu0 %v9733_v16  ;;  %2867 = vmatpush1.msra.mxu1 %v9735_v55 }
 0x889   :  { %2797 = vmatprep.subr.mxu0 %v9739_v9  ;;  %2868 = vmatprep.subr.mxu1 %v9741_v24 }
 0x88a   :  { %2798 = vmatpush1.msra.mxu0 %v9745_v61  ;;  %2869 = vmatpush1.msra.mxu1 %v9747_v53 }
 0x88b   :  { %2799 = vmatprep.subr.mxu0 %v9751_v7  ;;  %2870 = vmatprep.subr.mxu1 %v9753_v49 }
 0x88c   :  { %2800 = vmatpush1.msra.mxu0 %v9757_v31  ;;  %2871 = vmatpush1.msra.mxu1 %v9759_v35 }
 0x88d   :  { %2801 = vmatprep.subr.mxu0 %v9763_v39  ;;  %2872 = vmatprep.subr.mxu1 %v9765_v43 }
 0x88e   :  { %2802 = vmatpush1.msra.mxu0 %v9769_v27  ;;  %2873 = vmatpush1.msra.mxu1 %v9771_v63 }
 0x88f   :  { %2803 = vmatprep.subr.mxu0 %v9775_v23  ;;  %2874 = vmatprep.subr.mxu1 %v9777_v18 }
 0x890   :  { %2804 = vmatpush1.msra.mxu0 %v9781_v28  ;;  %2875 = vmatpush1.msra.mxu1 %v9783_v34 }
 0x891   :  { %2805 = vmatprep.subr.mxu0 %v9787_v38  ;;  %2876 = vmatprep.subr.mxu1 %v9789_v1 }
 0x892   :  { %2806 = vmatpush1.msra.mxu0 %v9793_v46  ;;  %2877 = vmatpush1.msra.mxu1 %v9795_v12 }
 0x893   :  { %2807 = vmatprep.subr.mxu0 %v13315_v56  ;;  %2878 = vmatprep.subr.mxu1 %v13316_v54 }
 0x894   :  { %2808 = vmatpush1.msra.mxu0 %v13317_v50  ;;  %2879 = vmatpush1.msra.mxu1 %v13318_v30 }
 0x895   :  { %2809 = vmatprep.subr.mxu0 %v13319_v48  ;;  %2880 = vmatprep.subr.mxu1 %v13320_v40 }
 0x896   :  { %2810 = vmatpush1.msra.mxu0 %v13321_v3  ;;  %2881 = vmatpush1.msra.mxu1 %v13322_v22 }
 0x897   :  { %2811 = vmatprep.subr.mxu0 %v13323_v32  ;;  %2882 = vmatprep.subr.mxu1 %v13324_v51 }
 0x898   :  { %2812 = vmatpush1.msra.mxu0 %v13325_v58  ;;  %2883 = vmatpush1.msra.mxu1 %v13326_v2 }
 0x899   :  { %2813 = vmatprep.subr.mxu0 %v13327_v62  ;;  %2884 = vmatprep.subr.mxu1 %v13328_v60  ;;  %v13336_v62 = vld [vmem:[#allocation42_spill] sm:$0xff]  ;;  %v2415_v60 = vpop.f32.mrf.mxu0 }
 0x89a   :  { %2814 = vmatpush1.msra.mxu0 %v13329_v44  ;;  %2885 = vmatpush1.msra.mxu1 %v13330_v36  ;;  %v2528_v44 = vpop.f32.mrf.mxu1 }
 0x89b   :  { %2815 = vmatprep.subr.mxu0 %v13331_v19  ;;  %2886 = vmatprep.subr.mxu1 %v13332_v14  ;;  %v2417_v2 = vpop.f32.mrf.mxu0 }
 0x89c   :  { %2816 = vmatpush1.msra.mxu0 %v13333_v15  ;;  %2849 = vmatprep.mubr.f32.mxu0 %v13276_v5  ;;  %v2530_v36 = vpop.f32.mrf.mxu1 }
 0x89d   :  { %2887 = vmatpush1.msra.mxu1 %v13334_v11  ;;  %2920 = vmatprep.mubr.f32.mxu1 %v13276_v5  ;;  %v9944_v58 = vpop.f32.mrf.mxu0 }
 0x89e   :  { %2959 = vmatprep.subr.mxu0 %v13335_v8  ;;  %3030 = vmatprep.subr.mxu1 %v13336_v62  ;;  %13337 = vst [vmem:[#allocation26_spill] sm:$0xff] %v9944_v58  ;;  %v9946_v19 = vpop.f32.mrf.mxu1 }
 0x89f   :  { %13338 = vst [vmem:[#allocation64_spill] sm:$0xff] %v9946_v19  ;;  %v9948_v14 = vpop.f32.mrf.mxu0 }
 0x8a0   :  { %13339 = vst [vmem:[#allocation27_spill] sm:$0xff] %v9948_v14  ;;  %v9950_v15 = vpop.f32.mrf.mxu1 }
 0x8a1   :  { %13340 = vst [vmem:[#allocation35_spill] sm:$0xff] %v9950_v15  ;;  %v9952_v51 = vpop.f32.mrf.mxu0 }
 0x8a2   :  { %13341 = vst [vmem:[#allocation28_spill] sm:$0xff] %v9952_v51  ;;  %v9954_v11 = vpop.f32.mrf.mxu1 }
 0x8a3   :  { %13342 = vst [vmem:[#allocation36_spill] sm:$0xff] %v9954_v11  ;;  %v9956_v5 = vpop.f32.mrf.mxu0 }
 0x8a4   :  { %13343 = vst [vmem:[#allocation29_spill] sm:$0xff] %v9956_v5  ;;  %v9958_v8 = vpop.f32.mrf.mxu1 }
 0x8a5   :  { %13344 = vst [vmem:[#allocation37_spill] sm:$0xff] %v9958_v8  ;;  %v9960_v62 = vpop.f32.mrf.mxu0 }
 0x8a6   :  { %13345 = vst [vmem:[#allocation30_spill] sm:$0xff] %v9960_v62  ;;  %v9962_v32 = vpop.f32.mrf.mxu1 }
 0x8a7   :  { %13346 = vst [vmem:[#allocation38_spill] sm:$0xff] %v9962_v32  ;;  %v9964_v22 = vpop.f32.mrf.mxu0 }
 0x8a8   :  { %13347 = vst [vmem:[#allocation32_spill] sm:$0xff] %v9964_v22  ;;  %v9966_v58 = vpop.f32.mrf.mxu1 }
 0x8a9   :  { %13348 = vst [vmem:[#allocation39_spill] sm:$0xff] %v9966_v58  ;;  %v9968_v19 = vpop.f32.mrf.mxu0 }
 0x8aa   :  { %13349 = vst [vmem:[#allocation58_spill] sm:$0xff] %v9968_v19  ;;  %v9970_v14 = vpop.f32.mrf.mxu1 }
 0x8ab   :  { %13350 = vst [vmem:[#allocation57_spill] sm:$0xff] %v9970_v14  ;;  %v9972_v15 = vpop.f32.mrf.mxu0  ;;  %v419_v14 = vld [vmem:[%s12639_s6] sm:$0xf] }
 0x8ac   :  { %13351 = vst [vmem:[#allocation72_spill] sm:$0xff] %v9972_v15  ;;  %v9974_v51 = vpop.f32.mrf.mxu1  ;;  %v13360_v15 = vld [vmem:[#allocation45_spill] sm:$0xff] }
 0x8ad   :  { %13352 = vst [vmem:[#allocation71_spill] sm:$0xff] %v9974_v51  ;;  %v9976_v11 = vpop.f32.mrf.mxu0  ;;  %v9994_v51 = vrot.slane %v419_v14, %v13360_v15 }
 0x8ae   :  { %13353 = vst [vmem:[#allocation75_spill] sm:$0xff] %v9976_v11  ;;  %v9978_v5 = vpop.f32.mrf.mxu1 }
 0x8af   :  { %13354 = vst [vmem:[#allocation34_spill] sm:$0xff] %v9978_v5  ;;  %v9980_v8 = vpop.f32.mrf.mxu0  ;;  %13361 = vst [vmem:[#allocation74_spill] sm:$0xff] %v9994_v51 }
 0x8b0   :  { %13355 = vst [vmem:[#allocation31_spill] sm:$0xff] %v9980_v8  ;;  %v9982_v62 = vpop.f32.mrf.mxu1  ;;  %v13364_v8 = vld [vmem:[#allocation56_spill] sm:$0xff] }
 0x8b1   :  { %13356 = vst [vmem:[#allocation59_spill] sm:$0xff] %v9982_v62  ;;  %v9984_v32 = vpop.f32.mrf.mxu0  ;;  %v10001_v58 = vrot.slane %v419_v14, %v13364_v8  ;;  %v13369_v8 = vld [vmem:[#allocation63_spill] sm:$0xff] }
 0x8b2   :  { %13357 = vst [vmem:[#allocation40_spill] sm:$0xff] %v9984_v32  ;;  %v9986_v22 = vpop.f32.mrf.mxu1  ;;  %v10012_v54 = vrot.slane %v419_v14, %v13369_v8 }
 0x8b3   :  { %13358 = vst [vmem:[#allocation61_spill] sm:$0xff] %v9986_v22  ;;  %v9991_v19 = vpop.f32.mrf.mxu0  ;;  %13365 = vst [vmem:[#allocation77_spill] sm:$0xff] %v10001_v58  ;;  %v2416_v22 = vadd.f32 %v2415_v60, %v9994_v51  ;;  %v2418_v40 = vadd.f32 %v2417_v2, %v10001_v58  ;;  %v13371_v60 = vld [vmem:[#allocation62_spill] sm:$0xff] }
 0x8b4   :  { %13359 = vst [vmem:[#allocation60_spill] sm:$0xff] %v9991_v19  ;;  %v9996_v11 = vpop.f32.mrf.mxu1  ;;  %13370 = vst [vmem:[#allocation81_spill] sm:$0xff] %v10012_v54  ;;  %v10016_v51 = vrot.slane %v419_v14, %v13371_v60 }
 0x8b5   :  { %13362 = vst [vmem:[#allocation73_spill] sm:$0xff] %v9996_v11 }
 0x8b6   :  { %13372 = vst [vmem:[#allocation82_spill] sm:$0xff] %v10016_v51 }
 0x939   :  { %v9998_v5 = vpop.f32.mrf.mxu0  ;;  %v10003_v62 = vpop.f32.mrf.mxu1 }
 0x93a   :  { %13363 = vst [vmem:[#allocation76_spill] sm:$0xff] %v9998_v5  ;;  %13366 = vst [vmem:[#allocation78_spill] sm:$0xff] %v10003_v62 }
 0x93b   :  { %v10005_v32 = vpop.f32.mrf.mxu0  ;;  %v10009_v19 = vpop.f32.mrf.mxu1 }
 0x93c   :  { %13367 = vst [vmem:[#allocation79_spill] sm:$0xff] %v10005_v32  ;;  %13368 = vst [vmem:[#allocation80_spill] sm:$0xff] %v10009_v19  ;;  %v2531_v32 = vadd.f32 %v2530_v36, %v10012_v54  ;;  %v2529_v19 = vadd.f32 %v2528_v44, %v10016_v51 }
 0x93d   :  { %v2677_v3 = vpop.f32.mrf.mxu0  ;;  %v2748_v5 = vpop.f32.mrf.mxu1 }
 0x93e   :  { %v2753_v15 = vadd.f32 %v2677_v3, %v2416_v22 }
 0x93f   :  { %v2679_v48 = vpop.f32.mrf.mxu0  ;;  %v2750_v62 = vpop.f32.mrf.mxu1 }
 0x940   :  { %v7367_v30 = vmul.f32 -1.442695, %v2753_v15  ;;  %v2754_v11 = vadd.f32 %v2679_v48, %v2418_v40  ;;  %v2756_v2 = vadd.f32 %v2750_v62, %v2531_v32  ;;  %v2755_v15 = vadd.f32 %v2748_v5, %v2529_v19  ;;  %v13375_v19 = vld [vmem:[#allocation66_spill] sm:$0xff] }
 0x942   :  { %7651 = vpow2.f32 %v7367_v30  ;;  %v7368_v50 = vmul.f32 -1.442695, %v2754_v11  ;;  %v7369_v3 = vmul.f32 -1.442695, %v2756_v2  ;;  %v13377_v2 = vld [vmem:[#allocation53_spill] sm:$0xff] }
 0x944   :  { %7653 = vpow2.f32 %v7368_v50 }
 0x945   :  { %7655 = vpow2.f32 %v7369_v3  ;;  %v13378_v3 = vld [vmem:[#allocation52_spill] sm:$0xff] }
 0x94f   :  { %v7652_v22 = vpop.eup %7651 }
 0x950   :  { %v2760_v48 = vadd.f32 1.0, %v7652_v22  ;;  %v13379_v22 = vld [vmem:[#allocation68_spill] sm:$0xff] }
 0x951   :  { %v7654_v30 = vpop.eup %7653 }
 0x952   :  { %7657 = vrcp.f32 %v2760_v48  ;;  %v2766_v11 = vadd.f32 1.0, %v7654_v30  ;;  %v7656_v50 = vpop.eup %7655  ;;  %v13381_v48 = vld [vmem:[#allocation22_spill] sm:$0xff]  ;;  %v13382_v30 = vld [vmem:[#allocation33_spill] sm:$0xff] }
 0x953   :  { %7659 = vtanh.f32 %v2755_v15  ;;  %v2773_v54 = vadd.f32 1.0, %v7656_v50  ;;  %v13380_v15 = vld [vmem:[#allocation67_spill] sm:$0xff]  ;;  %v13384_v50 = vld [vmem:[#allocation54_spill] sm:$0xff] }
 0x954   :  { %7661 = vrcp.f32 %v2766_v11  ;;  %v13383_v11 = vld [vmem:[#allocation55_spill] sm:$0xff] }
 0x955   :  { %7663 = vrcp.f32 %v2773_v54  ;;  %v13374_v54 = vld [vmem:[#allocation50_spill] sm:$0xff] }
 0x95f   :  { %v7658_v40 = vpop.eup %7657 }
 0x960   :  { %v7660_v8 = vpop.eup %7659 }
 0x961   :  { %v7662_v36 = vpop.eup %7661  ;;  %v2777_v60 = vmul.f32 %v7660_v8, %v7658_v40  ;;  %v13373_v8 = vld [vmem:[#allocation51_spill] sm:$0xff]  ;;  %v13385_v40 = vld [vmem:[#allocation70_spill] sm:$0xff] }
 0x962   :  { %v2776_v14 = vmul.f32 0.0, %v7662_v36  ;;  %v7664_v5 = vpop.eup %7663  ;;  %v13386_v36 = vld [vmem:[#allocation69_spill] sm:$0xff] }
 0x964   :  { %v10019_v32 = vadd.f32 %v2777_v60, %v2776_v14  ;;  %v13376_v60 = vld [vmem:[#allocation65_spill] sm:$0xff]  ;;  %v13387_v14 = vld [vmem:[#allocation47_spill] sm:$0xff] }
 0x966   :  { %7665 = vtanh.f32 %v10019_v32 }
 0x973   :  { %v7666_v62 = vpop.eup %7665 }
 0x974   :  { %v2780_v44 = vmul.f32 %v7666_v62, %v7664_v5  ;;  %v13388_v5 = vld [vmem:[#allocation23_spill] sm:$0xff]  ;;  %v13389_v62 = vld [vmem:[#allocation46_spill] sm:$0xff] }
 0x976   :  { %2850 = vmatmul.mubr.f32.vlgmr.msra.gmra.mxu0 %v2780_v44  ;;  %2921 = vmatmul.mubr.f32.vlgmr.msra.gmra.mxu1 %v2780_v44  ;;  %v13390_v44 = vld [vmem:[#allocation24_spill] sm:$0xff] }
 0x977   :  { %2960 = vmatpush1.msra.mxu0 %v9673_v52  ;;  %3031 = vmatpush1.msra.mxu1 %v9675_v20 }
 0x978   :  { %2961 = vmatprep.subr.mxu0 %v9679_v47  ;;  %3032 = vmatprep.subr.mxu1 %v9681_v57 }
 0x979   :  { %2962 = vmatpush1.msra.mxu0 %v9685_v0  ;;  %3033 = vmatpush1.msra.mxu1 %v9687_v26 }
 0x97a   :  { %2963 = vmatprep.subr.mxu0 %v9691_v59  ;;  %3034 = vmatprep.subr.mxu1 %v9693_v42 }
 0x97b   :  { %2964 = vmatpush1.msra.mxu0 %v9697_v4  ;;  %3035 = vmatpush1.msra.mxu1 %v9699_v6 }
 0x97c   :  { %2965 = vmatprep.subr.mxu0 %v9703_v10  ;;  %3036 = vmatprep.subr.mxu1 %v9705_v13 }
 0x97d   :  { %2966 = vmatpush1.msra.mxu0 %v9709_v17  ;;  %3037 = vmatpush1.msra.mxu1 %v9711_v21 }
 0x97e   :  { %2967 = vmatprep.subr.mxu0 %v9715_v25  ;;  %3038 = vmatprep.subr.mxu1 %v9717_v29 }
 0x97f   :  { %2968 = vmatpush1.msra.mxu0 %v9721_v33  ;;  %3039 = vmatpush1.msra.mxu1 %v9723_v37 }
 0x980   :  { %2969 = vmatprep.subr.mxu0 %v9727_v41  ;;  %3040 = vmatprep.subr.mxu1 %v9729_v45 }
 0x981   :  { %2970 = vmatpush1.msra.mxu0 %v9733_v16  ;;  %3041 = vmatpush1.msra.mxu1 %v9735_v55 }
 0x982   :  { %2971 = vmatprep.subr.mxu0 %v9739_v9  ;;  %3042 = vmatprep.subr.mxu1 %v9741_v24 }
 0x983   :  { %2972 = vmatpush1.msra.mxu0 %v9745_v61  ;;  %3043 = vmatpush1.msra.mxu1 %v9747_v53 }
 0x984   :  { %2973 = vmatprep.subr.mxu0 %v9751_v7  ;;  %3044 = vmatprep.subr.mxu1 %v9753_v49 }
 0x985   :  { %2974 = vmatpush1.msra.mxu0 %v9757_v31  ;;  %3045 = vmatpush1.msra.mxu1 %v9759_v35 }
 0x986   :  { %2975 = vmatprep.subr.mxu0 %v9763_v39  ;;  %3046 = vmatprep.subr.mxu1 %v9765_v43 }
 0x987   :  { %2976 = vmatpush1.msra.mxu0 %v9769_v27  ;;  %3047 = vmatpush1.msra.mxu1 %v9771_v63 }
 0x988   :  { %2977 = vmatprep.subr.mxu0 %v9775_v23  ;;  %3048 = vmatprep.subr.mxu1 %v9777_v18 }
 0x989   :  { %2978 = vmatpush1.msra.mxu0 %v9781_v28  ;;  %3049 = vmatpush1.msra.mxu1 %v9783_v34 }
 0x98a   :  { %2979 = vmatprep.subr.mxu0 %v9787_v38  ;;  %3050 = vmatprep.subr.mxu1 %v9789_v1 }
 0x98b   :  { %2980 = vmatpush1.msra.mxu0 %v9793_v46  ;;  %3051 = vmatpush1.msra.mxu1 %v9795_v12 }
 0x98c   :  { %2981 = vmatprep.subr.mxu0 %v13315_v56  ;;  %3052 = vmatprep.subr.mxu1 %v13373_v8  ;;  %v13400_v8 = vld [vmem:[#allocation64_spill] sm:$0xff] }
 0x98d   :  { %2982 = vmatpush1.msra.mxu0 %v13374_v54  ;;  %3053 = vmatpush1.msra.mxu1 %v13375_v19  ;;  %v13398_v19 = vld [vmem:[#allocation81_spill] sm:$0xff] }
 0x98e   :  { %2983 = vmatprep.subr.mxu0 %v13376_v60  ;;  %3054 = vmatprep.subr.mxu1 %v13377_v2 }
 0x98f   :  { %2984 = vmatpush1.msra.mxu0 %v13378_v3  ;;  %3055 = vmatpush1.msra.mxu1 %v13379_v22 }
 0x990   :  { %2985 = vmatprep.subr.mxu0 %v13380_v15  ;;  %3056 = vmatprep.subr.mxu1 %v13381_v48  ;;  %v13391_v15 = vmov 0.0   ;;  %v13392_v48 = vld [vmem:[#allocation49_spill] sm:$0xff] }
 0x991   :  { %2986 = vmatpush1.msra.mxu0 %v13382_v30  ;;  %3057 = vmatpush1.msra.mxu1 %v13383_v11  ;;  %v13393_v11 = vld [vmem:[#allocation41_spill] sm:$0xff] }
 0x992   :  { %2987 = vmatprep.subr.mxu0 %v13384_v50  ;;  %3058 = vmatprep.subr.mxu1 %v13385_v40  ;;  %v13394_v50 = vld [vmem:[#allocation42_spill] sm:$0xff] }
 0x993   :  { %2988 = vmatpush1.msra.mxu0 %v13386_v36  ;;  %3059 = vmatpush1.msra.mxu1 %v13387_v14  ;;  %v13395_v40 = vld [vmem:[#allocation74_spill] sm:$0xff] }
 0x994   :  { %2989 = vmatprep.subr.mxu0 %v13388_v5  ;;  %3060 = vmatprep.subr.mxu1 %v13389_v62  ;;  %v13396_v36 = vld [vmem:[#allocation26_spill] sm:$0xff]  ;;  %v13397_v5 = vld [vmem:[#allocation27_spill] sm:$0xff] }
 0x995   :  { %2990 = vmatpush1.msra.mxu0 %v13390_v44  ;;  %3023 = vmatprep.mubr.f32.mxu0 %v13391_v15  ;;  %v2422_v30 = vadd.f32 %v13396_v36, %v13395_v40  ;;  %v2424_v22 = vadd.f32 %v13397_v5, %v10001_v58  ;;  %v2535_v36 = vadd.f32 %v13400_v8, %v10016_v51 }
 0x996   :  { %3061 = vmatpush1.msra.mxu1 %v13392_v48  ;;  %3094 = vmatprep.mubr.f32.mxu1 %v13391_v15 }
 0x997   :  { %3133 = vmatprep.subr.mxu0 %v13393_v11  ;;  %3204 = vmatprep.subr.mxu1 %v13394_v50  ;;  %v13399_v11 = vld [vmem:[#allocation35_spill] sm:$0xff] }
 0x998   :  { %v2537_v54 = vadd.f32 %v13399_v11, %v13398_v19 }
 0xa36   :  { %v2851_v14 = vpop.f32.mrf.mxu0  ;;  %v2922_v60 = vpop.f32.mrf.mxu1 }
 0xa37   :  { %v2927_v62 = vadd.f32 %v2851_v14, %v2422_v30  ;;  %v2929_v40 = vadd.f32 %v2922_v60, %v2535_v36  ;;  %v13418_v36 = vld [vmem:[#allocation23_spill] sm:$0xff] }
 0xa38   :  { %v2853_v3 = vpop.f32.mrf.mxu0  ;;  %v2924_v15 = vpop.f32.mrf.mxu1 }
 0xa39   :  { %v7370_v44 = vmul.f32 -1.442695, %v2927_v62  ;;  %v2928_v2 = vadd.f32 %v2853_v3, %v2424_v22  ;;  %v2930_v50 = vadd.f32 %v2924_v15, %v2537_v54 }
 0xa3b   :  { %7667 = vpow2.f32 %v7370_v44  ;;  %v7371_v48 = vmul.f32 -1.442695, %v2928_v2  ;;  %v7372_v56 = vmul.f32 -1.442695, %v2930_v50  ;;  %v13415_v50 = vld [vmem:[#allocation70_spill] sm:$0xff]  ;;  %v13417_v44 = vld [vmem:[#allocation47_spill] sm:$0xff] }
 0xa3d   :  { %7669 = vpow2.f32 %v7371_v48 }
 0xa3e   :  { %7671 = vtanh.f32 %v2929_v40  ;;  %v13416_v40 = vld [vmem:[#allocation69_spill] sm:$0xff] }
 0xa3f   :  { %7673 = vpow2.f32 %v7372_v56  ;;  %v13413_v56 = vld [vmem:[#allocation55_spill] sm:$0xff] }
 0xa48   :  { %v7668_v12 = vpop.eup %7667 }
 0xa49   :  { %v2934_v5 = vadd.f32 1.0, %v7668_v12 }
 0xa4a   :  { %v7670_v30 = vpop.eup %7669 }
 0xa4b   :  { %7675 = vrcp.f32 %v2934_v5  ;;  %v2940_v3 = vadd.f32 1.0, %v7670_v30  ;;  %v7672_v2 = vpop.eup %7671  ;;  %v13419_v5 = vld [vmem:[#allocation46_spill] sm:$0xff]  ;;  %v13420_v30 = vld [vmem:[#allocation24_spill] sm:$0xff] }
 0xa4c   :  { %v7674_v22 = vpop.eup %7673 }
 0xa4d   :  { %7677 = vrcp.f32 %v2940_v3  ;;  %v2947_v11 = vadd.f32 1.0, %v7674_v22  ;;  %v13421_v3 = vmov 0.0   ;;  %v13423_v22 = vld [vmem:[#allocation41_spill] sm:$0xff] }
 0xa4f   :  { %7679 = vrcp.f32 %v2947_v11 }
 0xa58   :  { %v7676_v48 = vpop.eup %7675 }
 0xa59   :  { %v2951_v14 = vmul.f32 %v7676_v48, %v7672_v2  ;;  %v13422_v2 = vld [vmem:[#allocation49_spill] sm:$0xff]  ;;  %v13424_v48 = vld [vmem:[#allocation42_spill] sm:$0xff] }
 0xa5a   :  { %v7678_v62 = vpop.eup %7677 }
 0xa5b   :  { %v2950_v54 = vmul.f32 %v7678_v62, %v10019_v32  ;;  %v13414_v32 = vld [vmem:[#allocation54_spill] sm:$0xff]  ;;  %v13426_v62 = vld [vmem:[#allocation28_spill] sm:$0xff] }
 0xa5c   :  { %v7680_v12 = vpop.eup %7679 }
 0xa5d   :  { %v10097_v15 = vadd.f32 %v2951_v14, %v2950_v54  ;;  %v13425_v14 = vld [vmem:[#allocation74_spill] sm:$0xff] }
 0xa5e   :  { %v2428_v11 = vadd.f32 %v13426_v62, %v13425_v14 }
 0xa5f   :  { %7681 = vtanh.f32 %v10097_v15 }
 0xa6c   :  { %v7682_v8 = vpop.eup %7681 }
 0xa6d   :  { %v2954_v60 = vmul.f32 %v7682_v8, %v7680_v12  ;;  %v13427_v12 = vld [vmem:[#allocation29_spill] sm:$0xff] }
 0xa6e   :  { %v2430_v8 = vadd.f32 %v13427_v12, %v10001_v58 }
 0xa6f   :  { %3024 = vmatmul.mubr.f32.vlgmr.msra.gmra.mxu0 %v2954_v60  ;;  %3095 = vmatmul.mubr.f32.vlgmr.msra.gmra.mxu1 %v2954_v60 }
 0xa70   :  { %3134 = vmatpush1.msra.mxu0 %v9673_v52  ;;  %3205 = vmatpush1.msra.mxu1 %v9675_v20  ;;  %v13401_v52 = vld [vmem:[#allocation43_spill] sm:$0xff]  ;;  %v13402_v20 = vld [vmem:[#allocation44_spill] sm:$0xff] }
 0xa71   :  { %3135 = vmatprep.subr.mxu0 %v9679_v47  ;;  %3206 = vmatprep.subr.mxu1 %v9681_v57  ;;  %v13403_v47 = vld [vmem:[#allocation51_spill] sm:$0xff]  ;;  %v13404_v57 = vld [vmem:[#allocation50_spill] sm:$0xff] }
 0xa72   :  { %3136 = vmatpush1.msra.mxu0 %v9685_v0  ;;  %3207 = vmatpush1.msra.mxu1 %v9687_v26  ;;  %v13405_v0 = vld [vmem:[#allocation66_spill] sm:$0xff]  ;;  %v13406_v26 = vld [vmem:[#allocation65_spill] sm:$0xff] }
 0xa73   :  { %3137 = vmatprep.subr.mxu0 %v9691_v59  ;;  %3208 = vmatprep.subr.mxu1 %v9693_v42  ;;  %v13407_v59 = vld [vmem:[#allocation53_spill] sm:$0xff]  ;;  %v13408_v42 = vld [vmem:[#allocation52_spill] sm:$0xff] }
 0xa74   :  { %3138 = vmatpush1.msra.mxu0 %v9697_v4  ;;  %3209 = vmatpush1.msra.mxu1 %v9699_v6  ;;  %v13409_v4 = vld [vmem:[#allocation68_spill] sm:$0xff]  ;;  %v13410_v6 = vld [vmem:[#allocation67_spill] sm:$0xff] }
 0xa75   :  { %3139 = vmatprep.subr.mxu0 %v9703_v10  ;;  %3210 = vmatprep.subr.mxu1 %v9705_v13  ;;  %v13411_v10 = vld [vmem:[#allocation22_spill] sm:$0xff]  ;;  %v13412_v13 = vld [vmem:[#allocation33_spill] sm:$0xff] }
 0xa76   :  { %3140 = vmatpush1.msra.mxu0 %v9709_v17  ;;  %3211 = vmatpush1.msra.mxu1 %v9711_v21 }
 0xa77   :  { %3141 = vmatprep.subr.mxu0 %v9715_v25  ;;  %3212 = vmatprep.subr.mxu1 %v9717_v29 }
 0xa78   :  { %3142 = vmatpush1.msra.mxu0 %v9721_v33  ;;  %3213 = vmatpush1.msra.mxu1 %v9723_v37 }
 0xa79   :  { %3143 = vmatprep.subr.mxu0 %v9727_v41  ;;  %3214 = vmatprep.subr.mxu1 %v9729_v45 }
 0xa7a   :  { %3144 = vmatpush1.msra.mxu0 %v9733_v16  ;;  %3215 = vmatpush1.msra.mxu1 %v9735_v55 }
 0xa7b   :  { %3145 = vmatprep.subr.mxu0 %v9739_v9  ;;  %3216 = vmatprep.subr.mxu1 %v9741_v24 }
 0xa7c   :  { %3146 = vmatpush1.msra.mxu0 %v9745_v61  ;;  %3217 = vmatpush1.msra.mxu1 %v9747_v53 }
 0xa7d   :  { %3147 = vmatprep.subr.mxu0 %v9751_v7  ;;  %3218 = vmatprep.subr.mxu1 %v9753_v49 }
 0xa7e   :  { %3148 = vmatpush1.msra.mxu0 %v9757_v31  ;;  %3219 = vmatpush1.msra.mxu1 %v9759_v35 }
 0xa7f   :  { %3149 = vmatprep.subr.mxu0 %v9763_v39  ;;  %3220 = vmatprep.subr.mxu1 %v9765_v43 }
 0xa80   :  { %3150 = vmatpush1.msra.mxu0 %v9769_v27  ;;  %3221 = vmatpush1.msra.mxu1 %v9771_v63 }
 0xa81   :  { %3151 = vmatprep.subr.mxu0 %v9775_v23  ;;  %3222 = vmatprep.subr.mxu1 %v9777_v18 }
 0xa82   :  { %3152 = vmatpush1.msra.mxu0 %v9781_v28  ;;  %3223 = vmatpush1.msra.mxu1 %v9783_v34 }
 0xa83   :  { %3153 = vmatprep.subr.mxu0 %v9787_v38  ;;  %3224 = vmatprep.subr.mxu1 %v9789_v1 }
 0xa84   :  { %3154 = vmatpush1.msra.mxu0 %v9793_v46  ;;  %3225 = vmatpush1.msra.mxu1 %v13401_v52 }
 0xa85   :  { %3155 = vmatprep.subr.mxu0 %v13402_v20  ;;  %3226 = vmatprep.subr.mxu1 %v13403_v47 }
 0xa86   :  { %3156 = vmatpush1.msra.mxu0 %v13404_v57  ;;  %3227 = vmatpush1.msra.mxu1 %v13405_v0 }
 0xa87   :  { %3157 = vmatprep.subr.mxu0 %v13406_v26  ;;  %3228 = vmatprep.subr.mxu1 %v13407_v59 }
 0xa88   :  { %3158 = vmatpush1.msra.mxu0 %v13408_v42  ;;  %3229 = vmatpush1.msra.mxu1 %v13409_v4 }
 0xa89   :  { %3159 = vmatprep.subr.mxu0 %v13410_v6  ;;  %3230 = vmatprep.subr.mxu1 %v13411_v10 }
 0xa8a   :  { %3160 = vmatpush1.msra.mxu0 %v13412_v13  ;;  %3231 = vmatpush1.msra.mxu1 %v13413_v56 }
 0xa8b   :  { %3161 = vmatprep.subr.mxu0 %v13414_v32  ;;  %3232 = vmatprep.subr.mxu1 %v13415_v50  ;;  %v13429_v50 = vld [vmem:[#allocation36_spill] sm:$0xff] }
 0xa8c   :  { %3162 = vmatpush1.msra.mxu0 %v13416_v40  ;;  %3233 = vmatpush1.msra.mxu1 %v13417_v44  ;;  %v2541_v62 = vadd.f32 %v13429_v50, %v10016_v51 }
 0xa8d   :  { %3163 = vmatprep.subr.mxu0 %v13418_v36  ;;  %3234 = vmatprep.subr.mxu1 %v13419_v5 }
 0xa8e   :  { %3164 = vmatpush1.msra.mxu0 %v13420_v30  ;;  %3197 = vmatprep.mubr.f32.mxu0 %v13421_v3 }
 0xa8f   :  { %3235 = vmatpush1.msra.mxu1 %v13422_v2  ;;  %3268 = vmatprep.mubr.f32.mxu1 %v13421_v3 }
 0xa90   :  { %3307 = vmatprep.subr.mxu0 %v13423_v22  ;;  %3378 = vmatprep.subr.mxu1 %v13424_v48  ;;  %v13428_v22 = vld [vmem:[#allocation37_spill] sm:$0xff] }
 0xa91   :  { %v2543_v40 = vadd.f32 %v13428_v22, %v13398_v19  ;;  %v10184_v22 = vld [vmem:[#allocation9 + $0x1c8] sm:$0xff] }
 0xb2f   :  { %v3025_v54 = vpop.f32.mrf.mxu0  ;;  %v3096_v44 = vpop.f32.mrf.mxu1 }
 0xb30   :  { %v3101_v60 = vadd.f32 %v3025_v54, %v2428_v11  ;;  %v3103_v14 = vadd.f32 %v3096_v44, %v2541_v62  ;;  %v10193_v62 = vld [vmem:[#allocation9 + $0x1d0] sm:$0xff] }
 0xb31   :  { %v3027_v5 = vpop.f32.mrf.mxu0  ;;  %v3098_v3 = vpop.f32.mrf.mxu1 }
 0xb32   :  { %v7373_v30 = vmul.f32 -1.442695, %v3101_v60  ;;  %v3102_v36 = vadd.f32 %v3027_v5, %v2430_v8  ;;  %v3104_v48 = vadd.f32 %v3098_v3, %v2543_v40 }
 0xb34   :  { %7683 = vpow2.f32 %v7373_v30  ;;  %v7374_v2 = vmul.f32 -1.442695, %v3102_v36  ;;  %v7375_v32 = vmul.f32 -1.442695, %v3104_v48  ;;  %v10190_v48 = vld [vmem:[#allocation9 + $0x1c0] sm:$0xff] }
 0xb36   :  { %7685 = vpow2.f32 %v7374_v2 }
 0xb37   :  { %7687 = vtanh.f32 %v3103_v14  ;;  %v10181_v14 = vld [vmem:[#allocation9 + $0x1f0] sm:$0xff] }
 0xb38   :  { %7689 = vpow2.f32 %v7375_v32  ;;  %v10178_v32 = vld [vmem:[#allocation9 + $0x1e0] sm:$0xff] }
 0xb41   :  { %v7684_v56 = vpop.eup %7683 }
 0xb42   :  { %v3108_v12 = vadd.f32 1.0, %v7684_v56 }
 0xb43   :  { %v7686_v11 = vpop.eup %7685 }
 0xb44   :  { %7691 = vrcp.f32 %v3108_v12  ;;  %v3114_v5 = vadd.f32 1.0, %v7686_v11  ;;  %v7688_v36 = vpop.eup %7687  ;;  %v10196_v12 = vld [vmem:[#allocation9 + $0x1a8] sm:$0xff]  ;;  %v10199_v11 = vld [vmem:[#allocation9 + $0x1b8] sm:$0xff] }
 0xb45   :  { %v7690_v30 = vpop.eup %7689 }
 0xb46   :  { %7693 = vrcp.f32 %v3114_v5  ;;  %v3121_v60 = vadd.f32 1.0, %v7690_v30  ;;  %v10202_v5 = vld [vmem:[#allocation9 + $0x1a0] sm:$0xff]  ;;  %v10208_v30 = vld [vmem:[#allocation9 + $0x188] sm:$0xff] }
 0xb48   :  { %7695 = vrcp.f32 %v3121_v60 }
 0xb51   :  { %v7692_v2 = vpop.eup %7691 }
 0xb52   :  { %v3125_v54 = vmul.f32 %v7692_v2, %v7688_v36  ;;  %v10205_v36 = vld [vmem:[#allocation9 + $0x1b0] sm:$0xff]  ;;  %v10211_v2 = vld [vmem:[#allocation9 + $0x198] sm:$0xff] }
 0xb53   :  { %v7694_v8 = vpop.eup %7693 }
 0xb54   :  { %v3124_v40 = vmul.f32 %v7694_v8, %v10097_v15  ;;  %v10187_v15 = vld [vmem:[#allocation9 + $0x1d8] sm:$0xff] }
 0xb55   :  { %v7696_v56 = vpop.eup %7695 }
 0xb56   :  { %v10175_v3 = vadd.f32 %v3125_v54, %v3124_v40 }
 0xb58   :  { %7697 = vtanh.f32 %v10175_v3 }
 0xb65   :  { %v7698_v50 = vpop.eup %7697 }
 0xb66   :  { %v3128_v44 = vmul.f32 %v7698_v50, %v7696_v56 }
 0xb68   :  { %3198 = vmatmul.mubr.f32.vlgmr.msra.gmra.mxu0 %v3128_v44  ;;  %3269 = vmatmul.mubr.f32.vlgmr.msra.gmra.mxu1 %v3128_v44  ;;  %v10299_v44 = vld [vmem:[#allocation9 + $0x190] sm:$0xff] }
 0xb69   :  { %3308 = vmatpush1.msra.mxu0 %v10178_v32  ;;  %3379 = vmatpush1.msra.mxu1 %v10181_v14 }
 0xb6a   :  { %3309 = vmatprep.subr.mxu0 %v10184_v22  ;;  %3380 = vmatprep.subr.mxu1 %v10187_v15 }
 0xb6b   :  { %3310 = vmatpush1.msra.mxu0 %v10190_v48  ;;  %3381 = vmatpush1.msra.mxu1 %v10193_v62 }
 0xb6c   :  { %3311 = vmatprep.subr.mxu0 %v10196_v12  ;;  %3382 = vmatprep.subr.mxu1 %v10199_v11 }
 0xb6d   :  { %3312 = vmatpush1.msra.mxu0 %v10202_v5  ;;  %3383 = vmatpush1.msra.mxu1 %v10205_v36 }
 0xb6e   :  { %3313 = vmatprep.subr.mxu0 %v10208_v30  ;;  %3384 = vmatprep.subr.mxu1 %v10211_v2 }
 0xb6f   :  { %3314 = vmatpush1.msra.mxu0 %v9709_v17  ;;  %3385 = vmatpush1.msra.mxu1 %v9711_v21  ;;  %v13430_v17 = vld [vmem:[#allocation55_spill] sm:$0xff]  ;;  %v13431_v21 = vld [vmem:[#allocation54_spill] sm:$0xff] }
 0xb70   :  { %3315 = vmatprep.subr.mxu0 %v9715_v25  ;;  %3386 = vmatprep.subr.mxu1 %v9717_v29  ;;  %v13432_v25 = vld [vmem:[#allocation70_spill] sm:$0xff]  ;;  %v13433_v29 = vld [vmem:[#allocation69_spill] sm:$0xff] }
 0xb71   :  { %3316 = vmatpush1.msra.mxu0 %v9721_v33  ;;  %3387 = vmatpush1.msra.mxu1 %v9723_v37  ;;  %v13434_v33 = vld [vmem:[#allocation47_spill] sm:$0xff] }
 0xb72   :  { %3317 = vmatprep.subr.mxu0 %v9727_v41  ;;  %3388 = vmatprep.subr.mxu1 %v9729_v45  ;;  %v13435_v37 = vld [vmem:[#allocation23_spill] sm:$0xff]  ;;  %v13436_v41 = vld [vmem:[#allocation46_spill] sm:$0xff]  ;;  %v13437_v45 = vld [vmem:[#allocation24_spill] sm:$0xff] }
 0xb73   :  { %3318 = vmatpush1.msra.mxu0 %v9733_v16  ;;  %3389 = vmatpush1.msra.mxu1 %v9735_v55  ;;  %v13438_v16 = vmov 0.0   ;;  %v13439_v55 = vld [vmem:[#allocation49_spill] sm:$0xff] }
 0xb74   :  { %3319 = vmatprep.subr.mxu0 %v9739_v9  ;;  %3390 = vmatprep.subr.mxu1 %v9741_v24  ;;  %v10266_v9 = vld [vmem:[#allocation9 + $0x1e8] sm:$0xff]  ;;  %v10269_v24 = vld [vmem:[#allocation9 + $0x1f8] sm:$0xff] }
 0xb75   :  { %3320 = vmatpush1.msra.mxu0 %v9745_v61  ;;  %3391 = vmatpush1.msra.mxu1 %v9747_v53  ;;  %13440 = vst [vmem:[#allocation26_spill] sm:$0xff] %v10266_v9  ;;  %13441 = vst [vmem:[#allocation27_spill] sm:$0xff] %v10269_v24  ;;  %v13442_v61 = vld [vmem:[#allocation74_spill] sm:$0xff] }
 0xb76   :  { %3321 = vmatprep.subr.mxu0 %v9751_v7  ;;  %3392 = vmatprep.subr.mxu1 %v9753_v49  ;;  %v13443_v53 = vld [vmem:[#allocation30_spill] sm:$0xff] }
 0xb77   :  { %3322 = vmatpush1.msra.mxu0 %v9757_v31  ;;  %3393 = vmatpush1.msra.mxu1 %v9759_v35  ;;  %v2434_v7 = vadd.f32 %v13443_v53, %v13442_v61  ;;  %v13444_v31 = vld [vmem:[#allocation32_spill] sm:$0xff]  ;;  %v10329_v53 = vld [vmem:[#allocation9 + $0x138] sm:$0xff] }
 0xb78   :  { %3323 = vmatprep.subr.mxu0 %v9763_v39  ;;  %3394 = vmatprep.subr.mxu1 %v9765_v43  ;;  %v2436_v35 = vadd.f32 %v13444_v31, %v10001_v58  ;;  %v10338_v31 = vld [vmem:[#allocation9 + $0x108] sm:$0xff] }
 0xb79   :  { %3324 = vmatpush1.msra.mxu0 %v9769_v27  ;;  %3395 = vmatpush1.msra.mxu1 %v9771_v63 }
 0xb7a   :  { %3325 = vmatprep.subr.mxu0 %v9775_v23  ;;  %3396 = vmatprep.subr.mxu1 %v9777_v18 }
 0xb7b   :  { %3326 = vmatpush1.msra.mxu0 %v9781_v28  ;;  %3397 = vmatpush1.msra.mxu1 %v9783_v34  ;;  %v13445_v34 = vld [vmem:[#allocation39_spill] sm:$0xff] }
 0xb7c   :  { %3327 = vmatprep.subr.mxu0 %v9787_v38  ;;  %3398 = vmatprep.subr.mxu1 %v9789_v1  ;;  %v2549_v38 = vadd.f32 %v13445_v34, %v13398_v19  ;;  %v10365_v34 = vld [vmem:[#allocation9 + $0xd8] sm:$0xff] }
 0xb7d   :  { %3328 = vmatpush1.msra.mxu0 %v9793_v46  ;;  %3399 = vmatpush1.msra.mxu1 %v13401_v52  ;;  %v13446_v46 = vld [vmem:[#allocation38_spill] sm:$0xff] }
 0xb7e   :  { %3329 = vmatprep.subr.mxu0 %v13402_v20  ;;  %3400 = vmatprep.subr.mxu1 %v13403_v47  ;;  %v2547_v52 = vadd.f32 %v13446_v46, %v10016_v51  ;;  %v10374_v46 = vld [vmem:[#allocation9 + $0xa8] sm:$0xff] }
 0xb7f   :  { %3330 = vmatpush1.msra.mxu0 %v13404_v57  ;;  %3401 = vmatpush1.msra.mxu1 %v13405_v0 }
 0xb80   :  { %3331 = vmatprep.subr.mxu0 %v13406_v26  ;;  %3402 = vmatprep.subr.mxu1 %v13407_v59 }
 0xb81   :  { %3332 = vmatpush1.msra.mxu0 %v13408_v42  ;;  %3403 = vmatpush1.msra.mxu1 %v13409_v4 }
 0xb82   :  { %3333 = vmatprep.subr.mxu0 %v13410_v6  ;;  %3404 = vmatprep.subr.mxu1 %v13411_v10 }
 0xb83   :  { %3334 = vmatpush1.msra.mxu0 %v13412_v13  ;;  %3405 = vmatpush1.msra.mxu1 %v13430_v17  ;;  %v10302_v17 = vld [vmem:[#allocation9 + $0x168] sm:$0xff] }
 0xb84   :  { %3335 = vmatprep.subr.mxu0 %v13431_v21  ;;  %3406 = vmatprep.subr.mxu1 %v13432_v25  ;;  %v10305_v21 = vld [vmem:[#allocation9 + $0x178] sm:$0xff]  ;;  %v10308_v25 = vld [vmem:[#allocation9 + $0x160] sm:$0xff] }
 0xb85   :  { %3336 = vmatpush1.msra.mxu0 %v13433_v29  ;;  %3407 = vmatpush1.msra.mxu1 %v13434_v33  ;;  %v10311_v29 = vld [vmem:[#allocation9 + $0x170] sm:$0xff]  ;;  %v10314_v33 = vld [vmem:[#allocation9 + $0x148] sm:$0xff] }
 0xb86   :  { %3337 = vmatprep.subr.mxu0 %v13435_v37  ;;  %3408 = vmatprep.subr.mxu1 %v13436_v41  ;;  %v10317_v37 = vld [vmem:[#allocation9 + $0x158] sm:$0xff]  ;;  %v10320_v41 = vld [vmem:[#allocation9 + $0x140] sm:$0xff] }
 0xb87   :  { %3338 = vmatpush1.msra.mxu0 %v13437_v45  ;;  %3371 = vmatprep.mubr.f32.mxu0 %v13438_v16  ;;  %v10323_v45 = vld [vmem:[#allocation9 + $0x150] sm:$0xff] }
 0xb88   :  { %3409 = vmatpush1.msra.mxu1 %v13439_v55  ;;  %3442 = vmatprep.mubr.f32.mxu1 %v13438_v16  ;;  %v10326_v55 = vld [vmem:[#allocation9 + $0x128] sm:$0xff] }
 0xb89   :  { %3481 = vmatprep.subr.mxu0 %v10266_v9  ;;  %3552 = vmatprep.subr.mxu1 %v10269_v24 }
 0xc28   :  { %v3199_v49 = vpop.f32.mrf.mxu0  ;;  %v3270_v23 = vpop.f32.mrf.mxu1 }
 0xc29   :  { %v3275_v39 = vadd.f32 %v3199_v49, %v2434_v7  ;;  %v3277_v20 = vadd.f32 %v3270_v23, %v2547_v52  ;;  %v10332_v7 = vld [vmem:[#allocation9 + $0x120] sm:$0xff]  ;;  %v10335_v49 = vld [vmem:[#allocation9 + $0x130] sm:$0xff]  ;;  %v10377_v52 = vld [vmem:[#allocation9 + $0xb8] sm:$0xff] }
 0xc2a   :  { %v3201_v43 = vpop.f32.mrf.mxu0  ;;  %v3272_v28 = vpop.f32.mrf.mxu1  ;;  %v10356_v23 = vld [vmem:[#allocation9 + $0xe0] sm:$0xff] }
 0xc2b   :  { %v7376_v27 = vmul.f32 -1.442695, %v3275_v39  ;;  %v3276_v63 = vadd.f32 %v3201_v43, %v2436_v35  ;;  %v3278_v1 = vadd.f32 %v3272_v28, %v2549_v38  ;;  %v10341_v35 = vld [vmem:[#allocation9 + $0x118] sm:$0xff]  ;;  %v10344_v39 = vld [vmem:[#allocation9 + $0x100] sm:$0xff]  ;;  %v10347_v43 = vld [vmem:[#allocation9 + $0x110] sm:$0xff] }
 0xc2c   :  { %v10362_v28 = vld [vmem:[#allocation9 + $0xc8] sm:$0xff]  ;;  %v10368_v38 = vld [vmem:[#allocation9 + $0xc0] sm:$0xff] }
 0xc2d   :  { %7699 = vpow2.f32 %v7376_v27  ;;  %v7377_v18 = vmul.f32 -1.442695, %v3276_v63  ;;  %v7378_v47 = vmul.f32 -1.442695, %v3278_v1  ;;  %v10350_v27 = vld [vmem:[#allocation9 + $0xe8] sm:$0xff]  ;;  %v10353_v63 = vld [vmem:[#allocation9 + $0xf8] sm:$0xff] }
 0xc2e   :  { %v10371_v1 = vld [vmem:[#allocation9 + $0xd0] sm:$0xff] }
 0xc2f   :  { %7701 = vpow2.f32 %v7377_v18  ;;  %v10359_v18 = vld [vmem:[#allocation9 + $0xf0] sm:$0xff] }
 0xc30   :  { %7703 = vtanh.f32 %v3277_v20  ;;  %v10380_v20 = vld [vmem:[#allocation9 + $0xa0] sm:$0xff] }
 0xc31   :  { %7705 = vpow2.f32 %v7378_v47  ;;  %v10383_v47 = vld [vmem:[#allocation9 + $0xb0] sm:$0xff] }
 0xc32   :  { %13447 = vst [vmem:[#allocation35_spill] sm:$0xff] %v10383_v47 }
 0xc3a   :  { %v7700_v57 = vpop.eup %7699 }
 0xc3b   :  { %v3282_v0 = vadd.f32 1.0, %v7700_v57  ;;  %v10386_v57 = vld [vmem:[#allocation9 + $0x88] sm:$0xff] }
 0xc3c   :  { %v7702_v26 = vpop.eup %7701  ;;  %13448 = vst [vmem:[#allocation64_spill] sm:$0xff] %v10386_v57 }
 0xc3d   :  { %7707 = vrcp.f32 %v3282_v0  ;;  %v3288_v59 = vadd.f32 1.0, %v7702_v26  ;;  %v7704_v42 = vpop.eup %7703  ;;  %v10389_v0 = vld [vmem:[#allocation9 + $0x98] sm:$0xff]  ;;  %v10392_v26 = vld [vmem:[#allocation9 + $0x80] sm:$0xff] }
 0xc3e   :  { %v7706_v4 = vpop.eup %7705  ;;  %13449 = vst [vmem:[#allocation43_spill] sm:$0xff] %v10389_v0  ;;  %13450 = vst [vmem:[#allocation44_spill] sm:$0xff] %v10392_v26 }
 0xc3f   :  { %7709 = vrcp.f32 %v3288_v59  ;;  %v3295_v54 = vadd.f32 1.0, %v7706_v4  ;;  %v10395_v59 = vld [vmem:[#allocation9 + $0x90] sm:$0xff]  ;;  %v10401_v4 = vld [vmem:[#allocation9 + $0x78] sm:$0xff] }
 0xc40   :  { %13451 = vst [vmem:[#allocation51_spill] sm:$0xff] %v10395_v59  ;;  %13453 = vst [vmem:[#allocation66_spill] sm:$0xff] %v10401_v4 }
 0xc41   :  { %7711 = vrcp.f32 %v3295_v54  ;;  %v10413_v54 = vld [vmem:[#allocation9 + $0x58] sm:$0xff] }
 0xc42   :  { %13457 = vst [vmem:[#allocation68_spill] sm:$0xff] %v10413_v54 }
 0xc4a   :  { %v7708_v6 = vpop.eup %7707 }
 0xc4b   :  { %v3299_v10 = vmul.f32 %v7708_v6, %v7704_v42  ;;  %v10398_v42 = vld [vmem:[#allocation9 + $0x68] sm:$0xff]  ;;  %v10404_v6 = vld [vmem:[#allocation9 + $0x60] sm:$0xff] }
 0xc4c   :  { %v7710_v13 = vpop.eup %7709  ;;  %13452 = vst [vmem:[#allocation50_spill] sm:$0xff] %v10398_v42  ;;  %13454 = vst [vmem:[#allocation65_spill] sm:$0xff] %v10404_v6 }
 0xc4d   :  { %v3298_v8 = vmul.f32 %v7710_v13, %v10175_v3  ;;  %v10296_v3 = vld [vmem:[#allocation9 + $0x180] sm:$0xff]  ;;  %v10410_v13 = vld [vmem:[#allocation9 + $0x48] sm:$0xff] }
 0xc4e   :  { %v7712_v40 = vpop.eup %7711  ;;  %13456 = vst [vmem:[#allocation52_spill] sm:$0xff] %v10410_v13 }
 0xc4f   :  { %v10281_v60 = vadd.f32 %v3299_v10, %v3298_v8  ;;  %v10407_v10 = vld [vmem:[#allocation9 + $0x70] sm:$0xff]  ;;  %v10416_v8 = vld [vmem:[#allocation9 + $0x40] sm:$0xff] }
 0xc50   :  { %13455 = vst [vmem:[#allocation53_spill] sm:$0xff] %v10407_v10  ;;  %13458 = vst [vmem:[#allocation67_spill] sm:$0xff] %v10416_v8 }
 0xc51   :  { %7713 = vtanh.f32 %v10281_v60 }
 0xc5e   :  { %v7714_v56 = vpop.eup %7713 }
 0xc5f   :  { %v3302_v50 = vmul.f32 %v7714_v56, %v7712_v40  ;;  %v10419_v40 = vld [vmem:[#allocation9 + $0x50] sm:$0xff]  ;;  %v10422_v56 = vld [vmem:[#allocation9 + $0x28] sm:$0xff] }
 0xc60   :  { %13459 = vst [vmem:[#allocation22_spill] sm:$0xff] %v10419_v40  ;;  %13460 = vst [vmem:[#allocation33_spill] sm:$0xff] %v10422_v56 }
 0xc61   :  { %3372 = vmatmul.mubr.f32.vlgmr.msra.gmra.mxu0 %v3302_v50  ;;  %3443 = vmatmul.mubr.f32.vlgmr.msra.gmra.mxu1 %v3302_v50  ;;  %v10425_v50 = vld [vmem:[#allocation9 + $0x38] sm:$0xff] }
 0xc62   :  { %3482 = vmatpush1.msra.mxu0 %v10178_v32  ;;  %3553 = vmatpush1.msra.mxu1 %v10181_v14  ;;  %13461 = vst [vmem:[#allocation41_spill] sm:$0xff] %v10425_v50 }
 0xc63   :  { %3483 = vmatprep.subr.mxu0 %v10184_v22  ;;  %3554 = vmatprep.subr.mxu1 %v10187_v15 }
 0xc64   :  { %3484 = vmatpush1.msra.mxu0 %v10190_v48  ;;  %3555 = vmatpush1.msra.mxu1 %v10193_v62 }
 0xc65   :  { %3485 = vmatprep.subr.mxu0 %v10196_v12  ;;  %3556 = vmatprep.subr.mxu1 %v10199_v11 }
 0xc66   :  { %3486 = vmatpush1.msra.mxu0 %v10202_v5  ;;  %3557 = vmatpush1.msra.mxu1 %v10205_v36 }
 0xc67   :  { %3487 = vmatprep.subr.mxu0 %v10208_v30  ;;  %3558 = vmatprep.subr.mxu1 %v10211_v2 }
 0xc68   :  { %3488 = vmatpush1.msra.mxu0 %v10296_v3  ;;  %3559 = vmatpush1.msra.mxu1 %v10299_v44 }
 0xc69   :  { %3489 = vmatprep.subr.mxu0 %v10302_v17  ;;  %3560 = vmatprep.subr.mxu1 %v10305_v21 }
 0xc6a   :  { %3490 = vmatpush1.msra.mxu0 %v10308_v25  ;;  %3561 = vmatpush1.msra.mxu1 %v10311_v29 }
 0xc6b   :  { %3491 = vmatprep.subr.mxu0 %v10314_v33  ;;  %3562 = vmatprep.subr.mxu1 %v10317_v37 }
 0xc6c   :  { %3492 = vmatpush1.msra.mxu0 %v10320_v41  ;;  %3563 = vmatpush1.msra.mxu1 %v10323_v45 }
 0xc6d   :  { %3493 = vmatprep.subr.mxu0 %v10326_v55  ;;  %3564 = vmatprep.subr.mxu1 %v10329_v53 }
 0xc6e   :  { %3494 = vmatpush1.msra.mxu0 %v10332_v7  ;;  %3565 = vmatpush1.msra.mxu1 %v10335_v49 }
 0xc6f   :  { %3495 = vmatprep.subr.mxu0 %v10338_v31  ;;  %3566 = vmatprep.subr.mxu1 %v10341_v35 }
 0xc70   :  { %3496 = vmatpush1.msra.mxu0 %v10344_v39  ;;  %3567 = vmatpush1.msra.mxu1 %v10347_v43 }
 0xc71   :  { %3497 = vmatprep.subr.mxu0 %v10350_v27  ;;  %3568 = vmatprep.subr.mxu1 %v10353_v63 }
 0xc72   :  { %3498 = vmatpush1.msra.mxu0 %v10356_v23  ;;  %3569 = vmatpush1.msra.mxu1 %v10359_v18 }
 0xc73   :  { %3499 = vmatprep.subr.mxu0 %v10362_v28  ;;  %3570 = vmatprep.subr.mxu1 %v10365_v34 }
 0xc74   :  { %3500 = vmatpush1.msra.mxu0 %v10368_v38  ;;  %3571 = vmatpush1.msra.mxu1 %v10371_v1 }
 0xc75   :  { %3501 = vmatprep.subr.mxu0 %v10374_v46  ;;  %3572 = vmatprep.subr.mxu1 %v10377_v52 }
 0xc76   :  { %3502 = vmatpush1.msra.mxu0 %v10380_v20  ;;  %3573 = vmatpush1.msra.mxu1 %v10383_v47 }
 0xc77   :  { %3503 = vmatprep.subr.mxu0 %v10386_v57  ;;  %3574 = vmatprep.subr.mxu1 %v10389_v0  ;;  %v13471_v0 = vld [vmem:[#allocation57_spill] sm:$0xff] }
 0xc78   :  { %3504 = vmatpush1.msra.mxu0 %v10392_v26  ;;  %3575 = vmatpush1.msra.mxu1 %v10395_v59 }
 0xc79   :  { %3505 = vmatprep.subr.mxu0 %v10398_v42  ;;  %3576 = vmatprep.subr.mxu1 %v10401_v4 }
 0xc7a   :  { %3506 = vmatpush1.msra.mxu0 %v10404_v6  ;;  %3577 = vmatpush1.msra.mxu1 %v10407_v10 }
 0xc7b   :  { %3507 = vmatprep.subr.mxu0 %v10410_v13  ;;  %3578 = vmatprep.subr.mxu1 %v10413_v54  ;;  %v10428_v13 = vld [vmem:[#allocation9 + $0x20] sm:$0xff]  ;;  %v10431_v54 = vld [vmem:[#allocation9 + $0x30] sm:$0xff] }
 0xc7c   :  { %3508 = vmatpush1.msra.mxu0 %v10416_v8  ;;  %3579 = vmatpush1.msra.mxu1 %v10419_v40  ;;  %13462 = vst [vmem:[#allocation42_spill] sm:$0xff] %v10428_v13  ;;  %13463 = vst [vmem:[#allocation28_spill] sm:$0xff] %v10431_v54  ;;  %v10434_v8 = vld [vmem:[#allocation9 + $0x8] sm:$0xff]  ;;  %v10437_v40 = vld [vmem:[#allocation9 + $0x18] sm:$0xff] }
 0xc7d   :  { %3509 = vmatprep.subr.mxu0 %v10422_v56  ;;  %3580 = vmatprep.subr.mxu1 %v10425_v50  ;;  %13464 = vst [vmem:[#allocation29_spill] sm:$0xff] %v10434_v8  ;;  %13465 = vst [vmem:[#allocation37_spill] sm:$0xff] %v10437_v40  ;;  %v10440_v56 = vld [vmem:[#allocation9] sm:$0xff]  ;;  %v10444_v50 = vld [vmem:[#allocation9 + $0x10] sm:$0xff] }
 0xc7e   :  { %3510 = vmatpush1.msra.mxu0 %v10428_v13  ;;  %3581 = vmatpush1.msra.mxu1 %v10431_v54  ;;  %13466 = vst [vmem:[#allocation36_spill] sm:$0xff] %v10440_v56  ;;  %13467 = vst [vmem:[#allocation55_spill] sm:$0xff] %v10444_v50  ;;  %v13469_v13 = vld [vmem:[#allocation72_spill] sm:$0xff] }
 0xc7f   :  { %3511 = vmatprep.subr.mxu0 %v10434_v8  ;;  %3582 = vmatprep.subr.mxu1 %v10437_v40  ;;  %v13468_v8 = vld [vmem:[#allocation58_spill] sm:$0xff]  ;;  %v2442_v10 = vadd.f32 %v13469_v13, %v10001_v58 }
 0xc80   :  { %3512 = vmatpush1.msra.mxu0 %v10440_v56  ;;  %3545 = vmatprep.mubr.f32.mxu0 %v13438_v16  ;;  %v2440_v54 = vadd.f32 %v13468_v8, %v13442_v61  ;;  %v2553_v8 = vadd.f32 %v13471_v0, %v10016_v51  ;;  %v13474_v0 = vld [vmem:[#allocation43_spill] sm:$0xff] }
 0xc81   :  { %3583 = vmatpush1.msra.mxu1 %v10444_v50  ;;  %3616 = vmatprep.mubr.f32.mxu1 %v13438_v16 }
 0xc82   :  { %3655 = vmatprep.subr.mxu0 %v10266_v9  ;;  %3726 = vmatprep.subr.mxu1 %v10269_v24  ;;  %v13470_v9 = vld [vmem:[#allocation71_spill] sm:$0xff] }
 0xc83   :  { %v2555_v26 = vadd.f32 %v13470_v9, %v13398_v19 }
 0xd21   :  { %v3373_v40 = vpop.f32.mrf.mxu0  ;;  %v3444_v59 = vpop.f32.mrf.mxu1 }
 0xd22   :  { %v3449_v56 = vadd.f32 %v3373_v40, %v2440_v54  ;;  %v3451_v61 = vadd.f32 %v3444_v59, %v2553_v8  ;;  %v13475_v59 = vld [vmem:[#allocation44_spill] sm:$0xff]  ;;  %v13477_v8 = vld [vmem:[#allocation50_spill] sm:$0xff] }
 0xd23   :  { %v3375_v6 = vpop.f32.mrf.mxu0  ;;  %v3446_v16 = vpop.f32.mrf.mxu1 }
 0xd24   :  { %v7379_v4 = vmul.f32 -1.442695, %v3449_v56  ;;  %v3450_v42 = vadd.f32 %v3375_v6, %v2442_v10  ;;  %v3452_v24 = vadd.f32 %v3446_v16, %v2555_v26 }
 0xd26   :  { %7715 = vpow2.f32 %v7379_v4  ;;  %v7380_v50 = vmul.f32 -1.442695, %v3450_v42  ;;  %v7381_v57 = vmul.f32 -1.442695, %v3452_v24 }
 0xd28   :  { %7717 = vpow2.f32 %v7380_v50  ;;  %v13476_v50 = vld [vmem:[#allocation51_spill] sm:$0xff] }
 0xd29   :  { %7719 = vtanh.f32 %v3451_v61 }
 0xd2a   :  { %7721 = vpow2.f32 %v7381_v57  ;;  %v13473_v57 = vld [vmem:[#allocation64_spill] sm:$0xff] }
 0xd33   :  { %v7716_v47 = vpop.eup %7715 }
 0xd34   :  { %v3456_v13 = vadd.f32 1.0, %v7716_v47 }
 0xd35   :  { %v7718_v54 = vpop.eup %7717 }
 0xd36   :  { %7723 = vrcp.f32 %v3456_v13  ;;  %v3462_v4 = vadd.f32 1.0, %v7718_v54  ;;  %v7720_v42 = vpop.eup %7719  ;;  %v13478_v13 = vld [vmem:[#allocation66_spill] sm:$0xff]  ;;  %v13479_v54 = vld [vmem:[#allocation65_spill] sm:$0xff] }
 0xd37   :  { %v7722_v6 = vpop.eup %7721 }
 0xd38   :  { %7725 = vrcp.f32 %v3462_v4  ;;  %v3469_v9 = vadd.f32 1.0, %v7722_v6  ;;  %v13480_v4 = vld [vmem:[#allocation53_spill] sm:$0xff]  ;;  %v13482_v6 = vld [vmem:[#allocation68_spill] sm:$0xff] }
 0xd3a   :  { %7727 = vrcp.f32 %v3469_v9  ;;  %v13486_v9 = vld [vmem:[#allocation41_spill] sm:$0xff] }
 0xd43   :  { %v7724_v10 = vpop.eup %7723 }
 0xd44   :  { %v3473_v40 = vmul.f32 %v7724_v10, %v7720_v42  ;;  %v13481_v42 = vld [vmem:[#allocation52_spill] sm:$0xff]  ;;  %v13483_v10 = vld [vmem:[#allocation67_spill] sm:$0xff] }
 0xd45   :  { %v7726_v56 = vpop.eup %7725 }
 0xd46   :  { %v3472_v16 = vmul.f32 %v7726_v56, %v10281_v60  ;;  %v13472_v60 = vld [vmem:[#allocation35_spill] sm:$0xff]  ;;  %v13485_v56 = vld [vmem:[#allocation33_spill] sm:$0xff] }
 0xd47   :  { %v7728_v24 = vpop.eup %7727 }
 0xd48   :  { %v10459_v26 = vadd.f32 %v3473_v40, %v3472_v16  ;;  %v13484_v40 = vld [vmem:[#allocation22_spill] sm:$0xff] }
 0xd49   :  { %v13487_v16 = vld [vmem:[#allocation42_spill] sm:$0xff] }
 0xd4a   :  { %7729 = vtanh.f32 %v10459_v26 }
 0xd57   :  { %v7730_v61 = vpop.eup %7729 }
 0xd58   :  { %v3476_v47 = vmul.f32 %v7730_v61, %v7728_v24  ;;  %v13488_v24 = vld [vmem:[#allocation28_spill] sm:$0xff]  ;;  %v13489_v61 = vld [vmem:[#allocation29_spill] sm:$0xff] }
 0xd5a   :  { %3546 = vmatmul.mubr.f32.vlgmr.msra.gmra.mxu0 %v3476_v47  ;;  %3617 = vmatmul.mubr.f32.vlgmr.msra.gmra.mxu1 %v3476_v47  ;;  %v13490_v47 = vld [vmem:[#allocation37_spill] sm:$0xff] }
 0xd5b   :  { %3656 = vmatpush1.msra.mxu0 %v10178_v32  ;;  %3727 = vmatpush1.msra.mxu1 %v10181_v14 }
 0xd5c   :  { %3657 = vmatprep.subr.mxu0 %v10184_v22  ;;  %3728 = vmatprep.subr.mxu1 %v10187_v15 }
 0xd5d   :  { %3658 = vmatpush1.msra.mxu0 %v10190_v48  ;;  %3729 = vmatpush1.msra.mxu1 %v10193_v62 }
 0xd5e   :  { %3659 = vmatprep.subr.mxu0 %v10196_v12  ;;  %3730 = vmatprep.subr.mxu1 %v10199_v11 }
 0xd5f   :  { %3660 = vmatpush1.msra.mxu0 %v10202_v5  ;;  %3731 = vmatpush1.msra.mxu1 %v10205_v36 }
 0xd60   :  { %3661 = vmatprep.subr.mxu0 %v10208_v30  ;;  %3732 = vmatprep.subr.mxu1 %v10211_v2 }
 0xd61   :  { %3662 = vmatpush1.msra.mxu0 %v10296_v3  ;;  %3733 = vmatpush1.msra.mxu1 %v10299_v44 }
 0xd62   :  { %3663 = vmatprep.subr.mxu0 %v10302_v17  ;;  %3734 = vmatprep.subr.mxu1 %v10305_v21 }
 0xd63   :  { %3664 = vmatpush1.msra.mxu0 %v10308_v25  ;;  %3735 = vmatpush1.msra.mxu1 %v10311_v29 }
 0xd64   :  { %3665 = vmatprep.subr.mxu0 %v10314_v33  ;;  %3736 = vmatprep.subr.mxu1 %v10317_v37 }
 0xd65   :  { %3666 = vmatpush1.msra.mxu0 %v10320_v41  ;;  %3737 = vmatpush1.msra.mxu1 %v10323_v45 }
 0xd66   :  { %3667 = vmatprep.subr.mxu0 %v10326_v55  ;;  %3738 = vmatprep.subr.mxu1 %v10329_v53 }
 0xd67   :  { %3668 = vmatpush1.msra.mxu0 %v10332_v7  ;;  %3739 = vmatpush1.msra.mxu1 %v10335_v49 }
 0xd68   :  { %3669 = vmatprep.subr.mxu0 %v10338_v31  ;;  %3740 = vmatprep.subr.mxu1 %v10341_v35 }
 0xd69   :  { %3670 = vmatpush1.msra.mxu0 %v10344_v39  ;;  %3741 = vmatpush1.msra.mxu1 %v10347_v43 }
 0xd6a   :  { %3671 = vmatprep.subr.mxu0 %v10350_v27  ;;  %3742 = vmatprep.subr.mxu1 %v10353_v63 }
 0xd6b   :  { %3672 = vmatpush1.msra.mxu0 %v10356_v23  ;;  %3743 = vmatpush1.msra.mxu1 %v10359_v18 }
 0xd6c   :  { %3673 = vmatprep.subr.mxu0 %v10362_v28  ;;  %3744 = vmatprep.subr.mxu1 %v10365_v34 }
 0xd6d   :  { %3674 = vmatpush1.msra.mxu0 %v10368_v38  ;;  %3745 = vmatpush1.msra.mxu1 %v10371_v1 }
 0xd6e   :  { %3675 = vmatprep.subr.mxu0 %v10374_v46  ;;  %3746 = vmatprep.subr.mxu1 %v10377_v52 }
 0xd6f   :  { %3676 = vmatpush1.msra.mxu0 %v10380_v20  ;;  %3747 = vmatpush1.msra.mxu1 %v13472_v60 }
 0xd70   :  { %3677 = vmatprep.subr.mxu0 %v13473_v57  ;;  %3748 = vmatprep.subr.mxu1 %v13474_v0  ;;  %v13500_v0 = vld [vmem:[#allocation34_spill] sm:$0xff] }
 0xd71   :  { %3678 = vmatpush1.msra.mxu0 %v13475_v59  ;;  %3749 = vmatpush1.msra.mxu1 %v13476_v50 }
 0xd72   :  { %3679 = vmatprep.subr.mxu0 %v13477_v8  ;;  %3750 = vmatprep.subr.mxu1 %v13478_v13 }
 0xd73   :  { %3680 = vmatpush1.msra.mxu0 %v13479_v54  ;;  %3751 = vmatpush1.msra.mxu1 %v13480_v4  ;;  %v13491_v4 = vld [vmem:[#allocation36_spill] sm:$0xff] }
 0xd74   :  { %3681 = vmatprep.subr.mxu0 %v13481_v42  ;;  %3752 = vmatprep.subr.mxu1 %v13482_v6  ;;  %v13492_v42 = vmov 0.0   ;;  %v13493_v6 = vld [vmem:[#allocation55_spill] sm:$0xff] }
 0xd75   :  { %3682 = vmatpush1.msra.mxu0 %v13483_v10  ;;  %3753 = vmatpush1.msra.mxu1 %v13484_v40  ;;  %v13494_v40 = vld [vmem:[#allocation26_spill] sm:$0xff] }
 0xd76   :  { %3683 = vmatprep.subr.mxu0 %v13485_v56  ;;  %3754 = vmatprep.subr.mxu1 %v13486_v9  ;;  %v13495_v56 = vld [vmem:[#allocation27_spill] sm:$0xff]  ;;  %v13496_v9 = vld [vmem:[#allocation74_spill] sm:$0xff] }
 0xd77   :  { %3684 = vmatpush1.msra.mxu0 %v13487_v16  ;;  %3755 = vmatpush1.msra.mxu1 %v13488_v24  ;;  %v13497_v16 = vld [vmem:[#allocation75_spill] sm:$0xff] }
 0xd78   :  { %3685 = vmatprep.subr.mxu0 %v13489_v61  ;;  %3756 = vmatprep.subr.mxu1 %v13490_v47  ;;  %v2446_v10 = vadd.f32 %v13497_v16, %v13496_v9  ;;  %v13498_v61 = vld [vmem:[#allocation31_spill] sm:$0xff]  ;;  %v2559_v16 = vadd.f32 %v13500_v0, %v10016_v51 }
 0xd79   :  { %3686 = vmatpush1.msra.mxu0 %v13491_v4  ;;  %3719 = vmatprep.mubr.f32.mxu0 %v13492_v42  ;;  %v2448_v54 = vadd.f32 %v13498_v61, %v10001_v58 }
 0xd7a   :  { %3757 = vmatpush1.msra.mxu1 %v13493_v6  ;;  %3790 = vmatprep.mubr.f32.mxu1 %v13492_v42 }
 0xd7b   :  { %3829 = vmatprep.subr.mxu0 %v13494_v40  ;;  %3900 = vmatprep.subr.mxu1 %v13495_v56  ;;  %v13499_v40 = vld [vmem:[#allocation59_spill] sm:$0xff] }
 0xd7c   :  { %v2561_v59 = vadd.f32 %v13499_v40, %v13398_v19 }
 0xe1a   :  { %v3547_v24 = vpop.f32.mrf.mxu0  ;;  %v3618_v50 = vpop.f32.mrf.mxu1 }
 0xe1b   :  { %v3623_v47 = vadd.f32 %v3547_v24, %v2446_v10  ;;  %v3625_v9 = vadd.f32 %v3618_v50, %v2559_v16 }
 0xe1c   :  { %v3549_v13 = vpop.f32.mrf.mxu0  ;;  %v3620_v42 = vpop.f32.mrf.mxu1 }
 0xe1d   :  { %v7382_v4 = vmul.f32 -1.442695, %v3623_v47  ;;  %v3624_v8 = vadd.f32 %v3549_v13, %v2448_v54  ;;  %v3626_v56 = vadd.f32 %v3620_v42, %v2561_v59 }
 0xe1f   :  { %7731 = vpow2.f32 %v7382_v4  ;;  %v7383_v6 = vmul.f32 -1.442695, %v3624_v8  ;;  %v7384_v57 = vmul.f32 -1.442695, %v3626_v56 }
 0xe21   :  { %7733 = vpow2.f32 %v7383_v6 }
 0xe22   :  { %7735 = vtanh.f32 %v3625_v9 }
 0xe23   :  { %7737 = vpow2.f32 %v7384_v57 }
 0xe2c   :  { %v7732_v60 = vpop.eup %7731 }
 0xe2d   :  { %v3630_v61 = vadd.f32 1.0, %v7732_v60 }
 0xe2e   :  { %v7734_v10 = vpop.eup %7733 }
 0xe2f   :  { %7739 = vrcp.f32 %v3630_v61  ;;  %v3636_v13 = vadd.f32 1.0, %v7734_v10  ;;  %v7736_v8 = vpop.eup %7735 }
 0xe30   :  { %v7738_v54 = vpop.eup %7737 }
 0xe31   :  { %7741 = vrcp.f32 %v3636_v13  ;;  %v3643_v47 = vadd.f32 1.0, %v7738_v54 }
 0xe33   :  { %7743 = vrcp.f32 %v3643_v47 }
 0xe3c   :  { %v7740_v4 = vpop.eup %7739 }
 0xe3d   :  { %v3647_v6 = vmul.f32 %v7740_v4, %v7736_v8 }
 0xe3e   :  { %v7742_v24 = vpop.eup %7741 }
 0xe3f   :  { %v3646_v59 = vmul.f32 %v7742_v24, %v10459_v26 }
 0xe40   :  { %v7744_v60 = vpop.eup %7743 }
 0xe41   :  { %v10537_v42 = vadd.f32 %v3647_v6, %v3646_v59 }
 0xe43   :  { %7745 = vtanh.f32 %v10537_v42 }
 0xe50   :  { %v7746_v0 = vpop.eup %7745 }
 0xe51   :  { %v3650_v50 = vmul.f32 %v7746_v0, %v7744_v60 }
 0xe53   :  { %3720 = vmatmul.mubr.f32.vlgmr.msra.gmra.mxu0 %v3650_v50  ;;  %3791 = vmatmul.mubr.f32.vlgmr.msra.gmra.mxu1 %v3650_v50  ;;  %v10622_v50 = vld [vmem:[#allocation11 + $0x1e0] sm:$0xff] }
 0xe54   :  { %3830 = vmatpush1.msra.mxu0 %v10178_v32  ;;  %3901 = vmatpush1.msra.mxu1 %v10181_v14  ;;  %v13501_v32 = vld [vmem:[#allocation35_spill] sm:$0xff]  ;;  %v13502_v14 = vld [vmem:[#allocation64_spill] sm:$0xff] }
 0xe55   :  { %3831 = vmatprep.subr.mxu0 %v10184_v22  ;;  %3902 = vmatprep.subr.mxu1 %v10187_v15  ;;  %v13503_v22 = vld [vmem:[#allocation43_spill] sm:$0xff]  ;;  %v13504_v15 = vld [vmem:[#allocation44_spill] sm:$0xff] }
 0xe56   :  { %3832 = vmatpush1.msra.mxu0 %v10190_v48  ;;  %3903 = vmatpush1.msra.mxu1 %v10193_v62  ;;  %v13505_v48 = vld [vmem:[#allocation51_spill] sm:$0xff]  ;;  %v13506_v62 = vld [vmem:[#allocation50_spill] sm:$0xff] }
 0xe57   :  { %3833 = vmatprep.subr.mxu0 %v10196_v12  ;;  %3904 = vmatprep.subr.mxu1 %v10199_v11  ;;  %v13507_v12 = vld [vmem:[#allocation66_spill] sm:$0xff]  ;;  %v13508_v11 = vld [vmem:[#allocation65_spill] sm:$0xff] }
 0xe58   :  { %3834 = vmatpush1.msra.mxu0 %v10202_v5  ;;  %3905 = vmatpush1.msra.mxu1 %v10205_v36  ;;  %v13509_v5 = vld [vmem:[#allocation53_spill] sm:$0xff]  ;;  %v13510_v36 = vld [vmem:[#allocation52_spill] sm:$0xff] }
 0xe59   :  { %3835 = vmatprep.subr.mxu0 %v10208_v30  ;;  %3906 = vmatprep.subr.mxu1 %v10211_v2  ;;  %v13511_v30 = vld [vmem:[#allocation68_spill] sm:$0xff]  ;;  %v13512_v2 = vld [vmem:[#allocation67_spill] sm:$0xff] }
 0xe5a   :  { %3836 = vmatpush1.msra.mxu0 %v10296_v3  ;;  %3907 = vmatpush1.msra.mxu1 %v10299_v44  ;;  %v13513_v3 = vld [vmem:[#allocation22_spill] sm:$0xff]  ;;  %v13514_v44 = vld [vmem:[#allocation33_spill] sm:$0xff] }
 0xe5b   :  { %3837 = vmatprep.subr.mxu0 %v10302_v17  ;;  %3908 = vmatprep.subr.mxu1 %v10305_v21  ;;  %v13515_v17 = vld [vmem:[#allocation41_spill] sm:$0xff]  ;;  %v13516_v21 = vld [vmem:[#allocation42_spill] sm:$0xff] }
 0xe5c   :  { %3838 = vmatpush1.msra.mxu0 %v10308_v25  ;;  %3909 = vmatpush1.msra.mxu1 %v10311_v29  ;;  %v13517_v25 = vld [vmem:[#allocation28_spill] sm:$0xff]  ;;  %v13518_v29 = vld [vmem:[#allocation29_spill] sm:$0xff] }
 0xe5d   :  { %3839 = vmatprep.subr.mxu0 %v10314_v33  ;;  %3910 = vmatprep.subr.mxu1 %v10317_v37  ;;  %v13519_v33 = vld [vmem:[#allocation37_spill] sm:$0xff]  ;;  %v13520_v37 = vld [vmem:[#allocation36_spill] sm:$0xff] }
 0xe5e   :  { %3840 = vmatpush1.msra.mxu0 %v10320_v41  ;;  %3911 = vmatpush1.msra.mxu1 %v10323_v45  ;;  %v13521_v41 = vld [vmem:[#allocation55_spill] sm:$0xff]  ;;  %v13522_v45 = vmov 0.0  }
 0xe5f   :  { %3841 = vmatprep.subr.mxu0 %v10326_v55  ;;  %3912 = vmatprep.subr.mxu1 %v10329_v53  ;;  %v10604_v55 = vld [vmem:[#allocation11 + $0x1e8] sm:$0xff]  ;;  %v10606_v53 = vld [vmem:[#allocation11 + $0x1f8] sm:$0xff] }
 0xe60   :  { %3842 = vmatpush1.msra.mxu0 %v10332_v7  ;;  %3913 = vmatpush1.msra.mxu1 %v10335_v49  ;;  %13523 = vst [vmem:[#allocation54_spill] sm:$0xff] %v10604_v55  ;;  %13524 = vst [vmem:[#allocation70_spill] sm:$0xff] %v10606_v53  ;;  %v13525_v7 = vld [vmem:[#allocation74_spill] sm:$0xff]  ;;  %v13526_v49 = vld [vmem:[#allocation40_spill] sm:$0xff] }
 0xe61   :  { %3843 = vmatprep.subr.mxu0 %v10338_v31  ;;  %3914 = vmatprep.subr.mxu1 %v10341_v35  ;;  %v2452_v31 = vadd.f32 %v13526_v49, %v13525_v7  ;;  %v10686_v49 = vld [vmem:[#allocation11 + $0x138] sm:$0xff]  ;;  %v10798_v7 = vld [vmem:[#allocation11] sm:$0xff] }
 0xe62   :  { %3844 = vmatpush1.msra.mxu0 %v10344_v39  ;;  %3915 = vmatpush1.msra.mxu1 %v10347_v43  ;;  %v13527_v39 = vld [vmem:[#allocation60_spill] sm:$0xff]  ;;  %13548 = vst [vmem:[#allocation59_spill] sm:$0xff] %v10798_v7 }
 0xe63   :  { %3845 = vmatprep.subr.mxu0 %v10350_v27  ;;  %3916 = vmatprep.subr.mxu1 %v10353_v63  ;;  %v2454_v43 = vadd.f32 %v13527_v39, %v10001_v58  ;;  %v10696_v39 = vld [vmem:[#allocation11 + $0x108] sm:$0xff] }
 0xe64   :  { %3846 = vmatpush1.msra.mxu0 %v10356_v23  ;;  %3917 = vmatpush1.msra.mxu1 %v10359_v18  ;;  %v10792_v58 = vld [vmem:[#allocation11 + $0x8] sm:$0xff] }
 0xe65   :  { %3847 = vmatprep.subr.mxu0 %v10362_v28  ;;  %3918 = vmatprep.subr.mxu1 %v10365_v34  ;;  %13546 = vst [vmem:[#allocation75_spill] sm:$0xff] %v10792_v58 }
 0xe66   :  { %3848 = vmatpush1.msra.mxu0 %v10368_v38  ;;  %3919 = vmatpush1.msra.mxu1 %v10371_v1  ;;  %v13528_v1 = vld [vmem:[#allocation73_spill] sm:$0xff] }
 0xe67   :  { %3849 = vmatprep.subr.mxu0 %v10374_v46  ;;  %3920 = vmatprep.subr.mxu1 %v10377_v52  ;;  %v2567_v46 = vadd.f32 %v13528_v1, %v13398_v19  ;;  %v10722_v1 = vld [vmem:[#allocation11 + $0xd8] sm:$0xff]  ;;  %v10788_v19 = vld [vmem:[#allocation11 + $0x30] sm:$0xff] }
 0xe68   :  { %3850 = vmatpush1.msra.mxu0 %v10380_v20  ;;  %3921 = vmatpush1.msra.mxu1 %v13501_v32  ;;  %v13529_v20 = vld [vmem:[#allocation61_spill] sm:$0xff]  ;;  %v10624_v32 = vld [vmem:[#allocation11 + $0x1f0] sm:$0xff]  ;;  %13545 = vst [vmem:[#allocation27_spill] sm:$0xff] %v10788_v19 }
 0xe69   :  { %3851 = vmatprep.subr.mxu0 %v13502_v14  ;;  %3922 = vmatprep.subr.mxu1 %v13503_v22  ;;  %v2565_v26 = vadd.f32 %v13529_v20, %v10016_v51  ;;  %v10626_v14 = vld [vmem:[#allocation11 + $0x1c8] sm:$0xff]  ;;  %v10628_v22 = vld [vmem:[#allocation11 + $0x1d8] sm:$0xff] }
 0xe6a   :  { %3852 = vmatpush1.msra.mxu0 %v13504_v15  ;;  %3923 = vmatpush1.msra.mxu1 %v13505_v48  ;;  %v10630_v15 = vld [vmem:[#allocation11 + $0x1c0] sm:$0xff]  ;;  %v10636_v48 = vld [vmem:[#allocation11 + $0x1a8] sm:$0xff]  ;;  %v10794_v51 = vld [vmem:[#allocation11 + $0x18] sm:$0xff] }
 0xe6b   :  { %3853 = vmatprep.subr.mxu0 %v13506_v62  ;;  %3924 = vmatprep.subr.mxu1 %v13507_v12  ;;  %v10638_v62 = vld [vmem:[#allocation11 + $0x1b8] sm:$0xff]  ;;  %v10642_v12 = vld [vmem:[#allocation11 + $0x1a0] sm:$0xff]  ;;  %v10732_v20 = vld [vmem:[#allocation11 + $0xa8] sm:$0xff]  ;;  %13547 = vst [vmem:[#allocation31_spill] sm:$0xff] %v10794_v51 }
 0xe6c   :  { %3854 = vmatpush1.msra.mxu0 %v13508_v11  ;;  %3925 = vmatpush1.msra.mxu1 %v13509_v5  ;;  %v10644_v11 = vld [vmem:[#allocation11 + $0x1b0] sm:$0xff]  ;;  %v10648_v5 = vld [vmem:[#allocation11 + $0x188] sm:$0xff] }
 0xe6d   :  { %3855 = vmatprep.subr.mxu0 %v13510_v36  ;;  %3926 = vmatprep.subr.mxu1 %v13511_v30  ;;  %v10650_v36 = vld [vmem:[#allocation11 + $0x198] sm:$0xff]  ;;  %v10654_v30 = vld [vmem:[#allocation11 + $0x180] sm:$0xff] }
 0xe6e   :  { %3856 = vmatpush1.msra.mxu0 %v13512_v2  ;;  %3927 = vmatpush1.msra.mxu1 %v13513_v3  ;;  %v10656_v2 = vld [vmem:[#allocation11 + $0x190] sm:$0xff]  ;;  %v10660_v3 = vld [vmem:[#allocation11 + $0x168] sm:$0xff] }
 0xe6f   :  { %3857 = vmatprep.subr.mxu0 %v13514_v44  ;;  %3928 = vmatprep.subr.mxu1 %v13515_v17  ;;  %v10662_v44 = vld [vmem:[#allocation11 + $0x178] sm:$0xff]  ;;  %v10666_v17 = vld [vmem:[#allocation11 + $0x160] sm:$0xff] }
 0xe70   :  { %3858 = vmatpush1.msra.mxu0 %v13516_v21  ;;  %3929 = vmatpush1.msra.mxu1 %v13517_v25  ;;  %v10668_v21 = vld [vmem:[#allocation11 + $0x170] sm:$0xff]  ;;  %v10672_v25 = vld [vmem:[#allocation11 + $0x148] sm:$0xff] }
 0xe71   :  { %3859 = vmatprep.subr.mxu0 %v13518_v29  ;;  %3930 = vmatprep.subr.mxu1 %v13519_v33  ;;  %v10674_v29 = vld [vmem:[#allocation11 + $0x158] sm:$0xff]  ;;  %v10678_v33 = vld [vmem:[#allocation11 + $0x140] sm:$0xff] }
 0xe72   :  { %3860 = vmatpush1.msra.mxu0 %v13520_v37  ;;  %3931 = vmatpush1.msra.mxu1 %v13521_v41  ;;  %v10680_v37 = vld [vmem:[#allocation11 + $0x150] sm:$0xff]  ;;  %v10684_v41 = vld [vmem:[#allocation11 + $0x128] sm:$0xff] }
 0xe73   :  { %3893 = vmatprep.mubr.f32.mxu0 %v13522_v45  ;;  %3964 = vmatprep.mubr.f32.mxu1 %v13522_v45 }
 0xe74   :  { %4020 = vmatprep.subr.mxu0 %v10604_v55  ;;  %4091 = vmatprep.subr.mxu1 %v10606_v53 }
 0xf13   :  { %v3721_v35 = vpop.f32.mrf.mxu0  ;;  %v3792_v28 = vpop.f32.mrf.mxu1 }
 0xf14   :  { %v3797_v27 = vadd.f32 %v3721_v35, %v2452_v31  ;;  %v3799_v57 = vadd.f32 %v3792_v28, %v2565_v26  ;;  %v10690_v31 = vld [vmem:[#allocation11 + $0x120] sm:$0xff]  ;;  %v10692_v35 = vld [vmem:[#allocation11 + $0x130] sm:$0xff]  ;;  %v10734_v26 = vld [vmem:[#allocation11 + $0xb8] sm:$0xff] }
 0xf15   :  { %v3723_v63 = vpop.f32.mrf.mxu0  ;;  %v3794_v38 = vpop.f32.mrf.mxu1  ;;  %v10714_v28 = vld [vmem:[#allocation11 + $0xe0] sm:$0xff] }
 0xf16   :  { %v7385_v23 = vmul.f32 -1.442695, %v3797_v27  ;;  %v3798_v18 = vadd.f32 %v3723_v63, %v2454_v43  ;;  %v3800_v52 = vadd.f32 %v3794_v38, %v2567_v46  ;;  %v10698_v43 = vld [vmem:[#allocation11 + $0x118] sm:$0xff]  ;;  %v10702_v27 = vld [vmem:[#allocation11 + $0x100] sm:$0xff]  ;;  %v10704_v63 = vld [vmem:[#allocation11 + $0x110] sm:$0xff] }
 0xf17   :  { %v10720_v38 = vld [vmem:[#allocation11 + $0xc8] sm:$0xff]  ;;  %v10726_v46 = vld [vmem:[#allocation11 + $0xc0] sm:$0xff] }
 0xf18   :  { %7747 = vpow2.f32 %v7385_v23  ;;  %v7386_v34 = vmul.f32 -1.442695, %v3798_v18  ;;  %v7387_v9 = vmul.f32 -1.442695, %v3800_v52  ;;  %v10708_v23 = vld [vmem:[#allocation11 + $0xe8] sm:$0xff]  ;;  %v10710_v18 = vld [vmem:[#allocation11 + $0xf8] sm:$0xff] }
 0xf19   :  { %v10728_v52 = vld [vmem:[#allocation11 + $0xd0] sm:$0xff] }
 0xf1a   :  { %7749 = vpow2.f32 %v7386_v34  ;;  %v10716_v34 = vld [vmem:[#allocation11 + $0xf0] sm:$0xff] }
 0xf1b   :  { %7751 = vtanh.f32 %v3799_v57  ;;  %v10738_v57 = vld [vmem:[#allocation11 + $0xa0] sm:$0xff] }
 0xf1c   :  { %7753 = vpow2.f32 %v7387_v9  ;;  %v10740_v9 = vld [vmem:[#allocation11 + $0xb0] sm:$0xff] }
 0xf25   :  { %v7748_v40 = vpop.eup %7747 }
 0xf26   :  { %v3804_v56 = vadd.f32 1.0, %v7748_v40  ;;  %v10744_v40 = vld [vmem:[#allocation11 + $0x88] sm:$0xff] }
 0xf27   :  { %v7750_v16 = vpop.eup %7749 }
 0xf28   :  { %7755 = vrcp.f32 %v3804_v56  ;;  %v3810_v61 = vadd.f32 1.0, %v7750_v16  ;;  %v7752_v10 = vpop.eup %7751  ;;  %v10746_v56 = vld [vmem:[#allocation11 + $0x98] sm:$0xff]  ;;  %v10750_v16 = vld [vmem:[#allocation11 + $0x80] sm:$0xff] }
 0xf29   :  { %v7754_v13 = vpop.eup %7753  ;;  %13531 = vst [vmem:[#allocation47_spill] sm:$0xff] %v10746_v56  ;;  %13532 = vst [vmem:[#allocation23_spill] sm:$0xff] %v10750_v16 }
 0xf2a   :  { %7757 = vrcp.f32 %v3810_v61  ;;  %v3817_v6 = vadd.f32 1.0, %v7754_v13  ;;  %v10752_v61 = vld [vmem:[#allocation11 + $0x90] sm:$0xff]  ;;  %v10758_v13 = vld [vmem:[#allocation11 + $0x78] sm:$0xff] }
 0xf2b   :  { %13533 = vst [vmem:[#allocation46_spill] sm:$0xff] %v10752_v61  ;;  %13535 = vst [vmem:[#allocation49_spill] sm:$0xff] %v10758_v13 }
 0xf2c   :  { %7759 = vrcp.f32 %v3817_v6  ;;  %v10770_v6 = vld [vmem:[#allocation11 + $0x58] sm:$0xff] }
 0xf2d   :  { %13539 = vst [vmem:[#allocation38_spill] sm:$0xff] %v10770_v6 }
 0xf35   :  { %v7756_v8 = vpop.eup %7755 }
 0xf36   :  { %v3821_v54 = vmul.f32 %v7756_v8, %v7752_v10  ;;  %v10756_v10 = vld [vmem:[#allocation11 + $0x68] sm:$0xff]  ;;  %v10762_v8 = vld [vmem:[#allocation11 + $0x60] sm:$0xff] }
 0xf37   :  { %v7758_v4 = vpop.eup %7757  ;;  %13534 = vst [vmem:[#allocation24_spill] sm:$0xff] %v10756_v10  ;;  %13536 = vst [vmem:[#allocation30_spill] sm:$0xff] %v10762_v8 }
 0xf38   :  { %v3820_v24 = vmul.f32 %v7758_v4, %v10537_v42  ;;  %v10632_v42 = vld [vmem:[#allocation11 + $0x1d0] sm:$0xff]  ;;  %v10768_v4 = vld [vmem:[#allocation11 + $0x48] sm:$0xff] }
 0xf39   :  { %v7760_v59 = vpop.eup %7759  ;;  %13538 = vst [vmem:[#allocation39_spill] sm:$0xff] %v10768_v4 }
 0xf3a   :  { %v10619_v47 = vadd.f32 %v3821_v54, %v3820_v24  ;;  %v10764_v54 = vld [vmem:[#allocation11 + $0x70] sm:$0xff]  ;;  %v10774_v24 = vld [vmem:[#allocation11 + $0x40] sm:$0xff] }
 0xf3b   :  { %13537 = vst [vmem:[#allocation32_spill] sm:$0xff] %v10764_v54  ;;  %13540 = vst [vmem:[#allocation58_spill] sm:$0xff] %v10774_v24 }
 0xf3c   :  { %13530 = vst [vmem:[#allocation69_spill] sm:$0xff] %v10619_v47  ;;  %7761 = vtanh.f32 %v10619_v47  ;;  %v10786_v47 = vld [vmem:[#allocation11 + $0x20] sm:$0xff] }
 0xf3d   :  { %13544 = vst [vmem:[#allocation26_spill] sm:$0xff] %v10786_v47 }
 0xf49   :  { %v7762_v60 = vpop.eup %7761 }
 0xf4a   :  { %v3824_v0 = vmul.f32 %v7762_v60, %v7760_v59  ;;  %v10776_v59 = vld [vmem:[#allocation11 + $0x50] sm:$0xff]  ;;  %v10780_v60 = vld [vmem:[#allocation11 + $0x28] sm:$0xff] }
 0xf4b   :  { %13541 = vst [vmem:[#allocation72_spill] sm:$0xff] %v10776_v59  ;;  %13542 = vst [vmem:[#allocation71_spill] sm:$0xff] %v10780_v60 }
 0xf4c   :  { %3894 = vmatmul.mubr.f32.vlgmr.msra.gmra.mxu0 %v3824_v0  ;;  %3965 = vmatmul.mubr.f32.vlgmr.msra.gmra.mxu1 %v3824_v0  ;;  %v10782_v0 = vld [vmem:[#allocation11 + $0x38] sm:$0xff] }
 0xf4d   :  { %4021 = vmatpush1.msra.mxu0 %v10622_v50  ;;  %4092 = vmatpush1.msra.mxu1 %v10624_v32  ;;  %13543 = vst [vmem:[#allocation57_spill] sm:$0xff] %v10782_v0 }
 0xf4e   :  { %4022 = vmatprep.subr.mxu0 %v10626_v14  ;;  %4093 = vmatprep.subr.mxu1 %v10628_v22 }
 0xf4f   :  { %4023 = vmatpush1.msra.mxu0 %v10630_v15  ;;  %4094 = vmatpush1.msra.mxu1 %v10632_v42 }
 0xf50   :  { %4024 = vmatprep.subr.mxu0 %v10636_v48  ;;  %4095 = vmatprep.subr.mxu1 %v10638_v62 }
 0xf51   :  { %4025 = vmatpush1.msra.mxu0 %v10642_v12  ;;  %4096 = vmatpush1.msra.mxu1 %v10644_v11 }
 0xf52   :  { %4026 = vmatprep.subr.mxu0 %v10648_v5  ;;  %4097 = vmatprep.subr.mxu1 %v10650_v36 }
 0xf53   :  { %4027 = vmatpush1.msra.mxu0 %v10654_v30  ;;  %4098 = vmatpush1.msra.mxu1 %v10656_v2 }
 0xf54   :  { %4028 = vmatprep.subr.mxu0 %v10660_v3  ;;  %4099 = vmatprep.subr.mxu1 %v10662_v44 }
 0xf55   :  { %4029 = vmatpush1.msra.mxu0 %v10666_v17  ;;  %4100 = vmatpush1.msra.mxu1 %v10668_v21 }
 0xf56   :  { %4030 = vmatprep.subr.mxu0 %v10672_v25  ;;  %4101 = vmatprep.subr.mxu1 %v10674_v29 }
 0xf57   :  { %4031 = vmatpush1.msra.mxu0 %v10678_v33  ;;  %4102 = vmatpush1.msra.mxu1 %v10680_v37 }
 0xf58   :  { %4032 = vmatprep.subr.mxu0 %v10684_v41  ;;  %4103 = vmatprep.subr.mxu1 %v10686_v49 }
 0xf59   :  { %4033 = vmatpush1.msra.mxu0 %v10690_v31  ;;  %4104 = vmatpush1.msra.mxu1 %v10692_v35 }
 0xf5a   :  { %4034 = vmatprep.subr.mxu0 %v10696_v39  ;;  %4105 = vmatprep.subr.mxu1 %v10698_v43 }
 0xf5b   :  { %4035 = vmatpush1.msra.mxu0 %v10702_v27  ;;  %4106 = vmatpush1.msra.mxu1 %v10704_v63 }
 0xf5c   :  { %4036 = vmatprep.subr.mxu0 %v10708_v23  ;;  %4107 = vmatprep.subr.mxu1 %v10710_v18 }
 0xf5d   :  { %4037 = vmatpush1.msra.mxu0 %v10714_v28  ;;  %4108 = vmatpush1.msra.mxu1 %v10716_v34 }
 0xf5e   :  { %4038 = vmatprep.subr.mxu0 %v10720_v38  ;;  %4109 = vmatprep.subr.mxu1 %v10722_v1 }
 0xf5f   :  { %4039 = vmatpush1.msra.mxu0 %v10726_v46  ;;  %4110 = vmatpush1.msra.mxu1 %v10728_v52 }
 0xf60   :  { %4040 = vmatprep.subr.mxu0 %v10732_v20  ;;  %4111 = vmatprep.subr.mxu1 %v10734_v26 }
 0xf61   :  { %4041 = vmatpush1.msra.mxu0 %v10738_v57  ;;  %4112 = vmatpush1.msra.mxu1 %v10740_v9 }
 0xf62   :  { %4042 = vmatprep.subr.mxu0 %v10744_v40  ;;  %4113 = vmatprep.subr.mxu1 %v10746_v56 }
 0xf63   :  { %4043 = vmatpush1.msra.mxu0 %v10750_v16  ;;  %4114 = vmatpush1.msra.mxu1 %v10752_v61 }
 0xf64   :  { %4044 = vmatprep.subr.mxu0 %v10756_v10  ;;  %4115 = vmatprep.subr.mxu1 %v10758_v13 }
 0xf65   :  { %4045 = vmatpush1.msra.mxu0 %v10762_v8  ;;  %4116 = vmatpush1.msra.mxu1 %v10764_v54 }
 0xf66   :  { %4046 = vmatprep.subr.mxu0 %v10768_v4  ;;  %4117 = vmatprep.subr.mxu1 %v10770_v6  ;;  %v10802_v6 = vld [vmem:[#allocation11 + $0x10] sm:$0xff] }
 0xf67   :  { %4047 = vmatpush1.msra.mxu0 %v10774_v24  ;;  %4118 = vmatpush1.msra.mxu1 %v10776_v59  ;;  %13549 = vst [vmem:[#allocation34_spill] sm:$0xff] %v10802_v6 }
 0xf68   :  { %4048 = vmatprep.subr.mxu0 %v10780_v60  ;;  %4119 = vmatprep.subr.mxu1 %v10782_v0  ;;  %v13550_v0 = vld [vmem:[#allocation48_spill] sm:$0xff] }
 0xf69   :  { %4049 = vmatpush1.msra.mxu0 %v10786_v47  ;;  %4120 = vmatpush1.msra.mxu1 %v10788_v19 }
 0xf6a   :  { %4050 = vmatprep.subr.mxu0 %v10792_v58  ;;  %4121 = vmatprep.subr.mxu1 %v10794_v51 }
 0xf6b   :  { %4051 = vmatpush1.msra.mxu0 %v10798_v7  ;;  %4084 = vmatprep.mubr.f32.mxu0 %v13522_v45 }
 0xf6c   :  { %4122 = vmatpush1.msra.mxu1 %v10802_v6  ;;  %4155 = vmatprep.mubr.f32.mxu1 %v13522_v45 }
 0xf6d   :  { %4085 = vmatmul.mubr.f32.vlgmr.msra.gmra.mxu0 %v13550_v0  ;;  %4156 = vmatmul.mubr.f32.vlgmr.msra.gmra.mxu1 %v13550_v0  ;;  %v13551_v0 = vld [vmem:[#allocation38_spill] sm:$0xff] }
 0xf6e   :  { %4191 = vmatprep.subr.mxu0 %v10604_v55  ;;  %4262 = vmatprep.subr.mxu1 %v10606_v53 }
 0xf6f   :  { %4192 = vmatpush1.msra.mxu0 %v10622_v50  ;;  %4263 = vmatpush1.msra.mxu1 %v10624_v32 }
 0xf70   :  { %4193 = vmatprep.subr.mxu0 %v10626_v14  ;;  %4264 = vmatprep.subr.mxu1 %v10628_v22 }
 0xf71   :  { %4194 = vmatpush1.msra.mxu0 %v10630_v15  ;;  %4265 = vmatpush1.msra.mxu1 %v10632_v42 }
 0xf72   :  { %4195 = vmatprep.subr.mxu0 %v10636_v48  ;;  %4266 = vmatprep.subr.mxu1 %v10638_v62 }
 0xf73   :  { %4196 = vmatpush1.msra.mxu0 %v10642_v12  ;;  %4267 = vmatpush1.msra.mxu1 %v10644_v11 }
 0xf74   :  { %4197 = vmatprep.subr.mxu0 %v10648_v5  ;;  %4268 = vmatprep.subr.mxu1 %v10650_v36 }
 0xf75   :  { %4198 = vmatpush1.msra.mxu0 %v10654_v30  ;;  %4269 = vmatpush1.msra.mxu1 %v10656_v2 }
 0xf76   :  { %4199 = vmatprep.subr.mxu0 %v10660_v3  ;;  %4270 = vmatprep.subr.mxu1 %v10662_v44 }
 0xf77   :  { %4200 = vmatpush1.msra.mxu0 %v10666_v17  ;;  %4271 = vmatpush1.msra.mxu1 %v10668_v21 }
 0xf78   :  { %4201 = vmatprep.subr.mxu0 %v10672_v25  ;;  %4272 = vmatprep.subr.mxu1 %v10674_v29 }
 0xf79   :  { %4202 = vmatpush1.msra.mxu0 %v10678_v33  ;;  %4273 = vmatpush1.msra.mxu1 %v10680_v37 }
 0xf7a   :  { %4203 = vmatprep.subr.mxu0 %v10684_v41  ;;  %4274 = vmatprep.subr.mxu1 %v10686_v49 }
 0xf7b   :  { %4204 = vmatpush1.msra.mxu0 %v10690_v31  ;;  %4275 = vmatpush1.msra.mxu1 %v10692_v35 }
 0xf7c   :  { %4205 = vmatprep.subr.mxu0 %v10696_v39  ;;  %4276 = vmatprep.subr.mxu1 %v10698_v43 }
 0xf7d   :  { %4206 = vmatpush1.msra.mxu0 %v10702_v27  ;;  %4277 = vmatpush1.msra.mxu1 %v10704_v63 }
 0xf7e   :  { %4207 = vmatprep.subr.mxu0 %v10708_v23  ;;  %4278 = vmatprep.subr.mxu1 %v10710_v18 }
 0xf7f   :  { %4208 = vmatpush1.msra.mxu0 %v10714_v28  ;;  %4279 = vmatpush1.msra.mxu1 %v10716_v34 }
 0xf80   :  { %4209 = vmatprep.subr.mxu0 %v10720_v38  ;;  %4280 = vmatprep.subr.mxu1 %v10722_v1 }
 0xf81   :  { %4210 = vmatpush1.msra.mxu0 %v10726_v46  ;;  %4281 = vmatpush1.msra.mxu1 %v10728_v52 }
 0xf82   :  { %4211 = vmatprep.subr.mxu0 %v10732_v20  ;;  %4282 = vmatprep.subr.mxu1 %v10734_v26 }
 0xf83   :  { %4212 = vmatpush1.msra.mxu0 %v10738_v57  ;;  %4283 = vmatpush1.msra.mxu1 %v10740_v9 }
 0xf84   :  { %4213 = vmatprep.subr.mxu0 %v10744_v40  ;;  %4284 = vmatprep.subr.mxu1 %v10746_v56 }
 0xf85   :  { %4214 = vmatpush1.msra.mxu0 %v10750_v16  ;;  %4285 = vmatpush1.msra.mxu1 %v10752_v61  ;;  %v13552_v16 = vld [vmem:[#allocation57_spill] sm:$0xff] }
 0xf86   :  { %4215 = vmatprep.subr.mxu0 %v10756_v10  ;;  %4286 = vmatprep.subr.mxu1 %v10758_v13 }
 0xf87   :  { %4216 = vmatpush1.msra.mxu0 %v10762_v8  ;;  %4287 = vmatpush1.msra.mxu1 %v10764_v54  ;;  %v13559_v54 = vld [vmem:[#allocation81_spill] sm:$0xff]  ;;  %v13560_v8 = vld [vmem:[#allocation80_spill] sm:$0xff] }
 0xf88   :  { %4217 = vmatprep.subr.mxu0 %v10768_v4  ;;  %4288 = vmatprep.subr.mxu1 %v13551_v0  ;;  %v13557_v0 = vld [vmem:[#allocation77_spill] sm:$0xff] }
 0xf89   :  { %4218 = vmatpush1.msra.mxu0 %v10774_v24  ;;  %4289 = vmatpush1.msra.mxu1 %v10776_v59  ;;  %v13556_v59 = vld [vmem:[#allocation78_spill] sm:$0xff] }
 0xf8a   :  { %4219 = vmatprep.subr.mxu0 %v10780_v60  ;;  %4290 = vmatprep.subr.mxu1 %v13552_v16  ;;  %v13553_v16 = vld [vmem:[#allocation74_spill] sm:$0xff] }
 0xf8b   :  { %4220 = vmatpush1.msra.mxu0 %v10786_v47  ;;  %4291 = vmatpush1.msra.mxu1 %v10788_v19  ;;  %v13554_v47 = vld [vmem:[#allocation76_spill] sm:$0xff]  ;;  %v13555_v19 = vld [vmem:[#allocation82_spill] sm:$0xff] }
 0xf8c   :  { %4221 = vmatprep.subr.mxu0 %v10792_v58  ;;  %4292 = vmatprep.subr.mxu1 %v10794_v51  ;;  %v2458_v60 = vadd.f32 %v13554_v47, %v13553_v16  ;;  %v2571_v58 = vadd.f32 %v13556_v59, %v13555_v19 }
 0xf8d   :  { %4222 = vmatpush1.msra.mxu0 %v10798_v7  ;;  %4255 = vmatprep.mubr.f32.mxu0 %v13522_v45  ;;  %v13558_v7 = vld [vmem:[#allocation79_spill] sm:$0xff] }
 0xf8e   :  { %4293 = vmatpush1.msra.mxu1 %v10802_v6  ;;  %4326 = vmatprep.mubr.f32.mxu1 %v13522_v45  ;;  %v2460_v4 = vadd.f32 %v13558_v7, %v13557_v0  ;;  %v2573_v6 = vadd.f32 %v13560_v8, %v13559_v54  ;;  %v13566_v0 = vld [vmem:[#allocation69_spill] sm:$0xff] }
 0xf8f   :  { %4362 = vmatprep.subr.mxu0 %v10604_v55  ;;  %4433 = vmatprep.subr.mxu1 %v10606_v53 }
0x100c   :  { %v3895_v24 = vpop.f32.mrf.mxu0  ;;  %v3966_v51 = vpop.f32.mrf.mxu1 }
0x100d   :  { %v3971_v13 = vadd.f32 %v3895_v24, %v2458_v60  ;;  %v3973_v45 = vadd.f32 %v3966_v51, %v2571_v58  ;;  %v484_v51 = vld [vmem:[%s12641_s8] sm:$0xf]  ;;  %v13562_v58 = vld [vmem:[#allocation45_spill] sm:$0xff] }
0x100e   :  { %v3897_v10 = vpop.f32.mrf.mxu0  ;;  %v3968_v55 = vpop.f32.mrf.mxu1  ;;  %v10894_v8 = vrot.slane %v484_v51, %v13562_v58 }
0x100f   :  { %v7388_v61 = vmul.f32 -1.442695, %v3971_v13  ;;  %v3972_v53 = vadd.f32 %v3897_v10, %v2460_v4  ;;  %v10888_v56 = vadd.f32 %v3968_v55, %v2573_v6  ;;  %v13564_v10 = vld [vmem:[#allocation56_spill] sm:$0xff] }
0x1010   :  { %13563 = vst [vmem:[#allocation64_spill] sm:$0xff] %v10894_v8  ;;  %v10897_v55 = vrot.slane %v484_v51, %v13564_v10 }
0x1011   :  { %13561 = vst [vmem:[#allocation35_spill] sm:$0xff] %v10888_v56  ;;  %7763 = vpow2.f32 %v7388_v61  ;;  %v7389_v47 = vmul.f32 -1.442695, %v3972_v53 }
0x1012   :  { %13565 = vst [vmem:[#allocation43_spill] sm:$0xff] %v10897_v55 }
0x1013   :  { %7765 = vpow2.f32 %v7389_v47 }
0x1014   :  { %7767 = vtanh.f32 %v3973_v45 }
0x101e   :  { %v7764_v19 = vpop.eup %7763 }
0x101f   :  { %v3978_v16 = vadd.f32 1.0, %v7764_v19 }
0x1020   :  { %v7766_v59 = vpop.eup %7765 }
0x1021   :  { %7769 = vrcp.f32 %v3978_v16  ;;  %v3984_v7 = vadd.f32 1.0, %v7766_v59  ;;  %v7768_v61 = vpop.eup %7767 }
0x1023   :  { %7771 = vrcp.f32 %v3984_v7  ;;  %v13568_v7 = vld [vmem:[#allocation63_spill] sm:$0xff] }
0x1024   :  { %v10905_v10 = vrot.slane %v484_v51, %v13568_v7 }
0x102d   :  { %v4086_v53 = vpop.f32.mrf.mxu0  ;;  %v4157_v19 = vpop.f32.mrf.mxu1 }
0x102e   :  { %v7770_v13 = vpop.eup %7769  ;;  %v4162_v54 = vadd.f32 %v4086_v53, %v10894_v8 }
0x102f   :  { %v3995_v4 = vmul.f32 %v7770_v13, %v7768_v61  ;;  %v4088_v45 = vpop.f32.mrf.mxu0  ;;  %v4159_v58 = vpop.f32.mrf.mxu1  ;;  %v13569_v61 = vld [vmem:[#allocation62_spill] sm:$0xff] }
0x1030   :  { %v7772_v6 = vpop.eup %7771  ;;  %v7391_v24 = vmul.f32 -1.442695, %v4162_v54  ;;  %v4163_v60 = vadd.f32 %v4088_v45, %v10897_v55  ;;  %v4165_v53 = vadd.f32 %v4159_v58, %v10905_v10  ;;  %v10909_v13 = vrot.slane %v484_v51, %v13569_v61 }
0x1031   :  { %v3994_v47 = vmul.f32 %v7772_v6, %v13566_v0 }
0x1032   :  { %7773 = vpow2.f32 %v7391_v24  ;;  %v7392_v16 = vmul.f32 -1.442695, %v4163_v60  ;;  %v7393_v54 = vmul.f32 -1.442695, %v4165_v53  ;;  %v4164_v45 = vadd.f32 %v4157_v19, %v10909_v13 }
0x1033   :  { %v10902_v59 = vadd.f32 %v3995_v4, %v3994_v47 }
0x1034   :  { %7775 = vpow2.f32 %v7392_v16 }
0x1035   :  { %13567 = vst [vmem:[#allocation44_spill] sm:$0xff] %v10902_v59  ;;  %7777 = vpow2.f32 %v7393_v54  ;;  %v13570_v59 = vld [vmem:[#allocation25_spill] sm:$0xff]  ;;  %v13574_v54 = vld [vmem:[#allocation46_spill] sm:$0xff] }
0x103f   :  { %v7774_v56 = vpop.eup %7773 }
0x1040   :  { %v4169_v6 = vadd.f32 1.0, %v7774_v56 }
0x1041   :  { %v7776_v24 = vpop.eup %7775 }
0x1042   :  { %7779 = vrcp.f32 %v4169_v6  ;;  %v4175_v4 = vadd.f32 1.0, %v7776_v24  ;;  %v7778_v60 = vpop.eup %7777  ;;  %v13576_v6 = vld [vmem:[#allocation49_spill] sm:$0xff]  ;;  %v13577_v24 = vld [vmem:[#allocation30_spill] sm:$0xff] }
0x1043   :  { %7781 = vtanh.f32 %v4164_v45  ;;  %v4182_v7 = vadd.f32 1.0, %v7778_v60  ;;  %v13575_v45 = vld [vmem:[#allocation24_spill] sm:$0xff]  ;;  %v13579_v60 = vld [vmem:[#allocation39_spill] sm:$0xff] }
0x1044   :  { %7783 = vrcp.f32 %v4175_v4  ;;  %v13578_v4 = vld [vmem:[#allocation32_spill] sm:$0xff] }
0x1045   :  { %7785 = vrcp.f32 %v4182_v7  ;;  %v13573_v7 = vld [vmem:[#allocation23_spill] sm:$0xff] }
0x104f   :  { %v7780_v0 = vpop.eup %7779 }
0x1050   :  { %v7782_v47 = vpop.eup %7781 }
0x1051   :  { %v7784_v16 = vpop.eup %7783  ;;  %v4186_v58 = vmul.f32 %v7782_v47, %v7780_v0  ;;  %v13580_v0 = vld [vmem:[#allocation38_spill] sm:$0xff] }
0x1052   :  { %v4185_v51 = vmul.f32 %v7784_v16, %v13570_v59  ;;  %v7786_v56 = vpop.eup %7785  ;;  %v13572_v59 = vld [vmem:[#allocation47_spill] sm:$0xff]  ;;  %v13581_v47 = vld [vmem:[#allocation58_spill] sm:$0xff]  ;;  %v13582_v16 = vld [vmem:[#allocation72_spill] sm:$0xff] }
0x1054   :  { %v10913_v61 = vadd.f32 %v4186_v58, %v4185_v51  ;;  %v13583_v58 = vld [vmem:[#allocation71_spill] sm:$0xff]  ;;  %v13584_v51 = vld [vmem:[#allocation57_spill] sm:$0xff] }
0x1056   :  { %7787 = vtanh.f32 %v10913_v61 }
0x1063   :  { %v7788_v19 = vpop.eup %7787 }
0x1064   :  { %v10916_v53 = vmul.f32 %v7788_v19, %v7786_v56  ;;  %v13585_v56 = vld [vmem:[#allocation26_spill] sm:$0xff]  ;;  %v13586_v19 = vld [vmem:[#allocation27_spill] sm:$0xff] }
0x1066   :  { %13571 = vst [vmem:[#allocation51_spill] sm:$0xff] %v10916_v53  ;;  %4256 = vmatmul.mubr.f32.vlgmr.msra.gmra.mxu0 %v10916_v53  ;;  %4327 = vmatmul.mubr.f32.vlgmr.msra.gmra.mxu1 %v10916_v53  ;;  %v13587_v53 = vld [vmem:[#allocation75_spill] sm:$0xff] }
0x1067   :  { %4363 = vmatpush1.msra.mxu0 %v10622_v50  ;;  %4434 = vmatpush1.msra.mxu1 %v10624_v32 }
0x1068   :  { %4364 = vmatprep.subr.mxu0 %v10626_v14  ;;  %4435 = vmatprep.subr.mxu1 %v10628_v22 }
0x1069   :  { %4365 = vmatpush1.msra.mxu0 %v10630_v15  ;;  %4436 = vmatpush1.msra.mxu1 %v10632_v42 }
0x106a   :  { %4366 = vmatprep.subr.mxu0 %v10636_v48  ;;  %4437 = vmatprep.subr.mxu1 %v10638_v62 }
0x106b   :  { %4367 = vmatpush1.msra.mxu0 %v10642_v12  ;;  %4438 = vmatpush1.msra.mxu1 %v10644_v11 }
0x106c   :  { %4368 = vmatprep.subr.mxu0 %v10648_v5  ;;  %4439 = vmatprep.subr.mxu1 %v10650_v36 }
0x106d   :  { %4369 = vmatpush1.msra.mxu0 %v10654_v30  ;;  %4440 = vmatpush1.msra.mxu1 %v10656_v2 }
0x106e   :  { %4370 = vmatprep.subr.mxu0 %v10660_v3  ;;  %4441 = vmatprep.subr.mxu1 %v10662_v44 }
0x106f   :  { %4371 = vmatpush1.msra.mxu0 %v10666_v17  ;;  %4442 = vmatpush1.msra.mxu1 %v10668_v21 }
0x1070   :  { %4372 = vmatprep.subr.mxu0 %v10672_v25  ;;  %4443 = vmatprep.subr.mxu1 %v10674_v29 }
0x1071   :  { %4373 = vmatpush1.msra.mxu0 %v10678_v33  ;;  %4444 = vmatpush1.msra.mxu1 %v10680_v37 }
0x1072   :  { %4374 = vmatprep.subr.mxu0 %v10684_v41  ;;  %4445 = vmatprep.subr.mxu1 %v10686_v49 }
0x1073   :  { %4375 = vmatpush1.msra.mxu0 %v10690_v31  ;;  %4446 = vmatpush1.msra.mxu1 %v10692_v35 }
0x1074   :  { %4376 = vmatprep.subr.mxu0 %v10696_v39  ;;  %4447 = vmatprep.subr.mxu1 %v10698_v43 }
0x1075   :  { %4377 = vmatpush1.msra.mxu0 %v10702_v27  ;;  %4448 = vmatpush1.msra.mxu1 %v10704_v63 }
0x1076   :  { %4378 = vmatprep.subr.mxu0 %v10708_v23  ;;  %4449 = vmatprep.subr.mxu1 %v10710_v18 }
0x1077   :  { %4379 = vmatpush1.msra.mxu0 %v10714_v28  ;;  %4450 = vmatpush1.msra.mxu1 %v10716_v34 }
0x1078   :  { %4380 = vmatprep.subr.mxu0 %v10720_v38  ;;  %4451 = vmatprep.subr.mxu1 %v10722_v1 }
0x1079   :  { %4381 = vmatpush1.msra.mxu0 %v10726_v46  ;;  %4452 = vmatpush1.msra.mxu1 %v10728_v52 }
0x107a   :  { %4382 = vmatprep.subr.mxu0 %v10732_v20  ;;  %4453 = vmatprep.subr.mxu1 %v10734_v26 }
0x107b   :  { %4383 = vmatpush1.msra.mxu0 %v10738_v57  ;;  %4454 = vmatpush1.msra.mxu1 %v10740_v9 }
0x107c   :  { %4384 = vmatprep.subr.mxu0 %v10744_v40  ;;  %4455 = vmatprep.subr.mxu1 %v13572_v59 }
0x107d   :  { %4385 = vmatpush1.msra.mxu0 %v13573_v7  ;;  %4456 = vmatpush1.msra.mxu1 %v13574_v54 }
0x107e   :  { %4386 = vmatprep.subr.mxu0 %v13575_v45  ;;  %4457 = vmatprep.subr.mxu1 %v13576_v6 }
0x107f   :  { %4387 = vmatpush1.msra.mxu0 %v13577_v24  ;;  %4458 = vmatpush1.msra.mxu1 %v13578_v4  ;;  %v13588_v24 = vld [vmem:[#allocation31_spill] sm:$0xff] }
0x1080   :  { %4388 = vmatprep.subr.mxu0 %v13579_v60  ;;  %4459 = vmatprep.subr.mxu1 %v13580_v0  ;;  %v13589_v4 = vld [vmem:[#allocation59_spill] sm:$0xff]  ;;  %v13590_v60 = vmov 0.0   ;;  %v13591_v0 = vld [vmem:[#allocation34_spill] sm:$0xff] }
0x1081   :  { %4389 = vmatpush1.msra.mxu0 %v13581_v47  ;;  %4460 = vmatpush1.msra.mxu1 %v13582_v16  ;;  %v13592_v16 = vld [vmem:[#allocation54_spill] sm:$0xff] }
0x1082   :  { %4390 = vmatprep.subr.mxu0 %v13583_v58  ;;  %4461 = vmatprep.subr.mxu1 %v13584_v51  ;;  %v13593_v58 = vld [vmem:[#allocation70_spill] sm:$0xff] }
0x1083   :  { %4391 = vmatpush1.msra.mxu0 %v13585_v56  ;;  %4462 = vmatpush1.msra.mxu1 %v13586_v19 }
0x1084   :  { %4392 = vmatprep.subr.mxu0 %v13587_v53  ;;  %4463 = vmatprep.subr.mxu1 %v13588_v24 }
0x1085   :  { %4393 = vmatpush1.msra.mxu0 %v13589_v4  ;;  %4426 = vmatprep.mubr.f32.mxu0 %v13590_v60 }
0x1086   :  { %4464 = vmatpush1.msra.mxu1 %v13591_v0  ;;  %4497 = vmatprep.mubr.f32.mxu1 %v13590_v60 }
0x1087   :  { %4533 = vmatprep.subr.mxu0 %v13592_v16  ;;  %4604 = vmatprep.subr.mxu1 %v13593_v58 }
0x1126   :  { %v4257_v51 = vpop.f32.mrf.mxu0  ;;  %v4328_v24 = vpop.f32.mrf.mxu1 }
0x1127   :  { %v4333_v56 = vadd.f32 %v4257_v51, %v10894_v8  ;;  %v4335_v16 = vadd.f32 %v4328_v24, %v10909_v13 }
0x1128   :  { %v4259_v19 = vpop.f32.mrf.mxu0  ;;  %v4330_v6 = vpop.f32.mrf.mxu1 }
0x1129   :  { %v7394_v47 = vmul.f32 -1.442695, %v4333_v56  ;;  %v4334_v53 = vadd.f32 %v4259_v19, %v10897_v55  ;;  %v4336_v0 = vadd.f32 %v4330_v6, %v10905_v10 }
0x112b   :  { %7789 = vpow2.f32 %v7394_v47  ;;  %v7395_v4 = vmul.f32 -1.442695, %v4334_v53  ;;  %v7396_v45 = vmul.f32 -1.442695, %v4336_v0  ;;  %v13599_v0 = vld [vmem:[#allocation32_spill] sm:$0xff] }
0x112d   :  { %7791 = vpow2.f32 %v7395_v4 }
0x112e   :  { %7793 = vpow2.f32 %v7396_v45 }
0x1138   :  { %v7790_v60 = vpop.eup %7789 }
0x1139   :  { %v4340_v54 = vadd.f32 1.0, %v7790_v60 }
0x113a   :  { %v7792_v58 = vpop.eup %7791 }
0x113b   :  { %7795 = vrcp.f32 %v4340_v54  ;;  %v4346_v51 = vadd.f32 1.0, %v7792_v58  ;;  %v7794_v56 = vpop.eup %7793  ;;  %v13598_v54 = vld [vmem:[#allocation30_spill] sm:$0xff] }
0x113c   :  { %7797 = vtanh.f32 %v4335_v16  ;;  %v4353_v53 = vadd.f32 1.0, %v7794_v56  ;;  %v13600_v16 = vld [vmem:[#allocation39_spill] sm:$0xff]  ;;  %v13601_v58 = vld [vmem:[#allocation38_spill] sm:$0xff]  ;;  %v13603_v56 = vld [vmem:[#allocation72_spill] sm:$0xff] }
0x113d   :  { %7799 = vrcp.f32 %v4346_v51  ;;  %v13602_v51 = vld [vmem:[#allocation58_spill] sm:$0xff] }
0x113e   :  { %7801 = vrcp.f32 %v4353_v53  ;;  %v13606_v53 = vld [vmem:[#allocation26_spill] sm:$0xff] }
0x1148   :  { %v7796_v19 = vpop.eup %7795 }
0x1149   :  { %v7798_v47 = vpop.eup %7797 }
0x114a   :  { %v7800_v55 = vpop.eup %7799  ;;  %v4357_v4 = vmul.f32 %v7798_v47, %v7796_v19  ;;  %v13604_v19 = vld [vmem:[#allocation71_spill] sm:$0xff]  ;;  %v13605_v47 = vld [vmem:[#allocation57_spill] sm:$0xff] }
0x114b   :  { %v4356_v8 = vmul.f32 %v7800_v55, %v10913_v61  ;;  %v7802_v24 = vpop.eup %7801  ;;  %v13596_v55 = vld [vmem:[#allocation24_spill] sm:$0xff]  ;;  %v13597_v61 = vld [vmem:[#allocation49_spill] sm:$0xff] }
0x114d   :  { %v10991_v6 = vadd.f32 %v4357_v4, %v4356_v8  ;;  %v13595_v8 = vld [vmem:[#allocation46_spill] sm:$0xff]  ;;  %v13607_v4 = vld [vmem:[#allocation27_spill] sm:$0xff] }
0x114f   :  { %7803 = vtanh.f32 %v10991_v6 }
0x115c   :  { %v7804_v60 = vpop.eup %7803 }
0x115d   :  { %v10994_v45 = vmul.f32 %v7804_v60, %v7802_v24  ;;  %v13608_v24 = vld [vmem:[#allocation75_spill] sm:$0xff] }
0x115e   :  { %v13609_v60 = vld [vmem:[#allocation31_spill] sm:$0xff] }
0x115f   :  { %13594 = vst [vmem:[#allocation50_spill] sm:$0xff] %v10994_v45  ;;  %4427 = vmatmul.mubr.f32.vlgmr.msra.gmra.mxu0 %v10994_v45  ;;  %4498 = vmatmul.mubr.f32.vlgmr.msra.gmra.mxu1 %v10994_v45  ;;  %v13610_v45 = vld [vmem:[#allocation59_spill] sm:$0xff] }
0x1160   :  { %4534 = vmatpush1.msra.mxu0 %v10622_v50  ;;  %4605 = vmatpush1.msra.mxu1 %v10624_v32 }
0x1161   :  { %4535 = vmatprep.subr.mxu0 %v10626_v14  ;;  %4606 = vmatprep.subr.mxu1 %v10628_v22 }
0x1162   :  { %4536 = vmatpush1.msra.mxu0 %v10630_v15  ;;  %4607 = vmatpush1.msra.mxu1 %v10632_v42 }
0x1163   :  { %4537 = vmatprep.subr.mxu0 %v10636_v48  ;;  %4608 = vmatprep.subr.mxu1 %v10638_v62 }
0x1164   :  { %4538 = vmatpush1.msra.mxu0 %v10642_v12  ;;  %4609 = vmatpush1.msra.mxu1 %v10644_v11 }
0x1165   :  { %4539 = vmatprep.subr.mxu0 %v10648_v5  ;;  %4610 = vmatprep.subr.mxu1 %v10650_v36 }
0x1166   :  { %4540 = vmatpush1.msra.mxu0 %v10654_v30  ;;  %4611 = vmatpush1.msra.mxu1 %v10656_v2 }
0x1167   :  { %4541 = vmatprep.subr.mxu0 %v10660_v3  ;;  %4612 = vmatprep.subr.mxu1 %v10662_v44 }
0x1168   :  { %4542 = vmatpush1.msra.mxu0 %v10666_v17  ;;  %4613 = vmatpush1.msra.mxu1 %v10668_v21 }
0x1169   :  { %4543 = vmatprep.subr.mxu0 %v10672_v25  ;;  %4614 = vmatprep.subr.mxu1 %v10674_v29 }
0x116a   :  { %4544 = vmatpush1.msra.mxu0 %v10678_v33  ;;  %4615 = vmatpush1.msra.mxu1 %v10680_v37 }
0x116b   :  { %4545 = vmatprep.subr.mxu0 %v10684_v41  ;;  %4616 = vmatprep.subr.mxu1 %v10686_v49 }
0x116c   :  { %4546 = vmatpush1.msra.mxu0 %v10690_v31  ;;  %4617 = vmatpush1.msra.mxu1 %v10692_v35 }
0x116d   :  { %4547 = vmatprep.subr.mxu0 %v10696_v39  ;;  %4618 = vmatprep.subr.mxu1 %v10698_v43 }
0x116e   :  { %4548 = vmatpush1.msra.mxu0 %v10702_v27  ;;  %4619 = vmatpush1.msra.mxu1 %v10704_v63 }
0x116f   :  { %4549 = vmatprep.subr.mxu0 %v10708_v23  ;;  %4620 = vmatprep.subr.mxu1 %v10710_v18 }
0x1170   :  { %4550 = vmatpush1.msra.mxu0 %v10714_v28  ;;  %4621 = vmatpush1.msra.mxu1 %v10716_v34 }
0x1171   :  { %4551 = vmatprep.subr.mxu0 %v10720_v38  ;;  %4622 = vmatprep.subr.mxu1 %v10722_v1 }
0x1172   :  { %4552 = vmatpush1.msra.mxu0 %v10726_v46  ;;  %4623 = vmatpush1.msra.mxu1 %v10728_v52 }
0x1173   :  { %4553 = vmatprep.subr.mxu0 %v10732_v20  ;;  %4624 = vmatprep.subr.mxu1 %v10734_v26 }
0x1174   :  { %4554 = vmatpush1.msra.mxu0 %v10738_v57  ;;  %4625 = vmatpush1.msra.mxu1 %v10740_v9 }
0x1175   :  { %4555 = vmatprep.subr.mxu0 %v10744_v40  ;;  %4626 = vmatprep.subr.mxu1 %v13572_v59 }
0x1176   :  { %4556 = vmatpush1.msra.mxu0 %v13573_v7  ;;  %4627 = vmatpush1.msra.mxu1 %v13595_v8 }
0x1177   :  { %4557 = vmatprep.subr.mxu0 %v13596_v55  ;;  %4628 = vmatprep.subr.mxu1 %v13597_v61 }
0x1178   :  { %4558 = vmatpush1.msra.mxu0 %v13598_v54  ;;  %4629 = vmatpush1.msra.mxu1 %v13599_v0 }
0x1179   :  { %4559 = vmatprep.subr.mxu0 %v13600_v16  ;;  %4630 = vmatprep.subr.mxu1 %v13601_v58  ;;  %v13611_v16 = vmov 0.0   ;;  %v13612_v58 = vld [vmem:[#allocation34_spill] sm:$0xff] }
0x117a   :  { %4560 = vmatpush1.msra.mxu0 %v13602_v51  ;;  %4631 = vmatpush1.msra.mxu1 %v13603_v56  ;;  %v13613_v56 = vld [vmem:[#allocation54_spill] sm:$0xff] }
0x117b   :  { %4561 = vmatprep.subr.mxu0 %v13604_v19  ;;  %4632 = vmatprep.subr.mxu1 %v13605_v47  ;;  %v13614_v19 = vld [vmem:[#allocation70_spill] sm:$0xff] }
0x117c   :  { %4562 = vmatpush1.msra.mxu0 %v13606_v53  ;;  %4633 = vmatpush1.msra.mxu1 %v13607_v4  ;;  %v13615_v53 = vld [vmem:[#allocation64_spill] sm:$0xff] }
0x117d   :  { %4563 = vmatprep.subr.mxu0 %v13608_v24  ;;  %4634 = vmatprep.subr.mxu1 %v13609_v60  ;;  %v13616_v24 = vld [vmem:[#allocation43_spill] sm:$0xff] }
0x117e   :  { %4564 = vmatpush1.msra.mxu0 %v13610_v45  ;;  %4597 = vmatprep.mubr.f32.mxu0 %v13611_v16 }
0x117f   :  { %4635 = vmatpush1.msra.mxu1 %v13612_v58  ;;  %4668 = vmatprep.mubr.f32.mxu1 %v13611_v16 }
0x1180   :  { %4704 = vmatprep.subr.mxu0 %v13613_v56  ;;  %4775 = vmatprep.subr.mxu1 %v13614_v19 }
0x121f   :  { %v4428_v47 = vpop.f32.mrf.mxu0  ;;  %v4499_v60 = vpop.f32.mrf.mxu1 }
0x1220   :  { %v4504_v51 = vadd.f32 %v4428_v47, %v13615_v53  ;;  %v4506_v56 = vadd.f32 %v4499_v60, %v10909_v13  ;;  %v11161_v60 = vld [vmem:[#allocation11 + $0x1f0] sm:$0xff] }
0x1221   :  { %v4430_v4 = vpop.f32.mrf.mxu0  ;;  %v4501_v61 = vpop.f32.mrf.mxu1 }
0x1222   :  { %v7397_v0 = vmul.f32 -1.442695, %v4504_v51  ;;  %v4505_v54 = vadd.f32 %v4430_v4, %v13616_v24  ;;  %v4507_v58 = vadd.f32 %v4501_v61, %v10905_v10 }
0x1224   :  { %7805 = vpow2.f32 %v7397_v0  ;;  %v7398_v45 = vmul.f32 -1.442695, %v4505_v54  ;;  %v7399_v55 = vmul.f32 -1.442695, %v4507_v58 }
0x1226   :  { %7807 = vpow2.f32 %v7398_v45 }
0x1227   :  { %7809 = vpow2.f32 %v7399_v55 }
0x1231   :  { %v7806_v16 = vpop.eup %7805 }
0x1232   :  { %v4511_v8 = vadd.f32 1.0, %v7806_v16 }
0x1233   :  { %v7808_v19 = vpop.eup %7807 }
0x1234   :  { %7811 = vrcp.f32 %v4511_v8  ;;  %v4517_v47 = vadd.f32 1.0, %v7808_v19  ;;  %v7810_v51 = vpop.eup %7809  ;;  %v11167_v19 = vld [vmem:[#allocation11 + $0x1d8] sm:$0xff] }
0x1235   :  { %7813 = vtanh.f32 %v4506_v56  ;;  %v4524_v54 = vadd.f32 1.0, %v7810_v51  ;;  %v11164_v56 = vld [vmem:[#allocation11 + $0x1c8] sm:$0xff]  ;;  %v11173_v51 = vld [vmem:[#allocation11 + $0x1d0] sm:$0xff] }
0x1236   :  { %7815 = vrcp.f32 %v4517_v47  ;;  %v11170_v47 = vld [vmem:[#allocation11 + $0x1c0] sm:$0xff] }
0x1237   :  { %7817 = vrcp.f32 %v4524_v54  ;;  %v11182_v54 = vld [vmem:[#allocation11 + $0x1a0] sm:$0xff] }
0x1241   :  { %v7812_v4 = vpop.eup %7811 }
0x1242   :  { %v7814_v0 = vpop.eup %7813 }
0x1243   :  { %v7816_v24 = vpop.eup %7815  ;;  %v4528_v45 = vmul.f32 %v7814_v0, %v7812_v4  ;;  %v11176_v4 = vld [vmem:[#allocation11 + $0x1a8] sm:$0xff]  ;;  %v11179_v0 = vld [vmem:[#allocation11 + $0x1b8] sm:$0xff] }
0x1244   :  { %v4527_v53 = vmul.f32 %v7816_v24, %v10991_v6  ;;  %v7818_v16 = vpop.eup %7817  ;;  %v11158_v24 = vld [vmem:[#allocation11 + $0x1e0] sm:$0xff] }
0x1246   :  { %v11069_v61 = vadd.f32 %v4528_v45, %v4527_v53  ;;  %v11185_v45 = vld [vmem:[#allocation11 + $0x1b0] sm:$0xff] }
0x1248   :  { %7819 = vtanh.f32 %v11069_v61 }
0x1255   :  { %v7820_v58 = vpop.eup %7819 }
0x1256   :  { %v11072_v55 = vmul.f32 %v7820_v58, %v7818_v16  ;;  %v11191_v16 = vld [vmem:[#allocation11 + $0x198] sm:$0xff]  ;;  %v11194_v58 = vld [vmem:[#allocation11 + $0x180] sm:$0xff] }
0x1258   :  { %13617 = vst [vmem:[#allocation66_spill] sm:$0xff] %v11072_v55  ;;  %4598 = vmatmul.mubr.f32.vlgmr.msra.gmra.mxu0 %v11072_v55  ;;  %4669 = vmatmul.mubr.f32.vlgmr.msra.gmra.mxu1 %v11072_v55  ;;  %v11323_v55 = vld [vmem:[#allocation11 + $0x38] sm:$0xff] }
0x1259   :  { %4705 = vmatpush1.msra.mxu0 %v10622_v50  ;;  %4776 = vmatpush1.msra.mxu1 %v10624_v32  ;;  %v13618_v50 = vld [vmem:[#allocation46_spill] sm:$0xff]  ;;  %v13619_v32 = vld [vmem:[#allocation24_spill] sm:$0xff]  ;;  %13651 = vst [vmem:[#allocation55_spill] sm:$0xff] %v11323_v55 }
0x125a   :  { %4706 = vmatprep.subr.mxu0 %v10626_v14  ;;  %4777 = vmatprep.subr.mxu1 %v10628_v22  ;;  %v13620_v14 = vld [vmem:[#allocation49_spill] sm:$0xff]  ;;  %v13621_v22 = vld [vmem:[#allocation30_spill] sm:$0xff] }
0x125b   :  { %4707 = vmatpush1.msra.mxu0 %v10630_v15  ;;  %4778 = vmatpush1.msra.mxu1 %v10632_v42  ;;  %v13622_v15 = vld [vmem:[#allocation32_spill] sm:$0xff]  ;;  %v13623_v42 = vld [vmem:[#allocation39_spill] sm:$0xff] }
0x125c   :  { %4708 = vmatprep.subr.mxu0 %v10636_v48  ;;  %4779 = vmatprep.subr.mxu1 %v10638_v62  ;;  %v13624_v48 = vld [vmem:[#allocation38_spill] sm:$0xff] }
0x125d   :  { %4709 = vmatpush1.msra.mxu0 %v10642_v12  ;;  %4780 = vmatpush1.msra.mxu1 %v10644_v11  ;;  %v13625_v62 = vld [vmem:[#allocation58_spill] sm:$0xff]  ;;  %v13626_v12 = vld [vmem:[#allocation72_spill] sm:$0xff]  ;;  %v13627_v11 = vld [vmem:[#allocation71_spill] sm:$0xff] }
0x125e   :  { %4710 = vmatprep.subr.mxu0 %v10648_v5  ;;  %4781 = vmatprep.subr.mxu1 %v10650_v36  ;;  %v13628_v5 = vld [vmem:[#allocation57_spill] sm:$0xff]  ;;  %v13629_v36 = vld [vmem:[#allocation26_spill] sm:$0xff] }
0x125f   :  { %4711 = vmatpush1.msra.mxu0 %v10654_v30  ;;  %4782 = vmatpush1.msra.mxu1 %v10656_v2  ;;  %v13630_v30 = vld [vmem:[#allocation27_spill] sm:$0xff] }
0x1260   :  { %4712 = vmatprep.subr.mxu0 %v10660_v3  ;;  %4783 = vmatprep.subr.mxu1 %v10662_v44  ;;  %v13631_v2 = vld [vmem:[#allocation75_spill] sm:$0xff] }
0x1261   :  { %4713 = vmatpush1.msra.mxu0 %v10666_v17  ;;  %4784 = vmatpush1.msra.mxu1 %v10668_v21  ;;  %v13632_v3 = vld [vmem:[#allocation31_spill] sm:$0xff]  ;;  %v13634_v17 = vmov 0.0   ;;  %v13635_v21 = vld [vmem:[#allocation34_spill] sm:$0xff] }
0x1262   :  { %4714 = vmatprep.subr.mxu0 %v10672_v25  ;;  %4785 = vmatprep.subr.mxu1 %v10674_v29  ;;  %v13633_v44 = vld [vmem:[#allocation59_spill] sm:$0xff]  ;;  %v11143_v29 = vld [vmem:[#allocation11 + $0x1f8] sm:$0xff] }
0x1263   :  { %4715 = vmatpush1.msra.mxu0 %v10678_v33  ;;  %4786 = vmatpush1.msra.mxu1 %v10680_v37  ;;  %v11140_v25 = vld [vmem:[#allocation11 + $0x1e8] sm:$0xff]  ;;  %13637 = vst [vmem:[#allocation53_spill] sm:$0xff] %v11143_v29  ;;  %v13638_v37 = vld [vmem:[#allocation64_spill] sm:$0xff] }
0x1264   :  { %4716 = vmatprep.subr.mxu0 %v10684_v41  ;;  %4787 = vmatprep.subr.mxu1 %v10686_v49  ;;  %13636 = vst [vmem:[#allocation65_spill] sm:$0xff] %v11140_v25 }
0x1265   :  { %4717 = vmatpush1.msra.mxu0 %v10690_v31  ;;  %4788 = vmatpush1.msra.mxu1 %v10692_v35  ;;  %v13639_v35 = vld [vmem:[#allocation43_spill] sm:$0xff] }
0x1266   :  { %4718 = vmatprep.subr.mxu0 %v10696_v39  ;;  %4789 = vmatprep.subr.mxu1 %v10698_v43 }
0x1267   :  { %4719 = vmatpush1.msra.mxu0 %v10702_v27  ;;  %4790 = vmatpush1.msra.mxu1 %v10704_v63 }
0x1268   :  { %4720 = vmatprep.subr.mxu0 %v10708_v23  ;;  %4791 = vmatprep.subr.mxu1 %v10710_v18 }
0x1269   :  { %4721 = vmatpush1.msra.mxu0 %v10714_v28  ;;  %4792 = vmatpush1.msra.mxu1 %v10716_v34 }
0x126a   :  { %4722 = vmatprep.subr.mxu0 %v10720_v38  ;;  %4793 = vmatprep.subr.mxu1 %v10722_v1 }
0x126b   :  { %4723 = vmatpush1.msra.mxu0 %v10726_v46  ;;  %4794 = vmatpush1.msra.mxu1 %v10728_v52 }
0x126c   :  { %4724 = vmatprep.subr.mxu0 %v10732_v20  ;;  %4795 = vmatprep.subr.mxu1 %v10734_v26 }
0x126d   :  { %4725 = vmatpush1.msra.mxu0 %v10738_v57  ;;  %4796 = vmatpush1.msra.mxu1 %v10740_v9 }
0x126e   :  { %4726 = vmatprep.subr.mxu0 %v10744_v40  ;;  %4797 = vmatprep.subr.mxu1 %v13572_v59 }
0x126f   :  { %4727 = vmatpush1.msra.mxu0 %v13573_v7  ;;  %4798 = vmatpush1.msra.mxu1 %v13618_v50  ;;  %v11197_v50 = vld [vmem:[#allocation11 + $0x190] sm:$0xff] }
0x1270   :  { %4728 = vmatprep.subr.mxu0 %v13619_v32  ;;  %4799 = vmatprep.subr.mxu1 %v13620_v14  ;;  %v11200_v32 = vld [vmem:[#allocation11 + $0x168] sm:$0xff]  ;;  %v11203_v14 = vld [vmem:[#allocation11 + $0x178] sm:$0xff] }
0x1271   :  { %4729 = vmatpush1.msra.mxu0 %v13621_v22  ;;  %4800 = vmatpush1.msra.mxu1 %v13622_v15  ;;  %v11206_v22 = vld [vmem:[#allocation11 + $0x160] sm:$0xff]  ;;  %v11209_v15 = vld [vmem:[#allocation11 + $0x170] sm:$0xff] }
0x1272   :  { %4730 = vmatprep.subr.mxu0 %v13623_v42  ;;  %4801 = vmatprep.subr.mxu1 %v13624_v48  ;;  %v11212_v42 = vld [vmem:[#allocation11 + $0x148] sm:$0xff]  ;;  %v11215_v48 = vld [vmem:[#allocation11 + $0x158] sm:$0xff] }
0x1273   :  { %4731 = vmatpush1.msra.mxu0 %v13625_v62  ;;  %4802 = vmatpush1.msra.mxu1 %v13626_v12  ;;  %v11218_v62 = vld [vmem:[#allocation11 + $0x140] sm:$0xff]  ;;  %v11221_v12 = vld [vmem:[#allocation11 + $0x150] sm:$0xff] }
0x1274   :  { %4732 = vmatprep.subr.mxu0 %v13627_v11  ;;  %4803 = vmatprep.subr.mxu1 %v13628_v5  ;;  %v11224_v11 = vld [vmem:[#allocation11 + $0x128] sm:$0xff]  ;;  %v11227_v5 = vld [vmem:[#allocation11 + $0x138] sm:$0xff] }
0x1275   :  { %4733 = vmatpush1.msra.mxu0 %v13629_v36  ;;  %4804 = vmatpush1.msra.mxu1 %v13630_v30  ;;  %v11230_v36 = vld [vmem:[#allocation11 + $0x120] sm:$0xff]  ;;  %v11233_v30 = vld [vmem:[#allocation11 + $0x130] sm:$0xff] }
0x1276   :  { %4734 = vmatprep.subr.mxu0 %v13631_v2  ;;  %4805 = vmatprep.subr.mxu1 %v13632_v3  ;;  %v11236_v2 = vld [vmem:[#allocation11 + $0x108] sm:$0xff]  ;;  %v11239_v3 = vld [vmem:[#allocation11 + $0x118] sm:$0xff] }
0x1277   :  { %4735 = vmatpush1.msra.mxu0 %v13633_v44  ;;  %4768 = vmatprep.mubr.f32.mxu0 %v13634_v17  ;;  %v11242_v44 = vld [vmem:[#allocation11 + $0x100] sm:$0xff] }
0x1278   :  { %4806 = vmatpush1.msra.mxu1 %v13635_v21  ;;  %4839 = vmatprep.mubr.f32.mxu1 %v13634_v17  ;;  %v11245_v21 = vld [vmem:[#allocation11 + $0x110] sm:$0xff] }
0x1279   :  { %4875 = vmatprep.subr.mxu0 %v11140_v25  ;;  %4946 = vmatprep.subr.mxu1 %v11143_v29 }
0x1318   :  { %v4599_v33 = vpop.f32.mrf.mxu0  ;;  %v4670_v43 = vpop.f32.mrf.mxu1 }
0x1319   :  { %v4675_v41 = vadd.f32 %v4599_v33, %v13638_v37  ;;  %v4677_v34 = vadd.f32 %v4670_v43, %v10909_v13  ;;  %v11248_v33 = vld [vmem:[#allocation11 + $0xe8] sm:$0xff]  ;;  %v11263_v43 = vld [vmem:[#allocation11 + $0xd8] sm:$0xff] }
0x131a   :  { %v4601_v49 = vpop.f32.mrf.mxu0  ;;  %v4672_v63 = vpop.f32.mrf.mxu1 }
0x131b   :  { %v7400_v31 = vmul.f32 -1.442695, %v4675_v41  ;;  %v4676_v39 = vadd.f32 %v4601_v49, %v13639_v35  ;;  %v4678_v23 = vadd.f32 %v4672_v63, %v10905_v10  ;;  %v11251_v41 = vld [vmem:[#allocation11 + $0xf8] sm:$0xff]  ;;  %v11254_v49 = vld [vmem:[#allocation11 + $0xe0] sm:$0xff]  ;;  %v11269_v63 = vld [vmem:[#allocation11 + $0xd0] sm:$0xff] }
0x131d   :  { %7821 = vpow2.f32 %v7400_v31  ;;  %v7401_v27 = vmul.f32 -1.442695, %v4676_v39  ;;  %v7402_v18 = vmul.f32 -1.442695, %v4678_v23  ;;  %v11257_v31 = vld [vmem:[#allocation11 + $0xf0] sm:$0xff]  ;;  %v11260_v39 = vld [vmem:[#allocation11 + $0xc8] sm:$0xff] }
0x131e   :  { %v11272_v23 = vld [vmem:[#allocation11 + $0xa8] sm:$0xff] }
0x131f   :  { %7823 = vpow2.f32 %v7401_v27  ;;  %v11266_v27 = vld [vmem:[#allocation11 + $0xc0] sm:$0xff] }
0x1320   :  { %7825 = vpow2.f32 %v7402_v18  ;;  %v11275_v18 = vld [vmem:[#allocation11 + $0xb8] sm:$0xff] }
0x132a   :  { %v7822_v28 = vpop.eup %7821 }
0x132b   :  { %v4682_v38 = vadd.f32 1.0, %v7822_v28  ;;  %v11278_v28 = vld [vmem:[#allocation11 + $0xa0] sm:$0xff] }
0x132c   :  { %v7824_v1 = vpop.eup %7823 }
0x132d   :  { %7827 = vrcp.f32 %v4682_v38  ;;  %v4688_v46 = vadd.f32 1.0, %v7824_v1  ;;  %v7826_v52 = vpop.eup %7825  ;;  %v11284_v38 = vld [vmem:[#allocation11 + $0x88] sm:$0xff]  ;;  %v11287_v1 = vld [vmem:[#allocation11 + $0x98] sm:$0xff] }
0x132e   :  { %7829 = vtanh.f32 %v4677_v34  ;;  %v4695_v9 = vadd.f32 1.0, %v7826_v52  ;;  %v11281_v34 = vld [vmem:[#allocation11 + $0xb0] sm:$0xff] }
0x132f   :  { %7831 = vrcp.f32 %v4688_v46  ;;  %v11290_v46 = vld [vmem:[#allocation11 + $0x80] sm:$0xff]  ;;  %v11293_v52 = vld [vmem:[#allocation11 + $0x90] sm:$0xff] }
0x1330   :  { %7833 = vrcp.f32 %v4695_v9  ;;  %13641 = vst [vmem:[#allocation68_spill] sm:$0xff] %v11293_v52  ;;  %v11305_v9 = vld [vmem:[#allocation11 + $0x70] sm:$0xff] }
0x1331   :  { %13645 = vst [vmem:[#allocation41_spill] sm:$0xff] %v11305_v9 }
0x133a   :  { %v7828_v20 = vpop.eup %7827 }
0x133b   :  { %v7830_v26 = vpop.eup %7829 }
0x133c   :  { %v7832_v57 = vpop.eup %7831  ;;  %v4699_v40 = vmul.f32 %v7830_v26, %v7828_v20  ;;  %v11296_v20 = vld [vmem:[#allocation11 + $0x68] sm:$0xff]  ;;  %v11299_v26 = vld [vmem:[#allocation11 + $0x78] sm:$0xff] }
0x133d   :  { %v4698_v59 = vmul.f32 %v7832_v57, %v11069_v61  ;;  %v7834_v6 = vpop.eup %7833  ;;  %v11188_v61 = vld [vmem:[#allocation11 + $0x188] sm:$0xff]  ;;  %13642 = vst [vmem:[#allocation67_spill] sm:$0xff] %v11296_v20  ;;  %13643 = vst [vmem:[#allocation22_spill] sm:$0xff] %v11299_v26  ;;  %v11302_v57 = vld [vmem:[#allocation11 + $0x60] sm:$0xff] }
0x133e   :  { %13644 = vst [vmem:[#allocation33_spill] sm:$0xff] %v11302_v57 }
0x133f   :  { %v11151_v7 = vadd.f32 %v4699_v40, %v4698_v59  ;;  %v11308_v40 = vld [vmem:[#allocation11 + $0x48] sm:$0xff]  ;;  %v11311_v59 = vld [vmem:[#allocation11 + $0x58] sm:$0xff] }
0x1340   :  { %13646 = vst [vmem:[#allocation42_spill] sm:$0xff] %v11308_v40  ;;  %13647 = vst [vmem:[#allocation28_spill] sm:$0xff] %v11311_v59 }
0x1341   :  { %7835 = vtanh.f32 %v11151_v7 }
0x134e   :  { %v7836_v8 = vpop.eup %7835 }
0x134f   :  { %v11154_v53 = vmul.f32 %v7836_v8, %v7834_v6  ;;  %v11314_v6 = vld [vmem:[#allocation11 + $0x40] sm:$0xff]  ;;  %v11317_v8 = vld [vmem:[#allocation11 + $0x50] sm:$0xff] }
0x1350   :  { %13648 = vst [vmem:[#allocation29_spill] sm:$0xff] %v11314_v6  ;;  %13649 = vst [vmem:[#allocation37_spill] sm:$0xff] %v11317_v8 }
0x1351   :  { %13640 = vst [vmem:[#allocation52_spill] sm:$0xff] %v11154_v53  ;;  %4769 = vmatmul.mubr.f32.vlgmr.msra.gmra.mxu0 %v11154_v53  ;;  %4840 = vmatmul.mubr.f32.vlgmr.msra.gmra.mxu1 %v11154_v53  ;;  %v11320_v53 = vld [vmem:[#allocation11 + $0x28] sm:$0xff] }
0x1352   :  { %4876 = vmatpush1.msra.mxu0 %v11158_v24  ;;  %4947 = vmatpush1.msra.mxu1 %v11161_v60  ;;  %13650 = vst [vmem:[#allocation36_spill] sm:$0xff] %v11320_v53 }
0x1353   :  { %4877 = vmatprep.subr.mxu0 %v11164_v56  ;;  %4948 = vmatprep.subr.mxu1 %v11167_v19 }
0x1354   :  { %4878 = vmatpush1.msra.mxu0 %v11170_v47  ;;  %4949 = vmatpush1.msra.mxu1 %v11173_v51 }
0x1355   :  { %4879 = vmatprep.subr.mxu0 %v11176_v4  ;;  %4950 = vmatprep.subr.mxu1 %v11179_v0 }
0x1356   :  { %4880 = vmatpush1.msra.mxu0 %v11182_v54  ;;  %4951 = vmatpush1.msra.mxu1 %v11185_v45 }
0x1357   :  { %4881 = vmatprep.subr.mxu0 %v11188_v61  ;;  %4952 = vmatprep.subr.mxu1 %v11191_v16 }
0x1358   :  { %4882 = vmatpush1.msra.mxu0 %v11194_v58  ;;  %4953 = vmatpush1.msra.mxu1 %v11197_v50 }
0x1359   :  { %4883 = vmatprep.subr.mxu0 %v11200_v32  ;;  %4954 = vmatprep.subr.mxu1 %v11203_v14 }
0x135a   :  { %4884 = vmatpush1.msra.mxu0 %v11206_v22  ;;  %4955 = vmatpush1.msra.mxu1 %v11209_v15 }
0x135b   :  { %4885 = vmatprep.subr.mxu0 %v11212_v42  ;;  %4956 = vmatprep.subr.mxu1 %v11215_v48 }
0x135c   :  { %4886 = vmatpush1.msra.mxu0 %v11218_v62  ;;  %4957 = vmatpush1.msra.mxu1 %v11221_v12 }
0x135d   :  { %4887 = vmatprep.subr.mxu0 %v11224_v11  ;;  %4958 = vmatprep.subr.mxu1 %v11227_v5 }
0x135e   :  { %4888 = vmatpush1.msra.mxu0 %v11230_v36  ;;  %4959 = vmatpush1.msra.mxu1 %v11233_v30 }
0x135f   :  { %4889 = vmatprep.subr.mxu0 %v11236_v2  ;;  %4960 = vmatprep.subr.mxu1 %v11239_v3 }
0x1360   :  { %4890 = vmatpush1.msra.mxu0 %v11242_v44  ;;  %4961 = vmatpush1.msra.mxu1 %v11245_v21 }
0x1361   :  { %4891 = vmatprep.subr.mxu0 %v11248_v33  ;;  %4962 = vmatprep.subr.mxu1 %v11251_v41 }
0x1362   :  { %4892 = vmatpush1.msra.mxu0 %v11254_v49  ;;  %4963 = vmatpush1.msra.mxu1 %v11257_v31 }
0x1363   :  { %4893 = vmatprep.subr.mxu0 %v11260_v39  ;;  %4964 = vmatprep.subr.mxu1 %v11263_v43 }
0x1364   :  { %4894 = vmatpush1.msra.mxu0 %v11266_v27  ;;  %4965 = vmatpush1.msra.mxu1 %v11269_v63 }
0x1365   :  { %4895 = vmatprep.subr.mxu0 %v11272_v23  ;;  %4966 = vmatprep.subr.mxu1 %v11275_v18 }
0x1366   :  { %4896 = vmatpush1.msra.mxu0 %v11278_v28  ;;  %4967 = vmatpush1.msra.mxu1 %v11281_v34 }
0x1367   :  { %4897 = vmatprep.subr.mxu0 %v11284_v38  ;;  %4968 = vmatprep.subr.mxu1 %v11287_v1 }
0x1368   :  { %4898 = vmatpush1.msra.mxu0 %v11290_v46  ;;  %4969 = vmatpush1.msra.mxu1 %v11293_v52 }
0x1369   :  { %4899 = vmatprep.subr.mxu0 %v11296_v20  ;;  %4970 = vmatprep.subr.mxu1 %v11299_v26 }
0x136a   :  { %4900 = vmatpush1.msra.mxu0 %v11302_v57  ;;  %4971 = vmatpush1.msra.mxu1 %v11305_v9 }
0x136b   :  { %4901 = vmatprep.subr.mxu0 %v11308_v40  ;;  %4972 = vmatprep.subr.mxu1 %v11311_v59  ;;  %v11326_v40 = vld [vmem:[#allocation11 + $0x20] sm:$0xff]  ;;  %v11329_v59 = vld [vmem:[#allocation11 + $0x30] sm:$0xff] }
0x136c   :  { %4902 = vmatpush1.msra.mxu0 %v11314_v6  ;;  %4973 = vmatpush1.msra.mxu1 %v11317_v8  ;;  %13652 = vst [vmem:[#allocation40_spill] sm:$0xff] %v11326_v40  ;;  %13653 = vst [vmem:[#allocation60_spill] sm:$0xff] %v11329_v59  ;;  %v11332_v6 = vld [vmem:[#allocation11 + $0x8] sm:$0xff]  ;;  %v11335_v8 = vld [vmem:[#allocation11 + $0x18] sm:$0xff] }
0x136d   :  { %4903 = vmatprep.subr.mxu0 %v11320_v53  ;;  %4974 = vmatprep.subr.mxu1 %v11323_v55  ;;  %13654 = vst [vmem:[#allocation73_spill] sm:$0xff] %v11332_v6  ;;  %13655 = vst [vmem:[#allocation61_spill] sm:$0xff] %v11335_v8  ;;  %v11338_v53 = vld [vmem:[#allocation11] sm:$0xff]  ;;  %v11342_v55 = vld [vmem:[#allocation11 + $0x10] sm:$0xff] }
0x136e   :  { %4904 = vmatpush1.msra.mxu0 %v11326_v40  ;;  %4975 = vmatpush1.msra.mxu1 %v11329_v59  ;;  %13656 = vst [vmem:[#allocation48_spill] sm:$0xff] %v11338_v53  ;;  %13657 = vst [vmem:[#allocation74_spill] sm:$0xff] %v11342_v55 }
0x136f   :  { %4905 = vmatprep.subr.mxu0 %v11332_v6  ;;  %4976 = vmatprep.subr.mxu1 %v11335_v8 }
0x1370   :  { %4906 = vmatpush1.msra.mxu0 %v11338_v53  ;;  %4939 = vmatprep.mubr.f32.mxu0 %v13634_v17 }
0x1371   :  { %4977 = vmatpush1.msra.mxu1 %v11342_v55  ;;  %5010 = vmatprep.mubr.f32.mxu1 %v13634_v17 }
0x1372   :  { %5046 = vmatprep.subr.mxu0 %v11140_v25  ;;  %5117 = vmatprep.subr.mxu1 %v11143_v29 }
0x1411   :  { %v4770_v6 = vpop.f32.mrf.mxu0  ;;  %v4841_v53 = vpop.f32.mrf.mxu1 }
0x1412   :  { %v4846_v59 = vadd.f32 %v4770_v6, %v13638_v37  ;;  %v4848_v25 = vadd.f32 %v4841_v53, %v10909_v13 }
0x1413   :  { %v4772_v8 = vpop.f32.mrf.mxu0  ;;  %v4843_v26 = vpop.f32.mrf.mxu1 }
0x1414   :  { %v7403_v40 = vmul.f32 -1.442695, %v4846_v59  ;;  %v4847_v9 = vadd.f32 %v4772_v8, %v13639_v35  ;;  %v4849_v55 = vadd.f32 %v4843_v26, %v10905_v10 }
0x1416   :  { %7837 = vpow2.f32 %v7403_v40  ;;  %v7404_v57 = vmul.f32 -1.442695, %v4847_v9  ;;  %v7405_v20 = vmul.f32 -1.442695, %v4849_v55 }
0x1418   :  { %7839 = vpow2.f32 %v7404_v57 }
0x1419   :  { %7841 = vpow2.f32 %v7405_v20  ;;  %v13665_v20 = vld [vmem:[#allocation28_spill] sm:$0xff] }
0x1423   :  { %v7838_v17 = vpop.eup %7837 }
0x1424   :  { %v4853_v52 = vadd.f32 1.0, %v7838_v17 }
0x1425   :  { %v7840_v29 = vpop.eup %7839 }
0x1426   :  { %7843 = vrcp.f32 %v4853_v52  ;;  %v4859_v6 = vadd.f32 1.0, %v7840_v29  ;;  %v7842_v59 = vpop.eup %7841  ;;  %v13660_v29 = vld [vmem:[#allocation67_spill] sm:$0xff]  ;;  %v13664_v52 = vld [vmem:[#allocation42_spill] sm:$0xff] }
0x1427   :  { %7845 = vtanh.f32 %v4848_v25  ;;  %v4866_v9 = vadd.f32 1.0, %v7842_v59  ;;  %v13659_v25 = vld [vmem:[#allocation68_spill] sm:$0xff]  ;;  %v13667_v59 = vld [vmem:[#allocation37_spill] sm:$0xff] }
0x1428   :  { %7847 = vrcp.f32 %v4859_v6  ;;  %v13666_v6 = vld [vmem:[#allocation29_spill] sm:$0xff] }
0x1429   :  { %7849 = vrcp.f32 %v4866_v9  ;;  %v13670_v9 = vld [vmem:[#allocation40_spill] sm:$0xff] }
0x1433   :  { %v7844_v8 = vpop.eup %7843 }
0x1434   :  { %v7846_v40 = vpop.eup %7845 }
0x1435   :  { %v7848_v35 = vpop.eup %7847  ;;  %v4870_v57 = vmul.f32 %v7846_v40, %v7844_v8  ;;  %v13668_v8 = vld [vmem:[#allocation36_spill] sm:$0xff]  ;;  %v13669_v40 = vld [vmem:[#allocation55_spill] sm:$0xff] }
0x1436   :  { %v4869_v37 = vmul.f32 %v7848_v35, %v11151_v7  ;;  %v7850_v55 = vpop.eup %7849  ;;  %v13662_v35 = vld [vmem:[#allocation33_spill] sm:$0xff] }
0x1437   :  { %v13663_v7 = vld [vmem:[#allocation41_spill] sm:$0xff] }
0x1438   :  { %v11353_v26 = vadd.f32 %v4870_v57, %v4869_v37  ;;  %v13661_v37 = vld [vmem:[#allocation22_spill] sm:$0xff]  ;;  %v13671_v57 = vld [vmem:[#allocation60_spill] sm:$0xff] }
0x143a   :  { %7851 = vtanh.f32 %v11353_v26 }
0x1447   :  { %v7852_v17 = vpop.eup %7851 }
0x1448   :  { %v11356_v53 = vmul.f32 %v7852_v17, %v7850_v55  ;;  %v13672_v55 = vld [vmem:[#allocation73_spill] sm:$0xff] }
0x1449   :  { %v13673_v17 = vld [vmem:[#allocation61_spill] sm:$0xff] }
0x144a   :  { %13658 = vst [vmem:[#allocation76_spill] sm:$0xff] %v11356_v53  ;;  %4940 = vmatmul.mubr.f32.vlgmr.msra.gmra.mxu0 %v11356_v53  ;;  %5011 = vmatmul.mubr.f32.vlgmr.msra.gmra.mxu1 %v11356_v53  ;;  %v13674_v53 = vld [vmem:[#allocation48_spill] sm:$0xff] }
0x144b   :  { %5047 = vmatpush1.msra.mxu0 %v11158_v24  ;;  %5118 = vmatpush1.msra.mxu1 %v11161_v60 }
0x144c   :  { %5048 = vmatprep.subr.mxu0 %v11164_v56  ;;  %5119 = vmatprep.subr.mxu1 %v11167_v19 }
0x144d   :  { %5049 = vmatpush1.msra.mxu0 %v11170_v47  ;;  %5120 = vmatpush1.msra.mxu1 %v11173_v51 }
0x144e   :  { %5050 = vmatprep.subr.mxu0 %v11176_v4  ;;  %5121 = vmatprep.subr.mxu1 %v11179_v0 }
0x144f   :  { %5051 = vmatpush1.msra.mxu0 %v11182_v54  ;;  %5122 = vmatpush1.msra.mxu1 %v11185_v45 }
0x1450   :  { %5052 = vmatprep.subr.mxu0 %v11188_v61  ;;  %5123 = vmatprep.subr.mxu1 %v11191_v16 }
0x1451   :  { %5053 = vmatpush1.msra.mxu0 %v11194_v58  ;;  %5124 = vmatpush1.msra.mxu1 %v11197_v50 }
0x1452   :  { %5054 = vmatprep.subr.mxu0 %v11200_v32  ;;  %5125 = vmatprep.subr.mxu1 %v11203_v14 }
0x1453   :  { %5055 = vmatpush1.msra.mxu0 %v11206_v22  ;;  %5126 = vmatpush1.msra.mxu1 %v11209_v15 }
0x1454   :  { %5056 = vmatprep.subr.mxu0 %v11212_v42  ;;  %5127 = vmatprep.subr.mxu1 %v11215_v48 }
0x1455   :  { %5057 = vmatpush1.msra.mxu0 %v11218_v62  ;;  %5128 = vmatpush1.msra.mxu1 %v11221_v12 }
0x1456   :  { %5058 = vmatprep.subr.mxu0 %v11224_v11  ;;  %5129 = vmatprep.subr.mxu1 %v11227_v5 }
0x1457   :  { %5059 = vmatpush1.msra.mxu0 %v11230_v36  ;;  %5130 = vmatpush1.msra.mxu1 %v11233_v30 }
0x1458   :  { %5060 = vmatprep.subr.mxu0 %v11236_v2  ;;  %5131 = vmatprep.subr.mxu1 %v11239_v3 }
0x1459   :  { %5061 = vmatpush1.msra.mxu0 %v11242_v44  ;;  %5132 = vmatpush1.msra.mxu1 %v11245_v21 }
0x145a   :  { %5062 = vmatprep.subr.mxu0 %v11248_v33  ;;  %5133 = vmatprep.subr.mxu1 %v11251_v41 }
0x145b   :  { %5063 = vmatpush1.msra.mxu0 %v11254_v49  ;;  %5134 = vmatpush1.msra.mxu1 %v11257_v31 }
0x145c   :  { %5064 = vmatprep.subr.mxu0 %v11260_v39  ;;  %5135 = vmatprep.subr.mxu1 %v11263_v43 }
0x145d   :  { %5065 = vmatpush1.msra.mxu0 %v11266_v27  ;;  %5136 = vmatpush1.msra.mxu1 %v11269_v63 }
0x145e   :  { %5066 = vmatprep.subr.mxu0 %v11272_v23  ;;  %5137 = vmatprep.subr.mxu1 %v11275_v18 }
0x145f   :  { %5067 = vmatpush1.msra.mxu0 %v11278_v28  ;;  %5138 = vmatpush1.msra.mxu1 %v11281_v34 }
0x1460   :  { %5068 = vmatprep.subr.mxu0 %v11284_v38  ;;  %5139 = vmatprep.subr.mxu1 %v11287_v1 }
0x1461   :  { %5069 = vmatpush1.msra.mxu0 %v11290_v46  ;;  %5140 = vmatpush1.msra.mxu1 %v13659_v25 }
0x1462   :  { %5070 = vmatprep.subr.mxu0 %v13660_v29  ;;  %5141 = vmatprep.subr.mxu1 %v13661_v37 }
0x1463   :  { %5071 = vmatpush1.msra.mxu0 %v13662_v35  ;;  %5142 = vmatpush1.msra.mxu1 %v13663_v7 }
0x1464   :  { %5072 = vmatprep.subr.mxu0 %v13664_v52  ;;  %5143 = vmatprep.subr.mxu1 %v13665_v20  ;;  %v13675_v52 = vmov 0.0   ;;  %v13676_v20 = vld [vmem:[#allocation74_spill] sm:$0xff] }
0x1465   :  { %5073 = vmatpush1.msra.mxu0 %v13666_v6  ;;  %5144 = vmatpush1.msra.mxu1 %v13667_v59  ;;  %v13677_v59 = vld [vmem:[#allocation65_spill] sm:$0xff] }
0x1466   :  { %5074 = vmatprep.subr.mxu0 %v13668_v8  ;;  %5145 = vmatprep.subr.mxu1 %v13669_v40  ;;  %v13678_v8 = vld [vmem:[#allocation53_spill] sm:$0xff] }
0x1467   :  { %5075 = vmatpush1.msra.mxu0 %v13670_v9  ;;  %5146 = vmatpush1.msra.mxu1 %v13671_v57  ;;  %v13679_v9 = vld [vmem:[#allocation64_spill] sm:$0xff] }
0x1468   :  { %5076 = vmatprep.subr.mxu0 %v13672_v55  ;;  %5147 = vmatprep.subr.mxu1 %v13673_v17  ;;  %v13680_v55 = vld [vmem:[#allocation43_spill] sm:$0xff] }
0x1469   :  { %5077 = vmatpush1.msra.mxu0 %v13674_v53  ;;  %5110 = vmatprep.mubr.f32.mxu0 %v13675_v52 }
0x146a   :  { %5148 = vmatpush1.msra.mxu1 %v13676_v20  ;;  %5181 = vmatprep.mubr.f32.mxu1 %v13675_v52 }
0x146b   :  { %5217 = vmatprep.subr.mxu0 %v13677_v59  ;;  %5288 = vmatprep.subr.mxu1 %v13678_v8 }
0x150a   :  { %v4941_v40 = vpop.f32.mrf.mxu0  ;;  %v5012_v17 = vpop.f32.mrf.mxu1 }
0x150b   :  { %v5017_v6 = vadd.f32 %v4941_v40, %v13679_v9  ;;  %v5019_v59 = vadd.f32 %v5012_v17, %v10909_v13  ;;  %v547_v17 = vld [vmem:[#allocation12 + $0x1f0] sm:$0xff] }
0x150c   :  { %v4943_v57 = vpop.f32.mrf.mxu0  ;;  %v5014_v37 = vpop.f32.mrf.mxu1 }
0x150d   :  { %v7406_v7 = vmul.f32 -1.442695, %v5017_v6  ;;  %v5018_v35 = vadd.f32 %v4943_v57, %v13680_v55  ;;  %v5020_v20 = vadd.f32 %v5014_v37, %v10905_v10 }
0x150f   :  { %7853 = vpow2.f32 %v7406_v7  ;;  %v7407_v53 = vmul.f32 -1.442695, %v5018_v35  ;;  %v7408_v29 = vmul.f32 -1.442695, %v5020_v20 }
0x1511   :  { %7855 = vpow2.f32 %v7407_v53 }
0x1512   :  { %7857 = vpow2.f32 %v7408_v29 }
0x151c   :  { %v7854_v52 = vpop.eup %7853 }
0x151d   :  { %v5024_v25 = vadd.f32 1.0, %v7854_v52 }
0x151e   :  { %v7856_v8 = vpop.eup %7855 }
0x151f   :  { %7859 = vrcp.f32 %v5024_v25  ;;  %v5030_v40 = vadd.f32 1.0, %v7856_v8  ;;  %v7858_v6 = vpop.eup %7857  ;;  %v544_v8 = vld [vmem:[#allocation12 + $0x1d8] sm:$0xff] }
0x1520   :  { %7861 = vtanh.f32 %v5019_v59  ;;  %v5037_v35 = vadd.f32 1.0, %v7858_v6  ;;  %v542_v59 = vld [vmem:[#allocation12 + $0x1c8] sm:$0xff]  ;;  %v543_v6 = vld [vmem:[#allocation12 + $0x1d0] sm:$0xff] }
0x1521   :  { %7863 = vrcp.f32 %v5030_v40  ;;  %v541_v40 = vld [vmem:[#allocation12 + $0x1c0] sm:$0xff] }
0x1522   :  { %7865 = vrcp.f32 %v5037_v35  ;;  %v537_v35 = vld [vmem:[#allocation12 + $0x1a0] sm:$0xff] }
0x152c   :  { %v7860_v57 = vpop.eup %7859 }
0x152d   :  { %v7862_v7 = vpop.eup %7861 }
0x152e   :  { %v7864_v55 = vpop.eup %7863  ;;  %v5041_v53 = vmul.f32 %v7862_v7, %v7860_v57  ;;  %v538_v57 = vld [vmem:[#allocation12 + $0x1a8] sm:$0xff]  ;;  %v540_v7 = vld [vmem:[#allocation12 + $0x1b8] sm:$0xff] }
0x152f   :  { %v5040_v9 = vmul.f32 %v7864_v55, %v11353_v26  ;;  %v7866_v52 = vpop.eup %7865  ;;  %v545_v55 = vld [vmem:[#allocation12 + $0x1e0] sm:$0xff] }
0x1531   :  { %v11431_v37 = vadd.f32 %v5041_v53, %v5040_v9  ;;  %v539_v53 = vld [vmem:[#allocation12 + $0x1b0] sm:$0xff] }
0x1533   :  { %7867 = vtanh.f32 %v11431_v37 }
0x1540   :  { %v7868_v20 = vpop.eup %7867 }
0x1541   :  { %v11434_v29 = vmul.f32 %v7868_v20, %v7866_v52  ;;  %v536_v52 = vld [vmem:[#allocation12 + $0x198] sm:$0xff]  ;;  %v533_v20 = vld [vmem:[#allocation12 + $0x180] sm:$0xff] }
0x1543   :  { %5111 = vmatmul.mubr.f32.vlgmr.msra.gmra.mxu0 %v11434_v29  ;;  %5182 = vmatmul.mubr.f32.vlgmr.msra.gmra.mxu1 %v11434_v29 }
0x1544   :  { %5218 = vmatpush1.msra.mxu0 %v11158_v24  ;;  %5289 = vmatpush1.msra.mxu1 %v11161_v60  ;;  %v13681_v24 = vld [vmem:[#allocation68_spill] sm:$0xff]  ;;  %v13682_v60 = vld [vmem:[#allocation67_spill] sm:$0xff] }
0x1545   :  { %5219 = vmatprep.subr.mxu0 %v11164_v56  ;;  %5290 = vmatprep.subr.mxu1 %v11167_v19  ;;  %v13683_v56 = vld [vmem:[#allocation22_spill] sm:$0xff]  ;;  %v13684_v19 = vld [vmem:[#allocation33_spill] sm:$0xff] }
0x1546   :  { %5220 = vmatpush1.msra.mxu0 %v11170_v47  ;;  %5291 = vmatpush1.msra.mxu1 %v11173_v51  ;;  %v13685_v47 = vld [vmem:[#allocation41_spill] sm:$0xff]  ;;  %v13686_v51 = vld [vmem:[#allocation42_spill] sm:$0xff] }
0x1547   :  { %5221 = vmatprep.subr.mxu0 %v11176_v4  ;;  %5292 = vmatprep.subr.mxu1 %v11179_v0  ;;  %v13687_v4 = vld [vmem:[#allocation28_spill] sm:$0xff]  ;;  %v13688_v0 = vld [vmem:[#allocation29_spill] sm:$0xff] }
0x1548   :  { %5222 = vmatpush1.msra.mxu0 %v11182_v54  ;;  %5293 = vmatpush1.msra.mxu1 %v11185_v45  ;;  %v13689_v54 = vld [vmem:[#allocation37_spill] sm:$0xff]  ;;  %v13690_v45 = vld [vmem:[#allocation36_spill] sm:$0xff] }
0x1549   :  { %5223 = vmatprep.subr.mxu0 %v11188_v61  ;;  %5294 = vmatprep.subr.mxu1 %v11191_v16  ;;  %v13691_v61 = vld [vmem:[#allocation55_spill] sm:$0xff]  ;;  %v13692_v16 = vld [vmem:[#allocation40_spill] sm:$0xff] }
0x154a   :  { %5224 = vmatpush1.msra.mxu0 %v11194_v58  ;;  %5295 = vmatpush1.msra.mxu1 %v11197_v50  ;;  %v13693_v58 = vld [vmem:[#allocation60_spill] sm:$0xff]  ;;  %v13694_v50 = vld [vmem:[#allocation73_spill] sm:$0xff] }
0x154b   :  { %5225 = vmatprep.subr.mxu0 %v11200_v32  ;;  %5296 = vmatprep.subr.mxu1 %v11203_v14  ;;  %v13695_v32 = vld [vmem:[#allocation61_spill] sm:$0xff]  ;;  %v13696_v14 = vld [vmem:[#allocation48_spill] sm:$0xff] }
0x154c   :  { %5226 = vmatpush1.msra.mxu0 %v11206_v22  ;;  %5297 = vmatpush1.msra.mxu1 %v11209_v15  ;;  %v13697_v22 = vld [vmem:[#allocation74_spill] sm:$0xff]  ;;  %v13698_v15 = vmov 0.0  }
0x154d   :  { %5227 = vmatprep.subr.mxu0 %v11212_v42  ;;  %5298 = vmatprep.subr.mxu1 %v11215_v48  ;;  %v546_v42 = vld [vmem:[#allocation12 + $0x1e8] sm:$0xff]  ;;  %v548_v48 = vld [vmem:[#allocation12 + $0x1f8] sm:$0xff] }
0x154e   :  { %5228 = vmatpush1.msra.mxu0 %v11218_v62  ;;  %5299 = vmatpush1.msra.mxu1 %v11221_v12  ;;  %v13699_v12 = vld [vmem:[#allocation64_spill] sm:$0xff] }
0x154f   :  { %5229 = vmatprep.subr.mxu0 %v11224_v11  ;;  %5300 = vmatprep.subr.mxu1 %v11227_v5 }
0x1550   :  { %5230 = vmatpush1.msra.mxu0 %v11230_v36  ;;  %5301 = vmatpush1.msra.mxu1 %v11233_v30  ;;  %v13700_v30 = vld [vmem:[#allocation43_spill] sm:$0xff] }
0x1551   :  { %5231 = vmatprep.subr.mxu0 %v11236_v2  ;;  %5302 = vmatprep.subr.mxu1 %v11239_v3 }
0x1552   :  { %5232 = vmatpush1.msra.mxu0 %v11242_v44  ;;  %5303 = vmatpush1.msra.mxu1 %v11245_v21 }
0x1553   :  { %5233 = vmatprep.subr.mxu0 %v11248_v33  ;;  %5304 = vmatprep.subr.mxu1 %v11251_v41 }
0x1554   :  { %5234 = vmatpush1.msra.mxu0 %v11254_v49  ;;  %5305 = vmatpush1.msra.mxu1 %v11257_v31 }
0x1555   :  { %5235 = vmatprep.subr.mxu0 %v11260_v39  ;;  %5306 = vmatprep.subr.mxu1 %v11263_v43 }
0x1556   :  { %5236 = vmatpush1.msra.mxu0 %v11266_v27  ;;  %5307 = vmatpush1.msra.mxu1 %v11269_v63 }
0x1557   :  { %5237 = vmatprep.subr.mxu0 %v11272_v23  ;;  %5308 = vmatprep.subr.mxu1 %v11275_v18 }
0x1558   :  { %5238 = vmatpush1.msra.mxu0 %v11278_v28  ;;  %5309 = vmatpush1.msra.mxu1 %v11281_v34 }
0x1559   :  { %5239 = vmatprep.subr.mxu0 %v11284_v38  ;;  %5310 = vmatprep.subr.mxu1 %v11287_v1 }
0x155a   :  { %5240 = vmatpush1.msra.mxu0 %v11290_v46  ;;  %5311 = vmatpush1.msra.mxu1 %v13681_v24  ;;  %v535_v24 = vld [vmem:[#allocation12 + $0x190] sm:$0xff] }
0x155b   :  { %5241 = vmatprep.subr.mxu0 %v13682_v60  ;;  %5312 = vmatprep.subr.mxu1 %v13683_v56  ;;  %v530_v60 = vld [vmem:[#allocation12 + $0x168] sm:$0xff]  ;;  %v532_v56 = vld [vmem:[#allocation12 + $0x178] sm:$0xff] }
0x155c   :  { %5242 = vmatpush1.msra.mxu0 %v13684_v19  ;;  %5313 = vmatpush1.msra.mxu1 %v13685_v47  ;;  %v529_v19 = vld [vmem:[#allocation12 + $0x160] sm:$0xff]  ;;  %v531_v47 = vld [vmem:[#allocation12 + $0x170] sm:$0xff] }
0x155d   :  { %5243 = vmatprep.subr.mxu0 %v13686_v51  ;;  %5314 = vmatprep.subr.mxu1 %v13687_v4  ;;  %v526_v51 = vld [vmem:[#allocation12 + $0x148] sm:$0xff]  ;;  %v528_v4 = vld [vmem:[#allocation12 + $0x158] sm:$0xff] }
0x155e   :  { %5244 = vmatpush1.msra.mxu0 %v13688_v0  ;;  %5315 = vmatpush1.msra.mxu1 %v13689_v54  ;;  %v525_v0 = vld [vmem:[#allocation12 + $0x140] sm:$0xff]  ;;  %v527_v54 = vld [vmem:[#allocation12 + $0x150] sm:$0xff] }
0x155f   :  { %5245 = vmatprep.subr.mxu0 %v13690_v45  ;;  %5316 = vmatprep.subr.mxu1 %v13691_v61  ;;  %v522_v45 = vld [vmem:[#allocation12 + $0x128] sm:$0xff]  ;;  %v524_v61 = vld [vmem:[#allocation12 + $0x138] sm:$0xff] }
0x1560   :  { %5246 = vmatpush1.msra.mxu0 %v13692_v16  ;;  %5317 = vmatpush1.msra.mxu1 %v13693_v58  ;;  %v521_v16 = vld [vmem:[#allocation12 + $0x120] sm:$0xff]  ;;  %v523_v58 = vld [vmem:[#allocation12 + $0x130] sm:$0xff] }
0x1561   :  { %5247 = vmatprep.subr.mxu0 %v13694_v50  ;;  %5318 = vmatprep.subr.mxu1 %v13695_v32  ;;  %v518_v50 = vld [vmem:[#allocation12 + $0x108] sm:$0xff]  ;;  %v520_v32 = vld [vmem:[#allocation12 + $0x118] sm:$0xff] }
0x1562   :  { %5248 = vmatpush1.msra.mxu0 %v13696_v14  ;;  %5319 = vmatpush1.msra.mxu1 %v13697_v22  ;;  %v517_v14 = vld [vmem:[#allocation12 + $0x100] sm:$0xff]  ;;  %v519_v22 = vld [vmem:[#allocation12 + $0x110] sm:$0xff] }
0x1563   :  { %5281 = vmatprep.mubr.f32.mxu0 %v13698_v15  ;;  %5352 = vmatprep.mubr.f32.mxu1 %v13698_v15 }
0x1564   :  { %5417 = vmatprep.subr.mxu0 %v546_v42  ;;  %5530 = vmatprep.subr.mxu1 %v548_v48  ;;  %v514_v42 = vld [vmem:[#allocation12 + $0xe8] sm:$0xff]  ;;  %v516_v48 = vld [vmem:[#allocation12 + $0xf8] sm:$0xff] }
0x1603   :  { %v5112_v62 = vpop.f32.mrf.mxu0  ;;  %v5183_v3 = vpop.f32.mrf.mxu1 }
0x1604   :  { %v5188_v11 = vadd.f32 %v5112_v62, %v13699_v12  ;;  %v5190_v31 = vadd.f32 %v5183_v3, %v10909_v13  ;;  %v513_v62 = vld [vmem:[#allocation12 + $0xe0] sm:$0xff]  ;;  %v511_v3 = vld [vmem:[#allocation12 + $0xd0] sm:$0xff] }
0x1605   :  { %v5114_v5 = vpop.f32.mrf.mxu0  ;;  %v5185_v21 = vpop.f32.mrf.mxu1 }
0x1606   :  { %v7409_v36 = vmul.f32 -1.442695, %v5188_v11  ;;  %v5189_v2 = vadd.f32 %v5114_v5, %v13700_v30  ;;  %v5191_v33 = vadd.f32 %v5185_v21, %v10905_v10  ;;  %v515_v11 = vld [vmem:[#allocation12 + $0xf0] sm:$0xff]  ;;  %v510_v5 = vld [vmem:[#allocation12 + $0xc8] sm:$0xff]  ;;  %v508_v21 = vld [vmem:[#allocation12 + $0xb8] sm:$0xff] }
0x1608   :  { %7869 = vpow2.f32 %v7409_v36  ;;  %v7410_v44 = vmul.f32 -1.442695, %v5189_v2  ;;  %v7411_v41 = vmul.f32 -1.442695, %v5191_v33  ;;  %v512_v36 = vld [vmem:[#allocation12 + $0xd8] sm:$0xff]  ;;  %v509_v2 = vld [vmem:[#allocation12 + $0xc0] sm:$0xff] }
0x1609   :  { %v505_v33 = vld [vmem:[#allocation12 + $0xa0] sm:$0xff] }
0x160a   :  { %7871 = vpow2.f32 %v7410_v44  ;;  %v506_v44 = vld [vmem:[#allocation12 + $0xa8] sm:$0xff] }
0x160b   :  { %7873 = vpow2.f32 %v7411_v41  ;;  %v507_v41 = vld [vmem:[#allocation12 + $0xb0] sm:$0xff] }
0x1615   :  { %v7870_v49 = vpop.eup %7869 }
0x1616   :  { %v5195_v39 = vadd.f32 1.0, %v7870_v49  ;;  %v502_v49 = vld [vmem:[#allocation12 + $0x88] sm:$0xff] }
0x1617   :  { %v7872_v43 = vpop.eup %7871 }
0x1618   :  { %7875 = vrcp.f32 %v5195_v39  ;;  %v5201_v27 = vadd.f32 1.0, %v7872_v43  ;;  %v7874_v63 = vpop.eup %7873  ;;  %v501_v39 = vld [vmem:[#allocation12 + $0x80] sm:$0xff]  ;;  %v503_v43 = vld [vmem:[#allocation12 + $0x90] sm:$0xff] }
0x1619   :  { %7877 = vtanh.f32 %v5190_v31  ;;  %v5208_v34 = vadd.f32 1.0, %v7874_v63  ;;  %v504_v31 = vld [vmem:[#allocation12 + $0x98] sm:$0xff] }
0x161a   :  { %7879 = vrcp.f32 %v5201_v27  ;;  %v498_v27 = vld [vmem:[#allocation12 + $0x68] sm:$0xff]  ;;  %v500_v63 = vld [vmem:[#allocation12 + $0x78] sm:$0xff] }
0x161b   :  { %7881 = vrcp.f32 %v5208_v34  ;;  %v496_v34 = vld [vmem:[#allocation12 + $0x58] sm:$0xff] }
0x1625   :  { %v7876_v23 = vpop.eup %7875 }
0x1626   :  { %v7878_v18 = vpop.eup %7877 }
0x1627   :  { %v7880_v28 = vpop.eup %7879  ;;  %v5212_v38 = vmul.f32 %v7878_v18, %v7876_v23  ;;  %v497_v23 = vld [vmem:[#allocation12 + $0x60] sm:$0xff]  ;;  %v499_v18 = vld [vmem:[#allocation12 + $0x70] sm:$0xff] }
0x1628   :  { %v5211_v1 = vmul.f32 %v7880_v28, %v11431_v37  ;;  %v7882_v26 = vpop.eup %7881  ;;  %v534_v37 = vld [vmem:[#allocation12 + $0x188] sm:$0xff] }
0x1629   :  { %v494_v28 = vld [vmem:[#allocation12 + $0x48] sm:$0xff] }
0x162a   :  { %v11507_v46 = vadd.f32 %v5212_v38, %v5211_v1  ;;  %v493_v38 = vld [vmem:[#allocation12 + $0x40] sm:$0xff]  ;;  %v495_v1 = vld [vmem:[#allocation12 + $0x50] sm:$0xff] }
0x162c   :  { %7883 = vtanh.f32 %v11507_v46 }
0x1639   :  { %v7884_v25 = vpop.eup %7883 }
0x163a   :  { %v11510_v9 = vmul.f32 %v7884_v25, %v7882_v26  ;;  %v490_v26 = vld [vmem:[#allocation12 + $0x28] sm:$0xff]  ;;  %v492_v25 = vld [vmem:[#allocation12 + $0x38] sm:$0xff] }
0x163c   :  { %5282 = vmatmul.mubr.f32.vlgmr.msra.gmra.mxu0 %v11510_v9  ;;  %5353 = vmatmul.mubr.f32.vlgmr.msra.gmra.mxu1 %v11510_v9 }
0x163d   :  { %5418 = vmatpush1.msra.mxu0 %v545_v55  ;;  %5531 = vmatpush1.msra.mxu1 %v547_v17  ;;  %v489_v55 = vld [vmem:[#allocation12 + $0x20] sm:$0xff]  ;;  %v491_v17 = vld [vmem:[#allocation12 + $0x30] sm:$0xff] }
0x163e   :  { %5419 = vmatprep.subr.mxu0 %v542_v59  ;;  %5532 = vmatprep.subr.mxu1 %v544_v8  ;;  %v486_v59 = vld [vmem:[#allocation12 + $0x8] sm:$0xff]  ;;  %v488_v8 = vld [vmem:[#allocation12 + $0x18] sm:$0xff] }
0x163f   :  { %5420 = vmatpush1.msra.mxu0 %v541_v40  ;;  %5533 = vmatpush1.msra.mxu1 %v543_v6  ;;  %v485_v40 = vld [vmem:[#allocation12] sm:$0xff]  ;;  %v487_v6 = vld [vmem:[#allocation12 + $0x10] sm:$0xff] }
0x1640   :  { %5421 = vmatprep.subr.mxu0 %v538_v57  ;;  %5534 = vmatprep.subr.mxu1 %v540_v7  ;;  %v13701_v57 = vld [vmem:[#allocation51_spill] sm:$0xff]  ;;  %v13702_v7 = vld [vmem:[#allocation50_spill] sm:$0xff] }
0x1641   :  { %5422 = vmatpush1.msra.mxu0 %v537_v35  ;;  %5535 = vmatpush1.msra.mxu1 %v539_v53  ;;  %v13703_v35 = vld [vmem:[#allocation66_spill] sm:$0xff]  ;;  %v13704_v53 = vld [vmem:[#allocation52_spill] sm:$0xff] }
0x1642   :  { %5423 = vmatprep.subr.mxu0 %v534_v37  ;;  %5536 = vmatprep.subr.mxu1 %v536_v52  ;;  %v13705_v37 = vld [vmem:[#allocation76_spill] sm:$0xff]  ;;  %v11544_v52 = vld [vmem:[#allocation14 + $0x1e8] sm:$0xff] }
0x1643   :  { %5424 = vmatpush1.msra.mxu0 %v533_v20  ;;  %5537 = vmatpush1.msra.mxu1 %v535_v24  ;;  %13706 = vst [vmem:[#allocation82_spill] sm:$0xff] %v11544_v52  ;;  %v11546_v20 = vld [vmem:[#allocation14 + $0x1f8] sm:$0xff]  ;;  %v11552_v24 = vld [vmem:[#allocation14 + $0x1f0] sm:$0xff] }
0x1644   :  { %5425 = vmatprep.subr.mxu0 %v530_v60  ;;  %5538 = vmatprep.subr.mxu1 %v532_v56  ;;  %13707 = vst [vmem:[#allocation78_spill] sm:$0xff] %v11546_v20  ;;  %v11558_v60 = vld [vmem:[#allocation14 + $0x1d8] sm:$0xff]  ;;  %v11562_v56 = vld [vmem:[#allocation14 + $0x1c0] sm:$0xff] }
0x1645   :  { %5426 = vmatpush1.msra.mxu0 %v529_v19  ;;  %5539 = vmatpush1.msra.mxu1 %v531_v47  ;;  %v11564_v19 = vld [vmem:[#allocation14 + $0x1d0] sm:$0xff]  ;;  %v11568_v47 = vld [vmem:[#allocation14 + $0x1a8] sm:$0xff] }
0x1646   :  { %5427 = vmatprep.subr.mxu0 %v526_v51  ;;  %5540 = vmatprep.subr.mxu1 %v528_v4  ;;  %v11570_v51 = vld [vmem:[#allocation14 + $0x1b8] sm:$0xff]  ;;  %v11574_v4 = vld [vmem:[#allocation14 + $0x1a0] sm:$0xff] }
0x1647   :  { %5428 = vmatpush1.msra.mxu0 %v525_v0  ;;  %5541 = vmatpush1.msra.mxu1 %v527_v54  ;;  %v11576_v0 = vld [vmem:[#allocation14 + $0x1b0] sm:$0xff]  ;;  %v11580_v54 = vld [vmem:[#allocation14 + $0x188] sm:$0xff] }
0x1648   :  { %5429 = vmatprep.subr.mxu0 %v522_v45  ;;  %5542 = vmatprep.subr.mxu1 %v524_v61  ;;  %v11582_v45 = vld [vmem:[#allocation14 + $0x198] sm:$0xff]  ;;  %v11586_v61 = vld [vmem:[#allocation14 + $0x180] sm:$0xff] }
0x1649   :  { %5430 = vmatpush1.msra.mxu0 %v521_v16  ;;  %5543 = vmatpush1.msra.mxu1 %v523_v58  ;;  %v11588_v16 = vld [vmem:[#allocation14 + $0x190] sm:$0xff]  ;;  %v11592_v58 = vld [vmem:[#allocation14 + $0x168] sm:$0xff] }
0x164a   :  { %5431 = vmatprep.subr.mxu0 %v518_v50  ;;  %5544 = vmatprep.subr.mxu1 %v520_v32  ;;  %v11594_v50 = vld [vmem:[#allocation14 + $0x178] sm:$0xff]  ;;  %v11598_v32 = vld [vmem:[#allocation14 + $0x160] sm:$0xff] }
0x164b   :  { %5432 = vmatpush1.msra.mxu0 %v517_v14  ;;  %5545 = vmatpush1.msra.mxu1 %v519_v22  ;;  %v11600_v14 = vld [vmem:[#allocation14 + $0x170] sm:$0xff]  ;;  %v11604_v22 = vld [vmem:[#allocation14 + $0x148] sm:$0xff] }
0x164c   :  { %5433 = vmatprep.subr.mxu0 %v514_v42  ;;  %5546 = vmatprep.subr.mxu1 %v516_v48  ;;  %v11606_v42 = vld [vmem:[#allocation14 + $0x158] sm:$0xff]  ;;  %v11610_v48 = vld [vmem:[#allocation14 + $0x140] sm:$0xff] }
0x164d   :  { %5434 = vmatpush1.msra.mxu0 %v513_v62  ;;  %5547 = vmatpush1.msra.mxu1 %v515_v11  ;;  %v11612_v62 = vld [vmem:[#allocation14 + $0x150] sm:$0xff]  ;;  %v11616_v11 = vld [vmem:[#allocation14 + $0x128] sm:$0xff] }
0x164e   :  { %5435 = vmatprep.subr.mxu0 %v510_v5  ;;  %5548 = vmatprep.subr.mxu1 %v512_v36  ;;  %v11618_v5 = vld [vmem:[#allocation14 + $0x138] sm:$0xff]  ;;  %v11622_v36 = vld [vmem:[#allocation14 + $0x120] sm:$0xff] }
0x164f   :  { %5436 = vmatpush1.msra.mxu0 %v509_v2  ;;  %5549 = vmatpush1.msra.mxu1 %v511_v3  ;;  %v11624_v2 = vld [vmem:[#allocation14 + $0x130] sm:$0xff]  ;;  %v11628_v3 = vld [vmem:[#allocation14 + $0x108] sm:$0xff] }
0x1650   :  { %5437 = vmatprep.subr.mxu0 %v506_v44  ;;  %5550 = vmatprep.subr.mxu1 %v508_v21  ;;  %v11630_v44 = vld [vmem:[#allocation14 + $0x118] sm:$0xff]  ;;  %v11634_v21 = vld [vmem:[#allocation14 + $0x100] sm:$0xff] }
0x1651   :  { %5438 = vmatpush1.msra.mxu0 %v505_v33  ;;  %5551 = vmatpush1.msra.mxu1 %v507_v41  ;;  %v11636_v33 = vld [vmem:[#allocation14 + $0x110] sm:$0xff]  ;;  %v11640_v41 = vld [vmem:[#allocation14 + $0xe8] sm:$0xff] }
0x1652   :  { %5439 = vmatprep.subr.mxu0 %v502_v49  ;;  %5552 = vmatprep.subr.mxu1 %v504_v31  ;;  %v11642_v49 = vld [vmem:[#allocation14 + $0xf8] sm:$0xff]  ;;  %v11646_v31 = vld [vmem:[#allocation14 + $0xe0] sm:$0xff] }
0x1653   :  { %5440 = vmatpush1.msra.mxu0 %v501_v39  ;;  %5553 = vmatpush1.msra.mxu1 %v503_v43  ;;  %v11648_v39 = vld [vmem:[#allocation14 + $0xf0] sm:$0xff]  ;;  %v11652_v43 = vld [vmem:[#allocation14 + $0xc8] sm:$0xff] }
0x1654   :  { %5441 = vmatprep.subr.mxu0 %v498_v27  ;;  %5554 = vmatprep.subr.mxu1 %v500_v63  ;;  %v11654_v27 = vld [vmem:[#allocation14 + $0xd8] sm:$0xff]  ;;  %v11658_v63 = vld [vmem:[#allocation14 + $0xc0] sm:$0xff] }
0x1655   :  { %5442 = vmatpush1.msra.mxu0 %v497_v23  ;;  %5555 = vmatpush1.msra.mxu1 %v499_v18  ;;  %v11660_v23 = vld [vmem:[#allocation14 + $0xd0] sm:$0xff]  ;;  %v11664_v18 = vld [vmem:[#allocation14 + $0xa8] sm:$0xff] }
0x1656   :  { %5443 = vmatprep.subr.mxu0 %v494_v28  ;;  %5556 = vmatprep.subr.mxu1 %v496_v34  ;;  %v11666_v28 = vld [vmem:[#allocation14 + $0xb8] sm:$0xff]  ;;  %v11670_v34 = vld [vmem:[#allocation14 + $0xa0] sm:$0xff] }
0x1657   :  { %5444 = vmatpush1.msra.mxu0 %v493_v38  ;;  %5557 = vmatpush1.msra.mxu1 %v495_v1  ;;  %v11672_v38 = vld [vmem:[#allocation14 + $0xb0] sm:$0xff]  ;;  %v11676_v1 = vld [vmem:[#allocation14 + $0x88] sm:$0xff] }
0x1658   :  { %5445 = vmatprep.subr.mxu0 %v490_v26  ;;  %5558 = vmatprep.subr.mxu1 %v492_v25  ;;  %13708 = vst [vmem:[#allocation77_spill] sm:$0xff] %v11672_v38  ;;  %13709 = vst [vmem:[#allocation79_spill] sm:$0xff] %v11676_v1  ;;  %v11678_v26 = vld [vmem:[#allocation14 + $0x98] sm:$0xff]  ;;  %v11682_v25 = vld [vmem:[#allocation14 + $0x80] sm:$0xff] }
0x1659   :  { %5446 = vmatpush1.msra.mxu0 %v489_v55  ;;  %5559 = vmatpush1.msra.mxu1 %v491_v17  ;;  %13710 = vst [vmem:[#allocation81_spill] sm:$0xff] %v11678_v26  ;;  %13711 = vst [vmem:[#allocation80_spill] sm:$0xff] %v11682_v25  ;;  %v11684_v55 = vld [vmem:[#allocation14 + $0x90] sm:$0xff]  ;;  %v11688_v17 = vld [vmem:[#allocation14 + $0x68] sm:$0xff] }
0x165a   :  { %5447 = vmatprep.subr.mxu0 %v486_v59  ;;  %5560 = vmatprep.subr.mxu1 %v488_v8  ;;  %13712 = vst [vmem:[#allocation69_spill] sm:$0xff] %v11684_v55  ;;  %13713 = vst [vmem:[#allocation25_spill] sm:$0xff] %v11688_v17  ;;  %v11690_v59 = vld [vmem:[#allocation14 + $0x78] sm:$0xff]  ;;  %v11694_v8 = vld [vmem:[#allocation14 + $0x60] sm:$0xff] }
0x165b   :  { %5448 = vmatpush1.msra.mxu0 %v485_v40  ;;  %5481 = vmatprep.mubr.f32.mxu0 %v13698_v15  ;;  %13714 = vst [vmem:[#allocation47_spill] sm:$0xff] %v11690_v59  ;;  %13715 = vst [vmem:[#allocation23_spill] sm:$0xff] %v11694_v8  ;;  %v11696_v40 = vld [vmem:[#allocation14 + $0x70] sm:$0xff] }
0x165c   :  { %5561 = vmatpush1.msra.mxu1 %v487_v6  ;;  %5594 = vmatprep.mubr.f32.mxu1 %v13698_v15  ;;  %13716 = vst [vmem:[#allocation54_spill] sm:$0xff] %v11696_v40  ;;  %v11700_v6 = vld [vmem:[#allocation14 + $0x48] sm:$0xff] }
0x165d   :  { %5482 = vmatmul.mubr.f32.vlgmr.msra.gmra.mxu0 %v13701_v57  ;;  %5595 = vmatmul.mubr.f32.vlgmr.msra.gmra.mxu1 %v13701_v57  ;;  %13717 = vst [vmem:[#allocation70_spill] sm:$0xff] %v11700_v6  ;;  %v11702_v57 = vld [vmem:[#allocation14 + $0x58] sm:$0xff] }
0x165e   :  { %5487 = vmatprep.mubr.f32.mxu0 %v13698_v15  ;;  %5600 = vmatprep.mubr.f32.mxu1 %v13698_v15  ;;  %13718 = vst [vmem:[#allocation46_spill] sm:$0xff] %v11702_v57 }
0x165f   :  { %5679 = vmatprep.subr.mxu0 %v11544_v52  ;;  %5750 = vmatprep.subr.mxu1 %v11546_v20 }
0x1660   :  { %5751 = vmatpush1.msra.mxu1 %v11552_v24 }
0x1661   :  { %5488 = vmatmul.mubr.f32.gmra.mxu0 %v13702_v7  ;;  %5601 = vmatmul.mubr.f32.gmra.mxu1 %v13702_v7  ;;  %v11706_v7 = vld [vmem:[#allocation14 + $0x40] sm:$0xff] }
0x1662   :  { %5493 = vmatprep.mubr.f32.mxu0 %v13698_v15  ;;  %5606 = vmatprep.mubr.f32.mxu1 %v13698_v15  ;;  %13719 = vst [vmem:[#allocation24_spill] sm:$0xff] %v11706_v7 }
0x1663   :  { %5752 = vmatprep.subr.mxu1 %v11558_v60 }
0x1664   :  { %5753 = vmatpush1.msra.mxu1 %v11564_v19 }
0x1665   :  { %5494 = vmatmul.mubr.f32.gmra.mxu0 %v13703_v35  ;;  %5607 = vmatmul.mubr.f32.gmra.mxu1 %v13703_v35  ;;  %v11708_v35 = vld [vmem:[#allocation14 + $0x50] sm:$0xff] }
0x1666   :  { %5499 = vmatprep.mubr.f32.mxu0 %v13698_v15  ;;  %5612 = vmatprep.mubr.f32.mxu1 %v13698_v15  ;;  %13720 = vst [vmem:[#allocation49_spill] sm:$0xff] %v11708_v35 }
0x1667   :  { %5754 = vmatprep.subr.mxu1 %v11570_v51 }
0x1668   :  { %5755 = vmatpush1.msra.mxu1 %v11576_v0 }
0x1669   :  { %5500 = vmatmul.mubr.f32.gmra.mxu0 %v13704_v53  ;;  %5613 = vmatmul.mubr.f32.gmra.mxu1 %v13704_v53  ;;  %v11712_v53 = vld [vmem:[#allocation14 + $0x28] sm:$0xff] }
0x166a   :  { %5505 = vmatprep.mubr.f32.mxu0 %v13698_v15  ;;  %5618 = vmatprep.mubr.f32.mxu1 %v13698_v15  ;;  %13721 = vst [vmem:[#allocation30_spill] sm:$0xff] %v11712_v53 }
0x166b   :  { %5756 = vmatprep.subr.mxu1 %v11582_v45 }
0x166c   :  { %5757 = vmatpush1.msra.mxu1 %v11588_v16 }
0x166d   :  { %5506 = vmatmul.mubr.f32.gmra.mxu0 %v13705_v37  ;;  %5619 = vmatmul.mubr.f32.gmra.mxu1 %v13705_v37  ;;  %v11714_v37 = vld [vmem:[#allocation14 + $0x38] sm:$0xff] }
0x166e   :  { %5511 = vmatprep.mubr.f32.mxu0 %v13698_v15  ;;  %5624 = vmatprep.mubr.f32.mxu1 %v13698_v15  ;;  %13722 = vst [vmem:[#allocation32_spill] sm:$0xff] %v11714_v37 }
0x166f   :  { %5758 = vmatprep.subr.mxu1 %v11594_v50 }
0x1670   :  { %5759 = vmatpush1.msra.mxu1 %v11600_v14 }
0x1671   :  { %5512 = vmatmul.mubr.f32.gmra.mxu0 %v11434_v29  ;;  %5625 = vmatmul.mubr.f32.gmra.mxu1 %v11434_v29  ;;  %v11550_v29 = vld [vmem:[#allocation14 + $0x1e0] sm:$0xff] }
0x1672   :  { %5517 = vmatprep.mubr.f32.mxu0 %v13698_v15  ;;  %5630 = vmatprep.mubr.f32.mxu1 %v13698_v15 }
0x1673   :  { %5680 = vmatpush1.msra.mxu0 %v11550_v29  ;;  %5760 = vmatprep.subr.mxu1 %v11606_v42 }
0x1674   :  { %5761 = vmatpush1.msra.mxu1 %v11612_v62 }
0x1675   :  { %5518 = vmatmul.mubr.f32.gmra.mxu0 %v11510_v9  ;;  %5631 = vmatmul.mubr.f32.gmra.mxu1 %v11510_v9  ;;  %v11556_v9 = vld [vmem:[#allocation14 + $0x1c8] sm:$0xff] }
0x1676   :  { %5523 = vmatprep.mubr.f32.mxu0 %v13698_v15  ;;  %5636 = vmatprep.mubr.f32.mxu1 %v13698_v15 }
0x1677   :  { %5681 = vmatprep.subr.mxu0 %v11556_v9  ;;  %5762 = vmatprep.subr.mxu1 %v11618_v5 }
0x1678   :  { %5682 = vmatpush1.msra.mxu0 %v11562_v56  ;;  %5763 = vmatpush1.msra.mxu1 %v11624_v2 }
0x1679   :  { %5683 = vmatprep.subr.mxu0 %v11568_v47  ;;  %5764 = vmatprep.subr.mxu1 %v11630_v44 }
0x167a   :  { %5684 = vmatpush1.msra.mxu0 %v11574_v4  ;;  %5765 = vmatpush1.msra.mxu1 %v11636_v33 }
0x167b   :  { %5685 = vmatprep.subr.mxu0 %v11580_v54  ;;  %5766 = vmatprep.subr.mxu1 %v11642_v49 }
0x167c   :  { %5686 = vmatpush1.msra.mxu0 %v11586_v61  ;;  %5767 = vmatpush1.msra.mxu1 %v11648_v39 }
0x167d   :  { %5687 = vmatprep.subr.mxu0 %v11592_v58  ;;  %5768 = vmatprep.subr.mxu1 %v11654_v27 }
0x167e   :  { %5688 = vmatpush1.msra.mxu0 %v11598_v32  ;;  %5769 = vmatpush1.msra.mxu1 %v11660_v23 }
0x167f   :  { %5689 = vmatprep.subr.mxu0 %v11604_v22  ;;  %5770 = vmatprep.subr.mxu1 %v11666_v28 }
0x1680   :  { %5690 = vmatpush1.msra.mxu0 %v11610_v48  ;;  %5771 = vmatpush1.msra.mxu1 %v11672_v38 }
0x1681   :  { %5691 = vmatprep.subr.mxu0 %v11616_v11  ;;  %5772 = vmatprep.subr.mxu1 %v11678_v26  ;;  %v13729_v26 = vld [vmem:[#allocation35_spill] sm:$0xff] }
0x1682   :  { %5692 = vmatpush1.msra.mxu0 %v11622_v36  ;;  %5773 = vmatpush1.msra.mxu1 %v11684_v55 }
0x1683   :  { %5693 = vmatprep.subr.mxu0 %v11628_v3  ;;  %5774 = vmatprep.subr.mxu1 %v11690_v59 }
0x1684   :  { %5694 = vmatpush1.msra.mxu0 %v11634_v21  ;;  %5775 = vmatpush1.msra.mxu1 %v11696_v40  ;;  %v11718_v40 = vld [vmem:[#allocation14 + $0x20] sm:$0xff] }
0x1685   :  { %5695 = vmatprep.subr.mxu0 %v11640_v41  ;;  %5776 = vmatprep.subr.mxu1 %v11702_v57  ;;  %13723 = vst [vmem:[#allocation39_spill] sm:$0xff] %v11718_v40  ;;  %v11724_v57 = vld [vmem:[#allocation14 + $0x8] sm:$0xff] }
0x1686   :  { %5696 = vmatpush1.msra.mxu0 %v11646_v31  ;;  %5777 = vmatpush1.msra.mxu1 %v11708_v35  ;;  %13725 = vst [vmem:[#allocation58_spill] sm:$0xff] %v11724_v57  ;;  %v11728_v35 = vld [vmem:[#allocation14] sm:$0xff] }
0x1687   :  { %5697 = vmatprep.subr.mxu0 %v11652_v43  ;;  %5778 = vmatprep.subr.mxu1 %v11714_v37  ;;  %13727 = vst [vmem:[#allocation71_spill] sm:$0xff] %v11728_v35 }
0x1688   :  { %5698 = vmatpush1.msra.mxu0 %v11658_v63 }
0x1689   :  { %5699 = vmatprep.subr.mxu0 %v11664_v18 }
0x168a   :  { %5700 = vmatpush1.msra.mxu0 %v11670_v34 }
0x168b   :  { %5701 = vmatprep.subr.mxu0 %v11676_v1 }
0x168c   :  { %5702 = vmatpush1.msra.mxu0 %v11682_v25 }
0x168d   :  { %5703 = vmatprep.subr.mxu0 %v11688_v17 }
0x168e   :  { %5704 = vmatpush1.msra.mxu0 %v11694_v8 }
0x168f   :  { %5705 = vmatprep.subr.mxu0 %v11700_v6  ;;  %v11720_v6 = vld [vmem:[#allocation14 + $0x30] sm:$0xff] }
0x1690   :  { %5706 = vmatpush1.msra.mxu0 %v11706_v7  ;;  %13724 = vst [vmem:[#allocation38_spill] sm:$0xff] %v11720_v6  ;;  %5779 = vmatpush1.msra.mxu1 %v11720_v6  ;;  %v11726_v7 = vld [vmem:[#allocation14 + $0x18] sm:$0xff] }
0x1691   :  { %5707 = vmatprep.subr.mxu0 %v11712_v53  ;;  %13726 = vst [vmem:[#allocation72_spill] sm:$0xff] %v11726_v7  ;;  %5780 = vmatprep.subr.mxu1 %v11726_v7  ;;  %v11732_v53 = vld [vmem:[#allocation14 + $0x10] sm:$0xff] }
0x1692   :  { %5708 = vmatpush1.msra.mxu0 %v11718_v40  ;;  %13728 = vst [vmem:[#allocation57_spill] sm:$0xff] %v11732_v53  ;;  %5781 = vmatpush1.msra.mxu1 %v11732_v53 }
0x1693   :  { %5709 = vmatprep.subr.mxu0 %v11724_v57  ;;  %5925 = vmatprep.subr.mxu1 %v11546_v20 }
0x1694   :  { %5710 = vmatpush1.msra.mxu0 %v11728_v35 }
0x1695   :  { %5854 = vmatprep.subr.mxu0 %v11544_v52 }
0x16fc   :  { %v5283_v6 = vpop.f32.mrf.mxu0  ;;  %v5354_v57 = vpop.f32.mrf.mxu1 }
0x16fd   :  { %v5359_v40 = vadd.f32 %v5283_v6, %v13699_v12  ;;  %v5361_v52 = vadd.f32 %v5354_v57, %v10909_v13  ;;  %v7390_v12 = vmul.f32 -1.442695, %v13729_v26 }
0x16fe   :  { %v5285_v37 = vpop.f32.mrf.mxu0  ;;  %v5356_v17 = vpop.f32.mrf.mxu1 }
0x16ff   :  { %v7412_v8 = vmul.f32 -1.442695, %v5359_v40  ;;  %v5360_v59 = vadd.f32 %v5285_v37, %v13700_v30  ;;  %v5362_v35 = vadd.f32 %v5356_v17, %v10905_v10  ;;  %v13731_v37 = vld [vmem:[#allocation81_spill] sm:$0xff] }
0x1701   :  { %7885 = vpow2.f32 %v7412_v8  ;;  %v7413_v7 = vmul.f32 -1.442695, %v5360_v59  ;;  %v7414_v55 = vmul.f32 -1.442695, %v5362_v35 }
0x1703   :  { %7887 = vpow2.f32 %v7413_v7 }
0x1704   :  { %7889 = vpow2.f32 %v7414_v55  ;;  %v13730_v55 = vld [vmem:[#allocation44_spill] sm:$0xff] }
0x170e   :  { %v7886_v53 = vpop.eup %7885 }
0x170f   :  { %v5366_v25 = vadd.f32 1.0, %v7886_v53 }
0x1710   :  { %v7888_v20 = vpop.eup %7887 }
0x1711   :  { %7891 = vrcp.f32 %v5366_v25  ;;  %v5372_v40 = vadd.f32 1.0, %v7888_v20  ;;  %v7890_v30 = vpop.eup %7889 }
0x1712   :  { %7893 = vtanh.f32 %v5361_v52  ;;  %v5379_v7 = vadd.f32 1.0, %v7890_v30  ;;  %v13734_v30 = vld [vmem:[#allocation25_spill] sm:$0xff] }
0x1713   :  { %7895 = vrcp.f32 %v5372_v40  ;;  %v13733_v40 = vld [vmem:[#allocation69_spill] sm:$0xff] }
0x1714   :  { %7897 = vpow2.f32 %v7390_v12  ;;  %v13732_v12 = vld [vmem:[#allocation80_spill] sm:$0xff] }
0x1715   :  { %7899 = vrcp.f32 %v5379_v7  ;;  %v13738_v7 = vld [vmem:[#allocation70_spill] sm:$0xff] }
0x171e   :  { %v7892_v59 = vpop.eup %7891 }
0x171f   :  { %v7894_v8 = vpop.eup %7893 }
0x1720   :  { %v7896_v6 = vpop.eup %7895  ;;  %v5383_v10 = vmul.f32 %v7894_v8, %v7892_v59  ;;  %v13735_v59 = vld [vmem:[#allocation47_spill] sm:$0xff] }
0x1721   :  { %v5382_v17 = vmul.f32 %v7896_v6, %v11507_v46  ;;  %v7898_v35 = vpop.eup %7897  ;;  %v13736_v8 = vld [vmem:[#allocation23_spill] sm:$0xff]  ;;  %v13737_v6 = vld [vmem:[#allocation54_spill] sm:$0xff] }
0x1722   :  { %v3991_v57 = vadd.f32 1.0, %v7898_v35  ;;  %v7900_v20 = vpop.eup %7899  ;;  %v13741_v35 = vld [vmem:[#allocation49_spill] sm:$0xff] }
0x1723   :  { %v5384_v13 = vadd.f32 %v5383_v10, %v5382_v17  ;;  %v13739_v10 = vld [vmem:[#allocation46_spill] sm:$0xff]  ;;  %v13740_v17 = vld [vmem:[#allocation24_spill] sm:$0xff] }
0x1725   :  { %7901 = vtanh.f32 %v5384_v13  ;;  %v13742_v13 = vld [vmem:[#allocation30_spill] sm:$0xff] }
0x1726   :  { %7903 = vtanh.f32 %v13730_v55 }
0x1727   :  { %7905 = vrcp.f32 %v3991_v57  ;;  %v13743_v57 = vld [vmem:[#allocation32_spill] sm:$0xff] }
0x1732   :  { %v7902_v52 = vpop.eup %7901 }
0x1733   :  { %v5386_v26 = vmul.f32 %v7902_v52, %v7900_v20  ;;  %v7904_v25 = vpop.eup %7903  ;;  %v13744_v20 = vld [vmem:[#allocation39_spill] sm:$0xff]  ;;  %v13745_v52 = vld [vmem:[#allocation38_spill] sm:$0xff] }
0x1734   :  { %v7906_v53 = vpop.eup %7905 }
0x1735   :  { %5524 = vmatmul.mubr.f32.gmra.mxu0 %v5386_v26  ;;  %5637 = vmatmul.mubr.f32.gmra.mxu1 %v5386_v26  ;;  %v3998_v46 = vmul.f32 %v7906_v53, %v7904_v25  ;;  %v13746_v26 = vld [vmem:[#allocation58_spill] sm:$0xff]  ;;  %v13747_v25 = vld [vmem:[#allocation72_spill] sm:$0xff]  ;;  %v13748_v53 = vld [vmem:[#allocation71_spill] sm:$0xff] }
0x1736   :  { %5743 = vmatprep.mubr.f32.mxu0 %v13698_v15  ;;  %5814 = vmatprep.mubr.f32.mxu1 %v13698_v15 }
0x1739   :  { %5744 = vmatmul.mubr.f32.vlgmr.msra.gmra.mxu0 %v3998_v46  ;;  %5815 = vmatmul.mubr.f32.vlgmr.msra.gmra.mxu1 %v3998_v46  ;;  %v13749_v46 = vld [vmem:[#allocation57_spill] sm:$0xff] }
0x173a   :  { %5855 = vmatpush1.msra.mxu0 %v11550_v29  ;;  %5926 = vmatpush1.msra.mxu1 %v11552_v24 }
0x173b   :  { %5856 = vmatprep.subr.mxu0 %v11556_v9  ;;  %5927 = vmatprep.subr.mxu1 %v11558_v60 }
0x173c   :  { %5857 = vmatpush1.msra.mxu0 %v11562_v56  ;;  %5928 = vmatpush1.msra.mxu1 %v11564_v19 }
0x173d   :  { %5858 = vmatprep.subr.mxu0 %v11568_v47  ;;  %5929 = vmatprep.subr.mxu1 %v11570_v51 }
0x173e   :  { %5859 = vmatpush1.msra.mxu0 %v11574_v4  ;;  %5930 = vmatpush1.msra.mxu1 %v11576_v0 }
0x173f   :  { %5860 = vmatprep.subr.mxu0 %v11580_v54  ;;  %5931 = vmatprep.subr.mxu1 %v11582_v45 }
0x1740   :  { %5861 = vmatpush1.msra.mxu0 %v11586_v61  ;;  %5932 = vmatpush1.msra.mxu1 %v11588_v16 }
0x1741   :  { %5862 = vmatprep.subr.mxu0 %v11592_v58  ;;  %5933 = vmatprep.subr.mxu1 %v11594_v50 }
0x1742   :  { %5863 = vmatpush1.msra.mxu0 %v11598_v32  ;;  %5934 = vmatpush1.msra.mxu1 %v11600_v14 }
0x1743   :  { %5864 = vmatprep.subr.mxu0 %v11604_v22  ;;  %5935 = vmatprep.subr.mxu1 %v11606_v42 }
0x1744   :  { %5865 = vmatpush1.msra.mxu0 %v11610_v48  ;;  %5936 = vmatpush1.msra.mxu1 %v11612_v62 }
0x1745   :  { %5866 = vmatprep.subr.mxu0 %v11616_v11  ;;  %5937 = vmatprep.subr.mxu1 %v11618_v5 }
0x1746   :  { %5867 = vmatpush1.msra.mxu0 %v11622_v36  ;;  %5938 = vmatpush1.msra.mxu1 %v11624_v2 }
0x1747   :  { %5868 = vmatprep.subr.mxu0 %v11628_v3  ;;  %5939 = vmatprep.subr.mxu1 %v11630_v44 }
0x1748   :  { %5869 = vmatpush1.msra.mxu0 %v11634_v21  ;;  %5940 = vmatpush1.msra.mxu1 %v11636_v33 }
0x1749   :  { %5870 = vmatprep.subr.mxu0 %v11640_v41  ;;  %5941 = vmatprep.subr.mxu1 %v11642_v49 }
0x174a   :  { %5871 = vmatpush1.msra.mxu0 %v11646_v31  ;;  %5942 = vmatpush1.msra.mxu1 %v11648_v39 }
0x174b   :  { %5872 = vmatprep.subr.mxu0 %v11652_v43  ;;  %5943 = vmatprep.subr.mxu1 %v11654_v27 }
0x174c   :  { %5873 = vmatpush1.msra.mxu0 %v11658_v63  ;;  %5944 = vmatpush1.msra.mxu1 %v11660_v23 }
0x174d   :  { %5874 = vmatprep.subr.mxu0 %v11664_v18  ;;  %5945 = vmatprep.subr.mxu1 %v11666_v28 }
0x174e   :  { %5875 = vmatpush1.msra.mxu0 %v11670_v34  ;;  %5946 = vmatpush1.msra.mxu1 %v11672_v38 }
0x174f   :  { %5876 = vmatprep.subr.mxu0 %v11676_v1  ;;  %5947 = vmatprep.subr.mxu1 %v13731_v37 }
0x1750   :  { %5877 = vmatpush1.msra.mxu0 %v13732_v12  ;;  %5948 = vmatpush1.msra.mxu1 %v13733_v40 }
0x1751   :  { %5878 = vmatprep.subr.mxu0 %v13734_v30  ;;  %5949 = vmatprep.subr.mxu1 %v13735_v59 }
0x1752   :  { %5879 = vmatpush1.msra.mxu0 %v13736_v8  ;;  %5950 = vmatpush1.msra.mxu1 %v13737_v6 }
0x1753   :  { %5880 = vmatprep.subr.mxu0 %v13738_v7  ;;  %5951 = vmatprep.subr.mxu1 %v13739_v10 }
0x1754   :  { %5881 = vmatpush1.msra.mxu0 %v13740_v17  ;;  %5952 = vmatpush1.msra.mxu1 %v13741_v35  ;;  %v13750_v35 = vld [vmem:[#allocation82_spill] sm:$0xff] }
0x1755   :  { %5882 = vmatprep.subr.mxu0 %v13742_v13  ;;  %5953 = vmatprep.subr.mxu1 %v13743_v57  ;;  %v13751_v13 = vld [vmem:[#allocation78_spill] sm:$0xff]  ;;  %v5483_v57 = vpop.f32.mrf.mxu0 }
0x1756   :  { %5883 = vmatpush1.msra.mxu0 %v13744_v20  ;;  %5954 = vmatpush1.msra.mxu1 %v13745_v52  ;;  %v5596_v20 = vpop.f32.mrf.mxu1 }
0x1757   :  { %5884 = vmatprep.subr.mxu0 %v13746_v26  ;;  %5955 = vmatprep.subr.mxu1 %v13747_v25  ;;  %v5485_v17 = vpop.f32.mrf.mxu0 }
0x1758   :  { %5885 = vmatpush1.msra.mxu0 %v13748_v53  ;;  %5918 = vmatprep.mubr.f32.mxu0 %v13698_v15  ;;  %v5598_v52 = vpop.f32.mrf.mxu1 }
0x1759   :  { %5956 = vmatpush1.msra.mxu1 %v13749_v46  ;;  %5989 = vmatprep.mubr.f32.mxu1 %v13698_v15  ;;  %v11813_v10 = vpop.f32.mrf.mxu0 }
0x175a   :  { %6029 = vmatprep.subr.mxu0 %v13750_v35  ;;  %6100 = vmatprep.subr.mxu1 %v13751_v13  ;;  %13752 = vst [vmem:[#allocation26_spill] sm:$0xff] %v11813_v10  ;;  %v11815_v26 = vpop.f32.mrf.mxu1 }
0x175b   :  { %13753 = vst [vmem:[#allocation27_spill] sm:$0xff] %v11815_v26  ;;  %v11817_v25 = vpop.f32.mrf.mxu0 }
0x175c   :  { %13754 = vst [vmem:[#allocation75_spill] sm:$0xff] %v11817_v25  ;;  %v11819_v53 = vpop.f32.mrf.mxu1 }
0x175d   :  { %13755 = vst [vmem:[#allocation31_spill] sm:$0xff] %v11819_v53  ;;  %v11821_v7 = vpop.f32.mrf.mxu0 }
0x175e   :  { %13756 = vst [vmem:[#allocation59_spill] sm:$0xff] %v11821_v7  ;;  %v11823_v46 = vpop.f32.mrf.mxu1 }
0x175f   :  { %13757 = vst [vmem:[#allocation34_spill] sm:$0xff] %v11823_v46  ;;  %v11825_v15 = vpop.f32.mrf.mxu0 }
0x1760   :  { %13758 = vst [vmem:[#allocation65_spill] sm:$0xff] %v11825_v15  ;;  %v11827_v35 = vpop.f32.mrf.mxu1 }
0x1761   :  { %13759 = vst [vmem:[#allocation53_spill] sm:$0xff] %v11827_v35  ;;  %v11829_v13 = vpop.f32.mrf.mxu0 }
0x1762   :  { %13760 = vst [vmem:[#allocation68_spill] sm:$0xff] %v11829_v13  ;;  %v11831_v6 = vpop.f32.mrf.mxu1 }
0x1763   :  { %13761 = vst [vmem:[#allocation67_spill] sm:$0xff] %v11831_v6  ;;  %v11833_v8 = vpop.f32.mrf.mxu0 }
0x1764   :  { %13762 = vst [vmem:[#allocation22_spill] sm:$0xff] %v11833_v8  ;;  %v11835_v10 = vpop.f32.mrf.mxu1 }
0x1765   :  { %13763 = vst [vmem:[#allocation33_spill] sm:$0xff] %v11835_v10  ;;  %v11837_v26 = vpop.f32.mrf.mxu0 }
0x1766   :  { %13764 = vst [vmem:[#allocation41_spill] sm:$0xff] %v11837_v26  ;;  %v11839_v25 = vpop.f32.mrf.mxu1 }
0x1767   :  { %13765 = vst [vmem:[#allocation42_spill] sm:$0xff] %v11839_v25  ;;  %v11841_v53 = vpop.f32.mrf.mxu0  ;;  %v613_v25 = vld [vmem:[%s12644_s11] sm:$0xf] }
0x1768   :  { %13766 = vst [vmem:[#allocation28_spill] sm:$0xff] %v11841_v53  ;;  %v11843_v7 = vpop.f32.mrf.mxu1  ;;  %v13775_v53 = vld [vmem:[#allocation45_spill] sm:$0xff] }
0x1769   :  { %13767 = vst [vmem:[#allocation29_spill] sm:$0xff] %v11843_v7  ;;  %v11845_v46 = vpop.f32.mrf.mxu0  ;;  %v11863_v7 = vrot.slane %v613_v25, %v13775_v53 }
0x176a   :  { %13768 = vst [vmem:[#allocation37_spill] sm:$0xff] %v11845_v46  ;;  %v11847_v15 = vpop.f32.mrf.mxu1 }
0x176b   :  { %13769 = vst [vmem:[#allocation36_spill] sm:$0xff] %v11847_v15  ;;  %v11849_v35 = vpop.f32.mrf.mxu0  ;;  %13776 = vst [vmem:[#allocation48_spill] sm:$0xff] %v11863_v7 }
0x176c   :  { %13770 = vst [vmem:[#allocation55_spill] sm:$0xff] %v11849_v35  ;;  %v11851_v13 = vpop.f32.mrf.mxu1  ;;  %v13779_v35 = vld [vmem:[#allocation56_spill] sm:$0xff] }
0x176d   :  { %13771 = vst [vmem:[#allocation40_spill] sm:$0xff] %v11851_v13  ;;  %v11853_v6 = vpop.f32.mrf.mxu0  ;;  %v11870_v10 = vrot.slane %v613_v25, %v13779_v35  ;;  %v13783_v35 = vld [vmem:[#allocation63_spill] sm:$0xff] }
0x176e   :  { %13772 = vst [vmem:[#allocation60_spill] sm:$0xff] %v11853_v6  ;;  %v11855_v8 = vpop.f32.mrf.mxu1  ;;  %v11881_v1 = vrot.slane %v613_v25, %v13783_v35 }
0x176f   :  { %13773 = vst [vmem:[#allocation73_spill] sm:$0xff] %v11855_v8  ;;  %v11860_v26 = vpop.f32.mrf.mxu0  ;;  %v5484_v8 = vadd.f32 %v5483_v57, %v11863_v7  ;;  %v5486_v30 = vadd.f32 %v5485_v17, %v11870_v10  ;;  %v13785_v57 = vld [vmem:[#allocation62_spill] sm:$0xff] }
0x1770   :  { %13774 = vst [vmem:[#allocation61_spill] sm:$0xff] %v11860_v26  ;;  %v11865_v46 = vpop.f32.mrf.mxu1  ;;  %13784 = vst [vmem:[#allocation66_spill] sm:$0xff] %v11881_v1  ;;  %v11885_v7 = vrot.slane %v613_v25, %v13785_v57 }
0x1771   :  { %13777 = vst [vmem:[#allocation74_spill] sm:$0xff] %v11865_v46 }
0x17f5   :  { %v11867_v15 = vpop.f32.mrf.mxu0  ;;  %v11872_v13 = vpop.f32.mrf.mxu1 }
0x17f6   :  { %13778 = vst [vmem:[#allocation64_spill] sm:$0xff] %v11867_v15  ;;  %13780 = vst [vmem:[#allocation43_spill] sm:$0xff] %v11872_v13 }
0x17f7   :  { %v11874_v6 = vpop.f32.mrf.mxu0  ;;  %v11878_v26 = vpop.f32.mrf.mxu1 }
0x17f8   :  { %13781 = vst [vmem:[#allocation51_spill] sm:$0xff] %v11874_v6  ;;  %13782 = vst [vmem:[#allocation50_spill] sm:$0xff] %v11878_v26  ;;  %v5599_v6 = vadd.f32 %v5598_v52, %v11881_v1  ;;  %v5597_v26 = vadd.f32 %v5596_v20, %v11885_v7 }
0x17f9   :  { %v5745_v59 = vpop.f32.mrf.mxu0  ;;  %v5816_v15 = vpop.f32.mrf.mxu1 }
0x17fa   :  { %v5821_v53 = vadd.f32 %v5745_v59, %v5484_v8 }
0x17fb   :  { %v5747_v40 = vpop.f32.mrf.mxu0  ;;  %v5818_v13 = vpop.f32.mrf.mxu1 }
0x17fc   :  { %v7415_v12 = vmul.f32 -1.442695, %v5821_v53  ;;  %v5822_v46 = vadd.f32 %v5747_v40, %v5486_v30  ;;  %v5824_v17 = vadd.f32 %v5818_v13, %v5599_v6  ;;  %v5823_v53 = vadd.f32 %v5816_v15, %v5597_v26 }
0x17fe   :  { %7907 = vpow2.f32 %v7415_v12  ;;  %v7416_v37 = vmul.f32 -1.442695, %v5822_v46  ;;  %v7417_v59 = vmul.f32 -1.442695, %v5824_v17  ;;  %v13789_v17 = vld [vmem:[#allocation80_spill] sm:$0xff] }
0x1800   :  { %7909 = vpow2.f32 %v7416_v37 }
0x1801   :  { %7911 = vpow2.f32 %v7417_v59  ;;  %v13790_v59 = vld [vmem:[#allocation69_spill] sm:$0xff] }
0x180b   :  { %v7908_v8 = vpop.eup %7907 }
0x180c   :  { %v5828_v40 = vadd.f32 1.0, %v7908_v8  ;;  %v13791_v8 = vld [vmem:[#allocation25_spill] sm:$0xff] }
0x180d   :  { %v7910_v12 = vpop.eup %7909 }
0x180e   :  { %7913 = vrcp.f32 %v5828_v40  ;;  %v5834_v30 = vadd.f32 1.0, %v7910_v12  ;;  %v7912_v37 = vpop.eup %7911  ;;  %v13793_v40 = vld [vmem:[#allocation23_spill] sm:$0xff]  ;;  %v13794_v12 = vld [vmem:[#allocation54_spill] sm:$0xff] }
0x180f   :  { %7915 = vtanh.f32 %v5823_v53  ;;  %v5841_v1 = vadd.f32 1.0, %v7912_v37  ;;  %v13792_v53 = vld [vmem:[#allocation47_spill] sm:$0xff]  ;;  %v13796_v37 = vld [vmem:[#allocation46_spill] sm:$0xff] }
0x1810   :  { %7917 = vrcp.f32 %v5834_v30  ;;  %v13795_v30 = vld [vmem:[#allocation70_spill] sm:$0xff] }
0x1811   :  { %7919 = vrcp.f32 %v5841_v1  ;;  %v13787_v1 = vld [vmem:[#allocation79_spill] sm:$0xff] }
0x181b   :  { %v7914_v46 = vpop.eup %7913 }
0x181c   :  { %v7916_v35 = vpop.eup %7915 }
0x181d   :  { %v7918_v52 = vpop.eup %7917  ;;  %v5845_v25 = vmul.f32 %v7916_v35, %v7914_v46  ;;  %v13797_v46 = vld [vmem:[#allocation24_spill] sm:$0xff]  ;;  %v13798_v35 = vld [vmem:[#allocation49_spill] sm:$0xff] }
0x181e   :  { %v5844_v6 = vmul.f32 %v7918_v52, %v13730_v55  ;;  %v7920_v15 = vpop.eup %7919  ;;  %v13788_v55 = vld [vmem:[#allocation81_spill] sm:$0xff]  ;;  %v13799_v52 = vld [vmem:[#allocation30_spill] sm:$0xff] }
0x1820   :  { %v11889_v13 = vadd.f32 %v5845_v25, %v5844_v6  ;;  %v13800_v25 = vld [vmem:[#allocation32_spill] sm:$0xff]  ;;  %v13801_v6 = vld [vmem:[#allocation39_spill] sm:$0xff] }
0x1822   :  { %7921 = vtanh.f32 %v11889_v13 }
0x182f   :  { %v7922_v20 = vpop.eup %7921 }
0x1830   :  { %v11892_v26 = vmul.f32 %v7922_v20, %v7920_v15  ;;  %v13802_v15 = vld [vmem:[#allocation38_spill] sm:$0xff] }
0x1831   :  { %v13803_v20 = vld [vmem:[#allocation58_spill] sm:$0xff] }
0x1832   :  { %13786 = vst [vmem:[#allocation52_spill] sm:$0xff] %v11892_v26  ;;  %7083 = vadd.xlane.f32.xlu0 %v11892_v26  ;;  %5919 = vmatmul.mubr.f32.vlgmr.msra.gmra.mxu0 %v11892_v26  ;;  %v7107_v57 = vmul.f32 %v11892_v26, %v11892_v26 }
0x1833   :  { %5990 = vmatmul.mubr.f32.vlgmr.msra.gmra.mxu1 %v11892_v26  ;;  %6030 = vmatpush1.msra.mxu0 %v11550_v29  ;;  %v13805_v26 = vld [vmem:[#allocation71_spill] sm:$0xff] }
0x1834   :  { %7115 = vadd.xlane.f32.xlu1 %v7107_v57  ;;  %6101 = vmatpush1.msra.mxu1 %v11552_v24  ;;  %v13804_v57 = vld [vmem:[#allocation72_spill] sm:$0xff] }
0x1835   :  { %6031 = vmatprep.subr.mxu0 %v11556_v9  ;;  %6102 = vmatprep.subr.mxu1 %v11558_v60 }
0x1836   :  { %6032 = vmatpush1.msra.mxu0 %v11562_v56  ;;  %6103 = vmatpush1.msra.mxu1 %v11564_v19 }
0x1837   :  { %6033 = vmatprep.subr.mxu0 %v11568_v47  ;;  %6104 = vmatprep.subr.mxu1 %v11570_v51 }
0x1838   :  { %6034 = vmatpush1.msra.mxu0 %v11574_v4  ;;  %6105 = vmatpush1.msra.mxu1 %v11576_v0 }
0x1839   :  { %6035 = vmatprep.subr.mxu0 %v11580_v54  ;;  %6106 = vmatprep.subr.mxu1 %v11582_v45 }
0x183a   :  { %6036 = vmatpush1.msra.mxu0 %v11586_v61  ;;  %6107 = vmatpush1.msra.mxu1 %v11588_v16 }
0x183b   :  { %6037 = vmatprep.subr.mxu0 %v11592_v58  ;;  %6108 = vmatprep.subr.mxu1 %v11594_v50 }
0x183c   :  { %6038 = vmatpush1.msra.mxu0 %v11598_v32  ;;  %6109 = vmatpush1.msra.mxu1 %v11600_v14 }
0x183d   :  { %6039 = vmatprep.subr.mxu0 %v11604_v22  ;;  %6110 = vmatprep.subr.mxu1 %v11606_v42 }
0x183e   :  { %6040 = vmatpush1.msra.mxu0 %v11610_v48  ;;  %6111 = vmatpush1.msra.mxu1 %v11612_v62 }
0x183f   :  { %6041 = vmatprep.subr.mxu0 %v11616_v11  ;;  %6112 = vmatprep.subr.mxu1 %v11618_v5 }
0x1840   :  { %6042 = vmatpush1.msra.mxu0 %v11622_v36  ;;  %6113 = vmatpush1.msra.mxu1 %v11624_v2 }
0x1841   :  { %6043 = vmatprep.subr.mxu0 %v11628_v3  ;;  %6114 = vmatprep.subr.mxu1 %v11630_v44 }
0x1842   :  { %6044 = vmatpush1.msra.mxu0 %v11634_v21  ;;  %6115 = vmatpush1.msra.mxu1 %v11636_v33 }
0x1843   :  { %6045 = vmatprep.subr.mxu0 %v11640_v41  ;;  %6116 = vmatprep.subr.mxu1 %v11642_v49 }
0x1844   :  { %6046 = vmatpush1.msra.mxu0 %v11646_v31  ;;  %6117 = vmatpush1.msra.mxu1 %v11648_v39 }
0x1845   :  { %6047 = vmatprep.subr.mxu0 %v11652_v43  ;;  %6118 = vmatprep.subr.mxu1 %v11654_v27 }
0x1846   :  { %6048 = vmatpush1.msra.mxu0 %v11658_v63  ;;  %6119 = vmatpush1.msra.mxu1 %v11660_v23 }
0x1847   :  { %6049 = vmatprep.subr.mxu0 %v11664_v18  ;;  %6120 = vmatprep.subr.mxu1 %v11666_v28 }
0x1848   :  { %6050 = vmatpush1.msra.mxu0 %v11670_v34  ;;  %6121 = vmatpush1.msra.mxu1 %v11672_v38 }
0x1849   :  { %6051 = vmatprep.subr.mxu0 %v13787_v1  ;;  %6122 = vmatprep.subr.mxu1 %v13788_v55  ;;  %v13815_v55 = vld [vmem:[#allocation27_spill] sm:$0xff] }
0x184a   :  { %6052 = vmatpush1.msra.mxu0 %v13789_v17  ;;  %6123 = vmatpush1.msra.mxu1 %v13790_v59  ;;  %v13813_v59 = vld [vmem:[#allocation66_spill] sm:$0xff] }
0x184b   :  { %6053 = vmatprep.subr.mxu0 %v13791_v8  ;;  %6124 = vmatprep.subr.mxu1 %v13792_v53 }
0x184c   :  { %6054 = vmatpush1.msra.mxu0 %v13793_v40  ;;  %6125 = vmatpush1.msra.mxu1 %v13794_v12 }
0x184d   :  { %6055 = vmatprep.subr.mxu0 %v13795_v30  ;;  %6126 = vmatprep.subr.mxu1 %v13796_v37  ;;  %v13806_v30 = vmov 0.0   ;;  %v13807_v37 = vld [vmem:[#allocation57_spill] sm:$0xff] }
0x184e   :  { %6056 = vmatpush1.msra.mxu0 %v13797_v46  ;;  %6127 = vmatpush1.msra.mxu1 %v13798_v35  ;;  %v13808_v35 = vld [vmem:[#allocation82_spill] sm:$0xff] }
0x184f   :  { %6057 = vmatprep.subr.mxu0 %v13799_v52  ;;  %6128 = vmatprep.subr.mxu1 %v13800_v25  ;;  %v13809_v52 = vld [vmem:[#allocation78_spill] sm:$0xff]  ;;  %v13810_v25 = vld [vmem:[#allocation48_spill] sm:$0xff] }
0x1850   :  { %6058 = vmatpush1.msra.mxu0 %v13801_v6  ;;  %6129 = vmatpush1.msra.mxu1 %v13802_v15  ;;  %v13811_v6 = vld [vmem:[#allocation26_spill] sm:$0xff] }
0x1851   :  { %6059 = vmatprep.subr.mxu0 %v13803_v20  ;;  %6130 = vmatprep.subr.mxu1 %v13804_v57  ;;  %v5490_v46 = vadd.f32 %v13811_v6, %v13810_v25  ;;  %v13812_v20 = vld [vmem:[#allocation75_spill] sm:$0xff]  ;;  %v5603_v6 = vadd.f32 %v13815_v55, %v11885_v7 }
0x1852   :  { %6060 = vmatpush1.msra.mxu0 %v13805_v26  ;;  %6093 = vmatprep.mubr.f32.mxu0 %v13806_v30  ;;  %v5492_v12 = vadd.f32 %v13812_v20, %v11870_v10 }
0x1853   :  { %6131 = vmatpush1.msra.mxu1 %v13807_v37  ;;  %6164 = vmatprep.mubr.f32.mxu1 %v13806_v30 }
0x1854   :  { %6204 = vmatprep.subr.mxu0 %v13808_v35  ;;  %6275 = vmatprep.subr.mxu1 %v13809_v52  ;;  %v13814_v35 = vld [vmem:[#allocation31_spill] sm:$0xff] }
0x1855   :  { %v5605_v17 = vadd.f32 %v13814_v35, %v13813_v59 }
0x18f2   :  { %v5920_v15 = vpop.f32.mrf.mxu0 }
0x18f3   :  { %v5996_v57 = vadd.f32 %v5920_v15, %v5490_v46  ;;  %v5991_v8 = vpop.f32.mrf.mxu1 }
0x18f4   :  { %v5922_v40 = vpop.f32.mrf.mxu0  ;;  %v5998_v25 = vadd.f32 %v5991_v8, %v5603_v6 }
0x18f5   :  { %v7418_v26 = vmul.f32 -1.442695, %v5996_v57  ;;  %v5997_v53 = vadd.f32 %v5922_v40, %v5492_v12  ;;  %v5993_v30 = vpop.f32.mrf.mxu1 }
0x18f6   :  { %v5999_v52 = vadd.f32 %v5993_v30, %v5605_v17 }
0x18f7   :  { %7923 = vpow2.f32 %v7418_v26  ;;  %v7419_v37 = vmul.f32 -1.442695, %v5997_v53 }
0x18f8   :  { %v7420_v1 = vmul.f32 -1.442695, %v5999_v52 }
0x18f9   :  { %7925 = vpow2.f32 %v7419_v37 }
0x18fa   :  { %7927 = vtanh.f32 %v5998_v25 }
0x18fb   :  { %7929 = vpow2.f32 %v7420_v1 }
0x1904   :  { %v7924_v38 = vpop.eup %7923 }
0x1905   :  { %v6003_v20 = vadd.f32 1.0, %v7924_v38 }
0x1906   :  { %v7926_v46 = vpop.eup %7925 }
0x1907   :  { %7931 = vrcp.f32 %v6003_v20  ;;  %v6009_v26 = vadd.f32 1.0, %v7926_v46  ;;  %v7928_v53 = vpop.eup %7927 }
0x1908   :  { %v7930_v40 = vpop.eup %7929 }
0x1909   :  { %7933 = vrcp.f32 %v6009_v26  ;;  %v6016_v35 = vadd.f32 1.0, %v7930_v40  ;;  %v13844_v40 = vld [vmem:[#allocation53_spill] sm:$0xff] }
0x190b   :  { %7935 = vrcp.f32 %v6016_v35 }
0x1914   :  { %v7932_v12 = vpop.eup %7931 }
0x1915   :  { %v6020_v37 = vmul.f32 %v7932_v12, %v7928_v53  ;;  %v5611_v12 = vadd.f32 %v13844_v40, %v13813_v59  ;;  %v12072_v40 = vld [vmem:[#allocation14 + $0x1f0] sm:$0xff] }
0x1916   :  { %v7934_v15 = vpop.eup %7933 }
0x1917   :  { %v6019_v17 = vmul.f32 %v7934_v15, %v11889_v13  ;;  %v13843_v13 = vld [vmem:[#allocation65_spill] sm:$0xff]  ;;  %v13845_v15 = vld [vmem:[#allocation34_spill] sm:$0xff] }
0x1918   :  { %v7936_v38 = vpop.eup %7935  ;;  %v5498_v52 = vadd.f32 %v13843_v13, %v11870_v10  ;;  %v5609_v35 = vadd.f32 %v13845_v15, %v11885_v7  ;;  %v12081_v15 = vld [vmem:[#allocation14 + $0x1c0] sm:$0xff] }
0x1919   :  { %v11974_v30 = vadd.f32 %v6020_v37, %v6019_v17 }
0x191b   :  { %7937 = vtanh.f32 %v11974_v30 }
0x1928   :  { %v7938_v55 = vpop.eup %7937 }
0x1929   :  { %v11977_v8 = vmul.f32 %v7938_v55, %v7936_v38 }
0x192b   :  { %13816 = vst [vmem:[#allocation76_spill] sm:$0xff] %v11977_v8  ;;  %7085 = vadd.xlane.f32.xlu0 %v11977_v8  ;;  %6094 = vmatmul.mubr.f32.vlgmr.msra.gmra.mxu0 %v11977_v8  ;;  %v7108_v1 = vmul.f32 %v11977_v8, %v11977_v8 }
0x192c   :  { %6165 = vmatmul.mubr.f32.vlgmr.msra.gmra.mxu1 %v11977_v8  ;;  %6205 = vmatpush1.msra.mxu0 %v11550_v29  ;;  %v13817_v29 = vld [vmem:[#allocation77_spill] sm:$0xff] }
0x192d   :  { %7117 = vadd.xlane.f32.xlu1 %v7108_v1  ;;  %6276 = vmatpush1.msra.mxu1 %v11552_v24  ;;  %v13818_v24 = vld [vmem:[#allocation79_spill] sm:$0xff]  ;;  %v12138_v8 = vld [vmem:[#allocation14 + $0x138] sm:$0xff] }
0x192e   :  { %6206 = vmatprep.subr.mxu0 %v11556_v9  ;;  %6277 = vmatprep.subr.mxu1 %v11558_v60  ;;  %v13819_v9 = vld [vmem:[#allocation81_spill] sm:$0xff]  ;;  %v13820_v60 = vld [vmem:[#allocation80_spill] sm:$0xff] }
0x192f   :  { %6207 = vmatpush1.msra.mxu0 %v11562_v56  ;;  %6278 = vmatpush1.msra.mxu1 %v11564_v19  ;;  %v13821_v56 = vld [vmem:[#allocation69_spill] sm:$0xff] }
0x1930   :  { %6208 = vmatprep.subr.mxu0 %v11568_v47  ;;  %6279 = vmatprep.subr.mxu1 %v11570_v51  ;;  %v13822_v19 = vld [vmem:[#allocation25_spill] sm:$0xff]  ;;  %v13823_v47 = vld [vmem:[#allocation47_spill] sm:$0xff] }
0x1931   :  { %6209 = vmatpush1.msra.mxu0 %v11574_v4  ;;  %6280 = vmatpush1.msra.mxu1 %v11576_v0  ;;  %v13824_v51 = vld [vmem:[#allocation23_spill] sm:$0xff]  ;;  %v13825_v4 = vld [vmem:[#allocation54_spill] sm:$0xff] }
0x1932   :  { %6210 = vmatprep.subr.mxu0 %v11580_v54  ;;  %6281 = vmatprep.subr.mxu1 %v11582_v45  ;;  %v13826_v0 = vld [vmem:[#allocation70_spill] sm:$0xff]  ;;  %v13828_v45 = vld [vmem:[#allocation24_spill] sm:$0xff] }
0x1933   :  { %6211 = vmatpush1.msra.mxu0 %v11586_v61  ;;  %6282 = vmatpush1.msra.mxu1 %v11588_v16  ;;  %v13827_v54 = vld [vmem:[#allocation46_spill] sm:$0xff]  ;;  %v13829_v61 = vld [vmem:[#allocation49_spill] sm:$0xff] }
0x1934   :  { %6212 = vmatprep.subr.mxu0 %v11592_v58  ;;  %6283 = vmatprep.subr.mxu1 %v11594_v50  ;;  %v13830_v16 = vld [vmem:[#allocation30_spill] sm:$0xff]  ;;  %v13831_v58 = vld [vmem:[#allocation32_spill] sm:$0xff]  ;;  %v13832_v50 = vld [vmem:[#allocation39_spill] sm:$0xff] }
0x1935   :  { %6213 = vmatpush1.msra.mxu0 %v11598_v32  ;;  %6284 = vmatpush1.msra.mxu1 %v11600_v14  ;;  %v13833_v32 = vld [vmem:[#allocation38_spill] sm:$0xff] }
0x1936   :  { %6214 = vmatprep.subr.mxu0 %v11604_v22  ;;  %6285 = vmatprep.subr.mxu1 %v11606_v42  ;;  %v13834_v14 = vld [vmem:[#allocation58_spill] sm:$0xff]  ;;  %v13835_v22 = vld [vmem:[#allocation72_spill] sm:$0xff]  ;;  %v13836_v42 = vld [vmem:[#allocation71_spill] sm:$0xff] }
0x1937   :  { %6215 = vmatpush1.msra.mxu0 %v11610_v48  ;;  %6286 = vmatpush1.msra.mxu1 %v11612_v62  ;;  %v13837_v48 = vmov 0.0   ;;  %v13838_v62 = vld [vmem:[#allocation57_spill] sm:$0xff] }
0x1938   :  { %6216 = vmatprep.subr.mxu0 %v11616_v11  ;;  %6287 = vmatprep.subr.mxu1 %v11618_v5  ;;  %v13839_v11 = vld [vmem:[#allocation82_spill] sm:$0xff] }
0x1939   :  { %6217 = vmatpush1.msra.mxu0 %v11622_v36  ;;  %6288 = vmatpush1.msra.mxu1 %v11624_v2  ;;  %v13840_v5 = vld [vmem:[#allocation78_spill] sm:$0xff]  ;;  %v13841_v36 = vld [vmem:[#allocation48_spill] sm:$0xff]  ;;  %v13842_v2 = vld [vmem:[#allocation59_spill] sm:$0xff] }
0x193a   :  { %6218 = vmatprep.subr.mxu0 %v11628_v3  ;;  %6289 = vmatprep.subr.mxu1 %v11630_v44  ;;  %v5496_v3 = vadd.f32 %v13842_v2, %v13841_v36 }
0x193b   :  { %6219 = vmatpush1.msra.mxu0 %v11634_v21  ;;  %6290 = vmatpush1.msra.mxu1 %v11636_v33 }
0x193c   :  { %6220 = vmatprep.subr.mxu0 %v11640_v41  ;;  %6291 = vmatprep.subr.mxu1 %v11642_v49 }
0x193d   :  { %6221 = vmatpush1.msra.mxu0 %v11646_v31  ;;  %6292 = vmatpush1.msra.mxu1 %v11648_v39 }
0x193e   :  { %6222 = vmatprep.subr.mxu0 %v11652_v43  ;;  %6293 = vmatprep.subr.mxu1 %v11654_v27 }
0x193f   :  { %6223 = vmatpush1.msra.mxu0 %v11658_v63  ;;  %6294 = vmatpush1.msra.mxu1 %v11660_v23 }
0x1940   :  { %6224 = vmatprep.subr.mxu0 %v11664_v18  ;;  %6295 = vmatprep.subr.mxu1 %v11666_v28 }
0x1941   :  { %6225 = vmatpush1.msra.mxu0 %v11670_v34  ;;  %6296 = vmatpush1.msra.mxu1 %v13817_v29 }
0x1942   :  { %6226 = vmatprep.subr.mxu0 %v13818_v24  ;;  %6297 = vmatprep.subr.mxu1 %v13819_v9 }
0x1943   :  { %6227 = vmatpush1.msra.mxu0 %v13820_v60  ;;  %6298 = vmatpush1.msra.mxu1 %v13821_v56 }
0x1944   :  { %6228 = vmatprep.subr.mxu0 %v13822_v19  ;;  %6299 = vmatprep.subr.mxu1 %v13823_v47 }
0x1945   :  { %6229 = vmatpush1.msra.mxu0 %v13824_v51  ;;  %6300 = vmatpush1.msra.mxu1 %v13825_v4 }
0x1946   :  { %6230 = vmatprep.subr.mxu0 %v13826_v0  ;;  %6301 = vmatprep.subr.mxu1 %v13827_v54 }
0x1947   :  { %6231 = vmatpush1.msra.mxu0 %v13828_v45  ;;  %6302 = vmatpush1.msra.mxu1 %v13829_v61 }
0x1948   :  { %6232 = vmatprep.subr.mxu0 %v13830_v16  ;;  %6303 = vmatprep.subr.mxu1 %v13831_v58 }
0x1949   :  { %6233 = vmatpush1.msra.mxu0 %v13832_v50  ;;  %6304 = vmatpush1.msra.mxu1 %v13833_v32 }
0x194a   :  { %6234 = vmatprep.subr.mxu0 %v13834_v14  ;;  %6305 = vmatprep.subr.mxu1 %v13835_v22 }
0x194b   :  { %6235 = vmatpush1.msra.mxu0 %v13836_v42  ;;  %6268 = vmatprep.mubr.f32.mxu0 %v13837_v48 }
0x194c   :  { %6306 = vmatpush1.msra.mxu1 %v13838_v62  ;;  %6339 = vmatprep.mubr.f32.mxu1 %v13837_v48 }
0x194d   :  { %6379 = vmatprep.subr.mxu0 %v13839_v11  ;;  %6450 = vmatprep.subr.mxu1 %v13840_v5 }
0x19eb   :  { %v6095_v44 = vpop.f32.mrf.mxu0 }
0x19ec   :  { %v6171_v25 = vadd.f32 %v6095_v44, %v5496_v3  ;;  %v6166_v46 = vpop.f32.mrf.mxu1 }
0x19ed   :  { %v6097_v57 = vpop.f32.mrf.mxu0  ;;  %v6173_v17 = vadd.f32 %v6166_v46, %v5609_v35  ;;  %v12084_v35 = vld [vmem:[#allocation14 + $0x1d0] sm:$0xff] }
0x19ee   :  { %v7421_v6 = vmul.f32 -1.442695, %v6171_v25  ;;  %v6172_v20 = vadd.f32 %v6097_v57, %v5498_v52  ;;  %v6168_v53 = vpop.f32.mrf.mxu1 }
0x19ef   :  { %v6174_v37 = vadd.f32 %v6168_v53, %v5611_v12  ;;  %v12067_v53 = vld [vmem:[#allocation14 + $0x1e0] sm:$0xff]  ;;  %v12075_v12 = vld [vmem:[#allocation14 + $0x1c8] sm:$0xff] }
0x19f0   :  { %7939 = vpow2.f32 %v7421_v6  ;;  %v7422_v26 = vmul.f32 -1.442695, %v6172_v20 }
0x19f1   :  { %v7423_v38 = vmul.f32 -1.442695, %v6174_v37  ;;  %v12078_v37 = vld [vmem:[#allocation14 + $0x1d8] sm:$0xff] }
0x19f2   :  { %7941 = vpow2.f32 %v7422_v26 }
0x19f3   :  { %7943 = vtanh.f32 %v6173_v17  ;;  %v12087_v17 = vld [vmem:[#allocation14 + $0x1a8] sm:$0xff] }
0x19f4   :  { %7945 = vpow2.f32 %v7423_v38  ;;  %v12090_v38 = vld [vmem:[#allocation14 + $0x1b8] sm:$0xff] }
0x19fd   :  { %v7940_v55 = vpop.eup %7939 }
0x19fe   :  { %v6178_v1 = vadd.f32 1.0, %v7940_v55  ;;  %v12093_v55 = vld [vmem:[#allocation14 + $0x1a0] sm:$0xff] }
0x19ff   :  { %v7942_v11 = vpop.eup %7941 }
0x1a00   :  { %7947 = vrcp.f32 %v6178_v1  ;;  %v6184_v5 = vadd.f32 1.0, %v7942_v11  ;;  %v7944_v2 = vpop.eup %7943  ;;  %v12096_v1 = vld [vmem:[#allocation14 + $0x1b0] sm:$0xff]  ;;  %v12099_v11 = vld [vmem:[#allocation14 + $0x188] sm:$0xff] }
0x1a01   :  { %v7946_v3 = vpop.eup %7945 }
0x1a02   :  { %7949 = vrcp.f32 %v6184_v5  ;;  %v6191_v25 = vadd.f32 1.0, %v7946_v3  ;;  %v12102_v5 = vld [vmem:[#allocation14 + $0x198] sm:$0xff]  ;;  %v12108_v3 = vld [vmem:[#allocation14 + $0x190] sm:$0xff] }
0x1a04   :  { %7951 = vrcp.f32 %v6191_v25  ;;  %v12120_v25 = vld [vmem:[#allocation14 + $0x170] sm:$0xff] }
0x1a0d   :  { %v7948_v44 = vpop.eup %7947 }
0x1a0e   :  { %v6195_v13 = vmul.f32 %v7948_v44, %v7944_v2  ;;  %v12105_v2 = vld [vmem:[#allocation14 + $0x180] sm:$0xff]  ;;  %v12111_v44 = vld [vmem:[#allocation14 + $0x168] sm:$0xff] }
0x1a0f   :  { %v7950_v52 = vpop.eup %7949 }
0x1a10   :  { %v6194_v57 = vmul.f32 %v7950_v52, %v11974_v30  ;;  %v12117_v52 = vld [vmem:[#allocation14 + $0x160] sm:$0xff] }
0x1a11   :  { %v7952_v20 = vpop.eup %7951 }
0x1a12   :  { %v12059_v6 = vadd.f32 %v6195_v13, %v6194_v57  ;;  %v12114_v13 = vld [vmem:[#allocation14 + $0x178] sm:$0xff]  ;;  %v12123_v57 = vld [vmem:[#allocation14 + $0x148] sm:$0xff] }
0x1a13   :  { %13847 = vst [vmem:[#allocation44_spill] sm:$0xff] %v12123_v57 }
0x1a14   :  { %7953 = vtanh.f32 %v12059_v6 }
0x1a21   :  { %v7954_v46 = vpop.eup %7953 }
0x1a22   :  { %v12062_v26 = vmul.f32 %v7954_v46, %v7952_v20  ;;  %v12126_v20 = vld [vmem:[#allocation14 + $0x158] sm:$0xff]  ;;  %v12129_v46 = vld [vmem:[#allocation14 + $0x140] sm:$0xff] }
0x1a23   :  { %13848 = vst [vmem:[#allocation45_spill] sm:$0xff] %v12126_v20  ;;  %13849 = vst [vmem:[#allocation56_spill] sm:$0xff] %v12129_v46 }
0x1a24   :  { %13846 = vst [vmem:[#allocation35_spill] sm:$0xff] %v12062_v26  ;;  %7087 = vadd.xlane.f32.xlu0 %v12062_v26  ;;  %6269 = vmatmul.mubr.f32.vlgmr.msra.gmra.mxu0 %v12062_v26  ;;  %v7109_v30 = vmul.f32 %v12062_v26, %v12062_v26 }
0x1a25   :  { %6340 = vmatmul.mubr.f32.vlgmr.msra.gmra.mxu1 %v12062_v26  ;;  %6380 = vmatpush1.msra.mxu0 %v12067_v53  ;;  %v12135_v26 = vld [vmem:[#allocation14 + $0x128] sm:$0xff] }
0x1a26   :  { %6451 = vmatpush1.msra.mxu1 %v12072_v40  ;;  %6381 = vmatprep.subr.mxu0 %v12075_v12 }
0x1a27   :  { %6452 = vmatprep.subr.mxu1 %v12078_v37  ;;  %6382 = vmatpush1.msra.mxu0 %v12081_v15 }
0x1a28   :  { %7119 = vadd.xlane.f32.xlu0 %v7109_v30  ;;  %6453 = vmatpush1.msra.mxu1 %v12084_v35  ;;  %v12132_v30 = vld [vmem:[#allocation14 + $0x150] sm:$0xff] }
0x1a29   :  { %6383 = vmatprep.subr.mxu0 %v12087_v17  ;;  %6454 = vmatprep.subr.mxu1 %v12090_v38  ;;  %13850 = vst [vmem:[#allocation63_spill] sm:$0xff] %v12132_v30 }
0x1a2a   :  { %6384 = vmatpush1.msra.mxu0 %v12093_v55  ;;  %6455 = vmatpush1.msra.mxu1 %v12096_v1 }
0x1a2b   :  { %6385 = vmatprep.subr.mxu0 %v12099_v11  ;;  %6456 = vmatprep.subr.mxu1 %v12102_v5 }
0x1a2c   :  { %6386 = vmatpush1.msra.mxu0 %v12105_v2  ;;  %6457 = vmatpush1.msra.mxu1 %v12108_v3 }
0x1a2d   :  { %6387 = vmatprep.subr.mxu0 %v12111_v44  ;;  %6458 = vmatprep.subr.mxu1 %v12114_v13 }
0x1a2e   :  { %6388 = vmatpush1.msra.mxu0 %v12117_v52  ;;  %6459 = vmatpush1.msra.mxu1 %v12120_v25 }
0x1a2f   :  { %6389 = vmatprep.subr.mxu0 %v12123_v57  ;;  %6460 = vmatprep.subr.mxu1 %v12126_v20  ;;  %v12141_v57 = vld [vmem:[#allocation14 + $0x120] sm:$0xff]  ;;  %v12144_v20 = vld [vmem:[#allocation14 + $0x130] sm:$0xff] }
0x1a30   :  { %6390 = vmatpush1.msra.mxu0 %v12129_v46  ;;  %6461 = vmatpush1.msra.mxu1 %v12132_v30  ;;  %v12147_v46 = vld [vmem:[#allocation14 + $0x108] sm:$0xff]  ;;  %v12150_v30 = vld [vmem:[#allocation14 + $0x118] sm:$0xff] }
0x1a31   :  { %6391 = vmatprep.subr.mxu0 %v12135_v26  ;;  %6462 = vmatprep.subr.mxu1 %v12138_v8 }
0x1a32   :  { %6392 = vmatpush1.msra.mxu0 %v12141_v57  ;;  %6463 = vmatpush1.msra.mxu1 %v12144_v20 }
0x1a33   :  { %6393 = vmatprep.subr.mxu0 %v12147_v46  ;;  %6464 = vmatprep.subr.mxu1 %v12150_v30 }
0x1a34   :  { %6394 = vmatpush1.msra.mxu0 %v11634_v21  ;;  %6465 = vmatpush1.msra.mxu1 %v11636_v33  ;;  %v12189_v21 = vld [vmem:[#allocation14 + $0x1e8] sm:$0xff]  ;;  %v12192_v33 = vld [vmem:[#allocation14 + $0x1f8] sm:$0xff] }
0x1a35   :  { %6395 = vmatprep.subr.mxu0 %v11640_v41  ;;  %6466 = vmatprep.subr.mxu1 %v11642_v49  ;;  %13851 = vst [vmem:[#allocation62_spill] sm:$0xff] %v12189_v21  ;;  %13852 = vst [vmem:[#allocation26_spill] sm:$0xff] %v12192_v33  ;;  %v13853_v41 = vld [vmem:[#allocation68_spill] sm:$0xff] }
0x1a36   :  { %6396 = vmatpush1.msra.mxu0 %v11646_v31  ;;  %6467 = vmatpush1.msra.mxu1 %v11648_v39  ;;  %v5502_v49 = vadd.f32 %v13853_v41, %v13841_v36  ;;  %v13854_v39 = vld [vmem:[#allocation22_spill] sm:$0xff] }
0x1a37   :  { %6397 = vmatprep.subr.mxu0 %v11652_v43  ;;  %6468 = vmatprep.subr.mxu1 %v11654_v27  ;;  %v5504_v43 = vadd.f32 %v13854_v39, %v11870_v10  ;;  %v13859_v39 = vld [vmem:[#allocation45_spill] sm:$0xff] }
0x1a38   :  { %6398 = vmatpush1.msra.mxu0 %v11658_v63  ;;  %6469 = vmatpush1.msra.mxu1 %v11660_v23 }
0x1a39   :  { %6399 = vmatprep.subr.mxu0 %v11664_v18  ;;  %6470 = vmatprep.subr.mxu1 %v11666_v28 }
0x1a3a   :  { %6400 = vmatpush1.msra.mxu0 %v11670_v34  ;;  %6471 = vmatpush1.msra.mxu1 %v13817_v29 }
0x1a3b   :  { %6401 = vmatprep.subr.mxu0 %v13818_v24  ;;  %6472 = vmatprep.subr.mxu1 %v13819_v9  ;;  %v13855_v24 = vld [vmem:[#allocation33_spill] sm:$0xff] }
0x1a3c   :  { %6402 = vmatpush1.msra.mxu0 %v13820_v60  ;;  %6473 = vmatpush1.msra.mxu1 %v13821_v56  ;;  %v5617_v9 = vadd.f32 %v13855_v24, %v13813_v59  ;;  %v13856_v56 = vld [vmem:[#allocation67_spill] sm:$0xff] }
0x1a3d   :  { %6403 = vmatprep.subr.mxu0 %v13822_v19  ;;  %6474 = vmatprep.subr.mxu1 %v13823_v47  ;;  %v5615_v19 = vadd.f32 %v13856_v56, %v11885_v7  ;;  %v12260_v24 = vld [vmem:[#allocation14 + $0xc8] sm:$0xff]  ;;  %v12269_v56 = vld [vmem:[#allocation14 + $0xd0] sm:$0xff] }
0x1a3e   :  { %6404 = vmatpush1.msra.mxu0 %v13824_v51  ;;  %6475 = vmatpush1.msra.mxu1 %v13825_v4 }
0x1a3f   :  { %6405 = vmatprep.subr.mxu0 %v13826_v0  ;;  %6476 = vmatprep.subr.mxu1 %v13827_v54 }
0x1a40   :  { %6406 = vmatpush1.msra.mxu0 %v13828_v45  ;;  %6477 = vmatpush1.msra.mxu1 %v13829_v61 }
0x1a41   :  { %6407 = vmatprep.subr.mxu0 %v13830_v16  ;;  %6478 = vmatprep.subr.mxu1 %v13831_v58 }
0x1a42   :  { %6408 = vmatpush1.msra.mxu0 %v13832_v50  ;;  %6479 = vmatpush1.msra.mxu1 %v13833_v32 }
0x1a43   :  { %6409 = vmatprep.subr.mxu0 %v13834_v14  ;;  %6480 = vmatprep.subr.mxu1 %v13835_v22 }
0x1a44   :  { %6410 = vmatpush1.msra.mxu0 %v13836_v42  ;;  %6443 = vmatprep.mubr.f32.mxu0 %v13837_v48 }
0x1a45   :  { %6481 = vmatpush1.msra.mxu1 %v13838_v62  ;;  %6514 = vmatprep.mubr.f32.mxu1 %v13837_v48 }
0x1a46   :  { %6554 = vmatprep.subr.mxu0 %v12189_v21  ;;  %6625 = vmatprep.subr.mxu1 %v12192_v33 }
0x1ae4   :  { %v6270_v31 = vpop.f32.mrf.mxu0 }
0x1ae5   :  { %v6346_v27 = vadd.f32 %v6270_v31, %v5502_v49  ;;  %v6341_v28 = vpop.f32.mrf.mxu1  ;;  %v13858_v31 = vld [vmem:[#allocation44_spill] sm:$0xff] }
0x1ae6   :  { %v6272_v63 = vpop.f32.mrf.mxu0  ;;  %v6348_v47 = vadd.f32 %v6341_v28, %v5615_v19  ;;  %v12251_v28 = vld [vmem:[#allocation14 + $0xf8] sm:$0xff]  ;;  %v12272_v19 = vld [vmem:[#allocation14 + $0xa8] sm:$0xff] }
0x1ae7   :  { %v7424_v23 = vmul.f32 -1.442695, %v6346_v27  ;;  %v6347_v18 = vadd.f32 %v6272_v63, %v5504_v43  ;;  %v6343_v29 = vpop.f32.mrf.mxu1  ;;  %v13860_v43 = vld [vmem:[#allocation56_spill] sm:$0xff]  ;;  %v13861_v27 = vld [vmem:[#allocation63_spill] sm:$0xff]  ;;  %v12242_v63 = vld [vmem:[#allocation14 + $0x100] sm:$0xff] }
0x1ae8   :  { %v6349_v60 = vadd.f32 %v6343_v29, %v5617_v9  ;;  %v12257_v29 = vld [vmem:[#allocation14 + $0xf0] sm:$0xff]  ;;  %v12263_v9 = vld [vmem:[#allocation14 + $0xd8] sm:$0xff] }
0x1ae9   :  { %7955 = vpow2.f32 %v7424_v23  ;;  %v7425_v34 = vmul.f32 -1.442695, %v6347_v18  ;;  %v12245_v23 = vld [vmem:[#allocation14 + $0x110] sm:$0xff]  ;;  %v12248_v18 = vld [vmem:[#allocation14 + $0xe8] sm:$0xff] }
0x1aea   :  { %v7426_v51 = vmul.f32 -1.442695, %v6349_v60  ;;  %v12266_v60 = vld [vmem:[#allocation14 + $0xc0] sm:$0xff] }
0x1aeb   :  { %7957 = vpow2.f32 %v7425_v34  ;;  %v12254_v34 = vld [vmem:[#allocation14 + $0xe0] sm:$0xff] }
0x1aec   :  { %7959 = vtanh.f32 %v6348_v47  ;;  %v12275_v47 = vld [vmem:[#allocation14 + $0xb8] sm:$0xff] }
0x1aed   :  { %7961 = vpow2.f32 %v7426_v51  ;;  %v12278_v51 = vld [vmem:[#allocation14 + $0xa0] sm:$0xff] }
0x1af6   :  { %v7956_v4 = vpop.eup %7955 }
0x1af7   :  { %v6353_v0 = vadd.f32 1.0, %v7956_v4  ;;  %v12281_v4 = vld [vmem:[#allocation14 + $0xb0] sm:$0xff] }
0x1af8   :  { %v7958_v54 = vpop.eup %7957  ;;  %13862 = vst [vmem:[#allocation66_spill] sm:$0xff] %v12281_v4 }
0x1af9   :  { %7963 = vrcp.f32 %v6353_v0  ;;  %v6359_v45 = vadd.f32 1.0, %v7958_v54  ;;  %v7960_v61 = vpop.eup %7959  ;;  %v12284_v0 = vld [vmem:[#allocation14 + $0x88] sm:$0xff]  ;;  %v12287_v54 = vld [vmem:[#allocation14 + $0x98] sm:$0xff] }
0x1afa   :  { %v7962_v16 = vpop.eup %7961  ;;  %13863 = vst [vmem:[#allocation31_spill] sm:$0xff] %v12284_v0  ;;  %13864 = vst [vmem:[#allocation27_spill] sm:$0xff] %v12287_v54 }
0x1afb   :  { %7965 = vrcp.f32 %v6359_v45  ;;  %v6366_v14 = vadd.f32 1.0, %v7962_v16  ;;  %v12290_v45 = vld [vmem:[#allocation14 + $0x80] sm:$0xff]  ;;  %v12296_v16 = vld [vmem:[#allocation14 + $0x68] sm:$0xff] }
0x1afc   :  { %13865 = vst [vmem:[#allocation77_spill] sm:$0xff] %v12290_v45  ;;  %13867 = vst [vmem:[#allocation81_spill] sm:$0xff] %v12296_v16 }
0x1afd   :  { %7967 = vrcp.f32 %v6366_v14  ;;  %v12308_v14 = vld [vmem:[#allocation14 + $0x48] sm:$0xff] }
0x1afe   :  { %13871 = vst [vmem:[#allocation47_spill] sm:$0xff] %v12308_v14 }
0x1b06   :  { %v7964_v58 = vpop.eup %7963 }
0x1b07   :  { %v6370_v50 = vmul.f32 %v7964_v58, %v7960_v61  ;;  %v12293_v61 = vld [vmem:[#allocation14 + $0x90] sm:$0xff]  ;;  %v12299_v58 = vld [vmem:[#allocation14 + $0x78] sm:$0xff] }
0x1b08   :  { %v7966_v32 = vpop.eup %7965  ;;  %13866 = vst [vmem:[#allocation79_spill] sm:$0xff] %v12293_v61  ;;  %13868 = vst [vmem:[#allocation80_spill] sm:$0xff] %v12299_v58 }
0x1b09   :  { %v6369_v22 = vmul.f32 %v7966_v32, %v12059_v6  ;;  %v12305_v32 = vld [vmem:[#allocation14 + $0x70] sm:$0xff] }
0x1b0a   :  { %v7968_v62 = vpop.eup %7967  ;;  %13870 = vst [vmem:[#allocation25_spill] sm:$0xff] %v12305_v32 }
0x1b0b   :  { %v12204_v42 = vadd.f32 %v6370_v50, %v6369_v22  ;;  %v12302_v50 = vld [vmem:[#allocation14 + $0x60] sm:$0xff]  ;;  %v12311_v22 = vld [vmem:[#allocation14 + $0x58] sm:$0xff] }
0x1b0c   :  { %13869 = vst [vmem:[#allocation69_spill] sm:$0xff] %v12302_v50  ;;  %13872 = vst [vmem:[#allocation23_spill] sm:$0xff] %v12311_v22 }
0x1b0d   :  { %7969 = vtanh.f32 %v12204_v42 }
0x1b1a   :  { %v7970_v41 = vpop.eup %7969 }
0x1b1b   :  { %v12207_v49 = vmul.f32 %v7970_v41, %v7968_v62  ;;  %v12314_v62 = vld [vmem:[#allocation14 + $0x40] sm:$0xff]  ;;  %v12317_v41 = vld [vmem:[#allocation14 + $0x50] sm:$0xff] }
0x1b1c   :  { %13873 = vst [vmem:[#allocation54_spill] sm:$0xff] %v12314_v62  ;;  %13874 = vst [vmem:[#allocation70_spill] sm:$0xff] %v12317_v41 }
0x1b1d   :  { %13857 = vst [vmem:[#allocation75_spill] sm:$0xff] %v12207_v49  ;;  %7089 = vadd.xlane.f32.xlu1 %v12207_v49  ;;  %6444 = vmatmul.mubr.f32.vlgmr.msra.gmra.mxu0 %v12207_v49  ;;  %v7110_v6 = vmul.f32 %v12207_v49, %v12207_v49 }
0x1b1e   :  { %6515 = vmatmul.mubr.f32.vlgmr.msra.gmra.mxu1 %v12207_v49  ;;  %6555 = vmatpush1.msra.mxu0 %v12067_v53  ;;  %v12323_v49 = vld [vmem:[#allocation14 + $0x38] sm:$0xff] }
0x1b1f   :  { %6626 = vmatpush1.msra.mxu1 %v12072_v40  ;;  %6556 = vmatprep.subr.mxu0 %v12075_v12  ;;  %13876 = vst [vmem:[#allocation24_spill] sm:$0xff] %v12323_v49 }
0x1b20   :  { %6627 = vmatprep.subr.mxu1 %v12078_v37  ;;  %6557 = vmatpush1.msra.mxu0 %v12081_v15 }
0x1b21   :  { %7121 = vadd.xlane.f32.xlu1 %v7110_v6  ;;  %6628 = vmatpush1.msra.mxu1 %v12084_v35  ;;  %v12320_v6 = vld [vmem:[#allocation14 + $0x28] sm:$0xff] }
0x1b22   :  { %6558 = vmatprep.subr.mxu0 %v12087_v17  ;;  %6629 = vmatprep.subr.mxu1 %v12090_v38  ;;  %13875 = vst [vmem:[#allocation46_spill] sm:$0xff] %v12320_v6 }
0x1b23   :  { %6559 = vmatpush1.msra.mxu0 %v12093_v55  ;;  %6630 = vmatpush1.msra.mxu1 %v12096_v1 }
0x1b24   :  { %6560 = vmatprep.subr.mxu0 %v12099_v11  ;;  %6631 = vmatprep.subr.mxu1 %v12102_v5 }
0x1b25   :  { %6561 = vmatpush1.msra.mxu0 %v12105_v2  ;;  %6632 = vmatpush1.msra.mxu1 %v12108_v3 }
0x1b26   :  { %6562 = vmatprep.subr.mxu0 %v12111_v44  ;;  %6633 = vmatprep.subr.mxu1 %v12114_v13 }
0x1b27   :  { %6563 = vmatpush1.msra.mxu0 %v12117_v52  ;;  %6634 = vmatpush1.msra.mxu1 %v12120_v25 }
0x1b28   :  { %6564 = vmatprep.subr.mxu0 %v13858_v31  ;;  %6635 = vmatprep.subr.mxu1 %v13859_v39 }
0x1b29   :  { %6565 = vmatpush1.msra.mxu0 %v13860_v43  ;;  %6636 = vmatpush1.msra.mxu1 %v13861_v27 }
0x1b2a   :  { %6566 = vmatprep.subr.mxu0 %v12135_v26  ;;  %6637 = vmatprep.subr.mxu1 %v12138_v8 }
0x1b2b   :  { %6567 = vmatpush1.msra.mxu0 %v12141_v57  ;;  %6638 = vmatpush1.msra.mxu1 %v12144_v20 }
0x1b2c   :  { %6568 = vmatprep.subr.mxu0 %v12147_v46  ;;  %6639 = vmatprep.subr.mxu1 %v12150_v30 }
0x1b2d   :  { %6569 = vmatpush1.msra.mxu0 %v12242_v63  ;;  %6640 = vmatpush1.msra.mxu1 %v12245_v23 }
0x1b2e   :  { %6570 = vmatprep.subr.mxu0 %v12248_v18  ;;  %6641 = vmatprep.subr.mxu1 %v12251_v28 }
0x1b2f   :  { %6571 = vmatpush1.msra.mxu0 %v12254_v34  ;;  %6642 = vmatpush1.msra.mxu1 %v12257_v29 }
0x1b30   :  { %6572 = vmatprep.subr.mxu0 %v12260_v24  ;;  %6643 = vmatprep.subr.mxu1 %v12263_v9 }
0x1b31   :  { %6573 = vmatpush1.msra.mxu0 %v12266_v60  ;;  %6644 = vmatpush1.msra.mxu1 %v12269_v56 }
0x1b32   :  { %6574 = vmatprep.subr.mxu0 %v12272_v19  ;;  %6645 = vmatprep.subr.mxu1 %v12275_v47 }
0x1b33   :  { %6575 = vmatpush1.msra.mxu0 %v12278_v51  ;;  %6646 = vmatpush1.msra.mxu1 %v12281_v4 }
0x1b34   :  { %6576 = vmatprep.subr.mxu0 %v12284_v0  ;;  %6647 = vmatprep.subr.mxu1 %v12287_v54  ;;  %v13886_v54 = vld [vmem:[#allocation42_spill] sm:$0xff] }
0x1b35   :  { %6577 = vmatpush1.msra.mxu0 %v12290_v45  ;;  %6648 = vmatpush1.msra.mxu1 %v12293_v61 }
0x1b36   :  { %6578 = vmatprep.subr.mxu0 %v12296_v16  ;;  %6649 = vmatprep.subr.mxu1 %v12299_v58 }
0x1b37   :  { %6579 = vmatpush1.msra.mxu0 %v12302_v50  ;;  %6650 = vmatpush1.msra.mxu1 %v12305_v32 }
0x1b38   :  { %6580 = vmatprep.subr.mxu0 %v12308_v14  ;;  %6651 = vmatprep.subr.mxu1 %v12311_v22  ;;  %v12326_v14 = vld [vmem:[#allocation14 + $0x20] sm:$0xff]  ;;  %v12329_v22 = vld [vmem:[#allocation14 + $0x30] sm:$0xff] }
0x1b39   :  { %6581 = vmatpush1.msra.mxu0 %v12314_v62  ;;  %6652 = vmatpush1.msra.mxu1 %v12317_v41  ;;  %13877 = vst [vmem:[#allocation49_spill] sm:$0xff] %v12326_v14  ;;  %13878 = vst [vmem:[#allocation30_spill] sm:$0xff] %v12329_v22  ;;  %v12332_v62 = vld [vmem:[#allocation14 + $0x8] sm:$0xff]  ;;  %v12335_v41 = vld [vmem:[#allocation14 + $0x18] sm:$0xff] }
0x1b3a   :  { %6582 = vmatprep.subr.mxu0 %v12320_v6  ;;  %6653 = vmatprep.subr.mxu1 %v12323_v49  ;;  %13879 = vst [vmem:[#allocation32_spill] sm:$0xff] %v12332_v62  ;;  %13880 = vst [vmem:[#allocation39_spill] sm:$0xff] %v12335_v41  ;;  %v12338_v6 = vld [vmem:[#allocation14] sm:$0xff]  ;;  %v12342_v49 = vld [vmem:[#allocation14 + $0x10] sm:$0xff] }
0x1b3b   :  { %6583 = vmatpush1.msra.mxu0 %v12326_v14  ;;  %6654 = vmatpush1.msra.mxu1 %v12329_v22  ;;  %13881 = vst [vmem:[#allocation38_spill] sm:$0xff] %v12338_v6  ;;  %13882 = vst [vmem:[#allocation58_spill] sm:$0xff] %v12342_v49  ;;  %v13884_v14 = vld [vmem:[#allocation28_spill] sm:$0xff] }
0x1b3c   :  { %6584 = vmatprep.subr.mxu0 %v12332_v62  ;;  %6655 = vmatprep.subr.mxu1 %v12335_v41  ;;  %v13883_v62 = vld [vmem:[#allocation41_spill] sm:$0xff]  ;;  %v5510_v32 = vadd.f32 %v13884_v14, %v11870_v10 }
0x1b3d   :  { %6585 = vmatpush1.msra.mxu0 %v12338_v6  ;;  %6618 = vmatprep.mubr.f32.mxu0 %v13837_v48  ;;  %v5508_v22 = vadd.f32 %v13883_v62, %v13841_v36  ;;  %v5621_v62 = vadd.f32 %v13886_v54, %v11885_v7  ;;  %v13889_v54 = vld [vmem:[#allocation31_spill] sm:$0xff] }
0x1b3e   :  { %6656 = vmatpush1.msra.mxu1 %v12342_v49  ;;  %6689 = vmatprep.mubr.f32.mxu1 %v13837_v48 }
0x1b3f   :  { %6729 = vmatprep.subr.mxu0 %v12189_v21  ;;  %6800 = vmatprep.subr.mxu1 %v12192_v33  ;;  %v13885_v21 = vld [vmem:[#allocation29_spill] sm:$0xff] }
0x1b40   :  { %v5623_v45 = vadd.f32 %v13885_v21, %v13813_v59 }
0x1bdd   :  { %v6445_v41 = vpop.f32.mrf.mxu0 }
0x1bde   :  { %v6521_v6 = vadd.f32 %v6445_v41, %v5508_v22  ;;  %v6516_v61 = vpop.f32.mrf.mxu1 }
0x1bdf   :  { %v6447_v50 = vpop.f32.mrf.mxu0  ;;  %v6523_v36 = vadd.f32 %v6516_v61, %v5621_v62  ;;  %v13890_v61 = vld [vmem:[#allocation27_spill] sm:$0xff] }
0x1be0   :  { %v7427_v58 = vmul.f32 -1.442695, %v6521_v6  ;;  %v6522_v16 = vadd.f32 %v6447_v50, %v5510_v32  ;;  %v6518_v48 = vpop.f32.mrf.mxu1  ;;  %v13891_v6 = vld [vmem:[#allocation77_spill] sm:$0xff]  ;;  %v13892_v62 = vld [vmem:[#allocation79_spill] sm:$0xff] }
0x1be1   :  { %v6524_v33 = vadd.f32 %v6518_v48, %v5623_v45 }
0x1be2   :  { %7971 = vpow2.f32 %v7427_v58  ;;  %v7428_v49 = vmul.f32 -1.442695, %v6522_v16 }
0x1be3   :  { %v7429_v0 = vmul.f32 -1.442695, %v6524_v33 }
0x1be4   :  { %7973 = vpow2.f32 %v7428_v49 }
0x1be5   :  { %7975 = vtanh.f32 %v6523_v36 }
0x1be6   :  { %7977 = vpow2.f32 %v7429_v0  ;;  %v13888_v0 = vld [vmem:[#allocation66_spill] sm:$0xff] }
0x1bef   :  { %v7972_v4 = vpop.eup %7971 }
0x1bf0   :  { %v6528_v14 = vadd.f32 1.0, %v7972_v4 }
0x1bf1   :  { %v7974_v22 = vpop.eup %7973 }
0x1bf2   :  { %7979 = vrcp.f32 %v6528_v14  ;;  %v6534_v58 = vadd.f32 1.0, %v7974_v22  ;;  %v7976_v16 = vpop.eup %7975  ;;  %v13893_v14 = vld [vmem:[#allocation81_spill] sm:$0xff]  ;;  %v13894_v22 = vld [vmem:[#allocation80_spill] sm:$0xff] }
0x1bf3   :  { %v7978_v49 = vpop.eup %7977 }
0x1bf4   :  { %7981 = vrcp.f32 %v6534_v58  ;;  %v6541_v21 = vadd.f32 1.0, %v7978_v49  ;;  %v13895_v58 = vld [vmem:[#allocation69_spill] sm:$0xff]  ;;  %v13897_v49 = vld [vmem:[#allocation47_spill] sm:$0xff] }
0x1bf6   :  { %7983 = vrcp.f32 %v6541_v21  ;;  %v13901_v21 = vld [vmem:[#allocation46_spill] sm:$0xff] }
0x1bff   :  { %v7980_v50 = vpop.eup %7979 }
0x1c00   :  { %v6545_v32 = vmul.f32 %v7980_v50, %v7976_v16  ;;  %v13896_v16 = vld [vmem:[#allocation25_spill] sm:$0xff]  ;;  %v13898_v50 = vld [vmem:[#allocation23_spill] sm:$0xff] }
0x1c01   :  { %v7982_v41 = vpop.eup %7981 }
0x1c02   :  { %v6544_v48 = vmul.f32 %v7982_v41, %v12204_v42  ;;  %v13900_v41 = vld [vmem:[#allocation70_spill] sm:$0xff] }
0x1c03   :  { %v7984_v33 = vpop.eup %7983 }
0x1c04   :  { %v12357_v45 = vadd.f32 %v6545_v32, %v6544_v48  ;;  %v13899_v32 = vld [vmem:[#allocation54_spill] sm:$0xff]  ;;  %v13902_v48 = vld [vmem:[#allocation24_spill] sm:$0xff] }
0x1c06   :  { %7985 = vtanh.f32 %v12357_v45 }
0x1c13   :  { %v7986_v36 = vpop.eup %7985 }
0x1c14   :  { %v12360_v4 = vmul.f32 %v7986_v36, %v7984_v33  ;;  %v13903_v33 = vld [vmem:[#allocation49_spill] sm:$0xff]  ;;  %v13904_v36 = vld [vmem:[#allocation30_spill] sm:$0xff] }
0x1c16   :  { %13887 = vst [vmem:[#allocation72_spill] sm:$0xff] %v12360_v4  ;;  %7091 = vadd.xlane.f32.xlu0 %v12360_v4  ;;  %6619 = vmatmul.mubr.f32.vlgmr.msra.gmra.mxu0 %v12360_v4  ;;  %v7111_v42 = vmul.f32 %v12360_v4, %v12360_v4 }
0x1c17   :  { %6690 = vmatmul.mubr.f32.vlgmr.msra.gmra.mxu1 %v12360_v4  ;;  %6730 = vmatpush1.msra.mxu0 %v12067_v53  ;;  %v13906_v4 = vld [vmem:[#allocation39_spill] sm:$0xff] }
0x1c18   :  { %6801 = vmatpush1.msra.mxu1 %v12072_v40  ;;  %6731 = vmatprep.subr.mxu0 %v12075_v12 }
0x1c19   :  { %6802 = vmatprep.subr.mxu1 %v12078_v37  ;;  %6732 = vmatpush1.msra.mxu0 %v12081_v15 }
0x1c1a   :  { %7123 = vadd.xlane.f32.xlu0 %v7111_v42  ;;  %6803 = vmatpush1.msra.mxu1 %v12084_v35  ;;  %v13905_v42 = vld [vmem:[#allocation32_spill] sm:$0xff] }
0x1c1b   :  { %6733 = vmatprep.subr.mxu0 %v12087_v17  ;;  %6804 = vmatprep.subr.mxu1 %v12090_v38 }
0x1c1c   :  { %6734 = vmatpush1.msra.mxu0 %v12093_v55  ;;  %6805 = vmatpush1.msra.mxu1 %v12096_v1 }
0x1c1d   :  { %6735 = vmatprep.subr.mxu0 %v12099_v11  ;;  %6806 = vmatprep.subr.mxu1 %v12102_v5 }
0x1c1e   :  { %6736 = vmatpush1.msra.mxu0 %v12105_v2  ;;  %6807 = vmatpush1.msra.mxu1 %v12108_v3 }
0x1c1f   :  { %6737 = vmatprep.subr.mxu0 %v12111_v44  ;;  %6808 = vmatprep.subr.mxu1 %v12114_v13 }
0x1c20   :  { %6738 = vmatpush1.msra.mxu0 %v12117_v52  ;;  %6809 = vmatpush1.msra.mxu1 %v12120_v25 }
0x1c21   :  { %6739 = vmatprep.subr.mxu0 %v13858_v31  ;;  %6810 = vmatprep.subr.mxu1 %v13859_v39 }
0x1c22   :  { %6740 = vmatpush1.msra.mxu0 %v13860_v43  ;;  %6811 = vmatpush1.msra.mxu1 %v13861_v27 }
0x1c23   :  { %6741 = vmatprep.subr.mxu0 %v12135_v26  ;;  %6812 = vmatprep.subr.mxu1 %v12138_v8 }
0x1c24   :  { %6742 = vmatpush1.msra.mxu0 %v12141_v57  ;;  %6813 = vmatpush1.msra.mxu1 %v12144_v20 }
0x1c25   :  { %6743 = vmatprep.subr.mxu0 %v12147_v46  ;;  %6814 = vmatprep.subr.mxu1 %v12150_v30 }
0x1c26   :  { %6744 = vmatpush1.msra.mxu0 %v12242_v63  ;;  %6815 = vmatpush1.msra.mxu1 %v12245_v23 }
0x1c27   :  { %6745 = vmatprep.subr.mxu0 %v12248_v18  ;;  %6816 = vmatprep.subr.mxu1 %v12251_v28 }
0x1c28   :  { %6746 = vmatpush1.msra.mxu0 %v12254_v34  ;;  %6817 = vmatpush1.msra.mxu1 %v12257_v29 }
0x1c29   :  { %6747 = vmatprep.subr.mxu0 %v12260_v24  ;;  %6818 = vmatprep.subr.mxu1 %v12263_v9 }
0x1c2a   :  { %6748 = vmatpush1.msra.mxu0 %v12266_v60  ;;  %6819 = vmatpush1.msra.mxu1 %v12269_v56 }
0x1c2b   :  { %6749 = vmatprep.subr.mxu0 %v12272_v19  ;;  %6820 = vmatprep.subr.mxu1 %v12275_v47 }
0x1c2c   :  { %6750 = vmatpush1.msra.mxu0 %v12278_v51  ;;  %6821 = vmatpush1.msra.mxu1 %v13888_v0 }
0x1c2d   :  { %6751 = vmatprep.subr.mxu0 %v13889_v54  ;;  %6822 = vmatprep.subr.mxu1 %v13890_v61 }
0x1c2e   :  { %6752 = vmatpush1.msra.mxu0 %v13891_v6  ;;  %6823 = vmatpush1.msra.mxu1 %v13892_v62  ;;  %v13916_v6 = vld [vmem:[#allocation36_spill] sm:$0xff] }
0x1c2f   :  { %6753 = vmatprep.subr.mxu0 %v13893_v14  ;;  %6824 = vmatprep.subr.mxu1 %v13894_v22 }
0x1c30   :  { %6754 = vmatpush1.msra.mxu0 %v13895_v58  ;;  %6825 = vmatpush1.msra.mxu1 %v13896_v16  ;;  %v13907_v16 = vld [vmem:[#allocation38_spill] sm:$0xff] }
0x1c31   :  { %6755 = vmatprep.subr.mxu0 %v13897_v49  ;;  %6826 = vmatprep.subr.mxu1 %v13898_v50  ;;  %v13908_v49 = vmov 0.0   ;;  %v13909_v50 = vld [vmem:[#allocation58_spill] sm:$0xff] }
0x1c32   :  { %6756 = vmatpush1.msra.mxu0 %v13899_v32  ;;  %6827 = vmatpush1.msra.mxu1 %v13900_v41  ;;  %v13910_v41 = vld [vmem:[#allocation62_spill] sm:$0xff] }
0x1c33   :  { %6757 = vmatprep.subr.mxu0 %v13901_v21  ;;  %6828 = vmatprep.subr.mxu1 %v13902_v48  ;;  %v13911_v21 = vld [vmem:[#allocation26_spill] sm:$0xff]  ;;  %v13912_v48 = vld [vmem:[#allocation48_spill] sm:$0xff] }
0x1c34   :  { %6758 = vmatpush1.msra.mxu0 %v13903_v33  ;;  %6829 = vmatpush1.msra.mxu1 %v13904_v36  ;;  %v13913_v33 = vld [vmem:[#allocation37_spill] sm:$0xff] }
0x1c35   :  { %6759 = vmatprep.subr.mxu0 %v13905_v42  ;;  %6830 = vmatprep.subr.mxu1 %v13906_v4  ;;  %v5514_v32 = vadd.f32 %v13913_v33, %v13912_v48  ;;  %v13914_v42 = vld [vmem:[#allocation55_spill] sm:$0xff]  ;;  %v5627_v33 = vadd.f32 %v13916_v6, %v11885_v7 }
0x1c36   :  { %6760 = vmatpush1.msra.mxu0 %v13907_v16  ;;  %6793 = vmatprep.mubr.f32.mxu0 %v13908_v49  ;;  %v5516_v22 = vadd.f32 %v13914_v42, %v11870_v10 }
0x1c37   :  { %6831 = vmatpush1.msra.mxu1 %v13909_v50  ;;  %6864 = vmatprep.mubr.f32.mxu1 %v13908_v49 }
0x1c38   :  { %6904 = vmatprep.subr.mxu0 %v13910_v41  ;;  %6975 = vmatprep.subr.mxu1 %v13911_v21  ;;  %v13915_v41 = vld [vmem:[#allocation40_spill] sm:$0xff] }
0x1c39   :  { %v5629_v61 = vadd.f32 %v13915_v41, %v13813_v59 }
0x1cd6   :  { %v6620_v36 = vpop.f32.mrf.mxu0 }
0x1cd7   :  { %v6696_v4 = vadd.f32 %v6620_v36, %v5514_v32  ;;  %v6691_v14 = vpop.f32.mrf.mxu1 }
0x1cd8   :  { %v6622_v58 = vpop.f32.mrf.mxu0  ;;  %v6698_v48 = vadd.f32 %v6691_v14, %v5627_v33 }
0x1cd9   :  { %v7430_v16 = vmul.f32 -1.442695, %v6696_v4  ;;  %v6697_v62 = vadd.f32 %v6622_v58, %v5516_v22  ;;  %v6693_v49 = vpop.f32.mrf.mxu1 }
0x1cda   :  { %v6699_v21 = vadd.f32 %v6693_v49, %v5629_v61 }
0x1cdb   :  { %7987 = vpow2.f32 %v7430_v16  ;;  %v7431_v50 = vmul.f32 -1.442695, %v6697_v62 }
0x1cdc   :  { %v7432_v0 = vmul.f32 -1.442695, %v6699_v21 }
0x1cdd   :  { %7989 = vpow2.f32 %v7431_v50 }
0x1cde   :  { %7991 = vtanh.f32 %v6698_v48 }
0x1cdf   :  { %7993 = vpow2.f32 %v7432_v0  ;;  %v7084_v0 = vpop.xlane.xlu0 %7083 }
0x1ce0   :  { %v7099_v21 = vmul.f32 0.03125, %v7084_v0  ;;  %v629_v0 = vld [vmem:[#allocation15 + $0x68] sm:$0xff] }
0x1ce8   :  { %v7988_v54 = vpop.eup %7987 }
0x1ce9   :  { %v6703_v42 = vadd.f32 1.0, %v7988_v54 }
0x1cea   :  { %v7990_v32 = vpop.eup %7989 }
0x1ceb   :  { %7995 = vrcp.f32 %v6703_v42  ;;  %v6709_v4 = vadd.f32 1.0, %v7990_v32  ;;  %v7992_v62 = vpop.eup %7991  ;;  %v7116_v42 = vpop.xlane.xlu1 %7115 }
0x1cec   :  { %v7994_v22 = vpop.eup %7993 }
0x1ced   :  { %7997 = vrcp.f32 %v6709_v4  ;;  %v6716_v36 = vadd.f32 1.0, %v7994_v22  ;;  %v7131_v22 = vmul.f32 0.03125, %v7116_v42 }
0x1cef   :  { %7999 = vrcp.f32 %v6716_v36 }
0x1cf8   :  { %v7996_v58 = vpop.eup %7995 }
0x1cf9   :  { %v6720_v16 = vmul.f32 %v7996_v58, %v7992_v62  ;;  %v7139_v62 = vmul.f32 %v7099_v21, %v7099_v21 }
0x1cfa   :  { %v7998_v50 = vpop.eup %7997 }
0x1cfb   :  { %v6719_v61 = vmul.f32 %v7998_v50, %v12357_v45 }
0x1cfc   :  { %v8000_v54 = vpop.eup %7999 }
0x1cfd   :  { %v12442_v49 = vadd.f32 %v6720_v16, %v6719_v61  ;;  %v7147_v16 = vsub.f32 %v7131_v22, %v7139_v62 }
0x1cff   :  { %8001 = vtanh.f32 %v12442_v49  ;;  %v7163_v50 = vadd.f32 1e-05, %v7147_v16 }
0x1d0c   :  { %v8002_v6 = vpop.eup %8001 }
0x1d0d   :  { %v12445_v14 = vmul.f32 %v8002_v6, %v8000_v54  ;;  %v7086_v54 = vpop.xlane.xlu0 %7085 }
0x1d0f   :  { %7093 = vadd.xlane.f32.xlu1 %v12445_v14  ;;  %6794 = vmatmul.mubr.f32.vlgmr.msra.gmra.mxu0 %v12445_v14  ;;  %v7112_v45 = vmul.f32 %v12445_v14, %v12445_v14 }
0x1d10   :  { %6865 = vmatmul.mubr.f32.vlgmr.msra.gmra.mxu1 %v12445_v14  ;;  %6905 = vmatpush1.msra.mxu0 %v12067_v53  ;;  %v13919_v53 = vld [vmem:[#allocation77_spill] sm:$0xff] }
0x1d11   :  { %6906 = vmatprep.subr.mxu0 %v12075_v12  ;;  %6976 = vmatpush1.msra.mxu1 %v12072_v40  ;;  %v13920_v40 = vld [vmem:[#allocation27_spill] sm:$0xff]  ;;  %v13921_v12 = vld [vmem:[#allocation81_spill] sm:$0xff] }
0x1d12   :  { %6907 = vmatpush1.msra.mxu0 %v12081_v15  ;;  %6977 = vmatprep.subr.mxu1 %v12078_v37  ;;  %v13922_v37 = vld [vmem:[#allocation79_spill] sm:$0xff]  ;;  %v13923_v15 = vld [vmem:[#allocation69_spill] sm:$0xff] }
0x1d13   :  { %7125 = vadd.xlane.f32.xlu1 %v7112_v45  ;;  %6908 = vmatprep.subr.mxu0 %v12087_v17  ;;  %v13925_v17 = vld [vmem:[#allocation47_spill] sm:$0xff] }
0x1d14   :  { %6978 = vmatpush1.msra.mxu1 %v12084_v35  ;;  %6909 = vmatpush1.msra.mxu0 %v12093_v55  ;;  %v13924_v35 = vld [vmem:[#allocation80_spill] sm:$0xff]  ;;  %v13927_v55 = vld [vmem:[#allocation54_spill] sm:$0xff] }
0x1d15   :  { %6979 = vmatprep.subr.mxu1 %v12090_v38  ;;  %6910 = vmatprep.subr.mxu0 %v12099_v11  ;;  %v13926_v38 = vld [vmem:[#allocation25_spill] sm:$0xff]  ;;  %v13929_v11 = vld [vmem:[#allocation46_spill] sm:$0xff] }
0x1d16   :  { %6980 = vmatpush1.msra.mxu1 %v12096_v1  ;;  %6911 = vmatpush1.msra.mxu0 %v12105_v2  ;;  %v13928_v1 = vld [vmem:[#allocation23_spill] sm:$0xff]  ;;  %v13931_v2 = vld [vmem:[#allocation49_spill] sm:$0xff] }
0x1d17   :  { %6981 = vmatprep.subr.mxu1 %v12102_v5  ;;  %6912 = vmatprep.subr.mxu0 %v12111_v44  ;;  %v13930_v5 = vld [vmem:[#allocation70_spill] sm:$0xff]  ;;  %v13933_v44 = vld [vmem:[#allocation32_spill] sm:$0xff] }
0x1d18   :  { %6982 = vmatpush1.msra.mxu1 %v12108_v3  ;;  %6913 = vmatpush1.msra.mxu0 %v12117_v52  ;;  %v13932_v3 = vld [vmem:[#allocation24_spill] sm:$0xff]  ;;  %v13935_v52 = vld [vmem:[#allocation38_spill] sm:$0xff] }
0x1d19   :  { %6983 = vmatprep.subr.mxu1 %v12114_v13  ;;  %6914 = vmatprep.subr.mxu0 %v13858_v31  ;;  %v13934_v13 = vld [vmem:[#allocation30_spill] sm:$0xff]  ;;  %v13940_v31 = vld [vmem:[#allocation60_spill] sm:$0xff] }
0x1d1a   :  { %6984 = vmatpush1.msra.mxu1 %v12120_v25  ;;  %6915 = vmatpush1.msra.mxu0 %v13860_v43  ;;  %v13936_v25 = vld [vmem:[#allocation39_spill] sm:$0xff] }
0x1d1b   :  { %6985 = vmatprep.subr.mxu1 %v13859_v39  ;;  %6916 = vmatprep.subr.mxu0 %v12135_v26  ;;  %v13918_v26 = vld [vmem:[#allocation66_spill] sm:$0xff] }
0x1d1c   :  { %6986 = vmatpush1.msra.mxu1 %v13861_v27  ;;  %6917 = vmatpush1.msra.mxu0 %v12141_v57  ;;  %v13937_v57 = vmov 0.0   ;;  %v13941_v27 = vld [vmem:[#allocation61_spill] sm:$0xff] }
0x1d1d   :  { %6987 = vmatprep.subr.mxu1 %v12138_v8  ;;  %6918 = vmatprep.subr.mxu0 %v12147_v46  ;;  %v13917_v8 = vld [vmem:[#allocation31_spill] sm:$0xff]  ;;  %v12516_v46 = vld [vmem:[#allocation15 + $0x78] sm:$0xff] }
0x1d1e   :  { %6988 = vmatpush1.msra.mxu1 %v12144_v20  ;;  %6919 = vmatpush1.msra.mxu0 %v12242_v63  ;;  %v13938_v20 = vld [vmem:[#allocation58_spill] sm:$0xff]  ;;  %v5522_v63 = vadd.f32 %v13941_v27, %v11870_v10 }
0x1d1f   :  { %6989 = vmatprep.subr.mxu1 %v12150_v30  ;;  %6920 = vmatprep.subr.mxu0 %v12248_v18  ;;  %v13939_v30 = vld [vmem:[#allocation48_spill] sm:$0xff] }
0x1d20   :  { %6990 = vmatpush1.msra.mxu1 %v12245_v23  ;;  %6921 = vmatpush1.msra.mxu0 %v12254_v34  ;;  %v5520_v39 = vadd.f32 %v13940_v31, %v13939_v30 }
0x1d21   :  { %6991 = vmatprep.subr.mxu1 %v12251_v28  ;;  %6922 = vmatprep.subr.mxu0 %v12260_v24 }
0x1d22   :  { %6992 = vmatpush1.msra.mxu1 %v12257_v29  ;;  %6923 = vmatpush1.msra.mxu0 %v12266_v60  ;;  %v13942_v60 = vld [vmem:[#allocation74_spill] sm:$0xff] }
0x1d23   :  { %6993 = vmatprep.subr.mxu1 %v12263_v9  ;;  %6924 = vmatprep.subr.mxu0 %v12272_v19 }
0x1d24   :  { %6994 = vmatpush1.msra.mxu1 %v12269_v56  ;;  %6925 = vmatpush1.msra.mxu0 %v12278_v51  ;;  %v5635_v56 = vadd.f32 %v13942_v60, %v13813_v59  ;;  %v630_v60 = vld [vmem:[#allocation15 + $0x70] sm:$0xff] }
0x1d25   :  { %6995 = vmatprep.subr.mxu1 %v12275_v47  ;;  %6926 = vmatprep.subr.mxu0 %v13917_v8  ;;  %v13943_v47 = vld [vmem:[#allocation73_spill] sm:$0xff] }
0x1d26   :  { %6996 = vmatpush1.msra.mxu1 %v13918_v26  ;;  %6927 = vmatpush1.msra.mxu0 %v13919_v53  ;;  %v5633_v51 = vadd.f32 %v13943_v47, %v11885_v7  ;;  %v7118_v26 = vpop.xlane.xlu1 %7117 }
0x1d27   :  { %6997 = vmatprep.subr.mxu1 %v13920_v40  ;;  %6928 = vmatprep.subr.mxu0 %v13921_v12  ;;  %v7088_v40 = vpop.xlane.xlu0 %7087 }
0x1d28   :  { %6998 = vmatpush1.msra.mxu1 %v13922_v37  ;;  %6929 = vmatpush1.msra.mxu0 %v13923_v15 }
0x1d29   :  { %6999 = vmatprep.subr.mxu1 %v13924_v35  ;;  %6930 = vmatprep.subr.mxu0 %v13925_v17 }
0x1d2a   :  { %7000 = vmatpush1.msra.mxu1 %v13926_v38  ;;  %6931 = vmatpush1.msra.mxu0 %v13927_v55  ;;  %v7090_v15 = vpop.xlane.xlu1 %7089  ;;  %v13944_v55 = vld [vmem:[#allocation52_spill] sm:$0xff] }
0x1d2b   :  { %7001 = vmatprep.subr.mxu1 %v13928_v1  ;;  %6932 = vmatprep.subr.mxu0 %v13929_v11  ;;  %v7120_v35 = vpop.xlane.xlu0 %7119  ;;  %v7155_v1 = vsub.f32 %v13944_v55, %v7099_v21  ;;  %v12532_v11 = vmul.f32 0.03125, %v7086_v54  ;;  %v624_v54 = vld [vmem:[#allocation15 + $0x40] sm:$0xff] }
0x1d2c   :  { %7002 = vmatpush1.msra.mxu1 %v13930_v5  ;;  %6933 = vmatpush1.msra.mxu0 %v13931_v2 }
0x1d2d   :  { %7003 = vmatprep.subr.mxu1 %v13932_v3  ;;  %6934 = vmatprep.subr.mxu0 %v13933_v44  ;;  %v12534_v3 = vmul.f32 0.03125, %v7088_v40 }
0x1d2e   :  { %7004 = vmatpush1.msra.mxu1 %v13934_v13  ;;  %6935 = vmatpush1.msra.mxu0 %v13935_v52  ;;  %v7122_v38 = vpop.xlane.xlu1 %7121  ;;  %v7140_v13 = vmul.f32 %v12532_v11, %v12532_v11  ;;  %v7132_v52 = vmul.f32 0.03125, %v7118_v26 }
0x1d2f   :  { %7005 = vmatprep.subr.mxu1 %v13936_v25  ;;  %6968 = vmatprep.mubr.f32.mxu0 %v13937_v57  ;;  %v7092_v5 = vpop.xlane.xlu0 %7091  ;;  %v7133_v25 = vmul.f32 0.03125, %v7120_v35  ;;  %v7141_v27 = vmul.f32 %v12534_v3, %v12534_v3  ;;  %v13946_v35 = vld [vmem:[#allocation35_spill] sm:$0xff] }
0x1d30   :  { %7006 = vmatpush1.msra.mxu1 %v13938_v20  ;;  %7039 = vmatprep.mubr.f32.mxu1 %v13937_v57  ;;  %v12543_v20 = vmul.f32 0.03125, %v7090_v15 }
0x1d31   :  { %7466 = vmatprep.subr.mxu0 %v12516_v46 }
0x1d33   :  { %v7124_v31 = vpop.xlane.xlu0 %7123 }
0x1d98   :  { %v7094_v44 = vpop.xlane.xlu1 %7093 }
0x1dcf   :  { %v6795_v43 = vpop.f32.mrf.mxu0 }
0x1dd0   :  { %v6871_v23 = vadd.f32 %v6795_v43, %v5520_v39  ;;  %v6866_v29 = vpop.f32.mrf.mxu1 }
0x1dd1   :  { %v6797_v18 = vpop.f32.mrf.mxu0  ;;  %v6873_v48 = vadd.f32 %v6866_v29, %v5633_v51  ;;  %v7149_v29 = vsub.f32 %v7133_v25, %v7141_v27  ;;  %v13948_v25 = vld [vmem:[#allocation72_spill] sm:$0xff] }
0x1dd2   :  { %v7433_v28 = vmul.f32 -1.442695, %v6871_v23  ;;  %v6872_v34 = vadd.f32 %v6797_v18, %v5522_v63  ;;  %v6868_v9 = vpop.f32.mrf.mxu1  ;;  %v12548_v63 = vmul.f32 0.03125, %v7092_v5  ;;  %v12553_v23 = vld [vmem:[%s12646_s13] ss:$0 sm:$0xff]  ;;  %v7148_v18 = vsub.f32 %v7132_v52, %v7140_v13  ;;  %v618_v5 = vld [vmem:[#allocation15 + $0x10] sm:$0xff] }
0x1dd3   :  { %v6874_v19 = vadd.f32 %v6868_v9, %v5635_v56  ;;  %v7126_v9 = vpop.xlane.xlu1 %7125  ;;  %v7142_v56 = vmul.f32 %v12543_v20, %v12543_v20  ;;  %v7165_v42 = vadd.f32 1e-05, %v7149_v29  ;;  %v13947_v13 = vld [vmem:[#allocation75_spill] sm:$0xff] }
0x1dd4   :  { %8003 = vpow2.f32 %v7433_v28  ;;  %v7434_v24 = vmul.f32 -1.442695, %v6872_v34  ;;  %v7134_v28 = vmul.f32 0.03125, %v7122_v38  ;;  %v7143_v51 = vmul.f32 %v12548_v63, %v12548_v63  ;;  %v619_v38 = vld [vmem:[#allocation15 + $0x18] sm:$0xff] }
0x1dd5   :  { %v7435_v41 = vmul.f32 -1.442695, %v6874_v19  ;;  %v12559_v19 = vmul.f32 0.03125, %v7094_v44  ;;  %v7136_v21 = vmul.f32 0.03125, %v7126_v9  ;;  %v7158_v52 = vsub.f32 %v13947_v13, %v12543_v20 }
0x1dd6   :  { %8005 = vpow2.f32 %v7434_v24  ;;  %v7135_v24 = vmul.f32 0.03125, %v7124_v31 }
0x1dd7   :  { %8007 = vtanh.f32 %v6873_v48  ;;  %v7164_v48 = vadd.f32 1e-05, %v7148_v18  ;;  %v7144_v62 = vmul.f32 %v12559_v19, %v12559_v19 }
0x1dd8   :  { %8009 = vpow2.f32 %v7435_v41  ;;  %v7150_v41 = vsub.f32 %v7134_v28, %v7142_v56  ;;  %v7160_v28 = vsub.f32 %v12445_v14, %v12559_v19 }
0x1dda   :  { %v7166_v22 = vadd.f32 1e-05, %v7150_v41 }
0x1de1   :  { %v8004_v33 = vpop.eup %8003 }
0x1de2   :  { %v6878_v32 = vadd.f32 1.0, %v8004_v33 }
0x1de3   :  { %v8006_v4 = vpop.eup %8005 }
0x1de4   :  { %8011 = vrcp.f32 %v6878_v32  ;;  %v6884_v58 = vadd.f32 1.0, %v8006_v4  ;;  %v8008_v36 = vpop.eup %8007  ;;  %v7151_v32 = vsub.f32 %v7135_v24, %v7143_v51  ;;  %v628_v4 = vld [vmem:[#allocation15 + $0x60] sm:$0xff] }
0x1de5   :  { %v8010_v61 = vpop.eup %8009 }
0x1de6   :  { %8013 = vrcp.f32 %v6884_v58  ;;  %v6891_v53 = vadd.f32 1.0, %v8010_v61  ;;  %v7152_v58 = vsub.f32 %v7136_v21, %v7144_v62  ;;  %v7167_v16 = vadd.f32 1e-05, %v7151_v32 }
0x1de7   :  { %8015 = vrsqrt.f32 %v7163_v50  ;;  %v626_v50 = vld [vmem:[#allocation15 + $0x50] sm:$0xff] }
0x1de8   :  { %8017 = vrcp.f32 %v6891_v53  ;;  %v7168_v61 = vadd.f32 1e-05, %v7152_v58  ;;  %v620_v53 = vld [vmem:[#allocation15 + $0x20] sm:$0xff] }
0x1df1   :  { %v8012_v6 = vpop.eup %8011 }
0x1df2   :  { %v6895_v45 = vmul.f32 %v8012_v6, %v8008_v36  ;;  %v625_v36 = vld [vmem:[#allocation15 + $0x48] sm:$0xff]  ;;  %v623_v6 = vld [vmem:[#allocation15 + $0x38] sm:$0xff] }
0x1df3   :  { %v8014_v8 = vpop.eup %8013 }
0x1df4   :  { %v6894_v12 = vmul.f32 %v8014_v8, %v12442_v49  ;;  %v8016_v17 = vpop.eup %8015  ;;  %v12539_v49 = vld [vmem:[%s12645_s12] ss:$0 sm:$0xff]  ;;  %v621_v8 = vld [vmem:[#allocation15 + $0x28] sm:$0xff] }
0x1df5   :  { %v7179_v2 = vmul.f32 %v8016_v17, %v7155_v1  ;;  %v8018_v57 = vpop.eup %8017  ;;  %v7157_v17 = vsub.f32 %v13946_v35, %v12534_v3 }
0x1df6   :  { %v12528_v37 = vadd.f32 %v6895_v45, %v6894_v12  ;;  %v622_v45 = vld [vmem:[#allocation15 + $0x30] sm:$0xff] }
0x1df7   :  { %v7193_v39 = vmul.f32 %v12539_v49, %v7179_v2  ;;  %v13945_v12 = vld [vmem:[#allocation76_spill] sm:$0xff] }
0x1df8   :  { %8019 = vtanh.f32 %v12528_v37  ;;  %v7156_v15 = vsub.f32 %v13945_v12, %v12532_v11  ;;  %v7159_v11 = vsub.f32 %v13948_v25, %v12548_v63 }
0x1df9   :  { %v7207_v47 = vadd.f32 %v12553_v23, %v7193_v39  ;;  %8021 = vrsqrt.f32 %v7164_v48 }
0x1dfa   :  { %8023 = vrsqrt.f32 %v7165_v42 }
0x1dfb   :  { %8025 = vrsqrt.f32 %v7166_v22  ;;  %v13949_v22 = vld [vmem:[#allocation64_spill] sm:$0xff] }
0x1dfc   :  { %8027 = vrsqrt.f32 %v7167_v16  ;;  %v5526_v58 = vadd.f32 %v13949_v22, %v13939_v30 }
0x1dfd   :  { %8029 = vrsqrt.f32 %v7168_v61 }
0x1e05   :  { %v8020_v43 = vpop.eup %8019 }
0x1e06   :  { %v12555_v34 = vmul.f32 %v8020_v43, %v8018_v57  ;;  %v8022_v26 = vpop.eup %8021  ;;  %v617_v57 = vld [vmem:[#allocation15 + $0x8] sm:$0xff]  ;;  %v616_v43 = vld [vmem:[#allocation15] sm:$0xff] }
0x1e07   :  { %v8024_v40 = vpop.eup %8023  ;;  %v7180_v55 = vmul.f32 %v8022_v26, %v7156_v15  ;;  %v13952_v15 = vld [vmem:[#allocation43_spill] sm:$0xff] }
0x1e08   :  { %7095 = vadd.xlane.f32.xlu0 %v12555_v34  ;;  %6969 = vmatmul.mubr.f32.vlgmr.msra.gmra.mxu0 %v12555_v34  ;;  %v7113_v33 = vmul.f32 %v12555_v34, %v12555_v34  ;;  %v8026_v1 = vpop.eup %8025  ;;  %v7181_v2 = vmul.f32 %v8024_v40, %v7157_v17  ;;  %v5639_v30 = vadd.f32 %v13952_v15, %v11885_v7 }
0x1e09   :  { %7040 = vmatmul.mubr.f32.vlgmr.msra.gmra.mxu1 %v12555_v34  ;;  %7467 = vmatpush3.msra.mxu0 %v12516_v46  ;;  %v627_v46 = vld [vmem:[#allocation15 + $0x58] sm:$0xff]  ;;  %v8028_v44 = vpop.eup %8027  ;;  %v7194_v3 = vmul.f32 %v12539_v49, %v7180_v55  ;;  %v7182_v31 = vmul.f32 %v8026_v1, %v7158_v52 }
0x1e0a   :  { %7468 = vmatprep.subr.mxu0 %v630_v60  ;;  %7498 = vmatprep.mubr.f32.mxu0 %v7207_v47  ;;  %v8030_v39 = vpop.eup %8029  ;;  %v7195_v27 = vmul.f32 %v12539_v49, %v7181_v2  ;;  %v7183_v18 = vmul.f32 %v8028_v44, %v7159_v11 }
0x1e0b   :  { %7469 = vmatpush3.msra.mxu0 %v630_v60  ;;  %v7208_v20 = vadd.f32 %v12553_v23, %v7194_v3  ;;  %v7196_v63 = vmul.f32 %v12539_v49, %v7182_v31  ;;  %v7184_v29 = vmul.f32 %v8030_v39, %v7160_v28 }
0x1e0c   :  { %7470 = vmatprep.subr.mxu0 %v629_v0  ;;  %7127 = vadd.xlane.f32.xlu0 %v7113_v33  ;;  %v7209_v24 = vadd.f32 %v12553_v23, %v7195_v27  ;;  %v7197_v9 = vmul.f32 %v12539_v49, %v7183_v18 }
0x1e0d   :  { %7471 = vmatpush3.msra.mxu0 %v629_v0  ;;  %v7210_v60 = vadd.f32 %v12553_v23, %v7196_v63  ;;  %v7198_v56 = vmul.f32 %v12539_v49, %v7184_v29 }
0x1e0e   :  { %7472 = vmatprep.subr.mxu0 %v628_v4  ;;  %v7211_v14 = vadd.f32 %v12553_v23, %v7197_v9 }
0x1e0f   :  { %7473 = vmatpush3.msra.mxu0 %v628_v4  ;;  %v7212_v19 = vadd.f32 %v12553_v23, %v7198_v56 }
0x1e10   :  { %7474 = vmatprep.subr.mxu0 %v627_v46 }
0x1e11   :  { %7475 = vmatpush3.msra.mxu0 %v627_v46 }
0x1e12   :  { %7476 = vmatprep.subr.mxu0 %v626_v50 }
0x1e13   :  { %7477 = vmatpush3.msra.mxu0 %v626_v50  ;;  %v13950_v50 = vld [vmem:[#allocation51_spill] sm:$0xff] }
0x1e14   :  { %7478 = vmatprep.subr.mxu0 %v625_v36 }
0x1e15   :  { %7479 = vmatpush3.msra.mxu0 %v625_v36  ;;  %v5528_v36 = vadd.f32 %v13950_v50, %v11870_v10 }
0x1e16   :  { %7480 = vmatprep.subr.mxu0 %v624_v54 }
0x1e17   :  { %7481 = vmatpush3.msra.mxu0 %v624_v54 }
0x1e18   :  { %7482 = vmatprep.subr.mxu0 %v623_v6 }
0x1e19   :  { %7483 = vmatpush3.msra.mxu0 %v623_v6 }
0x1e1a   :  { %7484 = vmatprep.subr.mxu0 %v622_v45 }
0x1e1b   :  { %7485 = vmatpush3.msra.mxu0 %v622_v45 }
0x1e1c   :  { %7486 = vmatprep.subr.mxu0 %v621_v8 }
0x1e1d   :  { %7487 = vmatpush3.msra.mxu0 %v621_v8 }
0x1e1e   :  { %7488 = vmatprep.subr.mxu0 %v620_v53 }
0x1e1f   :  { %7489 = vmatpush3.msra.mxu0 %v620_v53  ;;  %v13951_v53 = vld [vmem:[#allocation50_spill] sm:$0xff] }
0x1e20   :  { %7490 = vmatprep.subr.mxu0 %v619_v38  ;;  %v5641_v40 = vadd.f32 %v13951_v53, %v13813_v59 }
0x1e21   :  { %7491 = vmatpush3.msra.mxu0 %v619_v38 }
0x1e22   :  { %7492 = vmatprep.subr.mxu0 %v618_v5 }
0x1e23   :  { %7493 = vmatpush3.msra.mxu0 %v618_v5  ;;  %v7441_v5 = vld [vmem:[%s12648_s15] ss:$0 sm:$0xff] }
0x1e24   :  { %7494 = vmatprep.subr.mxu0 %v617_v57 }
0x1e25   :  { %7495 = vmatpush3.msra.mxu0 %v617_v57 }
0x1e26   :  { %7496 = vmatprep.subr.mxu0 %v616_v43 }
0x1e27   :  { %7497 = vmatpush3.msra.mxu0 %v616_v43 }
0x1e28   :  { %7499 = vmatmul.mubr.f32.vlgmr.msra.gmra.mxu0 %v7208_v20 }
0x1e29   :  { %7501 = vmatprep.mubr.f32.mxu0 %v7209_v24 }
0x1e2c   :  { %7502 = vmatmul.mubr.f32.gmra.mxu0 %v7210_v60 }
0x1e2d   :  { %7504 = vmatprep.mubr.f32.mxu0 %v7211_v14 }
0x1e30   :  { %7505 = vmatmul.mubr.f32.gmra.mxu0 %v7212_v19 }
0x1e91   :  { %v7096_v47 = vpop.xlane.xlu0 %7095 }
0x1e92   :  { %v7105_v51 = vmul.f32 0.03125, %v7096_v47 }
0x1e94   :  { %v7145_v48 = vmul.f32 %v7105_v51, %v7105_v51  ;;  %v7161_v42 = vsub.f32 %v12555_v34, %v7105_v51 }
0x1e95   :  { %v7128_v0 = vpop.xlane.xlu0 %7127 }
0x1e96   :  { %v7137_v41 = vmul.f32 0.03125, %v7128_v0 }
0x1e98   :  { %v7153_v21 = vsub.f32 %v7137_v41, %v7145_v48 }
0x1e9a   :  { %v7169_v33 = vadd.f32 1e-05, %v7153_v21 }
0x1e9c   :  { %8031 = vrsqrt.f32 %v7169_v33 }
0x1ea9   :  { %v8032_v32 = vpop.eup %8031 }
0x1eaa   :  { %v7185_v4 = vmul.f32 %v8032_v32, %v7161_v42 }
0x1eac   :  { %v7199_v62 = vmul.f32 %v12539_v49, %v7185_v4 }
0x1eae   :  { %v7213_v46 = vadd.f32 %v12553_v23, %v7199_v62 }
0x1eb0   :  { %7507 = vmatprep.mubr.f32.mxu0 %v7213_v46 }
0x1ec8   :  { %v6970_v16 = vpop.f32.mrf.mxu0 }
0x1ec9   :  { %v7046_v61 = vadd.f32 %v6970_v16, %v5526_v58  ;;  %v7041_v34 = vpop.f32.mrf.mxu1 }
0x1eca   :  { %v6972_v54 = vpop.f32.mrf.mxu0  ;;  %v7048_v35 = vadd.f32 %v7041_v34, %v5639_v30 }
0x1ecb   :  { %v7436_v6 = vmul.f32 -1.442695, %v7046_v61  ;;  %v7047_v45 = vadd.f32 %v6972_v54, %v5528_v36  ;;  %v7043_v26 = vpop.f32.mrf.mxu1 }
0x1ecc   :  { %v7049_v12 = vadd.f32 %v7043_v26, %v5641_v40 }
0x1ecd   :  { %8033 = vpow2.f32 %v7436_v6  ;;  %v7437_v8 = vmul.f32 -1.442695, %v7047_v45 }
0x1ece   :  { %v7438_v17 = vmul.f32 -1.442695, %v7049_v12 }
0x1ecf   :  { %8035 = vpow2.f32 %v7437_v8 }
0x1ed0   :  { %8037 = vtanh.f32 %v7048_v35 }
0x1ed1   :  { %8039 = vpow2.f32 %v7438_v17 }
0x1eda   :  { %v8034_v38 = vpop.eup %8033 }
0x1edb   :  { %v7053_v10 = vadd.f32 1.0, %v8034_v38 }
0x1edc   :  { %v8036_v55 = vpop.eup %8035 }
0x1edd   :  { %8041 = vrcp.f32 %v7053_v10  ;;  %v7059_v1 = vadd.f32 1.0, %v8036_v55  ;;  %v8038_v2 = vpop.eup %8037 }
0x1ede   :  { %v8040_v44 = vpop.eup %8039 }
0x1edf   :  { %8043 = vrcp.f32 %v7059_v1  ;;  %v7066_v3 = vadd.f32 1.0, %v8040_v44 }
0x1ee1   :  { %8045 = vrcp.f32 %v7066_v3 }
0x1ee8   :  { %v7500_v59 = vpop.f32.mrf.mxu0 }
0x1ee9   :  { %v7293_v13 = vadd.f32 %v7500_v59, %v7441_v5 }
0x1eea   :  { %v8042_v52 = vpop.eup %8041  ;;  %v7287_v7 = vpop.f32.mrf.mxu0 }
0x1eeb   :  { %v7070_v25 = vmul.f32 %v8042_v52, %v8038_v2  ;;  %7327 = vst [vmem:[%s12649_s16 + $0x8] sm:$0xff] %v7293_v13  ;;  %v7288_v11 = vadd.f32 %v7441_v5, %v7287_v7 }
0x1eec   :  { %v8044_v57 = vpop.eup %8043  ;;  %v7503_v31 = vpop.f32.mrf.mxu0 }
0x1eed   :  { %v7069_v39 = vmul.f32 %v8044_v57, %v12528_v37  ;;  %7326 = vst [vmem:[%s12649_s16] sm:$0xff] %v7288_v11  ;;  %v7303_v43 = vadd.f32 %v7503_v31, %v7441_v5 }
0x1eee   :  { %v7297_v27 = vpop.f32.mrf.mxu0  ;;  %v8046_v24 = vpop.eup %8045 }
0x1eef   :  { %7329 = vst [vmem:[%s12649_s16 + $0x18] sm:$0xff] %v7303_v43  ;;  %v7298_v18 = vadd.f32 %v7441_v5, %v7297_v27  ;;  %v7071_v28 = vadd.f32 %v7070_v25, %v7069_v39 }
0x1ef0   :  { %v7506_v20 = vpop.f32.mrf.mxu0 }
0x1ef1   :  { %7328 = vst [vmem:[%s12649_s16 + $0x10] sm:$0xff] %v7298_v18  ;;  %v7313_v63 = vadd.f32 %v7506_v20, %v7441_v5  ;;  %8047 = vtanh.f32 %v7071_v28 }
0x1ef2   :  { %v7307_v37 = vpop.f32.mrf.mxu0 }
0x1ef3   :  { %7331 = vst [vmem:[%s12649_s16 + $0x28] sm:$0xff] %v7313_v63  ;;  %v7308_v29 = vadd.f32 %v7441_v5, %v7307_v37 }
0x1ef5   :  { %7330 = vst [vmem:[%s12649_s16 + $0x20] sm:$0xff] %v7308_v29 }
0x1efe   :  { %v8048_v9 = vpop.eup %8047 }
0x1eff   :  { %v7073_v60 = vmul.f32 %v8048_v9, %v8046_v24 }
0x1f01   :  { %7097 = vadd.xlane.f32.xlu1 %v7073_v60  ;;  %v7114_v56 = vmul.f32 %v7073_v60, %v7073_v60 }
0x1f05   :  { %7129 = vadd.xlane.f32.xlu1 %v7114_v56 }
0x1f8a   :  { %v7098_v14 = vpop.xlane.xlu1 %7097 }
0x1f8b   :  { %v7106_v19 = vmul.f32 0.03125, %v7098_v14 }
0x1f8d   :  { %v7146_v51 = vmul.f32 %v7106_v19, %v7106_v19  ;;  %v7162_v21 = vsub.f32 %v7073_v60, %v7106_v19 }
0x1f8e   :  { %v7130_v47 = vpop.xlane.xlu1 %7129 }
0x1f8f   :  { %v7138_v0 = vmul.f32 0.03125, %v7130_v47 }
0x1f91   :  { %v7154_v48 = vsub.f32 %v7138_v0, %v7146_v51 }
0x1f93   :  { %v7170_v41 = vadd.f32 1e-05, %v7154_v48 }
0x1f95   :  { %8049 = vrsqrt.f32 %v7170_v41 }
0x1fa2   :  { %v8050_v33 = vpop.eup %8049 }
0x1fa3   :  { %v7186_v42 = vmul.f32 %v8050_v33, %v7162_v21 }
0x1fa5   :  { %v7200_v32 = vmul.f32 %v12539_v49, %v7186_v42 }
0x1fa7   :  { %v7214_v4 = vadd.f32 %v12553_v23, %v7200_v32 }
0x1fa9   :  { %7508 = vmatmul.mubr.f32.gmra.mxu0 %v7214_v4 }
0x2069   :  { %v7509_v62 = vpop.f32.mrf.mxu0 }
0x206a   :  { %v7323_v46 = vadd.f32 %v7509_v62, %v7441_v5 }
0x206b   :  { %v7317_v22 = vpop.f32.mrf.mxu0 }
0x206c   :  { %7333 = vst [vmem:[%s12649_s16 + $0x38] sm:$0xff] %v7323_v46  ;;  %v7318_v58 = vadd.f32 %v7441_v5, %v7317_v22 }
0x206e   :  { %7332 = vst [vmem:[%s12649_s16 + $0x30] sm:$0xff] %v7318_v58 }
0x206f   :  { %7338 = vsyncpa [#allocation5], 1 }
0x2070   :  { %7339 = vsyncpa [#allocation7], 1 }
0x2071   :  { %7340 = vsyncpa [#allocation10], 1 }
0x2072   :  { %7341 = vsyncpa [#allocation13], 1 }
0x2073   :  { %7342 = vsyncpa [#allocation16], 1 }

</bundles_post_ra>
